<compile_context>
chip_gen: v7x
topology: tpu7x:2x2x1
jax: 0.10.0
libtpu: 0.0.40
codegen_flags: <defaults>
</compile_context>

<pallas_src>
import numpy as np
import jax
import jax.numpy as jnp
from jax import lax
from jax.experimental import pallas as pl
from jax.experimental.pallas import tpu as pltpu


# ---------------------------------------------------------------------------
# Constant 0/1 selection / shift matrices (depend only on the batch tile TB)
# ---------------------------------------------------------------------------

def _selection_constants(tb):
    f = np.float32

    # conv1 lane-shift:  (x @ c1[d-1])[h, b*32+w] = x[h, b*32+w+d]   (zero past stripe end)
    c1 = np.zeros((2, tb * 32, tb * 32), f)
    for d in (1, 2):
        for b in range(tb):
            for w in range(32 - d):
                c1[d - 1, b * 32 + w + d, b * 32 + w] = 1.0

    # conv2 lane-shift on 15-wide stripes
    c2 = np.zeros((2, tb * 15, tb * 15), f)
    for d in (1, 2):
        for b in range(tb):
            for w in range(15 - d):
                c2[d - 1, b * 15 + w + d, b * 15 + w] = 1.0

    # pool1 row selectors: rows 2i / 2i+1 of each 32-row channel block -> 16 rows/channel
    re1 = np.zeros((2, 96, 192), f)
    for c in range(6):
        for i in range(16):
            re1[0, c * 16 + i, c * 32 + 2 * i] = 1.0
            re1[1, c * 16 + i, c * 32 + 2 * i + 1] = 1.0

    # pool1 column selectors: cols 2j / 2j+1 of each 32-wide batch stripe -> 15 cols
    ce1 = np.zeros((2, tb * 32, tb * 15), f)
    for b in range(tb):
        for j in range(15):
            ce1[0, b * 32 + 2 * j, b * 15 + j] = 1.0
            ce1[1, b * 32 + 2 * j + 1, b * 15 + j] = 1.0

    # pool2 row selectors: 16-row channel blocks -> 6 rows/channel
    re2 = np.zeros((2, 96, 256), f)
    for c in range(16):
        for i in range(6):
            re2[0, c * 6 + i, c * 16 + 2 * i] = 1.0
            re2[1, c * 6 + i, c * 16 + 2 * i + 1] = 1.0

    # pool2 column selectors: 15-wide stripes -> 6-wide stripes
    ce2 = np.zeros((2, tb * 15, tb * 6), f)
    for b in range(tb):
        for j in range(6):
            ce2[0, b * 15 + 2 * j, b * 6 + j] = 1.0
            ce2[1, b * 15 + 2 * j + 1, b * 6 + j] = 1.0

    # flatten gather:  (q @ g[j])[:, b] = q[:, b*6 + j]
    g = np.zeros((6, tb * 6, tb), f)
    for j in range(6):
        for b in range(tb):
            g[j, b * 6 + j, b] = 1.0

    # tap-offset masks used to bake the conv weights into per-di matmul operands
    m1 = np.zeros((3, 32, 32), f)       # m1[dj, h, h+dj] = 1
    for dj in range(3):
        for h in range(32 - dj):
            m1[dj, h, h + dj] = 1.0
    m2 = np.zeros((3, 16, 16), f)       # m2[dj, h, h+dj] = 1
    for dj in range(3):
        for h in range(16 - dj):
            m2[dj, h, h + dj] = 1.0

    return c1, c2, re1, ce1, re2, ce2, g, m1, m2


# ---------------------------------------------------------------------------
# The fused forward kernel: TB batch elements per grid step, everything on the MXU
# ---------------------------------------------------------------------------

def _net_kernel(x_ref, a1_ref, c1_ref, b1_ref, re1_ref, ce1_ref,
                a2_ref, c2_ref, b2_ref, re2_ref, ce2_ref,
                g_ref, w1_ref, fb1_ref, w2_ref, fb2_ref, w3_ref, fb3_ref,
                o_ref, acc1_s, p1r_s, acc2_s, qg_s):
    f32 = jnp.float32

    def mm(a, b):
        return jnp.dot(a, b, preferred_element_type=f32)

    x = x_ref[...]                                          # (32, TB*32)  [h, b*32+w]

    # ---- conv1 (1->6, 3x3) + bias + ReLU : 5 matmuls -----------------------
    # acc1[co*32+h, b*32+w] = b1[co] + sum_{dj,di} W1[co,dj,di] * x[h+dj, b*32+w+di]
    acc1_s[...] = b1_ref[...] + mm(a1_ref[0], x)
    for d in (1, 2):
        acc1_s[...] += mm(a1_ref[d], mm(x, c1_ref[d - 1]))
    acc1_s[...] = jnp.maximum(acc1_s[...], 0.0)

    # ---- 2x2 max-pool #1 : 4 selection matmuls for all 6 channels ----------
    p1r_s[...] = jnp.maximum(mm(re1_ref[0], acc1_s[...]),
                             mm(re1_ref[1], acc1_s[...]))   # (96, TB*32)
    p1 = jnp.maximum(mm(p1r_s[...], ce1_ref[0]),
                     mm(p1r_s[...], ce1_ref[1]))            # (96, TB*15)

    # ---- conv2 (6->16, 3x3) + bias + ReLU : 5 matmuls (ci-contraction on MXU)
    acc2_s[...] = b2_ref[...] + mm(a2_ref[0], p1)
    for d in (1, 2):
        acc2_s[...] += mm(a2_ref[d], mm(p1, c2_ref[d - 1]))
    acc2_s[...] = jnp.maximum(acc2_s[...], 0.0)             # (256, TB*15)

    # ---- 2x2 max-pool #2 : 4 selection matmuls for all 16 channels ---------
    p2r = jnp.maximum(mm(re2_ref[0], acc2_s[...]),
                      mm(re2_ref[1], acc2_s[...]))          # (96, TB*15)
    q = jnp.maximum(mm(p2r, ce2_ref[0]), mm(p2r, ce2_ref[1]))  # (96, TB*6)

    # ---- flatten in PyTorch NCHW .view order: qg[j*96 + c*6 + i, b] = p2[b,c,i,j]
    for j in range(6):
        qg_s[j * 96:(j + 1) * 96, :] = mm(q, g_ref[j])      # (96, TB) each

    # ---- fc1 (single K=576 matmul) + ReLU, fc2 + ReLU, fc3 ------------------
    h1 = jnp.maximum(mm(w1_ref[...], qg_s[...]) + fb1_ref[...], 0.0)   # (120, TB)
    h2 = jnp.maximum(mm(w2_ref[...], h1) + fb2_ref[...], 0.0)          # (84, TB)
    o_ref[0] = (mm(w3_ref[...], h2) + fb3_ref[...]).astype(o_ref.dtype)  # (10, TB)


# ---------------------------------------------------------------------------
# Wrapper: weight re-layout + a single pallas_call over batch tiles
# ---------------------------------------------------------------------------

def net_forward(params, x_nchw, tb=8):
    """Forward pass of Net for NCHW input (B, 1, 32, 32) -> (B, 10) logits."""
    B = x_nchw.shape[0]
    while B % tb:                      # fall back to a smaller batch tile if needed
        tb //= 2
    nsteps = B // tb

    c1, c2, re1, ce1, re2, ce2, g, m1, m2 = _selection_constants(tb)

    hp = lax.Precision.HIGHEST
    # Per-di conv operands with the row (dj) offsets baked in:
    #   a1[di, co*32+h, h+dj] = W1[co, 0, dj, di],  a2[di, co*16+h, ci*16+h+dj] = W2[co, ci, dj, di]
    w1c = params["conv1_w"][:, 0]                                       # (6,3,3) [co,dj,di]
    a1 = jnp.einsum("cji,jhr->ichr", w1c, jnp.asarray(m1),
                    precision=hp).reshape(3, 192, 32)
    a2 = jnp.einsum("kcji,jhr->ikhcr", params["conv2_w"], jnp.asarray(m2),
                    precision=hp).reshape(3, 256, 96)
    b1r = jnp.repeat(params["conv1_b"], 32).reshape(192, 1)
    b2r = jnp.repeat(params["conv2_b"], 16).reshape(256, 1)
    # fc1 weight permuted to the (j, c, i) row order produced in qg_s.
    w1cat = params["fc1_w"].reshape(120, 16, 6, 6).transpose(0, 3, 1, 2).reshape(120, 576)
    fb1 = params["fc1_b"].reshape(120, 1)
    fb2 = params["fc2_b"].reshape(84, 1)
    fb3 = params["fc3_b"].reshape(10, 1)

    # Lane-stacked input slab: xs[h, b*32 + w] = x[b, 0, h, w]
    xs = jnp.transpose(x_nchw[:, 0, :, :], (1, 0, 2)).reshape(32, B * 32)

    def const(shape):
        nd = len(shape)
        return pl.BlockSpec(shape, lambda i, _nd=nd: (0,) * _nd)

    out = pl.pallas_call(
        _net_kernel,
        out_shape=jax.ShapeDtypeStruct((nsteps, 10, tb), jnp.float32),
        grid=(nsteps,),
        in_specs=[
            pl.BlockSpec((32, tb * 32), lambda i: (0, i)),   # x slab (per batch tile)
            const((3, 192, 32)),                             # a1
            const((2, tb * 32, tb * 32)),                    # c1 lane shifts
            const((192, 1)),                                 # conv1 bias rows
            const((2, 96, 192)),                             # pool1 row selectors
            const((2, tb * 32, tb * 15)),                    # pool1 col selectors
            const((3, 256, 96)),                             # a2
            const((2, tb * 15, tb * 15)),                    # c2 lane shifts
            const((256, 1)),                                 # conv2 bias rows
            const((2, 96, 256)),                             # pool2 row selectors
            const((2, tb * 15, tb * 6)),                     # pool2 col selectors
            const((6, tb * 6, tb)),                          # flatten gather
            const((120, 576)),                               # fc1 weight (permuted)
            const((120, 1)),                                 # fc1 bias
            const((84, 120)),                                # fc2 weight
            const((84, 1)),                                  # fc2 bias
            const((10, 84)),                                 # fc3 weight
            const((10, 1)),                                  # fc3 bias
        ],
        out_specs=pl.BlockSpec((1, 10, tb), lambda i: (i, 0, 0)),
        scratch_shapes=[
            pltpu.VMEM((192, tb * 32), jnp.float32),   # conv1 accumulator (relu'd in place)
            pltpu.VMEM((96, tb * 32), jnp.float32),    # pool1 row-pooled slab
            pltpu.VMEM((256, tb * 15), jnp.float32),   # conv2 accumulator
            pltpu.VMEM((576, tb), jnp.float32),        # flattened features (NCHW order)
        ],
        compiler_params=pltpu.CompilerParams(
            dimension_semantics=("parallel",)),        # v7x: batch tiles across 2 TCs
    )(xs, a1, jnp.asarray(c1), b1r, jnp.asarray(re1), jnp.asarray(ce1),
      a2, jnp.asarray(c2), b2r, jnp.asarray(re2), jnp.asarray(ce2),
      jnp.asarray(g), w1cat, fb1, params["fc2_w"], fb2, params["fc3_w"], fb3)

    return jnp.transpose(out, (0, 2, 1)).reshape(B, 10)


# ---------------------------------------------------------------------------
# Parameters (deterministic, PyTorch-default-like uniform(-1/sqrt(fan_in), +))
# ---------------------------------------------------------------------------

def init_params(key):
    def uniform(k, shape, fan_in):
        bound = 1.0 / float(fan_in) ** 0.5
        return jax.random.uniform(k, shape, jnp.float32, -bound, bound)

    ks = jax.random.split(key, 10)
    return {
        "conv1_w": uniform(ks[0], (6, 1, 3, 3), 1 * 3 * 3),
        "conv1_b": uniform(ks[1], (6,), 1 * 3 * 3),
        "conv2_w": uniform(ks[2], (16, 6, 3, 3), 6 * 3 * 3),
        "conv2_b": uniform(ks[3], (16,), 6 * 3 * 3),
        "fc1_w": uniform(ks[4], (120, 16 * 6 * 6), 16 * 6 * 6),
        "fc1_b": uniform(ks[5], (120,), 16 * 6 * 6),
        "fc2_w": uniform(ks[6], (84, 120), 120),
        "fc2_b": uniform(ks[7], (84,), 120),
        "fc3_w": uniform(ks[8], (10, 84), 84),
        "fc3_b": uniform(ks[9], (10,), 84),
    }


# ---------------------------------------------------------------------------
# Pure-XLA reference of the same forward pass (numerical sanity check)
# ---------------------------------------------------------------------------

def reference_forward(params, x):
    hp = jax.lax.Precision.HIGHEST
    y = lax.conv_general_dilated(
        x, params["conv1_w"], (1, 1), "VALID",
        dimension_numbers=("NCHW", "OIHW", "NCHW"), precision=hp)
    y = jnp.maximum(y + params["conv1_b"].reshape(1, -1, 1, 1), 0.0)
    y = lax.reduce_window(y, -jnp.inf, lax.max, (1, 1, 2, 2), (1, 1, 2, 2), "VALID")
    y = lax.conv_general_dilated(
        y, params["conv2_w"], (1, 1), "VALID",
        dimension_numbers=("NCHW", "OIHW", "NCHW"), precision=hp)
    y = jnp.maximum(y + params["conv2_b"].reshape(1, -1, 1, 1), 0.0)
    y = lax.reduce_window(y, -jnp.inf, lax.max, (1, 1, 2, 2), (1, 1, 2, 2), "VALID")
    y = y.reshape(y.shape[0], -1)                               # (B, 576) NCHW order
    y = jnp.maximum(jnp.dot(y, params["fc1_w"].T, precision=hp) + params["fc1_b"], 0.0)
    y = jnp.maximum(jnp.dot(y, params["fc2_w"].T, precision=hp) + params["fc2_b"], 0.0)
    y = jnp.dot(y, params["fc3_w"].T, precision=hp) + params["fc3_b"]
    return y


if __name__ == "__main__":
    key = jax.random.PRNGKey(0)
    pkey, xkey = jax.random.split(key)
    params = init_params(pkey)
    # Input shape implied by fc1 = Linear(16*6*6, 120): (B, 1, 32, 32).
    # B=16 -> two grid steps of 8 images each (even load for v7x's two TensorCores).
    x = jax.random.normal(xkey, (16, 1, 32, 32), jnp.float32)

    out = jax.block_until_ready(jax.jit(net_forward)(params, x))
    assert out.shape == (16, 10) and out.dtype == jnp.float32

    ref = jax.block_until_ready(jax.jit(reference_forward)(params, x))
    max_err = float(jnp.max(jnp.abs(out - ref)))
    assert max_err < 2e-2, f"kernel/reference mismatch: max abs err = {max_err}"

    print("KERNEL_OK")
</pallas_src>

<mosaic_0001>
module attributes {stable_mosaic.version = 11 : i64} {
  func.func @_net_kernel(%arg0: i32, %arg1: memref<32x256xf32, #tpu.memory_space<vmem>>, %arg2: memref<3x192x32xf32, #tpu.memory_space<vmem>>, %arg3: memref<2x256x256xf32, #tpu.memory_space<vmem>>, %arg4: memref<192x1xf32, #tpu.memory_space<vmem>>, %arg5: memref<2x96x192xf32, #tpu.memory_space<vmem>>, %arg6: memref<2x256x120xf32, #tpu.memory_space<vmem>>, %arg7: memref<3x256x96xf32, #tpu.memory_space<vmem>>, %arg8: memref<2x120x120xf32, #tpu.memory_space<vmem>>, %arg9: memref<256x1xf32, #tpu.memory_space<vmem>>, %arg10: memref<2x96x256xf32, #tpu.memory_space<vmem>>, %arg11: memref<2x120x48xf32, #tpu.memory_space<vmem>>, %arg12: memref<6x48x8xf32, #tpu.memory_space<vmem>>, %arg13: memref<120x576xf32, #tpu.memory_space<vmem>>, %arg14: memref<120x1xf32, #tpu.memory_space<vmem>>, %arg15: memref<84x120xf32, #tpu.memory_space<vmem>>, %arg16: memref<84x1xf32, #tpu.memory_space<vmem>>, %arg17: memref<10x84xf32, #tpu.memory_space<vmem>>, %arg18: memref<10x1xf32, #tpu.memory_space<vmem>>, %arg19: memref<1x10x8xf32, #tpu.memory_space<vmem>>, %arg20: memref<192x256xf32, #tpu.memory_space<vmem>>, %arg21: memref<96x256xf32, #tpu.memory_space<vmem>>, %arg22: memref<256x120xf32, #tpu.memory_space<vmem>>, %arg23: memref<576x8xf32, #tpu.memory_space<vmem>>) attributes {dimension_semantics = [#tpu.dimension_semantics<parallel>], iteration_bounds = array<i64: 2>, scalar_prefetch = 0 : i64, scratch_operands = 4 : i64, tpu.core_type = #tpu.core_type<tc>, window_params = [{transform_indices = @transform_0, window_bounds = array<i64: 32, 256>}, {pipeline_mode = #tpu.pipeline_mode<synchronous>, transform_indices = @transform_1, window_bounds = array<i64: 3, 192, 32>}, {pipeline_mode = #tpu.pipeline_mode<synchronous>, transform_indices = @transform_2, window_bounds = array<i64: 2, 256, 256>}, {pipeline_mode = #tpu.pipeline_mode<synchronous>, transform_indices = @transform_3, window_bounds = array<i64: 192, 1>}, {pipeline_mode = #tpu.pipeline_mode<synchronous>, transform_indices = @transform_4, window_bounds = array<i64: 2, 96, 192>}, {pipeline_mode = #tpu.pipeline_mode<synchronous>, transform_indices = @transform_5, window_bounds = array<i64: 2, 256, 120>}, {pipeline_mode = #tpu.pipeline_mode<synchronous>, transform_indices = @transform_6, window_bounds = array<i64: 3, 256, 96>}, {pipeline_mode = #tpu.pipeline_mode<synchronous>, transform_indices = @transform_7, window_bounds = array<i64: 2, 120, 120>}, {pipeline_mode = #tpu.pipeline_mode<synchronous>, transform_indices = @transform_8, window_bounds = array<i64: 256, 1>}, {pipeline_mode = #tpu.pipeline_mode<synchronous>, transform_indices = @transform_9, window_bounds = array<i64: 2, 96, 256>}, {pipeline_mode = #tpu.pipeline_mode<synchronous>, transform_indices = @transform_10, window_bounds = array<i64: 2, 120, 48>}, {pipeline_mode = #tpu.pipeline_mode<synchronous>, transform_indices = @transform_11, window_bounds = array<i64: 6, 48, 8>}, {pipeline_mode = #tpu.pipeline_mode<synchronous>, transform_indices = @transform_12, window_bounds = array<i64: 120, 576>}, {pipeline_mode = #tpu.pipeline_mode<synchronous>, transform_indices = @transform_13, window_bounds = array<i64: 120, 1>}, {pipeline_mode = #tpu.pipeline_mode<synchronous>, transform_indices = @transform_14, window_bounds = array<i64: 84, 120>}, {pipeline_mode = #tpu.pipeline_mode<synchronous>, transform_indices = @transform_15, window_bounds = array<i64: 84, 1>}, {pipeline_mode = #tpu.pipeline_mode<synchronous>, transform_indices = @transform_16, window_bounds = array<i64: 10, 84>}, {pipeline_mode = #tpu.pipeline_mode<synchronous>, transform_indices = @transform_17, window_bounds = array<i64: 10, 1>}, {transform_indices = @transform_18, window_bounds = array<i64: 1, 10, 8>}]} {
    %c0 = arith.constant 0 : index
    %c0_0 = arith.constant 0 : index
    %0 = vector.load %arg1[%c0, %c0_0] : memref<32x256xf32, #tpu.memory_space<vmem>>, vector<32x256xf32>
    %c0_1 = arith.constant 0 : index
    %c0_2 = arith.constant 0 : index
    %1 = vector.load %arg4[%c0_1, %c0_2] : memref<192x1xf32, #tpu.memory_space<vmem>>, vector<192x1xf32>
    %c0_3 = arith.constant 0 : index
    %c0_4 = arith.constant 0 : index
    %c0_5 = arith.constant 0 : index
    %2 = vector.load %arg2[%c0_3, %c0_4, %c0_5] : memref<3x192x32xf32, #tpu.memory_space<vmem>>, vector<1x192x32xf32>
    %3 = vector.shape_cast %2 : vector<1x192x32xf32> to vector<192x32xf32>
    %cst = arith.constant dense<0.000000e+00> : vector<192x256xf32>
    %4 = tpu.matmul %3, %0, %cst {dimension_numbers = #tpu.dot_dimension_numbers<[1], [0], [0], [1], [0, 0, 1, 1], [], []>} : vector<192x32xf32>, vector<32x256xf32>, vector<192x256xf32> -> vector<192x256xf32>
    %5 = vector.broadcast %1 : vector<192x1xf32> to vector<192x256xf32>
    %6 = arith.addf %5, %4 : vector<192x256xf32>
    %c0_6 = arith.constant 0 : index
    %c0_7 = arith.constant 0 : index
    %7 = vector.load %arg20[%c0_6, %c0_7] : memref<192x256xf32, #tpu.memory_space<vmem>>, vector<192x256xf32>
    tpu.vector_store %arg20[%c0_6, %c0_7], %6 {strides = array<i32>} : memref<192x256xf32, #tpu.memory_space<vmem>>, vector<192x256xf32>,
    %c0_8 = arith.constant 0 : index
    %c0_9 = arith.constant 0 : index
    %8 = vector.load %arg20[%c0_8, %c0_9] : memref<192x256xf32, #tpu.memory_space<vmem>>, vector<192x256xf32>
    %c1 = arith.constant 1 : index
    %c0_10 = arith.constant 0 : index
    %c0_11 = arith.constant 0 : index
    %9 = vector.load %arg2[%c1, %c0_10, %c0_11] : memref<3x192x32xf32, #tpu.memory_space<vmem>>, vector<1x192x32xf32>
    %10 = vector.shape_cast %9 : vector<1x192x32xf32> to vector<192x32xf32>
    %c0_12 = arith.constant 0 : index
    %c0_13 = arith.constant 0 : index
    %c0_14 = arith.constant 0 : index
    %11 = vector.load %arg3[%c0_12, %c0_13, %c0_14] : memref<2x256x256xf32, #tpu.memory_space<vmem>>, vector<1x256x256xf32>
    %12 = vector.shape_cast %11 : vector<1x256x256xf32> to vector<256x256xf32>
    %cst_15 = arith.constant dense<0.000000e+00> : vector<32x256xf32>
    %13 = tpu.matmul %0, %12, %cst_15 {dimension_numbers = #tpu.dot_dimension_numbers<[1], [0], [0], [1], [0, 0, 1, 1], [], []>} : vector<32x256xf32>, vector<256x256xf32>, vector<32x256xf32> -> vector<32x256xf32>
    %cst_16 = arith.constant dense<0.000000e+00> : vector<192x256xf32>
    %14 = tpu.matmul %10, %13, %cst_16 {dimension_numbers = #tpu.dot_dimension_numbers<[1], [0], [0], [1], [0, 0, 1, 1], [], []>} : vector<192x32xf32>, vector<32x256xf32>, vector<192x256xf32> -> vector<192x256xf32>
    %15 = arith.addf %8, %14 : vector<192x256xf32>
    %c0_17 = arith.constant 0 : index
    %c0_18 = arith.constant 0 : index
    %16 = vector.load %arg20[%c0_17, %c0_18] : memref<192x256xf32, #tpu.memory_space<vmem>>, vector<192x256xf32>
    tpu.vector_store %arg20[%c0_17, %c0_18], %15 {strides = array<i32>} : memref<192x256xf32, #tpu.memory_space<vmem>>, vector<192x256xf32>,
    %c0_19 = arith.constant 0 : index
    %c0_20 = arith.constant 0 : index
    %17 = vector.load %arg20[%c0_19, %c0_20] : memref<192x256xf32, #tpu.memory_space<vmem>>, vector<192x256xf32>
    %c2 = arith.constant 2 : index
    %c0_21 = arith.constant 0 : index
    %c0_22 = arith.constant 0 : index
    %18 = vector.load %arg2[%c2, %c0_21, %c0_22] : memref<3x192x32xf32, #tpu.memory_space<vmem>>, vector<1x192x32xf32>
    %19 = vector.shape_cast %18 : vector<1x192x32xf32> to vector<192x32xf32>
    %c1_23 = arith.constant 1 : index
    %c0_24 = arith.constant 0 : index
    %c0_25 = arith.constant 0 : index
    %20 = vector.load %arg3[%c1_23, %c0_24, %c0_25] : memref<2x256x256xf32, #tpu.memory_space<vmem>>, vector<1x256x256xf32>
    %21 = vector.shape_cast %20 : vector<1x256x256xf32> to vector<256x256xf32>
    %cst_26 = arith.constant dense<0.000000e+00> : vector<32x256xf32>
    %22 = tpu.matmul %0, %21, %cst_26 {dimension_numbers = #tpu.dot_dimension_numbers<[1], [0], [0], [1], [0, 0, 1, 1], [], []>} : vector<32x256xf32>, vector<256x256xf32>, vector<32x256xf32> -> vector<32x256xf32>
    %cst_27 = arith.constant dense<0.000000e+00> : vector<192x256xf32>
    %23 = tpu.matmul %19, %22, %cst_27 {dimension_numbers = #tpu.dot_dimension_numbers<[1], [0], [0], [1], [0, 0, 1, 1], [], []>} : vector<192x32xf32>, vector<32x256xf32>, vector<192x256xf32> -> vector<192x256xf32>
    %24 = arith.addf %17, %23 : vector<192x256xf32>
    %c0_28 = arith.constant 0 : index
    %c0_29 = arith.constant 0 : index
    %25 = vector.load %arg20[%c0_28, %c0_29] : memref<192x256xf32, #tpu.memory_space<vmem>>, vector<192x256xf32>
    tpu.vector_store %arg20[%c0_28, %c0_29], %24 {strides = array<i32>} : memref<192x256xf32, #tpu.memory_space<vmem>>, vector<192x256xf32>,
    %c0_30 = arith.constant 0 : index
    %c0_31 = arith.constant 0 : index
    %26 = vector.load %arg20[%c0_30, %c0_31] : memref<192x256xf32, #tpu.memory_space<vmem>>, vector<192x256xf32>
    %cst_32 = arith.constant 0.000000e+00 : f32
    %27 = vector.broadcast %cst_32 : f32 to vector<192x256xf32>
    %28 = arith.maximumf %26, %27 : vector<192x256xf32>
    %c0_33 = arith.constant 0 : index
    %c0_34 = arith.constant 0 : index
    %29 = vector.load %arg20[%c0_33, %c0_34] : memref<192x256xf32, #tpu.memory_space<vmem>>, vector<192x256xf32>
    tpu.vector_store %arg20[%c0_33, %c0_34], %28 {strides = array<i32>} : memref<192x256xf32, #tpu.memory_space<vmem>>, vector<192x256xf32>,
    %c0_35 = arith.constant 0 : index
    %c0_36 = arith.constant 0 : index
    %c0_37 = arith.constant 0 : index
    %30 = vector.load %arg5[%c0_35, %c0_36, %c0_37] : memref<2x96x192xf32, #tpu.memory_space<vmem>>, vector<1x96x192xf32>
    %31 = vector.shape_cast %30 : vector<1x96x192xf32> to vector<96x192xf32>
    %c0_38 = arith.constant 0 : index
    %c0_39 = arith.constant 0 : index
    %32 = vector.load %arg20[%c0_38, %c0_39] : memref<192x256xf32, #tpu.memory_space<vmem>>, vector<192x256xf32>
    %cst_40 = arith.constant dense<0.000000e+00> : vector<96x256xf32>
    %33 = tpu.matmul %31, %32, %cst_40 {dimension_numbers = #tpu.dot_dimension_numbers<[1], [0], [0], [1], [0, 0, 1, 1], [], []>} : vector<96x192xf32>, vector<192x256xf32>, vector<96x256xf32> -> vector<96x256xf32>
    %c1_41 = arith.constant 1 : index
    %c0_42 = arith.constant 0 : index
    %c0_43 = arith.constant 0 : index
    %34 = vector.load %arg5[%c1_41, %c0_42, %c0_43] : memref<2x96x192xf32, #tpu.memory_space<vmem>>, vector<1x96x192xf32>
    %35 = vector.shape_cast %34 : vector<1x96x192xf32> to vector<96x192xf32>
    %c0_44 = arith.constant 0 : index
    %c0_45 = arith.constant 0 : index
    %36 = vector.load %arg20[%c0_44, %c0_45] : memref<192x256xf32, #tpu.memory_space<vmem>>, vector<192x256xf32>
    %cst_46 = arith.constant dense<0.000000e+00> : vector<96x256xf32>
    %37 = tpu.matmul %35, %36, %cst_46 {dimension_numbers = #tpu.dot_dimension_numbers<[1], [0], [0], [1], [0, 0, 1, 1], [], []>} : vector<96x192xf32>, vector<192x256xf32>, vector<96x256xf32> -> vector<96x256xf32>
    %38 = arith.maximumf %33, %37 : vector<96x256xf32>
    %c0_47 = arith.constant 0 : index
    %c0_48 = arith.constant 0 : index
    %39 = vector.load %arg21[%c0_47, %c0_48] : memref<96x256xf32, #tpu.memory_space<vmem>>, vector<96x256xf32>
    tpu.vector_store %arg21[%c0_47, %c0_48], %38 {strides = array<i32>} : memref<96x256xf32, #tpu.memory_space<vmem>>, vector<96x256xf32>,
    %c0_49 = arith.constant 0 : index
    %c0_50 = arith.constant 0 : index
    %40 = vector.load %arg21[%c0_49, %c0_50] : memref<96x256xf32, #tpu.memory_space<vmem>>, vector<96x256xf32>
    %c0_51 = arith.constant 0 : index
    %c0_52 = arith.constant 0 : index
    %c0_53 = arith.constant 0 : index
    %41 = vector.load %arg6[%c0_51, %c0_52, %c0_53] : memref<2x256x120xf32, #tpu.memory_space<vmem>>, vector<1x256x120xf32>
    %42 = vector.shape_cast %41 : vector<1x256x120xf32> to vector<256x120xf32>
    %cst_54 = arith.constant dense<0.000000e+00> : vector<96x120xf32>
    %43 = tpu.matmul %40, %42, %cst_54 {dimension_numbers = #tpu.dot_dimension_numbers<[1], [0], [0], [1], [0, 0, 1, 1], [], []>} : vector<96x256xf32>, vector<256x120xf32>, vector<96x120xf32> -> vector<96x120xf32>
    %c0_55 = arith.constant 0 : index
    %c0_56 = arith.constant 0 : index
    %44 = vector.load %arg21[%c0_55, %c0_56] : memref<96x256xf32, #tpu.memory_space<vmem>>, vector<96x256xf32>
    %c1_57 = arith.constant 1 : index
    %c0_58 = arith.constant 0 : index
    %c0_59 = arith.constant 0 : index
    %45 = vector.load %arg6[%c1_57, %c0_58, %c0_59] : memref<2x256x120xf32, #tpu.memory_space<vmem>>, vector<1x256x120xf32>
    %46 = vector.shape_cast %45 : vector<1x256x120xf32> to vector<256x120xf32>
    %cst_60 = arith.constant dense<0.000000e+00> : vector<96x120xf32>
    %47 = tpu.matmul %44, %46, %cst_60 {dimension_numbers = #tpu.dot_dimension_numbers<[1], [0], [0], [1], [0, 0, 1, 1], [], []>} : vector<96x256xf32>, vector<256x120xf32>, vector<96x120xf32> -> vector<96x120xf32>
    %48 = arith.maximumf %43, %47 : vector<96x120xf32>
    %c0_61 = arith.constant 0 : index
    %c0_62 = arith.constant 0 : index
    %49 = vector.load %arg9[%c0_61, %c0_62] : memref<256x1xf32, #tpu.memory_space<vmem>>, vector<256x1xf32>
    %c0_63 = arith.constant 0 : index
    %c0_64 = arith.constant 0 : index
    %c0_65 = arith.constant 0 : index
    %50 = vector.load %arg7[%c0_63, %c0_64, %c0_65] : memref<3x256x96xf32, #tpu.memory_space<vmem>>, vector<1x256x96xf32>
    %51 = vector.shape_cast %50 : vector<1x256x96xf32> to vector<256x96xf32>
    %cst_66 = arith.constant dense<0.000000e+00> : vector<256x120xf32>
    %52 = tpu.matmul %51, %48, %cst_66 {dimension_numbers = #tpu.dot_dimension_numbers<[1], [0], [0], [1], [0, 0, 1, 1], [], []>} : vector<256x96xf32>, vector<96x120xf32>, vector<256x120xf32> -> vector<256x120xf32>
    %53 = vector.broadcast %49 : vector<256x1xf32> to vector<256x120xf32>
    %54 = arith.addf %53, %52 : vector<256x120xf32>
    %c0_67 = arith.constant 0 : index
    %c0_68 = arith.constant 0 : index
    %55 = vector.load %arg22[%c0_67, %c0_68] : memref<256x120xf32, #tpu.memory_space<vmem>>, vector<256x120xf32>
    tpu.vector_store %arg22[%c0_67, %c0_68], %54 {strides = array<i32>} : memref<256x120xf32, #tpu.memory_space<vmem>>, vector<256x120xf32>,
    %c0_69 = arith.constant 0 : index
    %c0_70 = arith.constant 0 : index
    %56 = vector.load %arg22[%c0_69, %c0_70] : memref<256x120xf32, #tpu.memory_space<vmem>>, vector<256x120xf32>
    %c1_71 = arith.constant 1 : index
    %c0_72 = arith.constant 0 : index
    %c0_73 = arith.constant 0 : index
    %57 = vector.load %arg7[%c1_71, %c0_72, %c0_73] : memref<3x256x96xf32, #tpu.memory_space<vmem>>, vector<1x256x96xf32>
    %58 = vector.shape_cast %57 : vector<1x256x96xf32> to vector<256x96xf32>
    %c0_74 = arith.constant 0 : index
    %c0_75 = arith.constant 0 : index
    %c0_76 = arith.constant 0 : index
    %59 = vector.load %arg8[%c0_74, %c0_75, %c0_76] : memref<2x120x120xf32, #tpu.memory_space<vmem>>, vector<1x120x120xf32>
    %60 = vector.shape_cast %59 : vector<1x120x120xf32> to vector<120x120xf32>
    %cst_77 = arith.constant dense<0.000000e+00> : vector<96x120xf32>
    %61 = tpu.matmul %48, %60, %cst_77 {dimension_numbers = #tpu.dot_dimension_numbers<[1], [0], [0], [1], [0, 0, 1, 1], [], []>} : vector<96x120xf32>, vector<120x120xf32>, vector<96x120xf32> -> vector<96x120xf32>
    %cst_78 = arith.constant dense<0.000000e+00> : vector<256x120xf32>
    %62 = tpu.matmul %58, %61, %cst_78 {dimension_numbers = #tpu.dot_dimension_numbers<[1], [0], [0], [1], [0, 0, 1, 1], [], []>} : vector<256x96xf32>, vector<96x120xf32>, vector<256x120xf32> -> vector<256x120xf32>
    %63 = arith.addf %56, %62 : vector<256x120xf32>
    %c0_79 = arith.constant 0 : index
    %c0_80 = arith.constant 0 : index
    %64 = vector.load %arg22[%c0_79, %c0_80] : memref<256x120xf32, #tpu.memory_space<vmem>>, vector<256x120xf32>
    tpu.vector_store %arg22[%c0_79, %c0_80], %63 {strides = array<i32>} : memref<256x120xf32, #tpu.memory_space<vmem>>, vector<256x120xf32>,
    %c0_81 = arith.constant 0 : index
    %c0_82 = arith.constant 0 : index
    %65 = vector.load %arg22[%c0_81, %c0_82] : memref<256x120xf32, #tpu.memory_space<vmem>>, vector<256x120xf32>
    %c2_83 = arith.constant 2 : index
    %c0_84 = arith.constant 0 : index
    %c0_85 = arith.constant 0 : index
    %66 = vector.load %arg7[%c2_83, %c0_84, %c0_85] : memref<3x256x96xf32, #tpu.memory_space<vmem>>, vector<1x256x96xf32>
    %67 = vector.shape_cast %66 : vector<1x256x96xf32> to vector<256x96xf32>
    %c1_86 = arith.constant 1 : index
    %c0_87 = arith.constant 0 : index
    %c0_88 = arith.constant 0 : index
    %68 = vector.load %arg8[%c1_86, %c0_87, %c0_88] : memref<2x120x120xf32, #tpu.memory_space<vmem>>, vector<1x120x120xf32>
    %69 = vector.shape_cast %68 : vector<1x120x120xf32> to vector<120x120xf32>
    %cst_89 = arith.constant dense<0.000000e+00> : vector<96x120xf32>
    %70 = tpu.matmul %48, %69, %cst_89 {dimension_numbers = #tpu.dot_dimension_numbers<[1], [0], [0], [1], [0, 0, 1, 1], [], []>} : vector<96x120xf32>, vector<120x120xf32>, vector<96x120xf32> -> vector<96x120xf32>
    %cst_90 = arith.constant dense<0.000000e+00> : vector<256x120xf32>
    %71 = tpu.matmul %67, %70, %cst_90 {dimension_numbers = #tpu.dot_dimension_numbers<[1], [0], [0], [1], [0, 0, 1, 1], [], []>} : vector<256x96xf32>, vector<96x120xf32>, vector<256x120xf32> -> vector<256x120xf32>
    %72 = arith.addf %65, %71 : vector<256x120xf32>
    %c0_91 = arith.constant 0 : index
    %c0_92 = arith.constant 0 : index
    %73 = vector.load %arg22[%c0_91, %c0_92] : memref<256x120xf32, #tpu.memory_space<vmem>>, vector<256x120xf32>
    tpu.vector_store %arg22[%c0_91, %c0_92], %72 {strides = array<i32>} : memref<256x120xf32, #tpu.memory_space<vmem>>, vector<256x120xf32>,
    %c0_93 = arith.constant 0 : index
    %c0_94 = arith.constant 0 : index
    %74 = vector.load %arg22[%c0_93, %c0_94] : memref<256x120xf32, #tpu.memory_space<vmem>>, vector<256x120xf32>
    %cst_95 = arith.constant 0.000000e+00 : f32
    %75 = vector.broadcast %cst_95 : f32 to vector<256x120xf32>
    %76 = arith.maximumf %74, %75 : vector<256x120xf32>
    %c0_96 = arith.constant 0 : index
    %c0_97 = arith.constant 0 : index
    %77 = vector.load %arg22[%c0_96, %c0_97] : memref<256x120xf32, #tpu.memory_space<vmem>>, vector<256x120xf32>
    tpu.vector_store %arg22[%c0_96, %c0_97], %76 {strides = array<i32>} : memref<256x120xf32, #tpu.memory_space<vmem>>, vector<256x120xf32>,
    %c0_98 = arith.constant 0 : index
    %c0_99 = arith.constant 0 : index
    %c0_100 = arith.constant 0 : index
    %78 = vector.load %arg10[%c0_98, %c0_99, %c0_100] : memref<2x96x256xf32, #tpu.memory_space<vmem>>, vector<1x96x256xf32>
    %79 = vector.shape_cast %78 : vector<1x96x256xf32> to vector<96x256xf32>
    %c0_101 = arith.constant 0 : index
    %c0_102 = arith.constant 0 : index
    %80 = vector.load %arg22[%c0_101, %c0_102] : memref<256x120xf32, #tpu.memory_space<vmem>>, vector<256x120xf32>
    %cst_103 = arith.constant dense<0.000000e+00> : vector<96x120xf32>
    %81 = tpu.matmul %79, %80, %cst_103 {dimension_numbers = #tpu.dot_dimension_numbers<[1], [0], [0], [1], [0, 0, 1, 1], [], []>} : vector<96x256xf32>, vector<256x120xf32>, vector<96x120xf32> -> vector<96x120xf32>
    %c1_104 = arith.constant 1 : index
    %c0_105 = arith.constant 0 : index
    %c0_106 = arith.constant 0 : index
    %82 = vector.load %arg10[%c1_104, %c0_105, %c0_106] : memref<2x96x256xf32, #tpu.memory_space<vmem>>, vector<1x96x256xf32>
    %83 = vector.shape_cast %82 : vector<1x96x256xf32> to vector<96x256xf32>
    %c0_107 = arith.constant 0 : index
    %c0_108 = arith.constant 0 : index
    %84 = vector.load %arg22[%c0_107, %c0_108] : memref<256x120xf32, #tpu.memory_space<vmem>>, vector<256x120xf32>
    %cst_109 = arith.constant dense<0.000000e+00> : vector<96x120xf32>
    %85 = tpu.matmul %83, %84, %cst_109 {dimension_numbers = #tpu.dot_dimension_numbers<[1], [0], [0], [1], [0, 0, 1, 1], [], []>} : vector<96x256xf32>, vector<256x120xf32>, vector<96x120xf32> -> vector<96x120xf32>
    %86 = arith.maximumf %81, %85 : vector<96x120xf32>
    %c0_110 = arith.constant 0 : index
    %c0_111 = arith.constant 0 : index
    %c0_112 = arith.constant 0 : index
    %87 = vector.load %arg11[%c0_110, %c0_111, %c0_112] : memref<2x120x48xf32, #tpu.memory_space<vmem>>, vector<1x120x48xf32>
    %88 = vector.shape_cast %87 : vector<1x120x48xf32> to vector<120x48xf32>
    %cst_113 = arith.constant dense<0.000000e+00> : vector<96x48xf32>
    %89 = tpu.matmul %86, %88, %cst_113 {dimension_numbers = #tpu.dot_dimension_numbers<[1], [0], [0], [1], [0, 0, 1, 1], [], []>} : vector<96x120xf32>, vector<120x48xf32>, vector<96x48xf32> -> vector<96x48xf32>
    %c1_114 = arith.constant 1 : index
    %c0_115 = arith.constant 0 : index
    %c0_116 = arith.constant 0 : index
    %90 = vector.load %arg11[%c1_114, %c0_115, %c0_116] : memref<2x120x48xf32, #tpu.memory_space<vmem>>, vector<1x120x48xf32>
    %91 = vector.shape_cast %90 : vector<1x120x48xf32> to vector<120x48xf32>
    %cst_117 = arith.constant dense<0.000000e+00> : vector<96x48xf32>
    %92 = tpu.matmul %86, %91, %cst_117 {dimension_numbers = #tpu.dot_dimension_numbers<[1], [0], [0], [1], [0, 0, 1, 1], [], []>} : vector<96x120xf32>, vector<120x48xf32>, vector<96x48xf32> -> vector<96x48xf32>
    %93 = arith.maximumf %89, %92 : vector<96x48xf32>
    %c0_118 = arith.constant 0 : index
    %c0_119 = arith.constant 0 : index
    %c0_120 = arith.constant 0 : index
    %94 = vector.load %arg12[%c0_118, %c0_119, %c0_120] : memref<6x48x8xf32, #tpu.memory_space<vmem>>, vector<1x48x8xf32>
    %95 = vector.shape_cast %94 : vector<1x48x8xf32> to vector<48x8xf32>
    %cst_121 = arith.constant dense<0.000000e+00> : vector<96x8xf32>
    %96 = tpu.matmul %93, %95, %cst_121 {dimension_numbers = #tpu.dot_dimension_numbers<[1], [0], [0], [1], [0, 0, 1, 1], [], []>} : vector<96x48xf32>, vector<48x8xf32>, vector<96x8xf32> -> vector<96x8xf32>
    %c0_122 = arith.constant 0 : index
    %c0_123 = arith.constant 0 : index
    %97 = vector.load %arg23[%c0_122, %c0_123] : memref<576x8xf32, #tpu.memory_space<vmem>>, vector<96x8xf32>
    tpu.vector_store %arg23[%c0_122, %c0_123], %96 {strides = array<i32>} : memref<576x8xf32, #tpu.memory_space<vmem>>, vector<96x8xf32>,
    %c1_124 = arith.constant 1 : index
    %c0_125 = arith.constant 0 : index
    %c0_126 = arith.constant 0 : index
    %98 = vector.load %arg12[%c1_124, %c0_125, %c0_126] : memref<6x48x8xf32, #tpu.memory_space<vmem>>, vector<1x48x8xf32>
    %99 = vector.shape_cast %98 : vector<1x48x8xf32> to vector<48x8xf32>
    %cst_127 = arith.constant dense<0.000000e+00> : vector<96x8xf32>
    %100 = tpu.matmul %93, %99, %cst_127 {dimension_numbers = #tpu.dot_dimension_numbers<[1], [0], [0], [1], [0, 0, 1, 1], [], []>} : vector<96x48xf32>, vector<48x8xf32>, vector<96x8xf32> -> vector<96x8xf32>
    %c96 = arith.constant 96 : index
    %c0_128 = arith.constant 0 : index
    %101 = vector.load %arg23[%c96, %c0_128] : memref<576x8xf32, #tpu.memory_space<vmem>>, vector<96x8xf32>
    tpu.vector_store %arg23[%c96, %c0_128], %100 {strides = array<i32>} : memref<576x8xf32, #tpu.memory_space<vmem>>, vector<96x8xf32>,
    %c2_129 = arith.constant 2 : index
    %c0_130 = arith.constant 0 : index
    %c0_131 = arith.constant 0 : index
    %102 = vector.load %arg12[%c2_129, %c0_130, %c0_131] : memref<6x48x8xf32, #tpu.memory_space<vmem>>, vector<1x48x8xf32>
    %103 = vector.shape_cast %102 : vector<1x48x8xf32> to vector<48x8xf32>
    %cst_132 = arith.constant dense<0.000000e+00> : vector<96x8xf32>
    %104 = tpu.matmul %93, %103, %cst_132 {dimension_numbers = #tpu.dot_dimension_numbers<[1], [0], [0], [1], [0, 0, 1, 1], [], []>} : vector<96x48xf32>, vector<48x8xf32>, vector<96x8xf32> -> vector<96x8xf32>
    %c192 = arith.constant 192 : index
    %c0_133 = arith.constant 0 : index
    %105 = vector.load %arg23[%c192, %c0_133] : memref<576x8xf32, #tpu.memory_space<vmem>>, vector<96x8xf32>
    tpu.vector_store %arg23[%c192, %c0_133], %104 {strides = array<i32>} : memref<576x8xf32, #tpu.memory_space<vmem>>, vector<96x8xf32>,
    %c3 = arith.constant 3 : index
    %c0_134 = arith.constant 0 : index
    %c0_135 = arith.constant 0 : index
    %106 = vector.load %arg12[%c3, %c0_134, %c0_135] : memref<6x48x8xf32, #tpu.memory_space<vmem>>, vector<1x48x8xf32>
    %107 = vector.shape_cast %106 : vector<1x48x8xf32> to vector<48x8xf32>
    %cst_136 = arith.constant dense<0.000000e+00> : vector<96x8xf32>
    %108 = tpu.matmul %93, %107, %cst_136 {dimension_numbers = #tpu.dot_dimension_numbers<[1], [0], [0], [1], [0, 0, 1, 1], [], []>} : vector<96x48xf32>, vector<48x8xf32>, vector<96x8xf32> -> vector<96x8xf32>
    %c288 = arith.constant 288 : index
    %c0_137 = arith.constant 0 : index
    %109 = vector.load %arg23[%c288, %c0_137] : memref<576x8xf32, #tpu.memory_space<vmem>>, vector<96x8xf32>
    tpu.vector_store %arg23[%c288, %c0_137], %108 {strides = array<i32>} : memref<576x8xf32, #tpu.memory_space<vmem>>, vector<96x8xf32>,
    %c4 = arith.constant 4 : index
    %c0_138 = arith.constant 0 : index
    %c0_139 = arith.constant 0 : index
    %110 = vector.load %arg12[%c4, %c0_138, %c0_139] : memref<6x48x8xf32, #tpu.memory_space<vmem>>, vector<1x48x8xf32>
    %111 = vector.shape_cast %110 : vector<1x48x8xf32> to vector<48x8xf32>
    %cst_140 = arith.constant dense<0.000000e+00> : vector<96x8xf32>
    %112 = tpu.matmul %93, %111, %cst_140 {dimension_numbers = #tpu.dot_dimension_numbers<[1], [0], [0], [1], [0, 0, 1, 1], [], []>} : vector<96x48xf32>, vector<48x8xf32>, vector<96x8xf32> -> vector<96x8xf32>
    %c384 = arith.constant 384 : index
    %c0_141 = arith.constant 0 : index
    %113 = vector.load %arg23[%c384, %c0_141] : memref<576x8xf32, #tpu.memory_space<vmem>>, vector<96x8xf32>
    tpu.vector_store %arg23[%c384, %c0_141], %112 {strides = array<i32>} : memref<576x8xf32, #tpu.memory_space<vmem>>, vector<96x8xf32>,
    %c5 = arith.constant 5 : index
    %c0_142 = arith.constant 0 : index
    %c0_143 = arith.constant 0 : index
    %114 = vector.load %arg12[%c5, %c0_142, %c0_143] : memref<6x48x8xf32, #tpu.memory_space<vmem>>, vector<1x48x8xf32>
    %115 = vector.shape_cast %114 : vector<1x48x8xf32> to vector<48x8xf32>
    %cst_144 = arith.constant dense<0.000000e+00> : vector<96x8xf32>
    %116 = tpu.matmul %93, %115, %cst_144 {dimension_numbers = #tpu.dot_dimension_numbers<[1], [0], [0], [1], [0, 0, 1, 1], [], []>} : vector<96x48xf32>, vector<48x8xf32>, vector<96x8xf32> -> vector<96x8xf32>
    %c480 = arith.constant 480 : index
    %c0_145 = arith.constant 0 : index
    %117 = vector.load %arg23[%c480, %c0_145] : memref<576x8xf32, #tpu.memory_space<vmem>>, vector<96x8xf32>
    tpu.vector_store %arg23[%c480, %c0_145], %116 {strides = array<i32>} : memref<576x8xf32, #tpu.memory_space<vmem>>, vector<96x8xf32>,
    %c0_146 = arith.constant 0 : index
    %c0_147 = arith.constant 0 : index
    %118 = vector.load %arg13[%c0_146, %c0_147] : memref<120x576xf32, #tpu.memory_space<vmem>>, vector<120x576xf32>
    %c0_148 = arith.constant 0 : index
    %c0_149 = arith.constant 0 : index
    %119 = vector.load %arg23[%c0_148, %c0_149] : memref<576x8xf32, #tpu.memory_space<vmem>>, vector<576x8xf32>
    %cst_150 = arith.constant dense<0.000000e+00> : vector<120x8xf32>
    %120 = tpu.matmul %118, %119, %cst_150 {dimension_numbers = #tpu.dot_dimension_numbers<[1], [0], [0], [1], [0, 0, 1, 1], [], []>} : vector<120x576xf32>, vector<576x8xf32>, vector<120x8xf32> -> vector<120x8xf32>
    %c0_151 = arith.constant 0 : index
    %c0_152 = arith.constant 0 : index
    %121 = vector.load %arg14[%c0_151, %c0_152] : memref<120x1xf32, #tpu.memory_space<vmem>>, vector<120x1xf32>
    %122 = vector.broadcast %121 : vector<120x1xf32> to vector<120x8xf32>
    %123 = arith.addf %120, %122 : vector<120x8xf32>
    %cst_153 = arith.constant 0.000000e+00 : f32
    %124 = vector.broadcast %cst_153 : f32 to vector<120x8xf32>
    %125 = arith.maximumf %123, %124 : vector<120x8xf32>
    %c0_154 = arith.constant 0 : index
    %c0_155 = arith.constant 0 : index
    %126 = vector.load %arg15[%c0_154, %c0_155] : memref<84x120xf32, #tpu.memory_space<vmem>>, vector<84x120xf32>
    %cst_156 = arith.constant dense<0.000000e+00> : vector<84x8xf32>
    %127 = tpu.matmul %126, %125, %cst_156 {dimension_numbers = #tpu.dot_dimension_numbers<[1], [0], [0], [1], [0, 0, 1, 1], [], []>} : vector<84x120xf32>, vector<120x8xf32>, vector<84x8xf32> -> vector<84x8xf32>
    %c0_157 = arith.constant 0 : index
    %c0_158 = arith.constant 0 : index
    %128 = vector.load %arg16[%c0_157, %c0_158] : memref<84x1xf32, #tpu.memory_space<vmem>>, vector<84x1xf32>
    %129 = vector.broadcast %128 : vector<84x1xf32> to vector<84x8xf32>
    %130 = arith.addf %127, %129 : vector<84x8xf32>
    %cst_159 = arith.constant 0.000000e+00 : f32
    %131 = vector.broadcast %cst_159 : f32 to vector<84x8xf32>
    %132 = arith.maximumf %130, %131 : vector<84x8xf32>
    %c0_160 = arith.constant 0 : index
    %c0_161 = arith.constant 0 : index
    %133 = vector.load %arg17[%c0_160, %c0_161] : memref<10x84xf32, #tpu.memory_space<vmem>>, vector<10x84xf32>
    %cst_162 = arith.constant dense<0.000000e+00> : vector<10x8xf32>
    %134 = tpu.matmul %133, %132, %cst_162 {dimension_numbers = #tpu.dot_dimension_numbers<[1], [0], [0], [1], [0, 0, 1, 1], [], []>} : vector<10x84xf32>, vector<84x8xf32>, vector<10x8xf32> -> vector<10x8xf32>
    %c0_163 = arith.constant 0 : index
    %c0_164 = arith.constant 0 : index
    %135 = vector.load %arg18[%c0_163, %c0_164] : memref<10x1xf32, #tpu.memory_space<vmem>>, vector<10x1xf32>
    %136 = vector.broadcast %135 : vector<10x1xf32> to vector<10x8xf32>
    %137 = arith.addf %134, %136 : vector<10x8xf32>
    %c0_165 = arith.constant 0 : index
    %c0_166 = arith.constant 0 : index
    %c0_167 = arith.constant 0 : index
    %138 = vector.load %arg19[%c0_165, %c0_166, %c0_167] : memref<1x10x8xf32, #tpu.memory_space<vmem>>, vector<1x10x8xf32>
    %139 = vector.shape_cast %138 : vector<1x10x8xf32> to vector<10x8xf32>
    %140 = vector.shape_cast %137 : vector<10x8xf32> to vector<1x10x8xf32>
    tpu.vector_store %arg19[%c0_165, %c0_166, %c0_167], %140 {strides = array<i32>} : memref<1x10x8xf32, #tpu.memory_space<vmem>>, vector<1x10x8xf32>,
    return
  }
  func.func @transform_0(%arg0: i32) -> (i32, i32) {
    %c0_i32 = arith.constant 0 : i32
    %c0_i32_0 = arith.constant 0 : i32
    return %c0_i32, %arg0 : i32, i32
  }
  func.func @transform_1(%arg0: i32) -> (i32, i32, i32) {
    %c0_i32 = arith.constant 0 : i32
    %c0_i32_0 = arith.constant 0 : i32
    %c0_i32_1 = arith.constant 0 : i32
    %c0_i32_2 = arith.constant 0 : i32
    return %c0_i32, %c0_i32_0, %c0_i32_1 : i32, i32, i32
  }
  func.func @transform_2(%arg0: i32) -> (i32, i32, i32) {
    %c0_i32 = arith.constant 0 : i32
    %c0_i32_0 = arith.constant 0 : i32
    %c0_i32_1 = arith.constant 0 : i32
    %c0_i32_2 = arith.constant 0 : i32
    return %c0_i32, %c0_i32_0, %c0_i32_1 : i32, i32, i32
  }
  func.func @transform_3(%arg0: i32) -> (i32, i32) {
    %c0_i32 = arith.constant 0 : i32
    %c0_i32_0 = arith.constant 0 : i32
    %c0_i32_1 = arith.constant 0 : i32
    return %c0_i32, %c0_i32_0 : i32, i32
  }
  func.func @transform_4(%arg0: i32) -> (i32, i32, i32) {
    %c0_i32 = arith.constant 0 : i32
    %c0_i32_0 = arith.constant 0 : i32
    %c0_i32_1 = arith.constant 0 : i32
    %c0_i32_2 = arith.constant 0 : i32
    return %c0_i32, %c0_i32_0, %c0_i32_1 : i32, i32, i32
  }
  func.func @transform_5(%arg0: i32) -> (i32, i32, i32) {
    %c0_i32 = arith.constant 0 : i32
    %c0_i32_0 = arith.constant 0 : i32
    %c0_i32_1 = arith.constant 0 : i32
    %c0_i32_2 = arith.constant 0 : i32
    return %c0_i32, %c0_i32_0, %c0_i32_1 : i32, i32, i32
  }
  func.func @transform_6(%arg0: i32) -> (i32, i32, i32) {
    %c0_i32 = arith.constant 0 : i32
    %c0_i32_0 = arith.constant 0 : i32
    %c0_i32_1 = arith.constant 0 : i32
    %c0_i32_2 = arith.constant 0 : i32
    return %c0_i32, %c0_i32_0, %c0_i32_1 : i32, i32, i32
  }
  func.func @transform_7(%arg0: i32) -> (i32, i32, i32) {
    %c0_i32 = arith.constant 0 : i32
    %c0_i32_0 = arith.constant 0 : i32
    %c0_i32_1 = arith.constant 0 : i32
    %c0_i32_2 = arith.constant 0 : i32
    return %c0_i32, %c0_i32_0, %c0_i32_1 : i32, i32, i32
  }
  func.func @transform_8(%arg0: i32) -> (i32, i32) {
    %c0_i32 = arith.constant 0 : i32
    %c0_i32_0 = arith.constant 0 : i32
    %c0_i32_1 = arith.constant 0 : i32
    return %c0_i32, %c0_i32_0 : i32, i32
  }
  func.func @transform_9(%arg0: i32) -> (i32, i32, i32) {
    %c0_i32 = arith.constant 0 : i32
    %c0_i32_0 = arith.constant 0 : i32
    %c0_i32_1 = arith.constant 0 : i32
    %c0_i32_2 = arith.constant 0 : i32
    return %c0_i32, %c0_i32_0, %c0_i32_1 : i32, i32, i32
  }
  func.func @transform_10(%arg0: i32) -> (i32, i32, i32) {
    %c0_i32 = arith.constant 0 : i32
    %c0_i32_0 = arith.constant 0 : i32
    %c0_i32_1 = arith.constant 0 : i32
    %c0_i32_2 = arith.constant 0 : i32
    return %c0_i32, %c0_i32_0, %c0_i32_1 : i32, i32, i32
  }
  func.func @transform_11(%arg0: i32) -> (i32, i32, i32) {
    %c0_i32 = arith.constant 0 : i32
    %c0_i32_0 = arith.constant 0 : i32
    %c0_i32_1 = arith.constant 0 : i32
    %c0_i32_2 = arith.constant 0 : i32
    return %c0_i32, %c0_i32_0, %c0_i32_1 : i32, i32, i32
  }
  func.func @transform_12(%arg0: i32) -> (i32, i32) {
    %c0_i32 = arith.constant 0 : i32
    %c0_i32_0 = arith.constant 0 : i32
    %c0_i32_1 = arith.constant 0 : i32
    return %c0_i32, %c0_i32_0 : i32, i32
  }
  func.func @transform_13(%arg0: i32) -> (i32, i32) {
    %c0_i32 = arith.constant 0 : i32
    %c0_i32_0 = arith.constant 0 : i32
    %c0_i32_1 = arith.constant 0 : i32
    return %c0_i32, %c0_i32_0 : i32, i32
  }
  func.func @transform_14(%arg0: i32) -> (i32, i32) {
    %c0_i32 = arith.constant 0 : i32
    %c0_i32_0 = arith.constant 0 : i32
    %c0_i32_1 = arith.constant 0 : i32
    return %c0_i32, %c0_i32_0 : i32, i32
  }
  func.func @transform_15(%arg0: i32) -> (i32, i32) {
    %c0_i32 = arith.constant 0 : i32
    %c0_i32_0 = arith.constant 0 : i32
    %c0_i32_1 = arith.constant 0 : i32
    return %c0_i32, %c0_i32_0 : i32, i32
  }
  func.func @transform_16(%arg0: i32) -> (i32, i32) {
    %c0_i32 = arith.constant 0 : i32
    %c0_i32_0 = arith.constant 0 : i32
    %c0_i32_1 = arith.constant 0 : i32
    return %c0_i32, %c0_i32_0 : i32, i32
  }
  func.func @transform_17(%arg0: i32) -> (i32, i32) {
    %c0_i32 = arith.constant 0 : i32
    %c0_i32_0 = arith.constant 0 : i32
    %c0_i32_1 = arith.constant 0 : i32
    return %c0_i32, %c0_i32_0 : i32, i32
  }
  func.func @transform_18(%arg0: i32) -> (i32, i32, i32) {
    %c0_i32 = arith.constant 0 : i32
    %c0_i32_0 = arith.constant 0 : i32
    %c0_i32_1 = arith.constant 0 : i32
    return %arg0, %c0_i32, %c0_i32_0 : i32, i32, i32
  }
}

</mosaic_0001>

<bundles_post_ra>
// kernel: net_forward.1
= control target key start
LH: loop header
LB: loop body
LE: loop exit
PB: predicated region body
PF: predicated region fallthrough
CT: control target
= control target key end

     0   :  { %s14626_s0 = inlined_call_operand.vmem [shape: f32[32,512], index: 0, kind: input, shape index: {}]   ;;  %s14627_s1 = inlined_call_operand.vmem [shape: f32[3,192,32], index: 1, kind: input, shape index: {}]   ;;  %s14628_s2 = inlined_call_operand.vmem [shape: f32[2,256,256], index: 2, kind: input, shape index: {}]   ;;  %s14629_s3 = inlined_call_operand.vmem [shape: f32[192,1], index: 3, kind: input, shape index: {}]   ;;  %s14630_s4 = inlined_call_operand.vmem [shape: f32[2,96,192], index: 4, kind: input, shape index: {}]   ;;  %s14631_s5 = inlined_call_operand.vmem [shape: f32[2,256,120], index: 5, kind: input, shape index: {}]   ;;  %s14632_s6 = inlined_call_operand.vmem [shape: f32[3,256,96], index: 6, kind: input, shape index: {}]   ;;  %s14633_s7 = inlined_call_operand.vmem [shape: f32[2,120,120], index: 7, kind: input, shape index: {}]   ;;  %s14634_s8 = inlined_call_operand.vmem [shape: f32[256,1], index: 8, kind: input, shape index: {}]   ;;  %s14635_s9 = inlined_call_operand.vmem [shape: f32[2,96,256], index: 9, kind: input, shape index: {}]   ;;  %s14636_s10 = inlined_call_operand.vmem [shape: f32[2,120,48], index: 10, kind: input, shape index: {}]   ;;  %s14637_s11 = inlined_call_operand.vmem [shape: f32[6,48,8], index: 11, kind: input, shape index: {}]   ;;  %s14638_s12 = inlined_call_operand.vmem [shape: f32[120,576], index: 12, kind: input, shape index: {}]   ;;  %s14639_s13 = inlined_call_operand.vmem [shape: f32[120,1], index: 13, kind: input, shape index: {}]   ;;  %s14640_s14 = inlined_call_operand.vmem [shape: f32[84,120], index: 14, kind: input, shape index: {}]   ;;  %s14641_s15 = inlined_call_operand.vmem [shape: f32[84,1], index: 15, kind: input, shape index: {}]   ;;  %s14642_s16 = inlined_call_operand.vmem [shape: f32[10,84], index: 16, kind: input, shape index: {}]   ;;  %s14643_s17 = inlined_call_operand.vmem [shape: f32[10,1], index: 17, kind: input, shape index: {}]   ;;  %s14644_s18 = inlined_call_operand.vmem [shape: f32[2,10,8], index: 18, kind: output, shape index: {}]  }
   0x1   :  { %14648 = sst [smem:[#allocation9_spill]] %s14626_s0 }
   0x2   :  { %14649 = sst [smem:[#allocation10_spill]] %s14627_s1 }
   0x3   :  { %14650 = sst [smem:[#allocation11_spill]] %s14628_s2 }
   0x4   :  { %s11269_s27 = smov 0   ;;  %s11271_s28 = smov 0  }
   0x5   :  { %s11273_s29 = smov 0  }
   0x6 LB: > { %14651 = sst [smem:[#allocation7_spill]] %s11164_s28  ;;  %s11286_s0 = sadd.s32 1, %s11168_s29   ;;  %s11168_s29 = sphi %s11273_s29, %s14660_s29   ;;  %s11164_s28 = sphi %s11271_s28, %s14659_s28   ;;  %s11160_s27 = sphi %s11269_s27, %s14658_s27  }
   0x7   : > { %s32_s19 = ssub.s32 %s11168_s29, %s11286_s0  ;;  %s35_s1 = sadd.s32 1, %s11164_s28 }
   0x8   : > { %p33_p0 = scmp.eq.s32.totalorder %s32_s19, 0  ;;  %p42_p1 = scmp.ne.s32.totalorder %s11164_s28, %s11160_s27 }
   0x9   : > { %p43_p2 = scmp.eq.s32.totalorder %s11168_s29, 0  ;;  %p7981_p4 = scmp.ge.s32.totalorder %s11168_s29, 2 }
   0xa   : > { %s11295_s20 = scalar_select %p33_p0, %s11164_s28, %s35_s1  }
   0xb   : > { %p44_p3 = por %p43_p2, %p42_p1  ;;  %502 = sbr.rel (%p7981_p4) target bundleno = 32 (0x20), region = 84 }
   0xc   : > { %14652 = sst [smem:[#allocation8_spill]] %s11295_s20 }
  0x12   : > { %505 = sbr.rel (!%p44_p3) target bundleno = 32 (0x20), region = 88  ;;  %s507_s21 = sand.u32 (%p44_p3), 1, %s11164_s28  }
  0x13   : > { %s8648_s22 = sshll.u32 (%p44_p3), %s11168_s29, 4  ;;  %s7982_s2 = sshll.u32 (%p44_p3), %s507_s21, 6 }
  0x14   : > { %s14653_s25 = sld [smem:[#allocation9_spill]] (%p44_p3)  ;;  %s509_s19 = scalar_lea.vmem (%p44_p3), [#allocation6], %s7982_s2 }
  0x1a   : > { %s512_s26 = scalar_lea.vmem %s14653_s25, %s8648_s22 }
  0x1b   : > { %v525_v0 = vld [vmem:[%s512_s26] sm:$0xff]  ;;  %v527_v1 = vld [vmem:[%s512_s26 + $0x8] sm:$0xff] }
  0x1c   : > { %v529_v2 = vld [vmem:[%s512_s26 + $0x20] sm:$0xff]  ;;  %526 = vst [vmem:[%s509_s19] sm:$0xff] %v525_v0  ;;  %528 = vst [vmem:[%s509_s19 + $0x8] sm:$0xff] %v527_v1  ;;  %v531_v3 = vld [vmem:[%s512_s26 + $0x28] sm:$0xff] }
  0x1d   : > { %530 = vst [vmem:[%s509_s19 + $0x10] sm:$0xff] %v529_v2  ;;  %v533_v4 = vld [vmem:[%s512_s26 + $0x40] sm:$0xff]  ;;  %v535_v5 = vld [vmem:[%s512_s26 + $0x48] sm:$0xff]  ;;  %532 = vst [vmem:[%s509_s19 + $0x18] sm:$0xff] %v531_v3 }
  0x1e   : > { %534 = vst [vmem:[%s509_s19 + $0x20] sm:$0xff] %v533_v4  ;;  %536 = vst [vmem:[%s509_s19 + $0x28] sm:$0xff] %v535_v5  ;;  %v537_v6 = vld [vmem:[%s512_s26 + $0x60] sm:$0xff]  ;;  %v539_v7 = vld [vmem:[%s512_s26 + $0x68] sm:$0xff] }
  0x1f   : > { %538 = vst [vmem:[%s509_s19 + $0x30] sm:$0xff] %v537_v6  ;;  %540 = vst [vmem:[%s509_s19 + $0x38] sm:$0xff] %v539_v7 }
  0x20 PF: > { %p7985_p5 = scmp.ge.s32.totalorder %s11168_s29, 1  ;;  %p545_p6 = scmp.lt.s32.totalorder %s11168_s29, 3 }
  0x22   : > { %p546_p7 = pnand %p7985_p5, %p545_p6 }
  0x23   : > { %s14654_s22 = sld [smem:[#allocation11_spill]] (!%p546_p7)  ;;  %s552_s23 = sand.u32 (!%p546_p7), 1, %s11160_s27   ;;  %v11170_v40 = vmov (!%p546_p7), 0.0   ;;  %vm667_vm0 = vcmask (!%p546_p7), 261120   ;;  %vm2588_vm1 = vcmask (!%p546_p7), 523264   ;;  %vm3423_vm2 = vcmask (!%p546_p7), 785408  }
  0x24   : > { %549 = sbr.rel (%p546_p7) target bundleno = 3438 (0xd6e), region = 111  ;;  %s7986_s21 = sshll.u32 (!%p546_p7), %s552_s23, 6  ;;  %804 = vmatprep.mubr.f32.mxu0 (!%p546_p7), %v11170_v40  ;;  %vm3937_vm3 = vcmask (!%p546_p7), 982016   ;;  %vm5961_vm4 = vcmask (!%p546_p7), 392192   ;;  %vm6123_vm5 = vcmask (!%p546_p7), 64512   ;;  %vm11173_vm6 = vmmov (!%p546_p7), 0  }
  0x25   : > { %s554_s30 = scalar_lea.vmem (!%p546_p7), [#allocation6], %s7986_s21  ;;  %s14655_s26 = sld [smem:[#allocation10_spill]] (!%p546_p7)  ;;  %vm7828_vm7 = vcmask (!%p546_p7), 687104   ;;  %vm7835_vm8 = vcmask (!%p546_p7), 1043456   ;;  %vm7915_vm9 = vcmask (!%p546_p7), 58368  }
  0x26   : > { %v11397_v52 = vld [vmem:[%s554_s30 + $0x8] sm:$0xff] (!%p546_p7)  ;;  %v11400_v53 = vld [vmem:[%s554_s30] sm:$0xff] (!%p546_p7)  ;;  %v11402_v54 = vld [vmem:[%s554_s30 + $0x18] sm:$0xff] (!%p546_p7) }
  0x27   : > { %1366 = vmatprep.mubr.f32.mxu1 (!%p546_p7), %v11397_v52  ;;  %v11404_v55 = vld [vmem:[%s554_s30 + $0x10] sm:$0xff] (!%p546_p7)  ;;  %v11406_v56 = vld [vmem:[%s554_s30 + $0x28] sm:$0xff] (!%p546_p7)  ;;  %v11408_v57 = vld [vmem:[%s554_s30 + $0x38] sm:$0xff] (!%p546_p7)  ;;  %v10223_v58 = vpack.c.bf16 (!%p546_p7), %v11402_v54, %v11397_v52 }
  0x28   : > { %v10225_v59 = vpack.c.bf16 (!%p546_p7), %v11404_v55, %v11400_v53  ;;  %v10227_v62 = vpack.c.bf16 (!%p546_p7), %v11408_v57, %v11406_v56  ;;  %v11422_v1 = vld [vmem:[%s554_s30 + $0x20] sm:$0xff] (!%p546_p7)  ;;  %v11424_v2 = vld [vmem:[%s554_s30 + $0x30] sm:$0xff] (!%p546_p7)  ;;  %s14656_s30 = sadd.s32 (!%p546_p7), 4294967295, %s11168_s29  }
  0x29   : > { %v1239_v8 = vld [vmem:[%s14654_s22 + $0x8] sm:$0xff] (!%p546_p7)  ;;  %v1241_v9 = vld [vmem:[%s14654_s22 + $0x18] sm:$0xff] (!%p546_p7)  ;;  %v1238_v10 = vld [vmem:[%s14654_s22] sm:$0xff] (!%p546_p7)  ;;  %10224 = vmatprep.subr.bf16.mxu0 (!%p546_p7), %v10223_v58  ;;  %v10229_v5 = vpack.c.bf16 (!%p546_p7), %v11424_v2, %v11422_v1  ;;  %p606_p8 = scmp.lt.s32.totalorder (!%p546_p7), %s14656_s30, 1  ;;  %s14657_s21 = smov (!%p546_p7), %s14656_s30 }
  0x2a   : > { %v10231_v11 = vpack.c.bf16 (!%p546_p7), %v1241_v9, %v1239_v8  ;;  %v1240_v12 = vld [vmem:[%s14654_s22 + $0x10] sm:$0xff] (!%p546_p7)  ;;  %v1243_v13 = vld [vmem:[%s14654_s22 + $0x28] sm:$0xff] (!%p546_p7)  ;;  %v1245_v14 = vld [vmem:[%s14654_s22 + $0x38] sm:$0xff] (!%p546_p7)  ;;  %10226 = vmatpush1.bf16.msra.mxu0 (!%p546_p7), %v10225_v59 }
  0x2b   : > { %v10233_v15 = vpack.c.bf16 %v1240_v12, %v1238_v10  ;;  %v10235_v16 = vpack.c.bf16 %v1245_v14, %v1243_v13  ;;  %v1242_v17 = vld [vmem:[%s14654_s22 + $0x20] sm:$0xff]  ;;  %v1244_v18 = vld [vmem:[%s14654_s22 + $0x30] sm:$0xff]  ;;  %v1247_v19 = vld [vmem:[%s14654_s22 + $0x48] sm:$0xff]  ;;  %10228 = vmatprep.subr.bf16.mxu0 %v10227_v62  ;;  %s14662_s21 = smov (!%p606_p8, %s14657_s21), 1 }
  0x2c   : > { %10232 = vmatprep.subr.bf16.mxu1 %v10231_v11  ;;  %v1249_v20 = vld [vmem:[%s14654_s22 + $0x58] sm:$0xff]  ;;  %v10237_v21 = vpack.c.bf16 %v1244_v18, %v1242_v17  ;;  %v1246_v23 = vld [vmem:[%s14654_s22 + $0x40] sm:$0xff]  ;;  %v1248_v24 = vld [vmem:[%s14654_s22 + $0x50] sm:$0xff]  ;;  %s8649_s23 = sshll.u32 %s14662_s21, 4 }
  0x2d   : > { %10234 = vmatpush1.bf16.msra.mxu1 %v10233_v15  ;;  %v10239_v22 = vpack.c.bf16 %v1249_v20, %v1247_v19  ;;  %v1251_v25 = vld [vmem:[%s14654_s22 + $0x68] sm:$0xff]  ;;  %v1253_v26 = vld [vmem:[%s14654_s22 + $0x78] sm:$0xff]  ;;  %v10241_v27 = vpack.c.bf16 %v1248_v24, %v1246_v23  ;;  %v1250_v29 = vld [vmem:[%s14654_s22 + $0x60] sm:$0xff]  ;;  %s610_s19 = scalar_lea.vmem %s14644_s18, %s8649_s23 }
  0x2e   : > { %10236 = vmatprep.subr.bf16.mxu1 %v10235_v16  ;;  %v10243_v28 = vpack.c.bf16 %v1253_v26, %v1251_v25  ;;  %v1252_v30 = vld [vmem:[%s14654_s22 + $0x70] sm:$0xff]  ;;  %v1255_v31 = vld [vmem:[%s14654_s22 + $0x88] sm:$0xff]  ;;  %v1257_v32 = vld [vmem:[%s14654_s22 + $0x98] sm:$0xff]  ;;  %10230 = vmatpush1.bf16.msra.mxu0 %v10229_v5 }
  0x2f   : > { %v10245_v33 = vpack.c.bf16 %v1252_v30, %v1250_v29  ;;  %v10247_v34 = vpack.c.bf16 %v1257_v32, %v1255_v31  ;;  %v1254_v35 = vld [vmem:[%s14654_s22 + $0x80] sm:$0xff]  ;;  %v1256_v36 = vld [vmem:[%s14654_s22 + $0x90] sm:$0xff]  ;;  %v1259_v37 = vld [vmem:[%s14654_s22 + $0xa8] sm:$0xff] }
  0x30   : > { %v1261_v38 = vld [vmem:[%s14654_s22 + $0xb8] sm:$0xff]  ;;  %v10249_v39 = vpack.c.bf16 %v1256_v36, %v1254_v35  ;;  %v1258_v42 = vld [vmem:[%s14654_s22 + $0xa0] sm:$0xff]  ;;  %v1260_v43 = vld [vmem:[%s14654_s22 + $0xb0] sm:$0xff] }
  0x31   : > { %10238 = vmatpush1.bf16.msra.mxu1 %v10237_v21  ;;  %v10251_v41 = vpack.c.bf16 %v1261_v38, %v1259_v37  ;;  %v1263_v44 = vld [vmem:[%s14654_s22 + $0xc8] sm:$0xff]  ;;  %v1265_v45 = vld [vmem:[%s14654_s22 + $0xd8] sm:$0xff]  ;;  %v10253_v46 = vpack.c.bf16 %v1260_v43, %v1258_v42  ;;  %v1262_v47 = vld [vmem:[%s14654_s22 + $0xc0] sm:$0xff] }
  0x32   : > { %10240 = vmatprep.subr.bf16.mxu1 %v10239_v22  ;;  %v1264_v48 = vld [vmem:[%s14654_s22 + $0xd0] sm:$0xff]  ;;  %v10255_v49 = vpack.c.bf16 %v1265_v45, %v1263_v44  ;;  %v1267_v50 = vld [vmem:[%s14654_s22 + $0xe8] sm:$0xff]  ;;  %v1269_v51 = vld [vmem:[%s14654_s22 + $0xf8] sm:$0xff] }
  0x33   : > { %v10257_v60 = vpack.c.bf16 %v1264_v48, %v1262_v47  ;;  %v1266_v61 = vld [vmem:[%s14654_s22 + $0xe0] sm:$0xff]  ;;  %v10259_v63 = vpack.c.bf16 %v1269_v51, %v1267_v50  ;;  %v1268_v0 = vld [vmem:[%s14654_s22 + $0xf0] sm:$0xff]  ;;  %v1271_v3 = vld [vmem:[%s14654_s22 + $0x108] sm:$0xff] }
  0x34   : > { %v1273_v4 = vld [vmem:[%s14654_s22 + $0x118] sm:$0xff]  ;;  %v10261_v6 = vpack.c.bf16 %v1268_v0, %v1266_v61  ;;  %v1270_v8 = vld [vmem:[%s14654_s22 + $0x100] sm:$0xff]  ;;  %v1272_v9 = vld [vmem:[%s14654_s22 + $0x110] sm:$0xff] }
  0x35   : > { %10242 = vmatpush1.bf16.msra.mxu1 %v10241_v27  ;;  %v10263_v7 = vpack.c.bf16 %v1273_v4, %v1271_v3  ;;  %v1275_v10 = vld [vmem:[%s14654_s22 + $0x128] sm:$0xff]  ;;  %v1277_v11 = vld [vmem:[%s14654_s22 + $0x138] sm:$0xff]  ;;  %v10265_v12 = vpack.c.bf16 %v1272_v9, %v1270_v8  ;;  %v1274_v14 = vld [vmem:[%s14654_s22 + $0x120] sm:$0xff] }
  0x36   : > { %10244 = vmatprep.subr.bf16.mxu1 %v10243_v28  ;;  %v10267_v13 = vpack.c.bf16 %v1277_v11, %v1275_v10  ;;  %v1276_v15 = vld [vmem:[%s14654_s22 + $0x130] sm:$0xff]  ;;  %v1279_v16 = vld [vmem:[%s14654_s22 + $0x148] sm:$0xff]  ;;  %v1281_v17 = vld [vmem:[%s14654_s22 + $0x158] sm:$0xff] }
  0x37   : > { %v10269_v18 = vpack.c.bf16 %v1276_v15, %v1274_v14  ;;  %v10271_v19 = vpack.c.bf16 %v1281_v17, %v1279_v16  ;;  %v1278_v20 = vld [vmem:[%s14654_s22 + $0x140] sm:$0xff]  ;;  %v1280_v21 = vld [vmem:[%s14654_s22 + $0x150] sm:$0xff]  ;;  %v1283_v22 = vld [vmem:[%s14654_s22 + $0x168] sm:$0xff] }
  0x38   : > { %v1285_v23 = vld [vmem:[%s14654_s22 + $0x178] sm:$0xff]  ;;  %v10273_v24 = vpack.c.bf16 %v1280_v21, %v1278_v20  ;;  %v1282_v26 = vld [vmem:[%s14654_s22 + $0x160] sm:$0xff]  ;;  %v1284_v27 = vld [vmem:[%s14654_s22 + $0x170] sm:$0xff] }
  0x39   : > { %10246 = vmatpush1.bf16.msra.mxu1 %v10245_v33  ;;  %v10275_v25 = vpack.c.bf16 %v1285_v23, %v1283_v22  ;;  %v1287_v28 = vld [vmem:[%s14654_s22 + $0x188] sm:$0xff]  ;;  %v1289_v29 = vld [vmem:[%s14654_s22 + $0x198] sm:$0xff]  ;;  %v10277_v30 = vpack.c.bf16 %v1284_v27, %v1282_v26  ;;  %v1286_v32 = vld [vmem:[%s14654_s22 + $0x180] sm:$0xff] }
  0x3a   : > { %10248 = vmatprep.subr.bf16.mxu1 %v10247_v34  ;;  %v10279_v31 = vpack.c.bf16 %v1289_v29, %v1287_v28  ;;  %v1288_v33 = vld [vmem:[%s14654_s22 + $0x190] sm:$0xff]  ;;  %v643_v34 = vld [vmem:[%s14655_s26] sm:$0xff]  ;;  %v1291_v35 = vld [vmem:[%s14654_s22 + $0x1a8] sm:$0xff] }
  0x3b   : > { %v1293_v36 = vld [vmem:[%s14654_s22 + $0x1b8] sm:$0xff]  ;;  %7989 = vmatmul.mubr.msk.f32.vlgmr.msra.gmra.mrb[0].mxu0 %vm667_vm0, %v643_v34  ;;  %v644_v37 = vld [vmem:[%s14655_s26 + $0x8] sm:$0xff]  ;;  %v10281_v38 = vpack.c.bf16 %v1288_v33, %v1286_v32  ;;  %v1292_v42 = vld [vmem:[%s14654_s22 + $0x1b0] sm:$0xff] }
  0x3c   : > { %810 = vmatprep.mubr.f32.mxu0 %v11170_v40  ;;  %v1295_v43 = vld [vmem:[%s14654_s22 + $0x1c8] sm:$0xff]  ;;  %v1297_v44 = vld [vmem:[%s14654_s22 + $0x1d8] sm:$0xff]  ;;  %v645_v45 = vld [vmem:[%s14655_s26 + $0x10] sm:$0xff] }
  0x3d   : > { %10250 = vmatpush1.bf16.msra.mxu1 %v10249_v39  ;;  %v10283_v39 = vpack.c.bf16 %v1293_v36, %v1291_v35  ;;  %v10287_v47 = vpack.c.bf16 %v1297_v44, %v1295_v43  ;;  %v1294_v48 = vld [vmem:[%s14654_s22 + $0x1c0] sm:$0xff]  ;;  %v1299_v50 = vld [vmem:[%s14654_s22 + $0x1e8] sm:$0xff]  ;;  %v1301_v51 = vld [vmem:[%s14654_s22 + $0x1f8] sm:$0xff] }
  0x3e   : > { %10252 = vmatprep.subr.bf16.mxu1 %v10251_v41  ;;  %v1290_v41 = vld [vmem:[%s14654_s22 + $0x1a0] sm:$0xff]  ;;  %v646_v58 = vld [vmem:[%s14655_s26 + $0x18] sm:$0xff]  ;;  %v1300_v62 = vld [vmem:[%s14654_s22 + $0x1f0] sm:$0xff] }
  0x3f   : > { %7990 = vmatmul.mubr.msk.f32.gmra.mrb[2].mxu0 %vm667_vm0, %v644_v37  ;;  %v1298_v61 = vld [vmem:[%s14654_s22 + $0x1e0] sm:$0xff]  ;;  %v8088_v0 = vld [vmem:[%s14654_s22 + $0x218] sm:$0xff]  ;;  %v8090_v8 = vld [vmem:[%s14654_s22 + $0x228] sm:$0xff] }
  0x40   : > { %816 = vmatprep.mubr.f32.mxu0 %v11170_v40  ;;  %v647_v3 = vld [vmem:[%s14655_s26 + $0x20] sm:$0xff]  ;;  %v10293_v4 = vpack.c.bf16 %v1300_v62, %v1298_v61  ;;  %v8092_v9 = vld [vmem:[%s14654_s22 + $0x238] sm:$0xff]  ;;  %v648_v10 = vld [vmem:[%s14655_s26 + $0x28] sm:$0xff] }
  0x41   : > { %10254 = vmatpush1.bf16.msra.mxu1 %v10253_v46  ;;  %v10285_v46 = vpack.c.bf16 %v1292_v42, %v1290_v41  ;;  %v8091_v14 = vld [vmem:[%s14654_s22 + $0x230] sm:$0xff]  ;;  %v8094_v15 = vld [vmem:[%s14654_s22 + $0x248] sm:$0xff]  ;;  %v8096_v16 = vld [vmem:[%s14654_s22 + $0x258] sm:$0xff] }
  0x42   : > { %10256 = vmatprep.subr.bf16.mxu1 %v10255_v49  ;;  %v1296_v49 = vld [vmem:[%s14654_s22 + $0x1d0] sm:$0xff]  ;;  %v8093_v20 = vld [vmem:[%s14654_s22 + $0x240] sm:$0xff]  ;;  %v8098_v22 = vld [vmem:[%s14654_s22 + $0x268] sm:$0xff] }
  0x43   : > { %7991 = vmatmul.mubr.msk.f32.gmra.mrb[4].mxu0 %vm667_vm0, %v645_v45  ;;  %v10289_v59 = vpack.c.bf16 %v1296_v49, %v1294_v48  ;;  %v649_v17 = vld [vmem:[%s14655_s26 + $0x30] sm:$0xff]  ;;  %v8100_v23 = vld [vmem:[%s14654_s22 + $0x278] sm:$0xff]  ;;  %v8097_v27 = vld [vmem:[%s14654_s22 + $0x260] sm:$0xff] }
  0x44   : > { %822 = vmatprep.mubr.f32.mxu0 %v11170_v40  ;;  %v8095_v21 = vld [vmem:[%s14654_s22 + $0x250] sm:$0xff]  ;;  %v10315_v26 = vpack.c.bf16 %v8100_v23, %v8098_v22  ;;  %v8102_v29 = vld [vmem:[%s14654_s22 + $0x288] sm:$0xff]  ;;  %v8101_v34 = vld [vmem:[%s14654_s22 + $0x280] sm:$0xff] }
  0x45   : > { %10258 = vmatpush1.bf16.msra.mxu1 %v10257_v60  ;;  %v10291_v60 = vpack.c.bf16 %v1301_v51, %v1299_v50  ;;  %v8099_v28 = vld [vmem:[%s14654_s22 + $0x270] sm:$0xff]  ;;  %v8106_v36 = vld [vmem:[%s14654_s22 + $0x2a8] sm:$0xff]  ;;  %v8108_v37 = vld [vmem:[%s14654_s22 + $0x2b8] sm:$0xff] }
  0x46   : > { %10260 = vmatprep.subr.bf16.mxu1 %v10259_v63  ;;  %v8086_v63 = vld [vmem:[%s14654_s22 + $0x208] sm:$0xff]  ;;  %v10317_v32 = vpack.c.bf16 %v8099_v28, %v8097_v27  ;;  %v8103_v35 = vld [vmem:[%s14654_s22 + $0x290] sm:$0xff]  ;;  %v10323_v41 = vpack.c.bf16 %v8108_v37, %v8106_v36  ;;  %v8105_v42 = vld [vmem:[%s14654_s22 + $0x2a0] sm:$0xff] }
  0x47   : > { %7992 = vmatmul.mubr.msk.f32.gmra.mrb[6].mxu0 %vm667_vm0, %v646_v58  ;;  %v10303_v5 = vpack.c.bf16 %v8088_v0, %v8086_v63  ;;  %v8107_v43 = vld [vmem:[%s14654_s22 + $0x2b0] sm:$0xff]  ;;  %v8110_v44 = vld [vmem:[%s14654_s22 + $0x2c8] sm:$0xff]  ;;  %v8112_v45 = vld [vmem:[%s14654_s22 + $0x2d8] sm:$0xff] }
  0x48   : > { %828 = vmatprep.mubr.f32.mxu0 %v11170_v40  ;;  %v8109_v48 = vld [vmem:[%s14654_s22 + $0x2c0] sm:$0xff]  ;;  %v8111_v49 = vld [vmem:[%s14654_s22 + $0x2d0] sm:$0xff]  ;;  %v8114_v50 = vld [vmem:[%s14654_s22 + $0x2e8] sm:$0xff] }
  0x49   : > { %10262 = vmatpush1.bf16.msra.mxu1 %v10261_v6  ;;  %v8085_v6 = vld [vmem:[%s14654_s22 + $0x200] sm:$0xff]  ;;  %v8116_v51 = vld [vmem:[%s14654_s22 + $0x2f8] sm:$0xff]  ;;  %v8115_v62 = vld [vmem:[%s14654_s22 + $0x2f0] sm:$0xff] }
  0x4a   : > { %10264 = vmatprep.subr.bf16.mxu1 %v10263_v7  ;;  %v8087_v7 = vld [vmem:[%s14654_s22 + $0x210] sm:$0xff]  ;;  %v654_v58 = vld [vmem:[%s14655_s26 + $0x58] sm:$0xff]  ;;  %v8113_v61 = vld [vmem:[%s14654_s22 + $0x2e0] sm:$0xff] }
  0x4b   : > { %7993 = vmatmul.mubr.msk.f32.gmra.mrb[8].mxu0 %vm667_vm0, %v647_v3  ;;  %v10305_v11 = vpack.c.bf16 %v8087_v7, %v8085_v6  ;;  %v8118_v63 = vld [vmem:[%s14654_s22 + $0x308] sm:$0xff]  ;;  %v8120_v0 = vld [vmem:[%s14654_s22 + $0x318] sm:$0xff]  ;;  %v655_v3 = vld [vmem:[%s14655_s26 + $0x60] sm:$0xff] }
  0x4c   : > { %834 = vmatprep.mubr.f32.mxu0 %v11170_v40  ;;  %v8117_v6 = vld [vmem:[%s14654_s22 + $0x300] sm:$0xff]  ;;  %v8119_v7 = vld [vmem:[%s14654_s22 + $0x310] sm:$0xff]  ;;  %v8130_v22 = vld [vmem:[%s14654_s22 + $0x368] sm:$0xff] }
  0x4d   : > { %10266 = vmatpush1.bf16.msra.mxu1 %v10265_v12  ;;  %v10307_v12 = vpack.c.bf16 %v8092_v9, %v8090_v8  ;;  %v8122_v8 = vld [vmem:[%s14654_s22 + $0x328] sm:$0xff]  ;;  %v8124_v9 = vld [vmem:[%s14654_s22 + $0x338] sm:$0xff]  ;;  %v8129_v27 = vld [vmem:[%s14654_s22 + $0x360] sm:$0xff] }
  0x4e   : > { %10268 = vmatprep.subr.bf16.mxu1 %v10267_v13  ;;  %v8089_v13 = vld [vmem:[%s14654_s22 + $0x220] sm:$0xff]  ;;  %v8132_v23 = vld [vmem:[%s14654_s22 + $0x378] sm:$0xff]  ;;  %v8131_v28 = vld [vmem:[%s14654_s22 + $0x370] sm:$0xff] }
  0x4f   : > { %7994 = vmatmul.mubr.msk.f32.gmra.mrb[10].mxu0 %vm667_vm0, %v648_v10  ;;  %v656_v10 = vld [vmem:[%s14655_s26 + $0x68] sm:$0xff]  ;;  %v8140_v37 = vld [vmem:[%s14654_s22 + $0x3b8] sm:$0xff] }
  0x50   : > { %840 = vmatprep.mubr.f32.mxu0 %v11170_v40  ;;  %v8138_v36 = vld [vmem:[%s14654_s22 + $0x3a8] sm:$0xff] }
  0x51   : > { %10270 = vmatpush1.bf16.msra.mxu1 %v10269_v18  ;;  %v10309_v18 = vpack.c.bf16 %v8091_v14, %v8089_v13  ;;  %v8121_v13 = vld [vmem:[%s14654_s22 + $0x320] sm:$0xff]  ;;  %v8123_v14 = vld [vmem:[%s14654_s22 + $0x330] sm:$0xff] }
  0x52   : > { %10272 = vmatprep.subr.bf16.mxu1 %v10271_v19  ;;  %v10311_v19 = vpack.c.bf16 %v8096_v16, %v8094_v15  ;;  %v8126_v15 = vld [vmem:[%s14654_s22 + $0x348] sm:$0xff]  ;;  %v8128_v16 = vld [vmem:[%s14654_s22 + $0x358] sm:$0xff] }
  0x53   : > { %7995 = vmatmul.mubr.msk.f32.gmra.mrb[12].mxu0 %vm667_vm0, %v649_v17  ;;  %v657_v17 = vld [vmem:[%s14655_s26 + $0x70] sm:$0xff] }
  0x54   : > { %846 = vmatprep.mubr.f32.mxu0 %v11170_v40 }
  0x55   : > { %10274 = vmatpush1.bf16.msra.mxu1 %v10273_v24  ;;  %v650_v24 = vld [vmem:[%s14655_s26 + $0x38] sm:$0xff] }
  0x56   : > { %10276 = vmatprep.subr.bf16.mxu1 %v10275_v25  ;;  %v10313_v25 = vpack.c.bf16 %v8095_v21, %v8093_v20  ;;  %v8125_v20 = vld [vmem:[%s14654_s22 + $0x340] sm:$0xff]  ;;  %v8127_v21 = vld [vmem:[%s14654_s22 + $0x350] sm:$0xff] }
  0x57   : > { %7996 = vmatmul.mubr.msk.f32.gmra.mrb[14].mxu0 %vm667_vm0, %v650_v24  ;;  %v658_v24 = vld [vmem:[%s14655_s26 + $0x78] sm:$0xff] }
  0x58   : > { %852 = vmatprep.mubr.f32.mxu0 %v11170_v40 }
  0x59   : > { %10278 = vmatpush1.bf16.msra.mxu1 %v10277_v30  ;;  %v8104_v30 = vld [vmem:[%s14654_s22 + $0x298] sm:$0xff] }
  0x5a   : > { %10280 = vmatprep.subr.bf16.mxu1 %v10279_v31  ;;  %v651_v31 = vld [vmem:[%s14655_s26 + $0x40] sm:$0xff]  ;;  %v10319_v33 = vpack.c.bf16 %v8104_v30, %v8102_v29  ;;  %v8134_v29 = vld [vmem:[%s14654_s22 + $0x388] sm:$0xff]  ;;  %v8136_v30 = vld [vmem:[%s14654_s22 + $0x398] sm:$0xff] }
  0x5b   : > { %7997 = vmatmul.mubr.msk.f32.gmra.mrb[16].mxu0 %vm667_vm0, %v651_v31  ;;  %v659_v31 = vld [vmem:[%s14655_s26 + $0x80] sm:$0xff] }
  0x5c   : > { %858 = vmatprep.mubr.f32.mxu0 %v11170_v40 }
  0x5d   : > { %10282 = vmatpush1.bf16.msra.mxu1 %v10281_v38  ;;  %v652_v38 = vld [vmem:[%s14655_s26 + $0x48] sm:$0xff] }
  0x5e   : > { %10284 = vmatprep.subr.bf16.mxu1 %v10283_v39  ;;  %v10321_v39 = vpack.c.bf16 %v8103_v35, %v8101_v34  ;;  %v8133_v34 = vld [vmem:[%s14654_s22 + $0x380] sm:$0xff]  ;;  %v8135_v35 = vld [vmem:[%s14654_s22 + $0x390] sm:$0xff] }
  0x5f   : > { %7998 = vmatmul.mubr.msk.f32.gmra.mrb[18].mxu0 %vm667_vm0, %v652_v38  ;;  %v660_v38 = vld [vmem:[%s14655_s26 + $0x88] sm:$0xff] }
  0x60   : > { %864 = vmatprep.mubr.f32.mxu0 %v11170_v40 }
  0x61   : > { %10286 = vmatpush1.bf16.msra.mxu1 %v10285_v46  ;;  %v10325_v46 = vpack.c.bf16 %v8107_v43, %v8105_v42  ;;  %v8137_v42 = vld [vmem:[%s14654_s22 + $0x3a0] sm:$0xff]  ;;  %v8139_v43 = vld [vmem:[%s14654_s22 + $0x3b0] sm:$0xff] }
  0x62   : > { %10288 = vmatprep.subr.bf16.mxu1 %v10287_v47  ;;  %v10327_v47 = vpack.c.bf16 %v8112_v45, %v8110_v44  ;;  %v8142_v44 = vld [vmem:[%s14654_s22 + $0x3c8] sm:$0xff]  ;;  %v8144_v45 = vld [vmem:[%s14654_s22 + $0x3d8] sm:$0xff] }
  0x65   : > { %10290 = vmatpush1.bf16.msra.mxu1 %v10289_v59  ;;  %v10329_v59 = vpack.c.bf16 %v8111_v49, %v8109_v48  ;;  %v8141_v48 = vld [vmem:[%s14654_s22 + $0x3c0] sm:$0xff]  ;;  %v8143_v49 = vld [vmem:[%s14654_s22 + $0x3d0] sm:$0xff] }
  0x66   : > { %10292 = vmatprep.subr.bf16.mxu1 %v10291_v60  ;;  %v10331_v60 = vpack.c.bf16 %v8116_v51, %v8114_v50  ;;  %v8146_v50 = vld [vmem:[%s14654_s22 + $0x3e8] sm:$0xff]  ;;  %v8148_v51 = vld [vmem:[%s14654_s22 + $0x3f8] sm:$0xff] }
  0x69   : > { %10294 = vmatpush1.bf16.msra.mxu1 %v10293_v4  ;;  %v10333_v4 = vpack.c.bf16 %v8115_v62, %v8113_v61  ;;  %v8145_v61 = vld [vmem:[%s14654_s22 + $0x3e0] sm:$0xff]  ;;  %v8147_v62 = vld [vmem:[%s14654_s22 + $0x3f0] sm:$0xff] }
  0x6a   : > { %10304 = vmatprep.subr.bf16.mxu1 %v10303_v5  ;;  %v10335_v5 = vpack.c.bf16 %v8120_v0, %v8118_v63  ;;  %v10365_v63 = vpack.c.bf16 %v8147_v62, %v8145_v61  ;;  %v663_v0 = vld [vmem:[%s14655_s26 + $0xa0] sm:$0xff]  ;;  %v3366_v61 = vld [vmem:[%s14634_s8 + $0x38] sm:$0xff] }
  0x6b   : > { %v3383_v62 = vld [vmem:[%s14634_s8 + $0xc0] sm:$0xff] }
  0x6c   : > { %1367 = vmatmul.mubr.f32.vlgmr.msra.gmra.mrb[0].mxu1 %v11400_v53 }
  0x6d   : > { %1372 = vmatprep.mubr.f32.mxu1 %v11402_v54  ;;  %10306 = vmatpush1.bf16.msra.mxu1 %v10305_v11  ;;  %v10337_v11 = vpack.c.bf16 %v8119_v7, %v8117_v6  ;;  %v625_v6 = vld [vmem:[%s14629_s3 + $0x30] sm:$0xff]  ;;  %v626_v7 = vld [vmem:[%s14629_s3 + $0x38] sm:$0xff] }
  0x6e   : > { %10308 = vmatprep.subr.bf16.mxu1 %v10307_v12  ;;  %v10339_v12 = vpack.c.bf16 %v8124_v9, %v8122_v8  ;;  %v627_v8 = vld [vmem:[%s14629_s3 + $0x40] sm:$0xff]  ;;  %v628_v9 = vld [vmem:[%s14629_s3 + $0x48] sm:$0xff] }
  0x70   : > { %1373 = vmatmul.mubr.f32.gmra.mrb[2].mxu1 %v11404_v55 }
  0x71   : > { %1378 = vmatprep.mubr.f32.mxu1 %v11406_v56  ;;  %10310 = vmatpush1.bf16.msra.mxu1 %v10309_v18  ;;  %v10341_v18 = vpack.c.bf16 %v8123_v14, %v8121_v13  ;;  %v632_v13 = vld [vmem:[%s14629_s3 + $0x68] sm:$0xff]  ;;  %v633_v14 = vld [vmem:[%s14629_s3 + $0x70] sm:$0xff] }
  0x72   : > { %10312 = vmatprep.subr.bf16.mxu1 %v10311_v19  ;;  %v10343_v19 = vpack.c.bf16 %v8128_v16, %v8126_v15  ;;  %v634_v15 = vld [vmem:[%s14629_s3 + $0x78] sm:$0xff]  ;;  %v635_v16 = vld [vmem:[%s14629_s3 + $0x80] sm:$0xff] }
  0x74   : > { %1379 = vmatmul.mubr.f32.gmra.mrb[4].mxu1 %v11422_v1 }
  0x75   : > { %1384 = vmatprep.mubr.f32.mxu1 %v11408_v57  ;;  %10314 = vmatpush1.bf16.msra.mxu1 %v10313_v25  ;;  %v10345_v25 = vpack.c.bf16 %v8127_v21, %v8125_v20  ;;  %v639_v20 = vld [vmem:[%s14629_s3 + $0xa0] sm:$0xff]  ;;  %v640_v21 = vld [vmem:[%s14629_s3 + $0xa8] sm:$0xff] }
  0x76   : > { %10316 = vmatprep.subr.bf16.mxu1 %v10315_v26  ;;  %v10347_v26 = vpack.c.bf16 %v8132_v23, %v8130_v22  ;;  %v641_v22 = vld [vmem:[%s14629_s3 + $0xb0] sm:$0xff] }
  0x78   : > { %1385 = vmatmul.mubr.f32.gmra.mrb[6].mxu1 %v11424_v2 }
  0x79   : > { %10318 = vmatpush1.bf16.msra.mxu1 %v10317_v32  ;;  %1970 = vmatprep.mubr.f32.mxu1 %v11397_v52  ;;  %v653_v52 = vld [vmem:[%s14655_s26 + $0x50] sm:$0xff]  ;;  %v10349_v32 = vpack.c.bf16 %v8131_v28, %v8129_v27  ;;  %v3376_v28 = vld [vmem:[%s14634_s8 + $0x88] sm:$0xff] }
  0x7a   : > { %10320 = vmatprep.subr.bf16.mxu1 %v10319_v33  ;;  %7999 = vmatmul.mubr.msk.f32.gmra.mrb[20].mxu0 %vm667_vm0, %v653_v52  ;;  %v10351_v33 = vpack.c.bf16 %v8136_v30, %v8134_v29  ;;  %v661_v52 = vld [vmem:[%s14655_s26 + $0x90] sm:$0xff]  ;;  %v3359_v29 = vld [vmem:[%s14634_s8] sm:$0xff] }
  0x7b   : > { %870 = vmatprep.mubr.f32.mxu0 %v11170_v40 }
  0x7d   : > { %10322 = vmatpush1.bf16.msra.mxu1 %v10321_v39  ;;  %v10353_v39 = vpack.c.bf16 %v8135_v35, %v8133_v34  ;;  %v3360_v34 = vld [vmem:[%s14634_s8 + $0x8] sm:$0xff]  ;;  %v3377_v35 = vld [vmem:[%s14634_s8 + $0x90] sm:$0xff] }
  0x7e   : > { %10324 = vmatprep.subr.bf16.mxu1 %v10323_v41  ;;  %8000 = vmatmul.mubr.msk.f32.gmra.mrb[22].mxu0 %vm667_vm0, %v654_v58  ;;  %v10355_v41 = vpack.c.bf16 %v8140_v37, %v8138_v36  ;;  %v662_v58 = vld [vmem:[%s14655_s26 + $0x98] sm:$0xff] }
  0x7f   : > { %876 = vmatprep.mubr.f32.mxu0 %v11170_v40 }
  0x81   : > { %10326 = vmatpush1.bf16.msra.mxu1 %v10325_v46  ;;  %v10357_v46 = vpack.c.bf16 %v8139_v43, %v8137_v42 }
  0x82   : > { %10328 = vmatprep.subr.bf16.mxu1 %v10327_v47  ;;  %8001 = vmatmul.mubr.msk.f32.gmra.mrb[24].mxu0 %vm667_vm0, %v655_v3  ;;  %v10359_v47 = vpack.c.bf16 %v8144_v45, %v8142_v44  ;;  %v622_v3 = vld [vmem:[%s14629_s3 + $0x18] sm:$0xff]  ;;  %v3379_v45 = vld [vmem:[%s14634_s8 + $0xa0] sm:$0xff] }
  0x83   : > { %882 = vmatprep.mubr.f32.mxu0 %v11170_v40  ;;  %v3362_v44 = vld [vmem:[%s14634_s8 + $0x18] sm:$0xff] }
  0x85   : > { %10330 = vmatpush1.bf16.msra.mxu1 %v10329_v59  ;;  %v10361_v59 = vpack.c.bf16 %v8143_v49, %v8141_v48  ;;  %v8014_v48 = vld [vmem:[%s14655_s26 + $0xc8] sm:$0xff] }
  0x86   : > { %10332 = vmatprep.subr.bf16.mxu1 %v10331_v60  ;;  %8002 = vmatmul.mubr.msk.f32.gmra.mrb[26].mxu0 %vm667_vm0, %v656_v10  ;;  %v10363_v60 = vpack.c.bf16 %v8148_v51, %v8146_v50  ;;  %v629_v10 = vld [vmem:[%s14629_s3 + $0x50] sm:$0xff]  ;;  %v3364_v49 = vld [vmem:[%s14634_s8 + $0x28] sm:$0xff] }
  0x87   : > { %888 = vmatprep.mubr.f32.mxu0 %v11170_v40  ;;  %v3381_v50 = vld [vmem:[%s14634_s8 + $0xb0] sm:$0xff] }
  0x88   : > { %v8015_v51 = vld [vmem:[%s14655_s26 + $0xd0] sm:$0xff] }
  0x89   : > { %10334 = vmatpush1.bf16.msra.mxu1 %v10333_v4  ;;  %v623_v4 = vld [vmem:[%s14629_s3 + $0x20] sm:$0xff] }
  0x8a   : > { %10336 = vmatprep.subr.bf16.mxu1 %v10335_v5  ;;  %8003 = vmatmul.mubr.msk.f32.gmra.mrb[28].mxu0 %vm667_vm0, %v657_v17  ;;  %v624_v5 = vld [vmem:[%s14629_s3 + $0x28] sm:$0xff] }
  0x8b   : > { %894 = vmatprep.mubr.f32.mxu0 %v11170_v40  ;;  %v636_v17 = vld [vmem:[%s14629_s3 + $0x88] sm:$0xff] }
  0x8d   : > { %10338 = vmatpush1.bf16.msra.mxu1 %v10337_v11  ;;  %v630_v11 = vld [vmem:[%s14629_s3 + $0x58] sm:$0xff] }
  0x8e   : > { %10340 = vmatprep.subr.bf16.mxu1 %v10339_v12  ;;  %8004 = vmatmul.mubr.msk.f32.gmra.mrb[30].mxu0 %vm667_vm0, %v658_v24  ;;  %v631_v12 = vld [vmem:[%s14629_s3 + $0x60] sm:$0xff]  ;;  %v642_v24 = vld [vmem:[%s14629_s3 + $0xb8] sm:$0xff] }
  0x8f   : > { %900 = vmatprep.mubr.f32.mxu0 %v11170_v40 }
  0x91   : > { %10342 = vmatpush1.bf16.msra.mxu1 %v10341_v18  ;;  %v637_v18 = vld [vmem:[%s14629_s3 + $0x90] sm:$0xff] }
  0x92   : > { %10344 = vmatprep.subr.bf16.mxu1 %v10343_v19  ;;  %8005 = vmatmul.mubr.msk.f32.gmra.mrb[32].mxu0 %vm667_vm0, %v659_v31  ;;  %v638_v19 = vld [vmem:[%s14629_s3 + $0x98] sm:$0xff] }
  0x93   : > { %906 = vmatprep.mubr.f32.mxu0 %v11170_v40 }
  0x95   : > { %10346 = vmatpush1.bf16.msra.mxu1 %v10345_v25  ;;  %v3375_v25 = vld [vmem:[%s14634_s8 + $0x80] sm:$0xff] }
  0x96   : > { %10348 = vmatprep.subr.bf16.mxu1 %v10347_v26  ;;  %8006 = vmatmul.mubr.msk.f32.gmra.mrb[34].mxu0 %vm667_vm0, %v660_v38  ;;  %v3378_v38 = vld [vmem:[%s14634_s8 + $0x98] sm:$0xff] }
  0x97   : > { %912 = vmatprep.mubr.f32.mxu0 %v11170_v40 }
  0x99   : > { %10350 = vmatpush1.bf16.msra.mxu1 %v10349_v32 }
  0x9a   : > { %10352 = vmatprep.subr.bf16.mxu1 %v10351_v33  ;;  %8007 = vmatmul.mubr.msk.f32.gmra.mrb[36].mxu0 %vm667_vm0, %v661_v52  ;;  %v8013_v52 = vld [vmem:[%s14655_s26 + $0xc0] sm:$0xff] }
  0x9b   : > { %918 = vmatprep.mubr.f32.mxu0 %v11170_v40 }
  0x9d   : > { %10354 = vmatpush1.bf16.msra.mxu1 %v10353_v39  ;;  %v3361_v39 = vld [vmem:[%s14634_s8 + $0x10] sm:$0xff] }
  0x9e   : > { %10356 = vmatprep.subr.bf16.mxu1 %v10355_v41  ;;  %8008 = vmatmul.mubr.msk.f32.gmra.mrb[38].mxu0 %vm667_vm0, %v662_v58  ;;  %v3382_v58 = vld [vmem:[%s14634_s8 + $0xb8] sm:$0xff] }
  0x9f   : > { %924 = vmatprep.mubr.f32.mxu0 %v11170_v40 }
  0xa1   : > { %10358 = vmatpush1.bf16.msra.mxu1 %v10357_v46  ;;  %v3380_v46 = vld [vmem:[%s14634_s8 + $0xa8] sm:$0xff] }
  0xa2   : > { %10360 = vmatprep.subr.bf16.mxu1 %v10359_v47  ;;  %8009 = vmatmul.mubr.msk.f32.gmra.mrb[40].mxu0 %vm667_vm0, %v663_v0  ;;  %v3363_v47 = vld [vmem:[%s14634_s8 + $0x20] sm:$0xff]  ;;  %v3384_v0 = vld [vmem:[%s14634_s8 + $0xc8] sm:$0xff] }
  0xa3   : > { %930 = vmatprep.mubr.f32.mxu0 %v11170_v40 }
  0xa5   : > { %10362 = vmatpush1.bf16.msra.mxu1 %v10361_v59  ;;  %v3365_v59 = vld [vmem:[%s14634_s8 + $0x30] sm:$0xff] }
  0xa6   : > { %10364 = vmatprep.subr.bf16.mxu1 %v10363_v60  ;;  %v8016_v60 = vld [vmem:[%s14655_s26 + $0xd8] sm:$0xff] }
  0xa9   : > { %10366 = vmatpush1.bf16.msra.mxu1 %v10365_v63  ;;  %v8017_v63 = vld [vmem:[%s14655_s26 + $0xe0] sm:$0xff] }
  0xac   : > { %1971 = vmatmul.mubr.f32.vlgmr.msra.gmra.mrb[8].mxu1 %v11400_v53  ;;  %v664_v53 = vld [vmem:[%s14655_s26 + $0xa8] sm:$0xff] }
  0xad   : > { %1976 = vmatprep.mubr.f32.mxu1 %v11402_v54  ;;  %8010 = vmatmul.mubr.msk.f32.gmra.mrb[42].mxu0 %vm667_vm0, %v664_v53  ;;  %v665_v54 = vld [vmem:[%s14655_s26 + $0xb0] sm:$0xff]  ;;  %v3367_v53 = vld [vmem:[%s14634_s8 + $0x40] sm:$0xff] }
  0xae   : > { %936 = vmatprep.mubr.f32.mxu0 %v11170_v40 }
  0xb0   : > { %1977 = vmatmul.mubr.f32.gmra.mrb[10].mxu1 %v11404_v55  ;;  %v666_v55 = vld [vmem:[%s14655_s26 + $0xb8] sm:$0xff] }
  0xb1   : > { %1982 = vmatprep.mubr.f32.mxu1 %v11406_v56  ;;  %8011 = vmatmul.mubr.msk.f32.gmra.mrb[44].mxu0 %vm667_vm0, %v665_v54  ;;  %v11171_v56 = vmov 0   ;;  %v8018_v54 = vld [vmem:[%s14655_s26 + $0xe8] sm:$0xff] }
  0xb2   : > { %942 = vmatprep.mubr.f32.mxu0 %v11170_v40  ;;  %11144 = vset.pattern.permute.xlu0 %v11171_v56 }
  0xb3   : > { %11145 = vset.pattern.permute.xlu1 %v11171_v56  ;;  %v3385_v56 = vld [vmem:[%s14634_s8 + $0xd0] sm:$0xff] }
  0xb4   : > { %1983 = vmatmul.mubr.f32.gmra.mrb[12].mxu1 %v11422_v1  ;;  %v621_v1 = vld [vmem:[%s14629_s3 + $0x10] sm:$0xff] }
  0xb5   : > { %1988 = vmatprep.mubr.f32.mxu1 %v11408_v57  ;;  %8012 = vmatmul.mubr.msk.f32.gmra.mrb[46].mxu0 %vm667_vm0, %v666_v55  ;;  %v619_v57 = vld [vmem:[%s14629_s3] sm:$0xff]  ;;  %v3368_v55 = vld [vmem:[%s14634_s8 + $0x48] sm:$0xff] }
  0xb6   : > { %1527 = vmatprep.mubr.f32.mxu0 %v11170_v40  ;;  %951 = vperm.xlu0 %11144, %v619_v57   ;;  %v8019_v57 = vld [vmem:[%s14655_s26 + $0xf0] sm:$0xff] }
  0xb7   : > { %961 = vperm.xlu1 %11145, %v621_v1   ;;  %v3386_v1 = vld [vmem:[%s14634_s8 + $0xd8] sm:$0xff] }
  0xb8   : > { %1989 = vmatmul.mubr.f32.gmra.mrb[14].mxu1 %v11424_v2  ;;  %v620_v2 = vld [vmem:[%s14629_s3 + $0x8] sm:$0xff] }
  0xba   : > { %956 = vperm.xlu0 %11144, %v620_v2   ;;  %v3369_v2 = vld [vmem:[%s14634_s8 + $0x50] sm:$0xff] }
  0xbb   : > { %966 = vperm.xlu1 %11145, %v622_v3   ;;  %v8020_v3 = vld [vmem:[%s14655_s26 + $0xf8] sm:$0xff] }
  0xbe   : > { %971 = vperm.xlu0 %11144, %v623_v4   ;;  %v3370_v4 = vld [vmem:[%s14634_s8 + $0x58] sm:$0xff] }
  0xbf   : > { %976 = vperm.xlu1 %11145, %v624_v5   ;;  %v3387_v5 = vld [vmem:[%s14634_s8 + $0xe0] sm:$0xff] }
  0xc2   : > { %981 = vperm.xlu0 %11144, %v625_v6   ;;  %v8021_v6 = vld [vmem:[%s14655_s26 + $0x100] sm:$0xff] }
  0xc3   : > { %986 = vperm.xlu1 %11145, %v626_v7   ;;  %v3388_v7 = vld [vmem:[%s14634_s8 + $0xe8] sm:$0xff] }
  0xc6   : > { %991 = vperm.xlu0 %11144, %v627_v8   ;;  %v3371_v8 = vld [vmem:[%s14634_s8 + $0x60] sm:$0xff] }
  0xc7   : > { %996 = vperm.xlu1 %11145, %v628_v9   ;;  %v8022_v9 = vld [vmem:[%s14655_s26 + $0x108] sm:$0xff] }
  0xca   : > { %1001 = vperm.xlu0 %11144, %v629_v10   ;;  %v3372_v10 = vld [vmem:[%s14634_s8 + $0x68] sm:$0xff] }
  0xcb   : > { %1006 = vperm.xlu1 %11145, %v630_v11   ;;  %v3389_v11 = vld [vmem:[%s14634_s8 + $0xf0] sm:$0xff] }
  0xce   : > { %1011 = vperm.xlu0 %11144, %v631_v12   ;;  %v8023_v12 = vld [vmem:[%s14655_s26 + $0x110] sm:$0xff] }
  0xcf   : > { %1016 = vperm.xlu1 %11145, %v632_v13   ;;  %v3390_v13 = vld [vmem:[%s14634_s8 + $0xf8] sm:$0xff] }
  0xd2   : > { %1021 = vperm.xlu0 %11144, %v633_v14   ;;  %v3373_v14 = vld [vmem:[%s14634_s8 + $0x70] sm:$0xff] }
  0xd3   : > { %1026 = vperm.xlu1 %11145, %v634_v15   ;;  %v8024_v15 = vld [vmem:[%s14655_s26 + $0x118] sm:$0xff] }
  0xd6   : > { %1031 = vperm.xlu0 %11144, %v635_v16  }
  0xd7   : > { %1036 = vperm.xlu1 %11145, %v636_v17   ;;  %v3374_v17 = vld [vmem:[%s14634_s8 + $0x78] sm:$0xff] }
  0xda   : > { %1041 = vperm.xlu0 %11144, %v637_v18   ;;  %v7003_v18 = vld [vmem:[%s14639_s13] sm:$0xff] }
  0xdb   : > { %1046 = vperm.xlu1 %11145, %v638_v19   ;;  %v8025_v19 = vld [vmem:[%s14655_s26 + $0x120] sm:$0xff] }
  0xde   : > { %1051 = vperm.xlu0 %11144, %v639_v20  }
  0xdf   : > { %1056 = vperm.xlu1 %11145, %v640_v21  }
  0xe2   : > { %1061 = vperm.xlu0 %11144, %v641_v22   ;;  %v7004_v22 = vld [vmem:[%s14639_s13 + $0x8] sm:$0xff] }
  0xe3   : > { %1066 = vperm.xlu1 %11145, %v642_v24   ;;  %v8026_v24 = vld [vmem:[%s14655_s26 + $0x128] sm:$0xff] }
  0xe6   : > { %3827 = vperm.xlu0 %11144, %v3375_v25  }
  0xe7   : > { %3832 = vperm.xlu1 %11145, %v3376_v28  }
  0xea   : > { %3747 = vperm.xlu0 %11144, %v3359_v29   ;;  %v7006_v29 = vld [vmem:[%s14639_s13 + $0x18] sm:$0xff] }
  0xeb   : > { %3752 = vperm.xlu1 %11145, %v3360_v34   ;;  %v7008_v34 = vld [vmem:[%s14639_s13 + $0x28] sm:$0xff] }
  0xee   : > { %3837 = vperm.xlu0 %11144, %v3377_v35   ;;  %v7009_v35 = vld [vmem:[%s14639_s13 + $0x30] sm:$0xff] }
  0xef   : > { %3842 = vperm.xlu1 %11145, %v3378_v38  }
  0xf2   : > { %3757 = vperm.xlu0 %11144, %v3361_v39  }
  0xf3   : > { %3762 = vperm.xlu1 %11145, %v3362_v44   ;;  %v7012_v44 = vld [vmem:[%s14639_s13 + $0x48] sm:$0xff] }
  0xf6   : > { %3847 = vperm.xlu0 %11144, %v3379_v45   ;;  %v7013_v45 = vld [vmem:[%s14639_s13 + $0x50] sm:$0xff] }
  0xf7   : > { %3852 = vperm.xlu1 %11145, %v3380_v46   ;;  %v7014_v46 = vld [vmem:[%s14639_s13 + $0x58] sm:$0xff] }
  0xfa   : > { %3767 = vperm.xlu0 %11144, %v3363_v47   ;;  %v7015_v47 = vld [vmem:[%s14639_s13 + $0x60] sm:$0xff] }
  0xfb   : > { %3772 = vperm.xlu1 %11145, %v3364_v49   ;;  %v7016_v49 = vld [vmem:[%s14639_s13 + $0x68] sm:$0xff] }
  0xfe   : > { %3857 = vperm.xlu0 %11144, %v3381_v50   ;;  %v7017_v50 = vld [vmem:[%s14639_s13 + $0x70] sm:$0xff] }
  0xff   : > { %3862 = vperm.xlu1 %11145, %v3382_v58   ;;  %v7584_v58 = vld [vmem:[%s14641_s15] sm:$0xff] }
 0x102   : > { %3777 = vperm.xlu0 %11144, %v3365_v59   ;;  %v7585_v59 = vld [vmem:[%s14641_s15 + $0x8] sm:$0xff] }
 0x103   : > { %3782 = vperm.xlu1 %11145, %v3366_v61   ;;  %v7586_v61 = vld [vmem:[%s14641_s15 + $0x10] sm:$0xff] }
 0x106   : > { %3867 = vperm.xlu0 %11144, %v3383_v62   ;;  %v7587_v62 = vld [vmem:[%s14641_s15 + $0x18] sm:$0xff] }
 0x107   : > { %3872 = vperm.xlu1 %11145, %v3384_v0   ;;  %v7588_v0 = vld [vmem:[%s14641_s15 + $0x20] sm:$0xff] }
 0x10a   : > { %3787 = vperm.xlu0 %11144, %v3367_v53   ;;  %v7589_v53 = vld [vmem:[%s14641_s15 + $0x28] sm:$0xff] }
 0x10b   : > { %3792 = vperm.xlu1 %11145, %v3368_v55   ;;  %v7590_v55 = vld [vmem:[%s14641_s15 + $0x30] sm:$0xff] }
 0x10e   : > { %3877 = vperm.xlu0 %11144, %v3385_v56   ;;  %v7591_v56 = vld [vmem:[%s14641_s15 + $0x38] sm:$0xff] }
 0x10f   : > { %3882 = vperm.xlu1 %11145, %v3386_v1   ;;  %v7592_v1 = vld [vmem:[%s14641_s15 + $0x40] sm:$0xff] }
 0x112   : > { %3797 = vperm.xlu0 %11144, %v3369_v2   ;;  %v7593_v2 = vld [vmem:[%s14641_s15 + $0x48] sm:$0xff] }
 0x113   : > { %3802 = vperm.xlu1 %11145, %v3370_v4   ;;  %v7594_v4 = vld [vmem:[%s14641_s15 + $0x50] sm:$0xf] }
 0x116   : > { %3887 = vperm.xlu0 %11144, %v3387_v5   ;;  %v7816_v5 = vld [vmem:[%s14643_s17] sm:$0xff] }
 0x117   : > { %3892 = vperm.xlu1 %11145, %v3388_v7   ;;  %v7817_v7 = vld [vmem:[%s14643_s17 + $0x8] sm:$0x3] }
 0x11a   : > { %3807 = vperm.xlu0 %11144, %v3371_v8   ;;  %v8063_v8 = vld [vmem:[%s14655_s26 + $0x190] sm:$0xff] }
 0x11b   : > { %3812 = vperm.xlu1 %11145, %v3372_v10   ;;  %v8065_v10 = vld [vmem:[%s14655_s26 + $0x1a0] sm:$0xff] }
 0x11e   : > { %3897 = vperm.xlu0 %11144, %v3389_v11   ;;  %v8066_v11 = vld [vmem:[%s14655_s26 + $0x1a8] sm:$0xff] }
 0x11f   : > { %3902 = vperm.xlu1 %11145, %v3390_v13   ;;  %v8068_v13 = vld [vmem:[%s14655_s26 + $0x1b8] sm:$0xff] }
 0x122   : > { %3817 = vperm.xlu0 %11144, %v3373_v14   ;;  %v8069_v14 = vld [vmem:[%s14655_s26 + $0x1c0] sm:$0xff] }
 0x123   : > { %3822 = vperm.xlu1 %11145, %v3374_v17   ;;  %v8072_v17 = vld [vmem:[%s14655_s26 + $0x1d8] sm:$0xff] }
 0x126   : > { %7020 = vperm.xlu0 %11144, %v7003_v18   ;;  %v8073_v18 = vld [vmem:[%s14655_s26 + $0x1e0] sm:$0xff] }
 0x127   : > { %7025 = vperm.xlu1 %11145, %v7004_v22   ;;  %v8077_v22 = vld [vmem:[%s14655_s26 + $0x200] sm:$0xff] }
 0x12b   : > { %7035 = vperm.xlu1 %11145, %v7006_v29   ;;  %v8084_v29 = vld [vmem:[%s14655_s26 + $0x238] sm:$0xff] }
 0x12f   : > { %7045 = vperm.xlu1 %11145, %v7008_v34  }
 0x13f   : > { %v1368_v23 = vpop.f32.mrb[0].mxu1 }
 0x140   : > { %v1370_v26 = vpop.f32.mrb[1].mxu1 }
 0x143   : > { %v1374_v27 = vpop.f32.mrb[2].mxu1 }
 0x144   : > { %v10297_v30 = vpack.c.bf16 %v1374_v27, %v1368_v23  ;;  %v1376_v31 = vpop.f32.mrb[3].mxu1  ;;  %v7005_v23 = vld [vmem:[%s14639_s13 + $0x10] sm:$0xff] }
 0x145   : > { %v10295_v32 = vpack.c.bf16 %v1376_v31, %v1370_v26  ;;  %7030 = vperm.xlu0 %11144, %v7005_v23   ;;  %v8027_v31 = vld [vmem:[%s14655_s26 + $0x130] sm:$0xff]  ;;  %v8078_v23 = vld [vmem:[%s14655_s26 + $0x208] sm:$0xff] }
 0x147   : > { %10296 = vmatprep.subr.bf16.mxu0 %v10295_v32  ;;  %v1380_v33 = vpop.f32.mrb[4].mxu1 }
 0x148   : > { %10298 = vmatpush1.bf16.msra.mxu0 %v10297_v30  ;;  %v1382_v36 = vpop.f32.mrb[5].mxu1  ;;  %v7007_v30 = vld [vmem:[%s14639_s13 + $0x20] sm:$0xff] }
 0x149   : > { %7040 = vperm.xlu0 %11144, %v7007_v30   ;;  %v2517_v30 = vld [vmem:[%s14630_s4 + $0x8] sm:$0xff] }
 0x14a   : > { %8173 = vmatprep.mubr.msk.f32.mxu1 %vm2588_vm1, %v2517_v30 }
 0x14b   : > { %v1386_v37 = vpop.f32.mrb[6].mxu1 }
 0x14c   : > { %v10301_v41 = vpack.c.bf16 %v1386_v37, %v1380_v33  ;;  %v1388_v42 = vpop.f32.mrb[7].mxu1 }
 0x14d   : > { %v10299_v43 = vpack.c.bf16 %v1388_v42, %v1382_v36  ;;  %v8028_v36 = vld [vmem:[%s14655_s26 + $0x138] sm:$0xff]  ;;  %7050 = vperm.xlu0 %11144, %v7009_v35   ;;  %v7011_v42 = vld [vmem:[%s14639_s13 + $0x40] sm:$0xff] }
 0x14f   : > { %10300 = vmatprep.subr.bf16.mxu0 %v10299_v43  ;;  %v8029_v43 = vld [vmem:[%s14655_s26 + $0x140] sm:$0xff] }
 0x150   : > { %10302 = vmatpush1.bf16.msra.mxu0 %v10301_v41  ;;  %v7010_v41 = vld [vmem:[%s14639_s13 + $0x38] sm:$0xff] }
 0x151   : > { %7055 = vperm.xlu1 %11145, %v7010_v41   ;;  %7060 = vperm.xlu0 %11144, %v7011_v42   ;;  %v962_v41 = vpop.permute.xlu1 %961 }
 0x153   : > { %8037 = vmatmul.mubr.msk.f32.vlgmr.msra.gmra.mrb[0].mxu0 %vm667_vm0, %v8013_v52  ;;  %v8030_v52 = vld [vmem:[%s14655_s26 + $0x148] sm:$0xff] }
 0x154   : > { %1533 = vmatprep.mubr.f32.mxu0 %v11170_v40 }
 0x155   : > { %7065 = vperm.xlu1 %11145, %v7012_v44   ;;  %7070 = vperm.xlu0 %11144, %v7013_v45  }
 0x157   : > { %8038 = vmatmul.mubr.msk.f32.gmra.mrb[2].mxu0 %vm667_vm0, %v8014_v48  ;;  %v8031_v48 = vld [vmem:[%s14655_s26 + $0x150] sm:$0xff] }
 0x158   : > { %1539 = vmatprep.mubr.f32.mxu0 %v11170_v40 }
 0x159   : > { %7075 = vperm.xlu1 %11145, %v7014_v46   ;;  %7080 = vperm.xlu0 %11144, %v7015_v47  }
 0x15b   : > { %8039 = vmatmul.mubr.msk.f32.gmra.mrb[4].mxu0 %vm667_vm0, %v8015_v51  ;;  %v8032_v51 = vld [vmem:[%s14655_s26 + $0x158] sm:$0xff] }
 0x15c   : > { %1545 = vmatprep.mubr.f32.mxu0 %v11170_v40 }
 0x15d   : > { %7085 = vperm.xlu1 %11145, %v7016_v49   ;;  %7090 = vperm.xlu0 %11144, %v7017_v50  }
 0x15f   : > { %8040 = vmatmul.mubr.msk.f32.gmra.mrb[6].mxu0 %vm667_vm0, %v8016_v60  ;;  %v8033_v60 = vld [vmem:[%s14655_s26 + $0x160] sm:$0xff] }
 0x160   : > { %1551 = vmatprep.mubr.f32.mxu0 %v11170_v40 }
 0x161   : > { %7597 = vperm.xlu1 %11145, %v7584_v58   ;;  %7602 = vperm.xlu0 %11144, %v7585_v59  }
 0x163   : > { %8041 = vmatmul.mubr.msk.f32.gmra.mrb[8].mxu0 %vm667_vm0, %v8017_v63  ;;  %v8034_v63 = vld [vmem:[%s14655_s26 + $0x168] sm:$0xff] }
 0x164   : > { %1557 = vmatprep.mubr.f32.mxu0 %v11170_v40 }
 0x165   : > { %7607 = vperm.xlu1 %11145, %v7586_v61   ;;  %7612 = vperm.xlu0 %11144, %v7587_v62  }
 0x167   : > { %8042 = vmatmul.mubr.msk.f32.gmra.mrb[10].mxu0 %vm667_vm0, %v8018_v54  ;;  %v8035_v54 = vld [vmem:[%s14655_s26 + $0x170] sm:$0xff] }
 0x168   : > { %1563 = vmatprep.mubr.f32.mxu0 %v11170_v40 }
 0x169   : > { %7617 = vperm.xlu1 %11145, %v7588_v0   ;;  %7622 = vperm.xlu0 %11144, %v7589_v53  }
 0x16b   : > { %8043 = vmatmul.mubr.msk.f32.gmra.mrb[12].mxu0 %vm667_vm0, %v8019_v57  ;;  %v8036_v57 = vld [vmem:[%s14655_s26 + $0x178] sm:$0xff] }
 0x16c   : > { %1569 = vmatprep.mubr.f32.mxu0 %v11170_v40 }
 0x16d   : > { %7627 = vperm.xlu1 %11145, %v7590_v55   ;;  %7632 = vperm.xlu0 %11144, %v7591_v56  }
 0x16f   : > { %8044 = vmatmul.mubr.msk.f32.gmra.mrb[14].mxu0 %vm667_vm0, %v8020_v3  ;;  %v8061_v3 = vld [vmem:[%s14655_s26 + $0x180] sm:$0xff] }
 0x170   : > { %1575 = vmatprep.mubr.f32.mxu0 %v11170_v40 }
 0x171   : > { %7637 = vperm.xlu1 %11145, %v7592_v1   ;;  %7642 = vperm.xlu0 %11144, %v7593_v2  }
 0x173   : > { %8045 = vmatmul.mubr.msk.f32.gmra.mrb[16].mxu0 %vm667_vm0, %v8021_v6  ;;  %v8062_v6 = vld [vmem:[%s14655_s26 + $0x188] sm:$0xff] }
 0x174   : > { %1581 = vmatprep.mubr.f32.mxu0 %v11170_v40 }
 0x175   : > { %7647 = vperm.xlu1 %11145, %v7594_v4   ;;  %7820 = vperm.xlu0 %11144, %v7816_v5  }
 0x177   : > { %8046 = vmatmul.mubr.msk.f32.gmra.mrb[18].mxu0 %vm667_vm0, %v8022_v9  ;;  %v8064_v9 = vld [vmem:[%s14655_s26 + $0x198] sm:$0xff] }
 0x178   : > { %1587 = vmatprep.mubr.f32.mxu0 %v11170_v40 }
 0x179   : > { %7825 = vperm.xlu1 %11145, %v7817_v7  }
 0x17b   : > { %8047 = vmatmul.mubr.msk.f32.gmra.mrb[20].mxu0 %vm667_vm0, %v8023_v12  ;;  %v8067_v12 = vld [vmem:[%s14655_s26 + $0x1b0] sm:$0xff] }
 0x17c   : > { %1593 = vmatprep.mubr.f32.mxu0 %v11170_v40 }
 0x17f   : > { %8048 = vmatmul.mubr.msk.f32.gmra.mrb[22].mxu0 %vm667_vm0, %v8024_v15  ;;  %v1972_v16 = vpop.f32.mrb[8].mxu1  ;;  %v8070_v15 = vld [vmem:[%s14655_s26 + $0x1c8] sm:$0xff] }
 0x180   : > { %1599 = vmatprep.mubr.f32.mxu0 %v11170_v40  ;;  %v1974_v20 = vpop.f32.mrb[9].mxu1 }
 0x183   : > { %8049 = vmatmul.mubr.msk.f32.gmra.mrb[24].mxu0 %vm667_vm0, %v8025_v19  ;;  %v1978_v21 = vpop.f32.mrb[10].mxu1  ;;  %v8074_v19 = vld [vmem:[%s14655_s26 + $0x1e8] sm:$0xff] }
 0x184   : > { %1605 = vmatprep.mubr.f32.mxu0 %v11170_v40  ;;  %v10369_v25 = vpack.c.bf16 %v1978_v21, %v1972_v16  ;;  %v1980_v26 = vpop.f32.mrb[11].mxu1  ;;  %v8071_v16 = vld [vmem:[%s14655_s26 + $0x1d0] sm:$0xff]  ;;  %v8076_v21 = vld [vmem:[%s14655_s26 + $0x1f8] sm:$0xff] }
 0x185   : > { %v10367_v27 = vpack.c.bf16 %v1980_v26, %v1974_v20  ;;  %v8075_v20 = vld [vmem:[%s14655_s26 + $0x1f0] sm:$0xff]  ;;  %v8081_v26 = vld [vmem:[%s14655_s26 + $0x220] sm:$0xff] }
 0x187   : > { %8050 = vmatmul.mubr.msk.f32.gmra.mrb[26].mxu0 %vm667_vm0, %v8026_v24  ;;  %10368 = vmatprep.subr.bf16.mxu0 %v10367_v27  ;;  %v1984_v28 = vpop.f32.mrb[12].mxu1  ;;  %v8079_v24 = vld [vmem:[%s14655_s26 + $0x210] sm:$0xff]  ;;  %v8082_v27 = vld [vmem:[%s14655_s26 + $0x228] sm:$0xff] }
 0x188   : > { %1611 = vmatprep.mubr.f32.mxu0 %v11170_v40  ;;  %10370 = vmatpush1.bf16.msra.mxu0 %v10369_v25  ;;  %v1986_v32 = vpop.f32.mrb[13].mxu1  ;;  %v8080_v25 = vld [vmem:[%s14655_s26 + $0x218] sm:$0xff] }
 0x18b   : > { %8051 = vmatmul.mubr.msk.f32.gmra.mrb[28].mxu0 %vm667_vm0, %v8027_v31  ;;  %v1990_v33 = vpop.f32.mrb[14].mxu1  ;;  %v952_v31 = vpop.permute.xlu0 %951 }
 0x18c   : > { %1617 = vmatprep.mubr.f32.mxu0 %v11170_v40  ;;  %v10373_v37 = vpack.c.bf16 %v1990_v33, %v1984_v28  ;;  %v1992_v38 = vpop.f32.mrb[15].mxu1  ;;  %v8083_v28 = vld [vmem:[%s14655_s26 + $0x230] sm:$0xff] }
 0x18d   : > { %v10371_v39 = vpack.c.bf16 %v1992_v38, %v1986_v32 }
 0x18f   : > { %8052 = vmatmul.mubr.msk.f32.gmra.mrb[30].mxu0 %vm667_vm0, %v8028_v36  ;;  %10372 = vmatprep.subr.bf16.mxu0 %v10371_v39  ;;  %v957_v35 = vpop.permute.xlu0 %956 }
 0x190   : > { %1623 = vmatprep.mubr.f32.mxu0 %v11170_v40  ;;  %10374 = vmatpush1.bf16.msra.mxu0 %v10373_v37 }
 0x193   : > { %8053 = vmatmul.mubr.msk.f32.gmra.mrb[32].mxu0 %vm667_vm0, %v8029_v43  ;;  %v972_v1 = vpop.permute.xlu0 %971 }
 0x194   : > { %1629 = vmatprep.mubr.f32.mxu0 %v11170_v40 }
 0x197   : > { %8054 = vmatmul.mubr.msk.f32.gmra.mrb[34].mxu0 %vm667_vm0, %v8030_v52 }
 0x198   : > { %1635 = vmatprep.mubr.f32.mxu0 %v11170_v40 }
 0x19b   : > { %8055 = vmatmul.mubr.msk.f32.gmra.mrb[36].mxu0 %vm667_vm0, %v8031_v48 }
 0x19c   : > { %1641 = vmatprep.mubr.f32.mxu0 %v11170_v40 }
 0x19f   : > { %8056 = vmatmul.mubr.msk.f32.gmra.mrb[38].mxu0 %vm667_vm0, %v8032_v51  ;;  %v967_v51 = vpop.permute.xlu1 %966 }
 0x1a0   : > { %1647 = vmatprep.mubr.f32.mxu0 %v11170_v40 }
 0x1a3   : > { %8057 = vmatmul.mubr.msk.f32.gmra.mrb[40].mxu0 %vm667_vm0, %v8033_v60  ;;  %v977_v4 = vpop.permute.xlu1 %976 }
 0x1a4   : > { %1653 = vmatprep.mubr.f32.mxu0 %v11170_v40 }
 0x1a7   : > { %8058 = vmatmul.mubr.msk.f32.gmra.mrb[42].mxu0 %vm667_vm0, %v8034_v63 }
 0x1a8   : > { %1659 = vmatprep.mubr.f32.mxu0 %v11170_v40 }
 0x1ab   : > { %8059 = vmatmul.mubr.msk.f32.gmra.mrb[44].mxu0 %vm667_vm0, %v8035_v54 }
 0x1ac   : > { %1665 = vmatprep.mubr.f32.mxu0 %v11170_v40 }
 0x1af   : > { %8060 = vmatmul.mubr.msk.f32.gmra.mrb[46].mxu0 %vm667_vm0, %v8036_v57 }
 0x1b0   : > { %2131 = vmatprep.mubr.f32.mxu0 %v11170_v40 }
 0x1b3   : > { %8149 = vmatmul.mubr.msk.f32.vlgmr.msra.gmra.mrb[0].mxu0 %vm667_vm0, %v8061_v3 }
 0x1b4   : > { %2137 = vmatprep.mubr.f32.mxu0 %v11170_v40 }
 0x1b7   : > { %8150 = vmatmul.mubr.msk.f32.gmra.mrb[2].mxu0 %vm667_vm0, %v8062_v6 }
 0x1b8   : > { %2143 = vmatprep.mubr.f32.mxu0 %v11170_v40 }
 0x1bb   : > { %8151 = vmatmul.mubr.msk.f32.gmra.mrb[4].mxu0 %vm667_vm0, %v8063_v8 }
 0x1bc   : > { %2149 = vmatprep.mubr.f32.mxu0 %v11170_v40 }
 0x1bf   : > { %8152 = vmatmul.mubr.msk.f32.gmra.mrb[6].mxu0 %vm667_vm0, %v8064_v9 }
 0x1c0   : > { %2155 = vmatprep.mubr.f32.mxu0 %v11170_v40 }
 0x1c3   : > { %8153 = vmatmul.mubr.msk.f32.gmra.mrb[8].mxu0 %vm667_vm0, %v8065_v10 }
 0x1c4   : > { %2161 = vmatprep.mubr.f32.mxu0 %v11170_v40 }
 0x1c7   : > { %8154 = vmatmul.mubr.msk.f32.gmra.mrb[10].mxu0 %vm667_vm0, %v8066_v11 }
 0x1c8   : > { %2167 = vmatprep.mubr.f32.mxu0 %v11170_v40 }
 0x1cb   : > { %8155 = vmatmul.mubr.msk.f32.gmra.mrb[12].mxu0 %vm667_vm0, %v8067_v12 }
 0x1cc   : > { %2173 = vmatprep.mubr.f32.mxu0 %v11170_v40 }
 0x1cf   : > { %8156 = vmatmul.mubr.msk.f32.gmra.mrb[14].mxu0 %vm667_vm0, %v8068_v13 }
 0x1d0   : > { %2179 = vmatprep.mubr.f32.mxu0 %v11170_v40 }
 0x1d3   : > { %8157 = vmatmul.mubr.msk.f32.gmra.mrb[16].mxu0 %vm667_vm0, %v8069_v14 }
 0x1d4   : > { %2185 = vmatprep.mubr.f32.mxu0 %v11170_v40 }
 0x1d7   : > { %8158 = vmatmul.mubr.msk.f32.gmra.mrb[18].mxu0 %vm667_vm0, %v8070_v15 }
 0x1d8   : > { %2191 = vmatprep.mubr.f32.mxu0 %v11170_v40 }
 0x1db   : > { %8159 = vmatmul.mubr.msk.f32.gmra.mrb[20].mxu0 %vm667_vm0, %v8071_v16 }
 0x1dc   : > { %2197 = vmatprep.mubr.f32.mxu0 %v11170_v40 }
 0x1df   : > { %8160 = vmatmul.mubr.msk.f32.gmra.mrb[22].mxu0 %vm667_vm0, %v8072_v17  ;;  %v982_v17 = vpop.permute.xlu0 %981 }
 0x1e0   : > { %2203 = vmatprep.mubr.f32.mxu0 %v11170_v40 }
 0x1e3   : > { %8161 = vmatmul.mubr.msk.f32.gmra.mrb[24].mxu0 %vm667_vm0, %v8073_v18 }
 0x1e4   : > { %2209 = vmatprep.mubr.f32.mxu0 %v11170_v40 }
 0x1e7   : > { %8162 = vmatmul.mubr.msk.f32.gmra.mrb[26].mxu0 %vm667_vm0, %v8074_v19 }
 0x1e8   : > { %2215 = vmatprep.mubr.f32.mxu0 %v11170_v40 }
 0x1eb   : > { %8163 = vmatmul.mubr.msk.f32.gmra.mrb[28].mxu0 %vm667_vm0, %v8075_v20  ;;  %v987_v20 = vpop.permute.xlu1 %986 }
 0x1ec   : > { %2221 = vmatprep.mubr.f32.mxu0 %v11170_v40 }
 0x1ef   : > { %8164 = vmatmul.mubr.msk.f32.gmra.mrb[30].mxu0 %vm667_vm0, %v8076_v21 }
 0x1f0   : > { %2227 = vmatprep.mubr.f32.mxu0 %v11170_v40 }
 0x1f3   : > { %8165 = vmatmul.mubr.msk.f32.gmra.mrb[32].mxu0 %vm667_vm0, %v8077_v22 }
 0x1f4   : > { %2233 = vmatprep.mubr.f32.mxu0 %v11170_v40 }
 0x1f7   : > { %8166 = vmatmul.mubr.msk.f32.gmra.mrb[34].mxu0 %vm667_vm0, %v8078_v23 }
 0x1f8   : > { %2239 = vmatprep.mubr.f32.mxu0 %v11170_v40 }
 0x1fb   : > { %8167 = vmatmul.mubr.msk.f32.gmra.mrb[36].mxu0 %vm667_vm0, %v8079_v24 }
 0x1fc   : > { %2245 = vmatprep.mubr.f32.mxu0 %v11170_v40 }
 0x1ff   : > { %8168 = vmatmul.mubr.msk.f32.gmra.mrb[38].mxu0 %vm667_vm0, %v8080_v25 }
 0x200   : > { %2251 = vmatprep.mubr.f32.mxu0 %v11170_v40 }
 0x203   : > { %8169 = vmatmul.mubr.msk.f32.gmra.mrb[40].mxu0 %vm667_vm0, %v8081_v26 }
 0x204   : > { %2257 = vmatprep.mubr.f32.mxu0 %v11170_v40 }
 0x207   : > { %8170 = vmatmul.mubr.msk.f32.gmra.mrb[42].mxu0 %vm667_vm0, %v8082_v27 }
 0x208   : > { %2263 = vmatprep.mubr.f32.mxu0 %v11170_v40 }
 0x20b   : > { %8171 = vmatmul.mubr.msk.f32.gmra.mrb[44].mxu0 %vm667_vm0, %v8083_v28 }
 0x20c   : > { %2269 = vmatprep.mubr.f32.mxu0 %v11170_v40 }
 0x20f   : > { %8172 = vmatmul.mubr.msk.f32.gmra.mrb[46].mxu0 %vm667_vm0, %v8084_v29 }
 0x286   : > { %v2133_v32 = vpop.f32.mrb[0].mxu0 }
 0x287   : > { %v2135_v33 = vpop.f32.mrb[1].mxu0  ;;  %v10972_v34 = vadd.f32 %v2133_v32, %v952_v31 }
 0x288   : > { %v10973_v36 = vadd.f32 %v2135_v33, %v952_v31  ;;  %v992_v33 = vpop.permute.xlu0 %991 }
 0x289   : > { %v2420_v43 = vmax.f32 %v10972_v34, 0.0 }
 0x28a   : > { %v2139_v37 = vpop.f32.mrb[2].mxu0  ;;  %v2421_v45 = vmax.f32 %v10973_v36, 0.0  ;;  %v997_v36 = vpop.permute.xlu1 %996 }
 0x28b   : > { %v10974_v38 = vadd.f32 %v2139_v37, %v957_v35  ;;  %v2141_v39 = vpop.f32.mrb[3].mxu0 }
 0x28c   : > { %v10975_v42 = vadd.f32 %v2141_v39, %v957_v35 }
 0x28d   : > { %v2422_v44 = vmax.f32 %v10974_v38, 0.0 }
 0x28e   : > { %v2423_v52 = vmax.f32 %v10975_v42, 0.0  ;;  %v2145_v46 = vpop.f32.mrb[4].mxu0 }
 0x28f   : > { %v12346_v47 = vpack.c.bf16 %v2422_v44, %v2420_v43  ;;  %v2147_v48 = vpop.f32.mrb[5].mxu0  ;;  %v10976_v50 = vadd.f32 %v2145_v46, %v962_v41 }
 0x290   : > { %v12348_v49 = vpack.c.bf16 %v2423_v52, %v2421_v45  ;;  %v10977_v58 = vadd.f32 %v2147_v48, %v962_v41 }
 0x291   : > { %v2424_v63 = vmax.f32 %v10976_v50, 0.0 }
 0x292   : > { %v2151_v59 = vpop.f32.mrb[6].mxu0  ;;  %10376 = vmatprep.subr.bf16.mxu1 %v12348_v49  ;;  %v2425_v53 = vmax.f32 %v10977_v58, 0.0 }
 0x293   : > { %v10978_v60 = vadd.f32 %v2151_v59, %v967_v51  ;;  %v2153_v61 = vpop.f32.mrb[7].mxu0  ;;  %10378 = vmatpush1.bf16.msra.mxu1 %v12346_v47 }
 0x294   : > { %v10979_v62 = vadd.f32 %v2153_v61, %v967_v51  ;;  %v1002_v51 = vpop.permute.xlu0 %1001 }
 0x295   : > { %v2426_v0 = vmax.f32 %v10978_v60, 0.0  ;;  %v1007_v60 = vpop.permute.xlu1 %1006 }
 0x296   : > { %v2427_v54 = vmax.f32 %v10979_v62, 0.0  ;;  %v2157_v55 = vpop.f32.mrb[8].mxu0 }
 0x297   : > { %v12352_v56 = vpack.c.bf16 %v2426_v0, %v2424_v63  ;;  %v2159_v57 = vpop.f32.mrb[9].mxu0  ;;  %v10980_v3 = vadd.f32 %v2157_v55, %v972_v1 }
 0x298   : > { %v12354_v2 = vpack.c.bf16 %v2427_v54, %v2425_v53  ;;  %v10981_v5 = vadd.f32 %v2159_v57, %v972_v1 }
 0x299   : > { %v2428_v10 = vmax.f32 %v10980_v3, 0.0 }
 0x29a   : > { %v2163_v6 = vpop.f32.mrb[10].mxu0  ;;  %10380 = vmatprep.subr.bf16.mxu1 %v12354_v2  ;;  %v2429_v12 = vmax.f32 %v10981_v5, 0.0 }
 0x29b   : > { %v10982_v7 = vadd.f32 %v2163_v6, %v977_v4  ;;  %v2165_v8 = vpop.f32.mrb[11].mxu0  ;;  %10382 = vmatpush1.bf16.msra.mxu1 %v12352_v56  ;;  %v1012_v6 = vpop.permute.xlu0 %1011 }
 0x29c   : > { %v10983_v9 = vadd.f32 %v2165_v8, %v977_v4 }
 0x29d   : > { %v2430_v11 = vmax.f32 %v10982_v7, 0.0 }
 0x29e   : > { %v2431_v13 = vmax.f32 %v10983_v9, 0.0  ;;  %v2169_v14 = vpop.f32.mrb[12].mxu0  ;;  %v1017_v9 = vpop.permute.xlu1 %1016 }
 0x29f   : > { %v12358_v15 = vpack.c.bf16 %v2430_v11, %v2428_v10  ;;  %v2171_v16 = vpop.f32.mrb[13].mxu0  ;;  %v10984_v19 = vadd.f32 %v2169_v14, %v982_v17 }
 0x2a0   : > { %v12360_v18 = vpack.c.bf16 %v2431_v13, %v2429_v12  ;;  %v10985_v21 = vadd.f32 %v2171_v16, %v982_v17 }
 0x2a1   : > { %v2432_v26 = vmax.f32 %v10984_v19, 0.0 }
 0x2a2   : > { %v2175_v22 = vpop.f32.mrb[14].mxu0  ;;  %10384 = vmatprep.subr.bf16.mxu1 %v12360_v18  ;;  %v2433_v28 = vmax.f32 %v10985_v21, 0.0 }
 0x2a3   : > { %v10986_v23 = vadd.f32 %v2175_v22, %v987_v20  ;;  %v2177_v24 = vpop.f32.mrb[15].mxu0  ;;  %10386 = vmatpush1.bf16.msra.mxu1 %v12358_v15 }
 0x2a4   : > { %v10987_v25 = vadd.f32 %v2177_v24, %v987_v20  ;;  %v1022_v24 = vpop.permute.xlu0 %1021 }
 0x2a5   : > { %v2434_v27 = vmax.f32 %v10986_v23, 0.0 }
 0x2a6   : > { %v2435_v29 = vmax.f32 %v10987_v25, 0.0  ;;  %v2181_v30 = vpop.f32.mrb[16].mxu0 }
 0x2a7   : > { %v12364_v31 = vpack.c.bf16 %v2434_v27, %v2432_v26  ;;  %v2183_v32 = vpop.f32.mrb[17].mxu0  ;;  %v10988_v35 = vadd.f32 %v2181_v30, %v992_v33  ;;  %v1027_v27 = vpop.permute.xlu1 %1026 }
 0x2a8   : > { %v12366_v34 = vpack.c.bf16 %v2435_v29, %v2433_v28  ;;  %v10989_v37 = vadd.f32 %v2183_v32, %v992_v33 }
 0x2a9   : > { %v2436_v43 = vmax.f32 %v10988_v35, 0.0 }
 0x2aa   : > { %v2187_v38 = vpop.f32.mrb[18].mxu0  ;;  %10388 = vmatprep.subr.bf16.mxu1 %v12366_v34  ;;  %v2437_v45 = vmax.f32 %v10989_v37, 0.0 }
 0x2ab   : > { %v10990_v39 = vadd.f32 %v2187_v38, %v997_v36  ;;  %v2189_v41 = vpop.f32.mrb[19].mxu0  ;;  %10390 = vmatpush1.bf16.msra.mxu1 %v12364_v31 }
 0x2ac   : > { %v10991_v42 = vadd.f32 %v2189_v41, %v997_v36 }
 0x2ad   : > { %v2438_v44 = vmax.f32 %v10990_v39, 0.0 }
 0x2ae   : > { %v2439_v52 = vmax.f32 %v10991_v42, 0.0  ;;  %v2193_v46 = vpop.f32.mrb[20].mxu0 }
 0x2af   : > { %v12370_v48 = vpack.c.bf16 %v2438_v44, %v2436_v43  ;;  %v2195_v50 = vpop.f32.mrb[21].mxu0  ;;  %v10992_v59 = vadd.f32 %v2193_v46, %v1002_v51  ;;  %v1032_v43 = vpop.permute.xlu0 %1031 }
 0x2b0   : > { %v12372_v58 = vpack.c.bf16 %v2439_v52, %v2437_v45  ;;  %v10993_v61 = vadd.f32 %v2195_v50, %v1002_v51  ;;  %v1037_v52 = vpop.permute.xlu1 %1036  ;;  %v8237_v51 = vld [vmem:[%s14631_s5 + $0x180] sm:$0xff] }
 0x2b1   : > { %v2440_v54 = vmax.f32 %v10992_v59, 0.0 }
 0x2b2   : > { %v2199_v62 = vpop.f32.mrb[22].mxu0  ;;  %10392 = vmatprep.subr.bf16.mxu1 %v12372_v58  ;;  %v2441_v57 = vmax.f32 %v10993_v61, 0.0  ;;  %v8238_v61 = vld [vmem:[%s14631_s5 + $0x188] sm:$0xff] }
 0x2b3   : > { %v10994_v63 = vadd.f32 %v2199_v62, %v1007_v60  ;;  %v2201_v0 = vpop.f32.mrb[23].mxu0  ;;  %10394 = vmatpush1.bf16.msra.mxu1 %v12370_v48 }
 0x2b4   : > { %v10995_v53 = vadd.f32 %v2201_v0, %v1007_v60  ;;  %v8221_v0 = vld [vmem:[%s14631_s5 + $0x100] sm:$0xff] }
 0x2b5   : > { %v2442_v55 = vmax.f32 %v10994_v63, 0.0  ;;  %v10503_v63 = vpack.c.bf16 %v8238_v61, %v8237_v51 }
 0x2b6   : > { %v2443_v1 = vmax.f32 %v10995_v53, 0.0  ;;  %v2205_v3 = vpop.f32.mrb[24].mxu0  ;;  %v8222_v53 = vld [vmem:[%s14631_s5 + $0x108] sm:$0xff] }
 0x2b7   : > { %v12376_v4 = vpack.c.bf16 %v2442_v55, %v2440_v54  ;;  %v2207_v5 = vpop.f32.mrb[25].mxu0  ;;  %v10996_v8 = vadd.f32 %v2205_v3, %v1012_v6  ;;  %10504 = vmatprep.subr.bf16.mxu0 %v10503_v63 }
 0x2b8   : > { %v12378_v7 = vpack.c.bf16 %v2443_v1, %v2441_v57  ;;  %v10997_v10 = vadd.f32 %v2207_v5, %v1012_v6  ;;  %v10505_v57 = vpack.c.bf16 %v8222_v53, %v8221_v0 }
 0x2b9   : > { %v2444_v16 = vmax.f32 %v10996_v8, 0.0 }
 0x2ba   : > { %v2211_v11 = vpop.f32.mrb[26].mxu0  ;;  %10396 = vmatprep.subr.bf16.mxu1 %v12378_v7  ;;  %v2445_v19 = vmax.f32 %v10997_v10, 0.0  ;;  %10506 = vmatpush3.bf16.msra.mxu0 %v10505_v57 }
 0x2bb   : > { %v10998_v12 = vadd.f32 %v2211_v11, %v1017_v9  ;;  %v2213_v13 = vpop.f32.mrb[27].mxu0  ;;  %10398 = vmatpush1.bf16.msra.mxu1 %v12376_v4 }
 0x2bc   : > { %v10999_v14 = vadd.f32 %v2213_v13, %v1017_v9  ;;  %v1042_v9 = vpop.permute.xlu0 %1041 }
 0x2bd   : > { %v2446_v17 = vmax.f32 %v10998_v12, 0.0  ;;  %v1047_v12 = vpop.permute.xlu1 %1046 }
 0x2be   : > { %v2447_v20 = vmax.f32 %v10999_v14, 0.0  ;;  %v2217_v21 = vpop.f32.mrb[28].mxu0 }
 0x2bf   : > { %v12382_v22 = vpack.c.bf16 %v2446_v17, %v2444_v16  ;;  %v2219_v23 = vpop.f32.mrb[29].mxu0  ;;  %v11000_v26 = vadd.f32 %v2217_v21, %v1022_v24 }
 0x2c0   : > { %v12384_v25 = vpack.c.bf16 %v2447_v20, %v2445_v19  ;;  %v11001_v28 = vadd.f32 %v2219_v23, %v1022_v24 }
 0x2c1   : > { %v2448_v35 = vmax.f32 %v11000_v26, 0.0 }
 0x2c2   : > { %v2223_v29 = vpop.f32.mrb[30].mxu0  ;;  %10400 = vmatprep.subr.bf16.mxu1 %v12384_v25  ;;  %v2449_v37 = vmax.f32 %v11001_v28, 0.0 }
 0x2c3   : > { %v11002_v30 = vadd.f32 %v2223_v29, %v1027_v27  ;;  %v2225_v32 = vpop.f32.mrb[31].mxu0  ;;  %10402 = vmatpush1.bf16.msra.mxu1 %v12382_v22  ;;  %v1052_v29 = vpop.permute.xlu0 %1051 }
 0x2c4   : > { %v11003_v33 = vadd.f32 %v2225_v32, %v1027_v27 }
 0x2c5   : > { %v2450_v36 = vmax.f32 %v11002_v30, 0.0 }
 0x2c6   : > { %v2451_v38 = vmax.f32 %v11003_v33, 0.0  ;;  %v2229_v39 = vpop.f32.mrb[32].mxu0  ;;  %v1057_v33 = vpop.permute.xlu1 %1056 }
 0x2c7   : > { %v12388_v41 = vpack.c.bf16 %v2450_v36, %v2448_v35  ;;  %v2231_v42 = vpop.f32.mrb[33].mxu0  ;;  %v11004_v45 = vadd.f32 %v2229_v39, %v1032_v43 }
 0x2c8   : > { %v12390_v44 = vpack.c.bf16 %v2451_v38, %v2449_v37  ;;  %v11005_v46 = vadd.f32 %v2231_v42, %v1032_v43 }
 0x2c9   : > { %v2452_v54 = vmax.f32 %v11004_v45, 0.0 }
 0x2ca   : > { %v2235_v50 = vpop.f32.mrb[34].mxu0  ;;  %10404 = vmatprep.subr.bf16.mxu1 %v12390_v44  ;;  %v2453_v1 = vmax.f32 %v11005_v46, 0.0 }
 0x2cb   : > { %v11006_v59 = vadd.f32 %v2235_v50, %v1037_v52  ;;  %v2237_v60 = vpop.f32.mrb[35].mxu0  ;;  %10406 = vmatpush1.bf16.msra.mxu1 %v12388_v41 }
 0x2cc   : > { %v11007_v62 = vadd.f32 %v2237_v60, %v1037_v52 }
 0x2cd   : > { %v2454_v55 = vmax.f32 %v11006_v59, 0.0  ;;  %v1062_v59 = vpop.permute.xlu0 %1061 }
 0x2ce   : > { %v2455_v3 = vmax.f32 %v11007_v62, 0.0  ;;  %v2241_v5 = vpop.f32.mrb[36].mxu0  ;;  %v1067_v62 = vpop.permute.xlu1 %1066 }
 0x2cf   : > { %v12406_v6 = vpack.c.bf16 %v2454_v55, %v2452_v54  ;;  %v2243_v8 = vpop.f32.mrb[37].mxu0  ;;  %v11008_v11 = vadd.f32 %v2241_v5, %v1042_v9 }
 0x2d0   : > { %v12408_v10 = vpack.c.bf16 %v2455_v3, %v2453_v1  ;;  %v11009_v13 = vadd.f32 %v2243_v8, %v1042_v9 }
 0x2d1   : > { %v2456_v20 = vmax.f32 %v11008_v11, 0.0  ;;  %v2516_v11 = vld [vmem:[%s14630_s4] sm:$0xff] }
 0x2d2   : > { %v2247_v14 = vpop.f32.mrb[38].mxu0  ;;  %10408 = vmatprep.subr.bf16.mxu1 %v12408_v10  ;;  %v2457_v23 = vmax.f32 %v11009_v13, 0.0  ;;  %v2518_v13 = vld [vmem:[%s14630_s4 + $0x10] sm:$0xff] }
 0x2d3   : > { %v11010_v16 = vadd.f32 %v2247_v14, %v1047_v12  ;;  %v2249_v17 = vpop.f32.mrb[39].mxu0  ;;  %10410 = vmatpush1.bf16.msra.mxu1 %v12406_v6  ;;  %v2521_v14 = vld [vmem:[%s14630_s4 + $0x28] sm:$0xff] }
 0x2d4   : > { %v11011_v19 = vadd.f32 %v2249_v17, %v1047_v12  ;;  %v2519_v12 = vld [vmem:[%s14630_s4 + $0x18] sm:$0xff]  ;;  %v3049_v17 = vld [vmem:[%s14631_s5 + $0x88] sm:$0xff] }
 0x2d5   : > { %v2458_v21 = vmax.f32 %v11010_v16, 0.0  ;;  %v3048_v16 = vld [vmem:[%s14631_s5 + $0x80] sm:$0xff] }
 0x2d6   : > { %v2459_v24 = vmax.f32 %v11011_v19, 0.0  ;;  %v2253_v26 = vpop.f32.mrb[40].mxu0  ;;  %v2538_v19 = vld [vmem:[%s14630_s4 + $0xb0] sm:$0xff] }
 0x2d7   : > { %v12412_v27 = vpack.c.bf16 %v2458_v21, %v2456_v20  ;;  %v2255_v28 = vpop.f32.mrb[41].mxu0  ;;  %v11012_v32 = vadd.f32 %v2253_v26, %v1052_v29  ;;  %v8186_v20 = vld [vmem:[%s14630_s4 + $0xc8] sm:$0xff]  ;;  %v10471_v21 = vpack.c.bf16 %v3049_v17, %v3048_v16  ;;  %v8185_v26 = vld [vmem:[%s14630_s4 + $0xc0] sm:$0xff]  ;;  %v8227_v16 = vld [vmem:[%s14631_s5 + $0x130] sm:$0xff] }
 0x2d8   : > { %v12414_v30 = vpack.c.bf16 %v2459_v24, %v2457_v23  ;;  %v11013_v35 = vadd.f32 %v2255_v28, %v1052_v29  ;;  %v3032_v23 = vld [vmem:[%s14631_s5] sm:$0xff]  ;;  %v3033_v24 = vld [vmem:[%s14631_s5 + $0x8] sm:$0xff]  ;;  %v8188_v28 = vld [vmem:[%s14630_s4 + $0xd8] sm:$0xff] }
 0x2d9   : > { %v2460_v42 = vmax.f32 %v11012_v32, 0.0  ;;  %v8187_v29 = vld [vmem:[%s14630_s4 + $0xd0] sm:$0xff]  ;;  %v8189_v32 = vld [vmem:[%s14630_s4 + $0xe0] sm:$0xff] }
 0x2da   : > { %v2259_v36 = vpop.f32.mrb[42].mxu0  ;;  %10412 = vmatprep.subr.bf16.mxu1 %v12414_v30  ;;  %v2461_v45 = vmax.f32 %v11013_v35, 0.0  ;;  %v8191_v35 = vld [vmem:[%s14630_s4 + $0xf0] sm:$0xff] }
 0x2db   : > { %v11014_v37 = vadd.f32 %v2259_v36, %v1057_v33  ;;  %v2261_v38 = vpop.f32.mrb[43].mxu0  ;;  %10414 = vmatpush1.bf16.msra.mxu1 %v12412_v27  ;;  %v8194_v36 = vld [vmem:[%s14630_s4 + $0x108] sm:$0xff] }
 0x2dc   : > { %v11015_v39 = vadd.f32 %v2261_v38, %v1057_v33  ;;  %v8192_v33 = vld [vmem:[%s14630_s4 + $0xf8] sm:$0xff] }
 0x2dd   : > { %v2462_v43 = vmax.f32 %v11014_v37, 0.0  ;;  %v8193_v37 = vld [vmem:[%s14630_s4 + $0x100] sm:$0xff]  ;;  %v8196_v38 = vld [vmem:[%s14630_s4 + $0x118] sm:$0xff] }
 0x2de   : > { %v2463_v52 = vmax.f32 %v11015_v39, 0.0  ;;  %v2265_v46 = vpop.f32.mrb[44].mxu0  ;;  %v8195_v39 = vld [vmem:[%s14630_s4 + $0x110] sm:$0xff] }
 0x2df   : > { %v12418_v50 = vpack.c.bf16 %v2462_v43, %v2460_v42  ;;  %v2267_v51 = vpop.f32.mrb[45].mxu0  ;;  %v11016_v61 = vadd.f32 %v2265_v46, %v1062_v59  ;;  %v8198_v42 = vld [vmem:[%s14630_s4 + $0x128] sm:$0xff]  ;;  %v8197_v43 = vld [vmem:[%s14630_s4 + $0x120] sm:$0xff] }
 0x2e0   : > { %v12420_v60 = vpack.c.bf16 %v2463_v52, %v2461_v45  ;;  %v11017_v63 = vadd.f32 %v2267_v51, %v1062_v59  ;;  %v8200_v45 = vld [vmem:[%s14630_s4 + $0x138] sm:$0xff]  ;;  %v8199_v52 = vld [vmem:[%s14630_s4 + $0x130] sm:$0xff]  ;;  %v8202_v46 = vld [vmem:[%s14630_s4 + $0x148] sm:$0xff] }
 0x2e1   : > { %v2464_v57 = vmax.f32 %v11016_v61, 0.0  ;;  %v8204_v51 = vld [vmem:[%s14630_s4 + $0x158] sm:$0xff]  ;;  %v8203_v59 = vld [vmem:[%s14630_s4 + $0x150] sm:$0xff] }
 0x2e2   : > { %v2271_v0 = vpop.f32.mrb[46].mxu0  ;;  %10416 = vmatprep.subr.bf16.mxu1 %v12420_v60  ;;  %v2465_v3 = vmax.f32 %v11017_v63, 0.0  ;;  %v3050_v61 = vld [vmem:[%s14631_s5 + $0x90] sm:$0xff] }
 0x2e3   : > { %v11018_v53 = vadd.f32 %v2271_v0, %v1067_v62  ;;  %v2273_v54 = vpop.f32.mrb[47].mxu0  ;;  %10418 = vmatpush1.bf16.msra.mxu1 %v12418_v50  ;;  %v8239_v63 = vld [vmem:[%s14631_s5 + $0x190] sm:$0xff]  ;;  %v8205_v0 = vld [vmem:[%s14630_s4 + $0x160] sm:$0xff] }
 0x2e4   : > { %v11019_v55 = vadd.f32 %v2273_v54, %v1067_v62  ;;  %v3051_v62 = vld [vmem:[%s14631_s5 + $0x98] sm:$0xff] }
 0x2e5   : > { %v2466_v1 = vmax.f32 %v11018_v53, 0.0  ;;  %v10475_v53 = vpack.c.bf16 %v3051_v62, %v3050_v61  ;;  %v8240_v54 = vld [vmem:[%s14631_s5 + $0x198] sm:$0xff]  ;;  %v3060_v61 = vld [vmem:[%s14631_s5 + $0xe0] sm:$0xff]  ;;  %v3061_v62 = vld [vmem:[%s14631_s5 + $0xe8] sm:$0xff] }
 0x2e6   : > { %v2467_v5 = vmax.f32 %v11019_v55, 0.0  ;;  %v8208_v55 = vld [vmem:[%s14630_s4 + $0x178] sm:$0xff] }
 0x2e7   : > { %v12424_v8 = vpack.c.bf16 %v2466_v1, %v2464_v57  ;;  %v10507_v57 = vpack.c.bf16 %v8240_v54, %v8239_v63  ;;  %v3034_v1 = vld [vmem:[%s14631_s5 + $0x10] sm:$0xff]  ;;  %v8249_v63 = vld [vmem:[%s14631_s5 + $0x1e0] sm:$0xff] }
 0x2e8   : > { %v12426_v9 = vpack.c.bf16 %v2467_v5, %v2465_v3  ;;  %v3035_v3 = vld [vmem:[%s14631_s5 + $0x18] sm:$0xff]  ;;  %v8223_v5 = vld [vmem:[%s14631_s5 + $0x110] sm:$0xff] }
 0x2e9   : > { %10508 = vmatprep.subr.bf16.mxu0 %v10507_v57  ;;  %v3045_v57 = vld [vmem:[%s14631_s5 + $0x68] sm:$0xff] }
 0x2ea   : > { %10420 = vmatprep.subr.bf16.mxu1 %v12426_v9 }
 0x2eb   : > { %10422 = vmatpush1.bf16.msra.mxu1 %v12424_v8 }
 0x2ec   : > { %10424 = vmatprep.subr.bf16.mxu1 %v12348_v49  ;;  %v2523_v49 = vld [vmem:[%s14630_s4 + $0x38] sm:$0xff] }
 0x2ee   : > { %2690 = vmatmul.mubr.f32.vlgmr.msra.gmra.mrb[16].mxu1 %v2516_v11  ;;  %v8207_v11 = vld [vmem:[%s14630_s4 + $0x170] sm:$0xff] }
 0x2ef   : > { %10426 = vmatpush1.bf16.msra.mxu1 %v12346_v47  ;;  %8174 = vmatprep.mubr.msk.f32.mxu1 %vm2588_vm1, %v2519_v12  ;;  %v2520_v47 = vld [vmem:[%s14630_s4 + $0x20] sm:$0xff] }
 0x2f0   : > { %10428 = vmatprep.subr.bf16.mxu1 %v12354_v2  ;;  %v2525_v2 = vld [vmem:[%s14630_s4 + $0x48] sm:$0xff] }
 0x2f2   : > { %2696 = vmatmul.mubr.f32.gmra.mrb[18].mxu1 %v2518_v13  ;;  %v3052_v13 = vld [vmem:[%s14631_s5 + $0xa0] sm:$0xff] }
 0x2f3   : > { %10430 = vmatpush1.bf16.msra.mxu1 %v12352_v56  ;;  %8175 = vmatprep.mubr.msk.f32.mxu1 %vm2588_vm1, %v2521_v14  ;;  %v2522_v56 = vld [vmem:[%s14630_s4 + $0x30] sm:$0xff]  ;;  %v3053_v14 = vld [vmem:[%s14631_s5 + $0xa8] sm:$0xff] }
 0x2f4   : > { %10432 = vmatprep.subr.bf16.mxu1 %v12360_v18  ;;  %v2527_v18 = vld [vmem:[%s14630_s4 + $0x58] sm:$0xff] }
 0x2f6   : > { %2702 = vmatmul.mubr.f32.gmra.mrb[20].mxu1 %v2520_v47  ;;  %v8241_v47 = vld [vmem:[%s14631_s5 + $0x1a0] sm:$0xff] }
 0x2f7   : > { %10434 = vmatpush1.bf16.msra.mxu1 %v12358_v15  ;;  %8176 = vmatprep.mubr.msk.f32.mxu1 %vm2588_vm1, %v2523_v49  ;;  %v2524_v15 = vld [vmem:[%s14630_s4 + $0x40] sm:$0xff]  ;;  %v10479_v49 = vpack.c.bf16 %v3053_v14, %v3052_v13  ;;  %v8252_v14 = vld [vmem:[%s14631_s5 + $0x1f8] sm:$0xff] }
 0x2f8   : > { %10436 = vmatprep.subr.bf16.mxu1 %v12366_v34  ;;  %v2529_v34 = vld [vmem:[%s14630_s4 + $0x68] sm:$0xff] }
 0x2fa   : > { %2708 = vmatmul.mubr.f32.gmra.mrb[22].mxu1 %v2522_v56  ;;  %v8242_v56 = vld [vmem:[%s14631_s5 + $0x1a8] sm:$0xff] }
 0x2fb   : > { %10438 = vmatpush1.bf16.msra.mxu1 %v12364_v31  ;;  %8177 = vmatprep.mubr.msk.f32.mxu1 %vm2588_vm1, %v2525_v2  ;;  %v2526_v31 = vld [vmem:[%s14630_s4 + $0x50] sm:$0xff]  ;;  %v10511_v2 = vpack.c.bf16 %v8242_v56, %v8241_v47 }
 0x2fc   : > { %10440 = vmatprep.subr.bf16.mxu1 %v12372_v58  ;;  %v2531_v58 = vld [vmem:[%s14630_s4 + $0x78] sm:$0xff]  ;;  %v3046_v47 = vld [vmem:[%s14631_s5 + $0x70] sm:$0xff] }
 0x2fe   : > { %2714 = vmatmul.mubr.f32.gmra.mrb[24].mxu1 %v2524_v15  ;;  %v3036_v15 = vld [vmem:[%s14631_s5 + $0x20] sm:$0xff] }
 0x2ff   : > { %10442 = vmatpush1.bf16.msra.mxu1 %v12370_v48  ;;  %8178 = vmatprep.mubr.msk.f32.mxu1 %vm2588_vm1, %v2527_v18  ;;  %v2528_v48 = vld [vmem:[%s14630_s4 + $0x60] sm:$0xff]  ;;  %v3037_v18 = vld [vmem:[%s14631_s5 + $0x28] sm:$0xff] }
 0x300   : > { %10444 = vmatprep.subr.bf16.mxu1 %v12378_v7  ;;  %v2533_v7 = vld [vmem:[%s14630_s4 + $0x88] sm:$0xff] }
 0x302   : > { %2720 = vmatmul.mubr.f32.gmra.mrb[26].mxu1 %v2526_v31  ;;  %v8225_v31 = vld [vmem:[%s14631_s5 + $0x120] sm:$0xff] }
 0x303   : > { %10446 = vmatpush1.bf16.msra.mxu1 %v12376_v4  ;;  %8179 = vmatprep.mubr.msk.f32.mxu1 %vm2588_vm1, %v2529_v34  ;;  %v2530_v4 = vld [vmem:[%s14630_s4 + $0x70] sm:$0xff]  ;;  %v10481_v34 = vpack.c.bf16 %v3037_v18, %v3036_v15  ;;  %v8236_v18 = vld [vmem:[%s14631_s5 + $0x178] sm:$0xff] }
 0x304   : > { %10448 = vmatprep.subr.bf16.mxu1 %v12384_v25  ;;  %v2535_v25 = vld [vmem:[%s14630_s4 + $0x98] sm:$0xff]  ;;  %v8235_v15 = vld [vmem:[%s14631_s5 + $0x170] sm:$0xff] }
 0x306   : > { %2726 = vmatmul.mubr.f32.gmra.mrb[28].mxu1 %v2528_v48  ;;  %v8226_v48 = vld [vmem:[%s14631_s5 + $0x128] sm:$0xff] }
 0x307   : > { %10450 = vmatpush1.bf16.msra.mxu1 %v12382_v22  ;;  %8180 = vmatprep.mubr.msk.f32.mxu1 %vm2588_vm1, %v2531_v58  ;;  %v2532_v22 = vld [vmem:[%s14630_s4 + $0x80] sm:$0xff]  ;;  %v10513_v58 = vpack.c.bf16 %v8226_v48, %v8225_v31  ;;  %v10533_v31 = vpack.c.bf16 %v8236_v18, %v8235_v15  ;;  %v4036_v48 = vld [vmem:[%s14633_s7 + $0x8] sm:$0xff] }
 0x308   : > { %10452 = vmatprep.subr.bf16.mxu1 %v12390_v44  ;;  %v2537_v44 = vld [vmem:[%s14630_s4 + $0xa8] sm:$0xff] }
 0x30a   : > { %2732 = vmatmul.mubr.f32.gmra.mrb[30].mxu1 %v2530_v4  ;;  %v3054_v4 = vld [vmem:[%s14631_s5 + $0xb0] sm:$0xff] }
 0x30b   : > { %10454 = vmatpush1.bf16.msra.mxu1 %v12388_v41  ;;  %8181 = vmatprep.mubr.msk.f32.mxu1 %vm2588_vm1, %v2533_v7  ;;  %v2534_v41 = vld [vmem:[%s14630_s4 + $0x90] sm:$0xff]  ;;  %v3055_v7 = vld [vmem:[%s14631_s5 + $0xb8] sm:$0xff] }
 0x30c   : > { %10456 = vmatprep.subr.bf16.mxu1 %v12408_v10  ;;  %v2539_v10 = vld [vmem:[%s14630_s4 + $0xb8] sm:$0xff] }
 0x30e   : > { %2738 = vmatmul.mubr.f32.gmra.mrb[32].mxu1 %v2532_v22  ;;  %v8243_v22 = vld [vmem:[%s14631_s5 + $0x1b0] sm:$0xff] }
 0x30f   : > { %10458 = vmatpush1.bf16.msra.mxu1 %v12406_v6  ;;  %8182 = vmatprep.mubr.msk.f32.mxu1 %vm2588_vm1, %v2535_v25  ;;  %v2536_v6 = vld [vmem:[%s14630_s4 + $0xa0] sm:$0xff]  ;;  %v10483_v25 = vpack.c.bf16 %v3055_v7, %v3054_v4 }
 0x310   : > { %10460 = vmatprep.subr.bf16.mxu1 %v12414_v30  ;;  %v8190_v30 = vld [vmem:[%s14630_s4 + $0xe8] sm:$0xff] }
 0x312   : > { %2744 = vmatmul.mubr.f32.gmra.mrb[34].mxu1 %v2534_v41  ;;  %v8244_v41 = vld [vmem:[%s14631_s5 + $0x1b8] sm:$0xff] }
 0x313   : > { %10462 = vmatpush1.bf16.msra.mxu1 %v12412_v27  ;;  %8183 = vmatprep.mubr.msk.f32.mxu1 %vm2588_vm1, %v2537_v44  ;;  %v10473_v27 = vpack.c.bf16 %v3033_v24, %v3032_v23  ;;  %v10515_v44 = vpack.c.bf16 %v8244_v41, %v8243_v22  ;;  %v3057_v23 = vld [vmem:[%s14631_s5 + $0xc8] sm:$0xff]  ;;  %v8245_v24 = vld [vmem:[%s14631_s5 + $0x1c0] sm:$0xff] }
 0x314   : > { %10464 = vmatprep.subr.bf16.mxu1 %v12420_v60  ;;  %v8206_v60 = vld [vmem:[%s14630_s4 + $0x168] sm:$0xff] }
 0x316   : > { %2750 = vmatmul.mubr.f32.gmra.mrb[36].mxu1 %v2536_v6  ;;  %v3038_v6 = vld [vmem:[%s14631_s5 + $0x30] sm:$0xff] }
 0x317   : > { %10466 = vmatpush1.bf16.msra.mxu1 %v12418_v50  ;;  %8184 = vmatprep.mubr.msk.f32.mxu1 %vm2588_vm1, %v2539_v10  ;;  %v8201_v50 = vld [vmem:[%s14630_s4 + $0x140] sm:$0xff]  ;;  %v3039_v10 = vld [vmem:[%s14631_s5 + $0x38] sm:$0xff] }
 0x318   : > { %10468 = vmatprep.subr.bf16.mxu1 %v12426_v9  ;;  %v8224_v9 = vld [vmem:[%s14631_s5 + $0x118] sm:$0xff]  ;;  %v10485_v17 = vpack.c.bf16 %v3039_v10, %v3038_v6 }
 0x319   : > { %v10509_v12 = vpack.c.bf16 %v8224_v9, %v8223_v5  ;;  %v8234_v5 = vld [vmem:[%s14631_s5 + $0x168] sm:$0xff]  ;;  %v3062_v9 = vld [vmem:[%s14631_s5 + $0xf0] sm:$0xff] }
 0x31a   : > { %2756 = vmatmul.mubr.f32.gmra.mrb[38].mxu1 %v2538_v19  ;;  %v8228_v19 = vld [vmem:[%s14631_s5 + $0x138] sm:$0xff] }
 0x31b   : > { %10470 = vmatpush1.bf16.msra.mxu1 %v12424_v8  ;;  %8209 = vmatprep.mubr.msk.f32.mxu1 %vm2588_vm1, %v8186_v20  ;;  %v10477_v8 = vpack.c.bf16 %v3035_v3, %v3034_v1  ;;  %v10517_v20 = vpack.c.bf16 %v8228_v19, %v8227_v16  ;;  %v8233_v1 = vld [vmem:[%s14631_s5 + $0x160] sm:$0xff] }
 0x31c   : > { %10472 = vmatprep.subr.bf16.mxu1 %v10471_v21  ;;  %10510 = vmatpush3.bf16.msra.mxu0 %v10509_v12  ;;  %v3056_v21 = vld [vmem:[%s14631_s5 + $0xc0] sm:$0xff]  ;;  %v8251_v12 = vld [vmem:[%s14631_s5 + $0x1f0] sm:$0xff] }
 0x31d   : > { %10512 = vmatprep.subr.bf16.mxu0 %v10511_v2  ;;  %v10531_v56 = vpack.c.bf16 %v8252_v14, %v8251_v12 }
 0x31e   : > { %2888 = vmatmul.mubr.f32.vlgmr.msra.gmra.mrb[40].mxu1 %v8185_v26  ;;  %v10487_v26 = vpack.c.bf16 %v3057_v23, %v3056_v21 }
 0x31f   : > { %8210 = vmatprep.mubr.msk.f32.mxu1 %vm2588_vm1, %v8188_v28  ;;  %10474 = vmatpush3.bf16.msra.mxu1 %v10473_v27  ;;  %v8246_v27 = vld [vmem:[%s14631_s5 + $0x1c8] sm:$0xff] }
 0x320   : > { %10476 = vmatprep.subr.bf16.mxu1 %v10475_v53  ;;  %10514 = vmatpush3.bf16.msra.mxu0 %v10513_v58  ;;  %v10519_v28 = vpack.c.bf16 %v8246_v27, %v8245_v24  ;;  %v8250_v53 = vld [vmem:[%s14631_s5 + $0x1e8] sm:$0xff] }
 0x321   : > { %10516 = vmatprep.subr.bf16.mxu0 %v10515_v44  ;;  %v10527_v54 = vpack.c.bf16 %v8250_v53, %v8249_v63  ;;  %v4042_v53 = vld [vmem:[%s14633_s7 + $0x38] sm:$0xff] }
 0x322   : > { %2894 = vmatmul.mubr.f32.gmra.mrb[42].mxu1 %v8187_v29  ;;  %v3040_v29 = vld [vmem:[%s14631_s5 + $0x40] sm:$0xff] }
 0x323   : > { %8211 = vmatprep.mubr.msk.f32.mxu1 %vm2588_vm1, %v8190_v30  ;;  %10478 = vmatpush3.bf16.msra.mxu1 %v10477_v8  ;;  %v3041_v30 = vld [vmem:[%s14631_s5 + $0x48] sm:$0xff]  ;;  %v10529_v8 = vpack.c.bf16 %v8234_v5, %v8233_v1  ;;  %v4043_v5 = vld [vmem:[%s14633_s7 + $0x40] sm:$0xff] }
 0x324   : > { %10480 = vmatprep.subr.bf16.mxu1 %v10479_v49  ;;  %10518 = vmatpush3.bf16.msra.mxu0 %v10517_v20  ;;  %v3047_v49 = vld [vmem:[%s14631_s5 + $0x78] sm:$0xff] }
 0x325   : > { %10520 = vmatprep.subr.bf16.mxu0 %v10519_v28  ;;  %v10501_v2 = vpack.c.bf16 %v3047_v49, %v3046_v47  ;;  %v4045_v47 = vld [vmem:[%s14633_s7 + $0x50] sm:$0xff]  ;;  %v4046_v49 = vld [vmem:[%s14633_s7 + $0x58] sm:$0xff] }
 0x326   : > { %2900 = vmatmul.mubr.f32.gmra.mrb[44].mxu1 %v8189_v32  ;;  %v8229_v32 = vld [vmem:[%s14631_s5 + $0x140] sm:$0xff]  ;;  %v10579_v18 = vpack.c.bf16 %v4046_v49, %v4045_v47 }
 0x327   : > { %8212 = vmatprep.mubr.msk.f32.mxu1 %vm2588_vm1, %v8192_v33  ;;  %10482 = vmatpush3.bf16.msra.mxu1 %v10481_v34  ;;  %v10489_v33 = vpack.c.bf16 %v3041_v30, %v3040_v29  ;;  %v4035_v34 = vld [vmem:[%s14633_s7] sm:$0xff] }
 0x328   : > { %10484 = vmatprep.subr.bf16.mxu1 %v10483_v25  ;;  %v10559_v58 = vpack.c.bf16 %v4036_v48, %v4035_v34 }
 0x32a   : > { %2906 = vmatmul.mubr.f32.gmra.mrb[46].mxu1 %v8191_v35  ;;  %v8230_v35 = vld [vmem:[%s14631_s5 + $0x148] sm:$0xff] }
 0x32b   : > { %8213 = vmatprep.mubr.msk.f32.mxu1 %vm2588_vm1, %v8194_v36  ;;  %10486 = vmatpush3.bf16.msra.mxu1 %v10485_v17  ;;  %v10521_v36 = vpack.c.bf16 %v8230_v35, %v8229_v32 }
 0x32c   : > { %10488 = vmatprep.subr.bf16.mxu1 %v10487_v26 }
 0x32d   : > { %10522 = vmatpush3.bf16.msra.mxu0 %v10521_v36 }
 0x32e   : > { %2912 = vmatmul.mubr.f32.gmra.mrb[48].mxu1 %v8193_v37  ;;  %v3058_v37 = vld [vmem:[%s14631_s5 + $0xd0] sm:$0xff] }
 0x32f   : > { %8214 = vmatprep.mubr.msk.f32.mxu1 %vm2588_vm1, %v8196_v38  ;;  %10490 = vmatpush3.bf16.msra.mxu1 %v10489_v33  ;;  %v3059_v38 = vld [vmem:[%s14631_s5 + $0xd8] sm:$0xff] }
 0x332   : > { %2918 = vmatmul.mubr.f32.gmra.mrb[50].mxu1 %v8195_v39  ;;  %v8247_v39 = vld [vmem:[%s14631_s5 + $0x1d0] sm:$0xff] }
 0x333   : > { %8215 = vmatprep.mubr.msk.f32.mxu1 %vm2588_vm1, %v8198_v42  ;;  %v10491_v42 = vpack.c.bf16 %v3059_v38, %v3058_v37  ;;  %v4037_v38 = vld [vmem:[%s14633_s7 + $0x10] sm:$0xff] }
 0x335   : > { %10492 = vmatprep.subr.bf16.mxu1 %v10491_v42 }
 0x336   : > { %2924 = vmatmul.mubr.f32.gmra.mrb[52].mxu1 %v8197_v43  ;;  %v8248_v43 = vld [vmem:[%s14631_s5 + $0x1d8] sm:$0xff] }
 0x337   : > { %8216 = vmatprep.mubr.msk.f32.mxu1 %vm2588_vm1, %v8200_v45  ;;  %v10523_v45 = vpack.c.bf16 %v8248_v43, %v8247_v39  ;;  %v4038_v39 = vld [vmem:[%s14633_s7 + $0x18] sm:$0xff] }
 0x339   : > { %10524 = vmatprep.subr.bf16.mxu0 %v10523_v45 }
 0x33a   : > { %2930 = vmatmul.mubr.f32.gmra.mrb[54].mxu1 %v8199_v52  ;;  %v3042_v52 = vld [vmem:[%s14631_s5 + $0x50] sm:$0xff] }
 0x33b   : > { %8217 = vmatprep.mubr.msk.f32.mxu1 %vm2588_vm1, %v8202_v46  ;;  %v3043_v46 = vld [vmem:[%s14631_s5 + $0x58] sm:$0xff] }
 0x33e   : > { %2936 = vmatmul.mubr.f32.gmra.mrb[56].mxu1 %v8201_v50  ;;  %v8231_v50 = vld [vmem:[%s14631_s5 + $0x150] sm:$0xff] }
 0x33f   : > { %8218 = vmatprep.mubr.msk.f32.mxu1 %vm2588_vm1, %v8204_v51  ;;  %v10493_v51 = vpack.c.bf16 %v3043_v46, %v3042_v52  ;;  %v10563_v52 = vpack.c.bf16 %v4038_v39, %v4037_v38 }
 0x341   : > { %10494 = vmatpush3.bf16.msra.mxu1 %v10493_v51  ;;  %v4040_v51 = vld [vmem:[%s14633_s7 + $0x28] sm:$0xff] }
 0x342   : > { %2942 = vmatmul.mubr.f32.gmra.mrb[58].mxu1 %v8203_v59  ;;  %v8232_v59 = vld [vmem:[%s14631_s5 + $0x158] sm:$0xff] }
 0x343   : > { %8219 = vmatprep.mubr.msk.f32.mxu1 %vm2588_vm1, %v8206_v60  ;;  %v10525_v60 = vpack.c.bf16 %v8232_v59, %v8231_v50  ;;  %v4039_v50 = vld [vmem:[%s14633_s7 + $0x20] sm:$0xff] }
 0x345   : > { %10526 = vmatpush3.bf16.msra.mxu0 %v10525_v60 }
 0x346   : > { %2948 = vmatmul.mubr.f32.gmra.mrb[60].mxu1 %v8205_v0  ;;  %v10495_v0 = vpack.c.bf16 %v3061_v62, %v3060_v61  ;;  %10528 = vmatprep.subr.bf16.mxu0 %v10527_v54  ;;  %v10567_v62 = vpack.c.bf16 %v4040_v51, %v4039_v50 }
 0x347   : > { %8220 = vmatprep.mubr.msk.f32.mxu1 %vm2588_vm1, %v8208_v55  ;;  %v3044_v55 = vld [vmem:[%s14631_s5 + $0x60] sm:$0xff] }
 0x348   : > { %10496 = vmatprep.subr.bf16.mxu1 %v10495_v0  ;;  %v10497_v3 = vpack.c.bf16 %v3045_v57, %v3044_v55  ;;  %v4041_v0 = vld [vmem:[%s14633_s7 + $0x30] sm:$0xff] }
 0x349   : > { %10530 = vmatpush3.bf16.msra.mxu0 %v10529_v8  ;;  %v10571_v1 = vpack.c.bf16 %v4042_v53, %v4041_v0  ;;  %v4044_v8 = vld [vmem:[%s14633_s7 + $0x48] sm:$0xff] }
 0x34a   : > { %2954 = vmatmul.mubr.f32.gmra.mrb[62].mxu1 %v8207_v11  ;;  %v3063_v11 = vld [vmem:[%s14631_s5 + $0xf8] sm:$0xff]  ;;  %10532 = vmatprep.subr.bf16.mxu0 %v10531_v56 }
 0x34b   : > { %10498 = vmatpush3.bf16.msra.mxu1 %v10497_v3  ;;  %v10499_v13 = vpack.c.bf16 %v3063_v11, %v3062_v9 }
 0x34d   : > { %10500 = vmatprep.subr.bf16.mxu1 %v10499_v13  ;;  %10534 = vmatpush3.bf16.msra.mxu0 %v10533_v31  ;;  %v10575_v13 = vpack.c.bf16 %v4044_v8, %v4043_v5 }
 0x34e   : > { %10560 = vmatprep.subr.bf16.mxu0 %v10559_v58 }
 0x34f   : > { %10502 = vmatpush3.bf16.msra.mxu1 %v10501_v2 }
 0x3c1   : > { %v2691_v4 = vpop.f32.mrb[16].mxu1 }
 0x3c2   : > { %v2693_v7 = vpop.f32.mrb[17].mxu1 }
 0x3c5   : > { %v2697_v22 = vpop.f32.mrb[18].mxu1 }
 0x3c6   : > { %v2699_v25 = vpop.f32.mrb[19].mxu1 }
 0x3c9   : > { %v2703_v41 = vpop.f32.mrb[20].mxu1 }
 0x3ca   : > { %v2705_v44 = vpop.f32.mrb[21].mxu1 }
 0x3cd   : > { %v2709_v6 = vpop.f32.mrb[22].mxu1 }
 0x3ce   : > { %v2711_v10 = vpop.f32.mrb[23].mxu1 }
 0x3d1   : > { %v12804_v16 = vpop.f32.mrb[24].mxu1 }
 0x3d2   : > { %v12806_v17 = vpop.f32.mrb[25].mxu1 }
 0x3d5   : > { %v12808_v19 = vpop.f32.mrb[26].mxu1 }
 0x3d6   : > { %v12810_v20 = vpop.f32.mrb[27].mxu1 }
 0x3d9   : > { %v12812_v21 = vpop.f32.mrb[28].mxu1 }
 0x3da   : > { %v12814_v23 = vpop.f32.mrb[29].mxu1 }
 0x3dd   : > { %v12816_v24 = vpop.f32.mrb[30].mxu1 }
 0x3de   : > { %v12818_v26 = vpop.f32.mrb[31].mxu1 }
 0x3e1   : > { %v12820_v27 = vpop.f32.mrb[32].mxu1 }
 0x3e2   : > { %v12822_v28 = vpop.f32.mrb[33].mxu1 }
 0x3e5   : > { %v12824_v29 = vpop.f32.mrb[34].mxu1 }
 0x3e6   : > { %v12826_v30 = vpop.f32.mrb[35].mxu1 }
 0x3e9   : > { %v12828_v32 = vpop.f32.mrb[36].mxu1 }
 0x3ea   : > { %v12830_v33 = vpop.f32.mrb[37].mxu1 }
 0x3ed   : > { %v12832_v35 = vpop.f32.mrb[38].mxu1 }
 0x3ee   : > { %v12834_v36 = vpop.f32.mrb[39].mxu1 }
 0x3f1   : > { %v2889_v37 = vpop.f32.mrb[40].mxu1 }
 0x3f2   : > { %v2960_v42 = vmax.f32 %v2691_v4, %v2889_v37  ;;  %v2891_v43 = vpop.f32.mrb[41].mxu1 }
 0x3f3   : > { %v2961_v45 = vmax.f32 %v2693_v7, %v2891_v43 }
 0x3f5   : > { %v2895_v46 = vpop.f32.mrb[42].mxu1  ;;  %3128 = vmatprep.mubr.f32.mxu1 %v2961_v45  ;;  %3286 = vmatprep.mubr.f32.mxu0 %v2961_v45 }
 0x3f6   : > { %v2962_v59 = vmax.f32 %v2697_v22, %v2895_v46  ;;  %v2897_v60 = vpop.f32.mrb[43].mxu1  ;;  %3129 = vmatmul.mubr.f32.vlgmr.msra.gmra.mrb[64].mxu1 %v2960_v42  ;;  %3287 = vmatmul.mubr.f32.vlgmr.msra.gmra.mrb[48].mxu0 %v2960_v42 }
 0x3f7   : > { %v2963_v61 = vmax.f32 %v2699_v25, %v2897_v60  ;;  %10562 = vmatpush3.bf16.msra.mxu0 %v10559_v58 }
 0x3f8   : > { %10564 = vmatprep.subr.bf16.mxu0 %v10563_v52 }
 0x3f9   : > { %v2901_v63 = vpop.f32.mrb[44].mxu1  ;;  %3133 = vmatprep.mubr.f32.mxu1 %v2963_v61  ;;  %3291 = vmatprep.mubr.f32.mxu0 %v2963_v61 }
 0x3fa   : > { %v2964_v54 = vmax.f32 %v2703_v41, %v2901_v63  ;;  %v2903_v55 = vpop.f32.mrb[45].mxu1  ;;  %3134 = vmatmul.mubr.f32.gmra.mrb[66].mxu1 %v2962_v59  ;;  %3292 = vmatmul.mubr.f32.gmra.mrb[50].mxu0 %v2962_v59 }
 0x3fb   : > { %v2965_v57 = vmax.f32 %v2705_v44, %v2903_v55  ;;  %10566 = vmatpush3.bf16.msra.mxu0 %v10563_v52 }
 0x3fc   : > { %10568 = vmatprep.subr.bf16.mxu0 %v10567_v62 }
 0x3fd   : > { %v2907_v3 = vpop.f32.mrb[46].mxu1  ;;  %3138 = vmatprep.mubr.f32.mxu1 %v2965_v57  ;;  %3296 = vmatprep.mubr.f32.mxu0 %v2965_v57 }
 0x3fe   : > { %v2966_v9 = vmax.f32 %v2709_v6, %v2907_v3  ;;  %v2909_v11 = vpop.f32.mrb[47].mxu1  ;;  %3139 = vmatmul.mubr.f32.gmra.mrb[68].mxu1 %v2964_v54  ;;  %3297 = vmatmul.mubr.f32.gmra.mrb[52].mxu0 %v2964_v54 }
 0x3ff   : > { %v2967_v12 = vmax.f32 %v2711_v10, %v2909_v11  ;;  %10570 = vmatpush3.bf16.msra.mxu0 %v10567_v62 }
 0x400   : > { %10572 = vmatprep.subr.bf16.mxu0 %v10571_v1 }
 0x401   : > { %v2913_v14 = vpop.f32.mrb[48].mxu1  ;;  %3143 = vmatprep.mubr.f32.mxu1 %v2967_v12  ;;  %3301 = vmatprep.mubr.f32.mxu0 %v2967_v12 }
 0x402   : > { %v2968_v56 = vmax.f32 %v12804_v16, %v2913_v14  ;;  %v2915_v2 = vpop.f32.mrb[49].mxu1  ;;  %3144 = vmatmul.mubr.f32.gmra.mrb[70].mxu1 %v2966_v9  ;;  %3302 = vmatmul.mubr.f32.gmra.mrb[54].mxu0 %v2966_v9 }
 0x403   : > { %v2969_v15 = vmax.f32 %v12806_v17, %v2915_v2  ;;  %10574 = vmatpush3.bf16.msra.mxu0 %v10571_v1 }
 0x404   : > { %10576 = vmatprep.subr.bf16.mxu0 %v10575_v13 }
 0x405   : > { %v2919_v31 = vpop.f32.mrb[50].mxu1  ;;  %3148 = vmatprep.mubr.f32.mxu1 %v2969_v15  ;;  %3306 = vmatprep.mubr.f32.mxu0 %v2969_v15 }
 0x406   : > { %v2970_v34 = vmax.f32 %v12808_v19, %v2919_v31  ;;  %v2921_v48 = vpop.f32.mrb[51].mxu1  ;;  %3149 = vmatmul.mubr.f32.gmra.mrb[72].mxu1 %v2968_v56  ;;  %3307 = vmatmul.mubr.f32.gmra.mrb[56].mxu0 %v2968_v56 }
 0x407   : > { %v2971_v58 = vmax.f32 %v12810_v20, %v2921_v48  ;;  %10578 = vmatpush3.bf16.msra.mxu0 %v10575_v13 }
 0x408   : > { %10580 = vmatprep.subr.bf16.mxu0 %v10579_v18 }
 0x409   : > { %v2925_v4 = vpop.f32.mrb[52].mxu1  ;;  %3153 = vmatprep.mubr.f32.mxu1 %v2971_v58  ;;  %3311 = vmatprep.mubr.f32.mxu0 %v2971_v58 }
 0x40a   : > { %v2972_v7 = vmax.f32 %v12812_v21, %v2925_v4  ;;  %v2927_v22 = vpop.f32.mrb[53].mxu1  ;;  %3154 = vmatmul.mubr.f32.gmra.mrb[74].mxu1 %v2970_v34  ;;  %3312 = vmatmul.mubr.f32.gmra.mrb[58].mxu0 %v2970_v34 }
 0x40b   : > { %v2973_v25 = vmax.f32 %v12814_v23, %v2927_v22  ;;  %10582 = vmatpush3.bf16.msra.mxu0 %v10579_v18 }
 0x40d   : > { %v2931_v41 = vpop.f32.mrb[54].mxu1  ;;  %3158 = vmatprep.mubr.f32.mxu1 %v2973_v25  ;;  %3316 = vmatprep.mubr.f32.mxu0 %v2973_v25 }
 0x40e   : > { %v2974_v44 = vmax.f32 %v12816_v24, %v2931_v41  ;;  %v2933_v6 = vpop.f32.mrb[55].mxu1  ;;  %3159 = vmatmul.mubr.f32.gmra.mrb[76].mxu1 %v2972_v7  ;;  %3317 = vmatmul.mubr.f32.gmra.mrb[60].mxu0 %v2972_v7 }
 0x40f   : > { %v2975_v10 = vmax.f32 %v12818_v26, %v2933_v6 }
 0x411   : > { %v2937_v16 = vpop.f32.mrb[56].mxu1  ;;  %3163 = vmatprep.mubr.f32.mxu1 %v2975_v10  ;;  %3321 = vmatprep.mubr.f32.mxu0 %v2975_v10 }
 0x412   : > { %v2976_v17 = vmax.f32 %v12820_v27, %v2937_v16  ;;  %v2939_v19 = vpop.f32.mrb[57].mxu1  ;;  %3164 = vmatmul.mubr.f32.gmra.mrb[78].mxu1 %v2974_v44  ;;  %3322 = vmatmul.mubr.f32.gmra.mrb[62].mxu0 %v2974_v44 }
 0x413   : > { %v2977_v20 = vmax.f32 %v12822_v28, %v2939_v19 }
 0x415   : > { %v2943_v21 = vpop.f32.mrb[58].mxu1  ;;  %3168 = vmatprep.mubr.f32.mxu1 %v2977_v20  ;;  %3326 = vmatprep.mubr.f32.mxu0 %v2977_v20 }
 0x416   : > { %v2978_v23 = vmax.f32 %v12824_v29, %v2943_v21  ;;  %v2945_v24 = vpop.f32.mrb[59].mxu1  ;;  %3169 = vmatmul.mubr.f32.gmra.mrb[80].mxu1 %v2976_v17  ;;  %3327 = vmatmul.mubr.f32.gmra.mrb[64].mxu0 %v2976_v17 }
 0x417   : > { %v2979_v26 = vmax.f32 %v12826_v30, %v2945_v24 }
 0x419   : > { %v2949_v37 = vpop.f32.mrb[60].mxu1  ;;  %3173 = vmatprep.mubr.f32.mxu1 %v2979_v26  ;;  %3331 = vmatprep.mubr.f32.mxu0 %v2979_v26 }
 0x41a   : > { %v2980_v27 = vmax.f32 %v12828_v32, %v2949_v37  ;;  %v2951_v38 = vpop.f32.mrb[61].mxu1  ;;  %3174 = vmatmul.mubr.f32.gmra.mrb[82].mxu1 %v2978_v23  ;;  %3332 = vmatmul.mubr.f32.gmra.mrb[66].mxu0 %v2978_v23  ;;  %v4047_v32 = vld [vmem:[%s14633_s7 + $0x60] sm:$0xff] }
 0x41b   : > { %v2981_v28 = vmax.f32 %v12830_v33, %v2951_v38  ;;  %v4048_v33 = vld [vmem:[%s14633_s7 + $0x68] sm:$0xff] }
 0x41c   : > { %v10583_v43 = vpack.c.bf16 %v4048_v33, %v4047_v32 }
 0x41d   : > { %v2955_v39 = vpop.f32.mrb[62].mxu1  ;;  %3178 = vmatprep.mubr.f32.mxu1 %v2981_v28  ;;  %3336 = vmatprep.mubr.f32.mxu0 %v2981_v28 }
 0x41e   : > { %v2982_v29 = vmax.f32 %v12832_v35, %v2955_v39  ;;  %v2957_v42 = vpop.f32.mrb[63].mxu1  ;;  %3179 = vmatmul.mubr.f32.gmra.mrb[84].mxu1 %v2980_v27  ;;  %3337 = vmatmul.mubr.f32.gmra.mrb[68].mxu0 %v2980_v27  ;;  %v4049_v35 = vld [vmem:[%s14633_s7 + $0x70] sm:$0xff] }
 0x41f   : > { %v2983_v30 = vmax.f32 %v12834_v36, %v2957_v42  ;;  %10584 = vmatprep.subr.bf16.mxu0 %v10583_v43  ;;  %v3391_v36 = vld [vmem:[%s14632_s6] sm:$0xff] }
 0x420   : > { %10586 = vmatpush3.bf16.msra.mxu0 %v10583_v43 }
 0x421   : > { %3183 = vmatprep.mubr.f32.mxu1 %v2983_v30  ;;  %3341 = vmatprep.mubr.f32.mxu0 %v2983_v30 }
 0x422   : > { %3184 = vmatmul.mubr.f32.gmra.mrb[86].mxu1 %v2982_v29  ;;  %3342 = vmatmul.mubr.f32.gmra.mrb[70].mxu0 %v2982_v29 }
 0x423   : > { %9586 = vmatprep.subr.mxu0 %v4049_v35  ;;  %9510 = vmatprep.mubr.msk.f32.mxu1 %vm3423_vm2, %v3391_v36 }
 0x424   : > { %9587 = vmatpush3.msra.mxu0 %v4049_v35 }
 0x4c9   : > { %v8682_v45 = vpop.f32.mrb[64].mxu1  ;;  %v8750_v52 = vpop.f32.mrb[48].mxu0 }
 0x4ca   : > { %v8683_v46 = vpop.f32.mrb[65].mxu1  ;;  %v8751_v50 = vpop.f32.mrb[49].mxu0 }
 0x4cb   : > { %v8684_v51 = vadd.f32 %v8683_v46, %v8682_v45  ;;  %v8752_v59 = vadd.f32 %v8751_v50, %v8750_v52 }
 0x4cd   : > { %v12895_v60 = vmax.f32 %v8684_v51, %v8752_v59  ;;  %v8685_v61 = vpop.f32.mrb[66].mxu1  ;;  %v8753_v62 = vpop.f32.mrb[50].mxu0 }
 0x4ce   : > { %v8686_v63 = vpop.f32.mrb[67].mxu1  ;;  %v8754_v0 = vpop.f32.mrb[51].mxu0 }
 0x4cf   : > { %v8687_v53 = vadd.f32 %v8686_v63, %v8685_v61  ;;  %v8755_v54 = vadd.f32 %v8754_v0, %v8753_v62  ;;  %9588 = vmatprep.mubr.msk.f32.mxu0 %vm3937_vm3, %v12895_v60 }
 0x4d1   : > { %v12899_v55 = vmax.f32 %v8687_v53, %v8755_v54  ;;  %v8688_v57 = vpop.f32.mrb[68].mxu1  ;;  %v8756_v1 = vpop.f32.mrb[52].mxu0 }
 0x4d2   : > { %v8689_v3 = vpop.f32.mrb[69].mxu1  ;;  %v8757_v5 = vpop.f32.mrb[53].mxu0 }
 0x4d3   : > { %v8690_v8 = vadd.f32 %v8689_v3, %v8688_v57  ;;  %v8758_v9 = vadd.f32 %v8757_v5, %v8756_v1  ;;  %9589 = vmatmul.mubr.msk.f32.vlgmr.msra.gmra.mrb[72].mxu0 %vm3937_vm3, %v12899_v55  ;;  %v10535_v11 = vpack.c.bf16 %v12899_v55, %v12895_v60 }
 0x4d5   : > { %v12905_v12 = vmax.f32 %v8690_v8, %v8758_v9  ;;  %v8691_v13 = vpop.f32.mrb[70].mxu1  ;;  %v8759_v14 = vpop.f32.mrb[54].mxu0  ;;  %10536 = vmatprep.subr.bf16.mxu1 %v10535_v11 }
 0x4d6   : > { %v8692_v47 = vpop.f32.mrb[71].mxu1  ;;  %v8760_v49 = vpop.f32.mrb[55].mxu0  ;;  %10538 = vmatpush3.bf16.msra.mxu1 %v10535_v11 }
 0x4d7   : > { %v8693_v56 = vadd.f32 %v8692_v47, %v8691_v13  ;;  %v8761_v2 = vadd.f32 %v8760_v49, %v8759_v14  ;;  %9591 = vmatprep.mubr.msk.f32.mxu0 %vm3937_vm3, %v12905_v12 }
 0x4d9   : > { %v12909_v15 = vmax.f32 %v8693_v56, %v8761_v2  ;;  %v8694_v18 = vpop.f32.mrb[72].mxu1  ;;  %v8762_v31 = vpop.f32.mrb[56].mxu0 }
 0x4da   : > { %v8695_v34 = vpop.f32.mrb[73].mxu1  ;;  %v8763_v48 = vpop.f32.mrb[57].mxu0 }
 0x4db   : > { %v8696_v58 = vadd.f32 %v8695_v34, %v8694_v18  ;;  %v8764_v4 = vadd.f32 %v8763_v48, %v8762_v31  ;;  %9592 = vmatmul.mubr.msk.f32.gmra.mrb[74].mxu0 %vm3937_vm3, %v12909_v15  ;;  %v10539_v7 = vpack.c.bf16 %v12909_v15, %v12905_v12  ;;  %v8393_v18 = vld [vmem:[%s14633_s7 + $0x78] sm:$0xff]  ;;  %v8394_v31 = vld [vmem:[%s14633_s7 + $0x80] sm:$0xff] }
 0x4dd   : > { %v12915_v22 = vmax.f32 %v8696_v58, %v8764_v4  ;;  %v8697_v25 = vpop.f32.mrb[74].mxu1  ;;  %v8765_v41 = vpop.f32.mrb[58].mxu0  ;;  %10540 = vmatprep.subr.bf16.mxu1 %v10539_v7  ;;  %v10611_v58 = vpack.c.bf16 %v8394_v31, %v8393_v18  ;;  %v8395_v4 = vld [vmem:[%s14633_s7 + $0x88] sm:$0xff]  ;;  %v3421_v31 = vld [vmem:[%s14632_s6 + $0xf0] sm:$0xff] }
 0x4de   : > { %v8698_v44 = vpop.f32.mrb[75].mxu1  ;;  %v8766_v6 = vpop.f32.mrb[59].mxu0  ;;  %10542 = vmatpush3.bf16.msra.mxu1 %v10539_v7  ;;  %v8396_v7 = vld [vmem:[%s14633_s7 + $0x90] sm:$0xff]  ;;  %v3420_v18 = vld [vmem:[%s14632_s6 + $0xe8] sm:$0xff] }
 0x4df   : > { %v8699_v10 = vadd.f32 %v8698_v44, %v8697_v25  ;;  %v8767_v16 = vadd.f32 %v8766_v6, %v8765_v41  ;;  %9594 = vmatprep.mubr.msk.f32.mxu0 %vm3937_vm3, %v12915_v22  ;;  %v3392_v25 = vld [vmem:[%s14632_s6 + $0x8] sm:$0xff]  ;;  %v3393_v41 = vld [vmem:[%s14632_s6 + $0x10] sm:$0xff]  ;;  %v10615_v44 = vpack.c.bf16 %v8396_v7, %v8395_v4  ;;  %v8397_v6 = vld [vmem:[%s14633_s7 + $0x98] sm:$0xff] }
 0x4e1   : > { %v12919_v17 = vmax.f32 %v8699_v10, %v8767_v16  ;;  %v8700_v19 = vpop.f32.mrb[76].mxu1  ;;  %v8768_v20 = vpop.f32.mrb[60].mxu0  ;;  %v8398_v10 = vld [vmem:[%s14633_s7 + $0xa0] sm:$0xff]  ;;  %v3394_v16 = vld [vmem:[%s14632_s6 + $0x18] sm:$0xff] }
 0x4e2   : > { %v8701_v21 = vpop.f32.mrb[77].mxu1  ;;  %v8769_v23 = vpop.f32.mrb[61].mxu0 }
 0x4e3   : > { %v8702_v24 = vadd.f32 %v8701_v21, %v8700_v19  ;;  %v8770_v26 = vadd.f32 %v8769_v23, %v8768_v20  ;;  %9595 = vmatmul.mubr.msk.f32.gmra.mrb[76].mxu0 %vm3937_vm3, %v12919_v17  ;;  %v10543_v37 = vpack.c.bf16 %v12919_v17, %v12915_v22  ;;  %v3395_v19 = vld [vmem:[%s14632_s6 + $0x20] sm:$0xff]  ;;  %v10619_v20 = vpack.c.bf16 %v8398_v10, %v8397_v6  ;;  %v8399_v21 = vld [vmem:[%s14633_s7 + $0xa8] sm:$0xff]  ;;  %v8400_v23 = vld [vmem:[%s14633_s7 + $0xb0] sm:$0xff] }
 0x4e5   : > { %v12925_v27 = vmax.f32 %v8702_v24, %v8770_v26  ;;  %v8703_v38 = vpop.f32.mrb[78].mxu1  ;;  %v8771_v28 = vpop.f32.mrb[62].mxu0  ;;  %10544 = vmatprep.subr.bf16.mxu1 %v10543_v37  ;;  %v3396_v24 = vld [vmem:[%s14632_s6 + $0x28] sm:$0xff]  ;;  %v3397_v26 = vld [vmem:[%s14632_s6 + $0x30] sm:$0xff] }
 0x4e6   : > { %v8704_v39 = vpop.f32.mrb[79].mxu1  ;;  %v8772_v29 = vpop.f32.mrb[63].mxu0  ;;  %10546 = vmatpush3.bf16.msra.mxu1 %v10543_v37  ;;  %v10623_v37 = vpack.c.bf16 %v8400_v23, %v8399_v21 }
 0x4e7   : > { %v8705_v42 = vadd.f32 %v8704_v39, %v8703_v38  ;;  %v8773_v30 = vadd.f32 %v8772_v29, %v8771_v28  ;;  %9597 = vmatprep.mubr.msk.f32.mxu0 %vm3937_vm3, %v12925_v27  ;;  %v8401_v38 = vld [vmem:[%s14633_s7 + $0xb8] sm:$0xff]  ;;  %v8402_v28 = vld [vmem:[%s14633_s7 + $0xc0] sm:$0xff] }
 0x4e8   : > { %v3398_v39 = vld [vmem:[%s14632_s6 + $0x38] sm:$0xff]  ;;  %v3399_v29 = vld [vmem:[%s14632_s6 + $0x40] sm:$0xff] }
 0x4e9   : > { %v12929_v32 = vmax.f32 %v8705_v42, %v8773_v30  ;;  %v8706_v33 = vpop.f32.mrb[80].mxu1  ;;  %v8774_v43 = vpop.f32.mrb[64].mxu0  ;;  %v10627_v42 = vpack.c.bf16 %v8402_v28, %v8401_v38  ;;  %v8403_v30 = vld [vmem:[%s14633_s7 + $0xc8] sm:$0xff] }
 0x4ea   : > { %v8707_v35 = vpop.f32.mrb[81].mxu1  ;;  %v8775_v36 = vpop.f32.mrb[65].mxu0 }
 0x4eb   : > { %v8708_v45 = vadd.f32 %v8707_v35, %v8706_v33  ;;  %v8776_v52 = vadd.f32 %v8775_v36, %v8774_v43  ;;  %9598 = vmatmul.mubr.msk.f32.gmra.mrb[78].mxu0 %vm3937_vm3, %v12929_v32  ;;  %v10547_v46 = vpack.c.bf16 %v12929_v32, %v12925_v27  ;;  %v8404_v33 = vld [vmem:[%s14633_s7 + $0xd0] sm:$0xff]  ;;  %v3400_v43 = vld [vmem:[%s14632_s6 + $0x48] sm:$0xff] }
 0x4ec   : > { %v3401_v35 = vld [vmem:[%s14632_s6 + $0x50] sm:$0xff]  ;;  %v10631_v36 = vpack.c.bf16 %v8404_v33, %v8403_v30 }
 0x4ed   : > { %v12935_v50 = vmax.f32 %v8708_v45, %v8776_v52  ;;  %v8709_v51 = vpop.f32.mrb[82].mxu1  ;;  %v8777_v59 = vpop.f32.mrb[66].mxu0  ;;  %10548 = vmatprep.subr.bf16.mxu1 %v10547_v46  ;;  %v8405_v45 = vld [vmem:[%s14633_s7 + $0xd8] sm:$0xff]  ;;  %v8406_v52 = vld [vmem:[%s14633_s7 + $0xe0] sm:$0xff] }
 0x4ee   : > { %v8710_v61 = vpop.f32.mrb[83].mxu1  ;;  %v8778_v62 = vpop.f32.mrb[67].mxu0  ;;  %10550 = vmatpush3.bf16.msra.mxu1 %v10547_v46  ;;  %v3402_v46 = vld [vmem:[%s14632_s6 + $0x58] sm:$0xff] }
 0x4ef   : > { %v8711_v63 = vadd.f32 %v8710_v61, %v8709_v51  ;;  %v8779_v0 = vadd.f32 %v8778_v62, %v8777_v59  ;;  %9600 = vmatprep.mubr.msk.f32.mxu0 %vm3937_vm3, %v12935_v50  ;;  %v3403_v51 = vld [vmem:[%s14632_s6 + $0x60] sm:$0xff]  ;;  %v10635_v59 = vpack.c.bf16 %v8406_v52, %v8405_v45  ;;  %v3404_v61 = vld [vmem:[%s14632_s6 + $0x68] sm:$0xff]  ;;  %v3405_v62 = vld [vmem:[%s14632_s6 + $0x70] sm:$0xff] }
 0x4f1   : > { %v12939_v53 = vmax.f32 %v8711_v63, %v8779_v0  ;;  %v8712_v54 = vpop.f32.mrb[84].mxu1  ;;  %v8780_v57 = vpop.f32.mrb[68].mxu0  ;;  %v8407_v63 = vld [vmem:[%s14633_s7 + $0xe8] sm:$0xff]  ;;  %v3406_v0 = vld [vmem:[%s14632_s6 + $0x78] sm:$0xff] }
 0x4f2   : > { %v8713_v1 = vpop.f32.mrb[85].mxu1  ;;  %v8781_v3 = vpop.f32.mrb[69].mxu0 }
 0x4f3   : > { %v8714_v5 = vadd.f32 %v8713_v1, %v8712_v54  ;;  %v8782_v8 = vadd.f32 %v8781_v3, %v8780_v57  ;;  %9601 = vmatmul.mubr.msk.f32.gmra.mrb[80].mxu0 %vm3937_vm3, %v12939_v53  ;;  %v10551_v9 = vpack.c.bf16 %v12939_v53, %v12935_v50  ;;  %v3407_v54 = vld [vmem:[%s14632_s6 + $0x80] sm:$0xff]  ;;  %v3408_v57 = vld [vmem:[%s14632_s6 + $0x88] sm:$0xff]  ;;  %v3409_v1 = vld [vmem:[%s14632_s6 + $0x90] sm:$0xff] }
 0x4f4   : > { %v3410_v3 = vld [vmem:[%s14632_s6 + $0x98] sm:$0xff] }
 0x4f5   : > { %v12945_v11 = vmax.f32 %v8714_v5, %v8782_v8  ;;  %v8715_v13 = vpop.f32.mrb[86].mxu1  ;;  %v8783_v14 = vpop.f32.mrb[70].mxu0  ;;  %10552 = vmatprep.subr.bf16.mxu1 %v10551_v9  ;;  %v3411_v5 = vld [vmem:[%s14632_s6 + $0xa0] sm:$0xff]  ;;  %v3412_v8 = vld [vmem:[%s14632_s6 + $0xa8] sm:$0xff] }
 0x4f6   : > { %v8716_v47 = vpop.f32.mrb[87].mxu1  ;;  %v8784_v49 = vpop.f32.mrb[71].mxu0  ;;  %10554 = vmatpush3.bf16.msra.mxu1 %v10551_v9  ;;  %v3413_v9 = vld [vmem:[%s14632_s6 + $0xb0] sm:$0xff] }
 0x4f7   : > { %v8717_v56 = vadd.f32 %v8716_v47, %v8715_v13  ;;  %v8785_v2 = vadd.f32 %v8784_v49, %v8783_v14  ;;  %9603 = vmatprep.mubr.msk.f32.mxu0 %vm3937_vm3, %v12945_v11  ;;  %v3414_v13 = vld [vmem:[%s14632_s6 + $0xb8] sm:$0xff]  ;;  %v3415_v14 = vld [vmem:[%s14632_s6 + $0xc0] sm:$0xff]  ;;  %v3416_v47 = vld [vmem:[%s14632_s6 + $0xc8] sm:$0xff] }
 0x4f8   : > { %v3417_v49 = vld [vmem:[%s14632_s6 + $0xd0] sm:$0xff] }
 0x4f9   : > { %v12955_v34 = vmax.f32 %v8717_v56, %v8785_v2  ;;  %v3418_v56 = vld [vmem:[%s14632_s6 + $0xd8] sm:$0xff]  ;;  %v3419_v2 = vld [vmem:[%s14632_s6 + $0xe0] sm:$0xff] }
 0x4fb   : > { %9604 = vmatmul.mubr.msk.f32.gmra.mrb[82].mxu0 %vm3937_vm3, %v12955_v34  ;;  %v10555_v48 = vpack.c.bf16 %v12955_v34, %v12945_v11 }
 0x4fd   : > { %10556 = vmatprep.subr.bf16.mxu1 %v10555_v48 }
 0x4fe   : > { %10558 = vmatpush3.bf16.msra.mxu1 %v10555_v48  ;;  %v3422_v48 = vld [vmem:[%s14632_s6 + $0xf8] sm:$0xff] }
 0x4ff   : > { %10612 = vmatprep.subr.bf16.mxu1 %v10611_v58 }
 0x501   : > { %9511 = vmatmul.mubr.msk.f32.vlgmr.msra.gmra.mrb[88].mxu1 %vm3423_vm2, %v3392_v25 }
 0x502   : > { %9513 = vmatprep.mubr.msk.f32.mxu1 %vm3423_vm2, %v3393_v41  ;;  %10614 = vmatpush3.bf16.msra.mxu1 %v10611_v58 }
 0x503   : > { %10616 = vmatprep.subr.bf16.mxu1 %v10615_v44 }
 0x505   : > { %9514 = vmatmul.mubr.msk.f32.gmra.mrb[90].mxu1 %vm3423_vm2, %v3394_v16 }
 0x506   : > { %9516 = vmatprep.mubr.msk.f32.mxu1 %vm3423_vm2, %v3395_v19  ;;  %10618 = vmatpush3.bf16.msra.mxu1 %v10615_v44 }
 0x507   : > { %10620 = vmatprep.subr.bf16.mxu1 %v10619_v20 }
 0x509   : > { %9517 = vmatmul.mubr.msk.f32.gmra.mrb[92].mxu1 %vm3423_vm2, %v3396_v24 }
 0x50a   : > { %9519 = vmatprep.mubr.msk.f32.mxu1 %vm3423_vm2, %v3397_v26  ;;  %10622 = vmatpush3.bf16.msra.mxu1 %v10619_v20 }
 0x50b   : > { %10624 = vmatprep.subr.bf16.mxu1 %v10623_v37 }
 0x50d   : > { %9520 = vmatmul.mubr.msk.f32.gmra.mrb[94].mxu1 %vm3423_vm2, %v3398_v39 }
 0x50e   : > { %9522 = vmatprep.mubr.msk.f32.mxu1 %vm3423_vm2, %v3399_v29  ;;  %10626 = vmatpush3.bf16.msra.mxu1 %v10623_v37 }
 0x50f   : > { %10628 = vmatprep.subr.bf16.mxu1 %v10627_v42 }
 0x511   : > { %9523 = vmatmul.mubr.msk.f32.gmra.mrb[96].mxu1 %vm3423_vm2, %v3400_v43 }
 0x512   : > { %9525 = vmatprep.mubr.msk.f32.mxu1 %vm3423_vm2, %v3401_v35  ;;  %10630 = vmatpush3.bf16.msra.mxu1 %v10627_v42 }
 0x513   : > { %10632 = vmatprep.subr.bf16.mxu1 %v10631_v36 }
 0x515   : > { %9526 = vmatmul.mubr.msk.f32.gmra.mrb[98].mxu1 %vm3423_vm2, %v3402_v46 }
 0x516   : > { %9528 = vmatprep.mubr.msk.f32.mxu1 %vm3423_vm2, %v3403_v51  ;;  %10634 = vmatpush3.bf16.msra.mxu1 %v10631_v36 }
 0x517   : > { %10636 = vmatprep.subr.bf16.mxu1 %v10635_v59 }
 0x519   : > { %9529 = vmatmul.mubr.msk.f32.gmra.mrb[100].mxu1 %vm3423_vm2, %v3404_v61 }
 0x51a   : > { %9531 = vmatprep.mubr.msk.f32.mxu1 %vm3423_vm2, %v3405_v62  ;;  %10638 = vmatpush3.bf16.msra.mxu1 %v10635_v59  ;;  %v8286_v59 = vld [vmem:[%s14632_s6 + $0x108] sm:$0xff]  ;;  %v8287_v62 = vld [vmem:[%s14632_s6 + $0x110] sm:$0xff] }
 0x51b   : > { %9706 = vmatprep.subr.mxu1 %v8407_v63 }
 0x51d   : > { %9532 = vmatmul.mubr.msk.f32.gmra.mrb[102].mxu1 %vm3423_vm2, %v3406_v0 }
 0x51e   : > { %9534 = vmatprep.mubr.msk.f32.mxu1 %vm3423_vm2, %v3407_v54  ;;  %9707 = vmatpush3.msra.mxu1 %v8407_v63 }
 0x521   : > { %9535 = vmatmul.mubr.msk.f32.gmra.mrb[104].mxu1 %vm3423_vm2, %v3408_v57  ;;  %v8288_v57 = vld [vmem:[%s14632_s6 + $0x118] sm:$0xff] }
 0x522   : > { %9537 = vmatprep.mubr.msk.f32.mxu1 %vm3423_vm2, %v3409_v1 }
 0x525   : > { %9538 = vmatmul.mubr.msk.f32.gmra.mrb[106].mxu1 %vm3423_vm2, %v3410_v3 }
 0x526   : > { %9540 = vmatprep.mubr.msk.f32.mxu1 %vm3423_vm2, %v3411_v5  ;;  %v8289_v5 = vld [vmem:[%s14632_s6 + $0x120] sm:$0xff] }
 0x529   : > { %9541 = vmatmul.mubr.msk.f32.gmra.mrb[108].mxu1 %vm3423_vm2, %v3412_v8 }
 0x52a   : > { %9543 = vmatprep.mubr.msk.f32.mxu1 %vm3423_vm2, %v3413_v9 }
 0x52d   : > { %9544 = vmatmul.mubr.msk.f32.gmra.mrb[110].mxu1 %vm3423_vm2, %v3414_v13 }
 0x52e   : > { %9546 = vmatprep.mubr.msk.f32.mxu1 %vm3423_vm2, %v3415_v14 }
 0x531   : > { %9547 = vmatmul.mubr.msk.f32.gmra.mrb[112].mxu1 %vm3423_vm2, %v3416_v47  ;;  %v8290_v47 = vld [vmem:[%s14632_s6 + $0x128] sm:$0xff] }
 0x532   : > { %9549 = vmatprep.mubr.msk.f32.mxu1 %vm3423_vm2, %v3417_v49 }
 0x535   : > { %9550 = vmatmul.mubr.msk.f32.gmra.mrb[114].mxu1 %vm3423_vm2, %v3418_v56  ;;  %v8291_v56 = vld [vmem:[%s14632_s6 + $0x130] sm:$0xff] }
 0x536   : > { %9552 = vmatprep.mubr.msk.f32.mxu1 %vm3423_vm2, %v3419_v2 }
 0x539   : > { %9553 = vmatmul.mubr.msk.f32.gmra.mrb[116].mxu1 %vm3423_vm2, %v3420_v18 }
 0x53a   : > { %9555 = vmatprep.mubr.msk.f32.mxu1 %vm3423_vm2, %v3421_v31 }
 0x53d   : > { %9556 = vmatmul.mubr.msk.f32.gmra.mrb[118].mxu1 %vm3423_vm2, %v3422_v48 }
 0x53e   : > { %9708 = vmatprep.mubr.msk.f32.mxu1 %vm3937_vm3, %v12895_v60  ;;  %v8285_v60 = vld [vmem:[%s14632_s6 + $0x100] sm:$0xff] }
 0x53f   : > { %9630 = vmatprep.mubr.msk.f32.mxu0 %vm3423_vm2, %v8285_v60 }
 0x541   : > { %9709 = vmatmul.mubr.msk.f32.vlgmr.msra.gmra.mrb[120].mxu1 %vm3937_vm3, %v12899_v55  ;;  %v13152_v55 = vpop.permute.xlu1 %3832 }
 0x542   : > { %9711 = vmatprep.mubr.msk.f32.mxu1 %vm3937_vm3, %v12905_v12  ;;  %v13154_v12 = vpop.permute.xlu0 %3827 }
 0x545   : > { %9712 = vmatmul.mubr.msk.f32.gmra.mrb[122].mxu1 %vm3937_vm3, %v12909_v15  ;;  %v3753_v15 = vpop.permute.xlu1 %3752 }
 0x546   : > { %9714 = vmatprep.mubr.msk.f32.mxu1 %vm3937_vm3, %v12915_v22  ;;  %v3748_v22 = vpop.permute.xlu0 %3747 }
 0x549   : > { %9715 = vmatmul.mubr.msk.f32.gmra.mrb[124].mxu1 %vm3937_vm3, %v12919_v17  ;;  %v13156_v17 = vpop.permute.xlu1 %3842 }
 0x54a   : > { %9717 = vmatprep.mubr.msk.f32.mxu1 %vm3937_vm3, %v12925_v27  ;;  %v13158_v27 = vpop.permute.xlu0 %3837 }
 0x54d   : > { %9718 = vmatmul.mubr.msk.f32.gmra.mrb[126].mxu1 %vm3937_vm3, %v12929_v32 }
 0x54e   : > { %9720 = vmatprep.mubr.msk.f32.mxu1 %vm3937_vm3, %v12935_v50  ;;  %v3758_v58 = vpop.permute.xlu0 %3757 }
 0x551   : > { %9721 = vmatmul.mubr.msk.f32.gmra.mrb[128].mxu1 %vm3937_vm3, %v12939_v53  ;;  %v3763_v53 = vpop.permute.xlu1 %3762 }
 0x552   : > { %9723 = vmatprep.mubr.msk.f32.mxu1 %vm3937_vm3, %v12945_v11  ;;  %v13166_v25 = vpop.permute.xlu0 %3847 }
 0x555   : > { %9724 = vmatmul.mubr.msk.f32.gmra.mrb[130].mxu1 %vm3937_vm3, %v12955_v34  ;;  %v8361_v34 = vld [vmem:[%s14632_s6 + $0x200] sm:$0xff]  ;;  %v13163_v4 = vpop.permute.xlu1 %3852 }
 0x556   : > { %9750 = vmatprep.mubr.msk.f32.mxu1 %vm3423_vm2, %v8361_v34  ;;  %v3768_v10 = vpop.permute.xlu0 %3767 }
 0x559   : > { %v3773_v6 = vpop.permute.xlu1 %3772 }
 0x55a   : > { %v13170_v23 = vpop.permute.xlu0 %3857 }
 0x55d   : > { %v13168_v21 = vpop.permute.xlu1 %3862 }
 0x55e   : > { %v3778_v28 = vpop.permute.xlu0 %3777 }
 0x561   : > { %v3783_v37 = vpop.permute.xlu1 %3782 }
 0x562   : > { %v13174_v42 = vpop.permute.xlu0 %3867 }
 0x565   : > { %v13172_v39 = vpop.permute.xlu1 %3872 }
 0x566   : > { %v3788_v35 = vpop.permute.xlu0 %3787 }
 0x569   : > { %v3793_v43 = vpop.permute.xlu1 %3792 }
 0x56a   : > { %v13178_v51 = vpop.permute.xlu0 %3877 }
 0x56d   : > { %v13176_v46 = vpop.permute.xlu1 %3882 }
 0x56e   : > { %v3798_v8 = vpop.permute.xlu0 %3797 }
 0x571   : > { %v3803_v1 = vpop.permute.xlu1 %3802 }
 0x572   : > { %v13209_v60 = vpop.permute.xlu0 %3887 }
 0x575   : > { %v13206_v31 = vpop.permute.xlu1 %3892 }
 0x579   : > { %v3813_v34 = vpop.permute.xlu1 %3812 }
 0x5a6   : > { %v9590_v32 = vpop.f32.mrb[72].mxu0 }
 0x5a7   : > { %v4152_v50 = vpop.f32.mrb[73].mxu0 }
 0x5a8   : > { %v10587_v11 = vpack.c.bf16 %v9590_v32, %v4152_v50  ;;  %v8293_v32 = vld [vmem:[%s14632_s6 + $0x140] sm:$0xff] }
 0x5aa   : > { %10588 = vmatprep.subr.bf16.mxu0 %v10587_v11 }
 0x5ab   : > { %10590 = vmatpush3.bf16.msra.mxu0 %v10587_v11 }
 0x5ae   : > { %v9593_v7 = vpop.f32.mrb[74].mxu0 }
 0x5af   : > { %v4162_v41 = vpop.f32.mrb[75].mxu0 }
 0x5b0   : > { %v10591_v44 = vpack.c.bf16 %v9593_v7, %v4162_v41  ;;  %v8295_v41 = vld [vmem:[%s14632_s6 + $0x150] sm:$0xff] }
 0x5b2   : > { %10592 = vmatprep.subr.bf16.mxu0 %v10591_v44 }
 0x5b3   : > { %10594 = vmatpush3.bf16.msra.mxu0 %v10591_v44  ;;  %v3808_v44 = vpop.permute.xlu0 %3807 }
 0x5b6   : > { %v9596_v16 = vpop.f32.mrb[76].mxu0 }
 0x5b7   : > { %v4172_v19 = vpop.f32.mrb[77].mxu0 }
 0x5b8   : > { %v10595_v20 = vpack.c.bf16 %v9596_v16, %v4172_v19  ;;  %v8296_v19 = vld [vmem:[%s14632_s6 + $0x158] sm:$0xff] }
 0x5ba   : > { %10596 = vmatprep.subr.bf16.mxu0 %v10595_v20 }
 0x5bb   : > { %10598 = vmatpush3.bf16.msra.mxu0 %v10595_v20 }
 0x5be   : > { %v9599_v24 = vpop.f32.mrb[78].mxu0 }
 0x5bf   : > { %v4182_v26 = vpop.f32.mrb[79].mxu0 }
 0x5c0   : > { %v10599_v38 = vpack.c.bf16 %v9599_v24, %v4182_v26  ;;  %v8297_v24 = vld [vmem:[%s14632_s6 + $0x160] sm:$0xff] }
 0x5c2   : > { %10600 = vmatprep.subr.bf16.mxu0 %v10599_v38 }
 0x5c3   : > { %10602 = vmatpush3.bf16.msra.mxu0 %v10599_v38  ;;  %v13240_v38 = vpop.permute.xlu1 %3902 }
 0x5c6   : > { %v9602_v29 = vpop.f32.mrb[80].mxu0 }
 0x5c7   : > { %v4192_v30 = vpop.f32.mrb[81].mxu0 }
 0x5c8   : > { %v10603_v33 = vpack.c.bf16 %v9602_v29, %v4192_v30  ;;  %v13243_v29 = vpop.permute.xlu0 %3897  ;;  %v8298_v30 = vld [vmem:[%s14632_s6 + $0x168] sm:$0xff] }
 0x5ca   : > { %10604 = vmatprep.subr.bf16.mxu0 %v10603_v33 }
 0x5cb   : > { %10606 = vmatpush3.bf16.msra.mxu0 %v10603_v33 }
 0x5ce   : > { %v9605_v36 = vpop.f32.mrb[82].mxu0 }
 0x5cf   : > { %v4202_v45 = vpop.f32.mrb[83].mxu0 }
 0x5d0   : > { %v10607_v52 = vpack.c.bf16 %v9605_v36, %v4202_v45 }
 0x5d2   : > { %10608 = vmatprep.subr.bf16.mxu0 %v10607_v52 }
 0x5d3   : > { %10610 = vmatpush3.bf16.msra.mxu0 %v10607_v52  ;;  %v8300_v52 = vld [vmem:[%s14632_s6 + $0x178] sm:$0xff] }
 0x5d4   : > { %v9512_v61 = vpop.f32.mrb[88].mxu1 }
 0x5d5   : > { %v3906_v63 = vadd.f32 %v9512_v61, %v3753_v15  ;;  %v3586_v0 = vpop.f32.mrb[89].mxu1  ;;  %v8292_v15 = vld [vmem:[%s14632_s6 + $0x138] sm:$0xff] }
 0x5d6   : > { %v3905_v54 = vadd.f32 %v3748_v22, %v3586_v0  ;;  %9631 = vmatmul.mubr.msk.f32.vlgmr.msra.gmra.mrb[84].mxu0 %vm3423_vm2, %v8286_v59  ;;  %v3823_v59 = vpop.permute.xlu1 %3822 }
 0x5d7   : > { %3939 = vst.msk [vmem:[#allocation4 + $0x8] sm:$0xff] %vm3937_vm3, %v3906_v63  ;;  %9633 = vmatprep.mubr.msk.f32.mxu0 %vm3423_vm2, %v8287_v62  ;;  %v8301_v62 = vld [vmem:[%s14632_s6 + $0x180] sm:$0xff]  ;;  %v3818_v63 = vpop.permute.xlu0 %3817 }
 0x5d8   : > { %3938 = vst.msk [vmem:[#allocation4] sm:$0xff] %vm3937_vm3, %v3905_v54  ;;  %v9515_v3 = vpop.f32.mrb[90].mxu1 }
 0x5d9   : > { %v3908_v9 = vadd.f32 %v9515_v3, %v3763_v53  ;;  %v3596_v13 = vpop.f32.mrb[91].mxu1 }
 0x5da   : > { %v3907_v14 = vadd.f32 %v3758_v58, %v3596_v13  ;;  %9634 = vmatmul.mubr.msk.f32.gmra.mrb[86].mxu0 %vm3423_vm2, %v8288_v57  ;;  %v8294_v58 = vld [vmem:[%s14632_s6 + $0x148] sm:$0xff] }
 0x5db   : > { %3941 = vst.msk [vmem:[#allocation4 + $0x18] sm:$0xff] %vm3937_vm3, %v3908_v9  ;;  %9636 = vmatprep.mubr.msk.f32.mxu0 %vm3423_vm2, %v8289_v5  ;;  %v8303_v5 = vld [vmem:[%s14632_s6 + $0x190] sm:$0xff] }
 0x5dc   : > { %3940 = vst.msk [vmem:[#allocation4 + $0x10] sm:$0xff] %vm3937_vm3, %v3907_v14  ;;  %v9518_v49 = vpop.f32.mrb[92].mxu1  ;;  %v8304_v14 = vld [vmem:[%s14632_s6 + $0x198] sm:$0xff] }
 0x5dd   : > { %v3910_v2 = vadd.f32 %v9518_v49, %v3773_v6  ;;  %v3606_v18 = vpop.f32.mrb[93].mxu1 }
 0x5de   : > { %v3909_v48 = vadd.f32 %v3768_v10, %v3606_v18  ;;  %9637 = vmatmul.mubr.msk.f32.gmra.mrb[88].mxu0 %vm3423_vm2, %v8290_v47 }
 0x5df   : > { %3943 = vst.msk [vmem:[#allocation4 + $0x28] sm:$0xff] %vm3937_vm3, %v3910_v2  ;;  %9639 = vmatprep.mubr.msk.f32.mxu0 %vm3423_vm2, %v8291_v56  ;;  %v8306_v2 = vld [vmem:[%s14632_s6 + $0x1a8] sm:$0xff] }
 0x5e0   : > { %3942 = vst.msk [vmem:[#allocation4 + $0x20] sm:$0xff] %vm3937_vm3, %v3909_v48  ;;  %v9521_v22 = vpop.f32.mrb[94].mxu1 }
 0x5e1   : > { %v3912_v50 = vadd.f32 %v9521_v22, %v3783_v37  ;;  %v3616_v53 = vpop.f32.mrb[95].mxu1  ;;  %v8308_v22 = vld [vmem:[%s14632_s6 + $0x1b8] sm:$0xff] }
 0x5e2   : > { %v3911_v11 = vadd.f32 %v3778_v28, %v3616_v53  ;;  %9640 = vmatmul.mubr.msk.f32.gmra.mrb[90].mxu0 %vm3423_vm2, %v8292_v15 }
 0x5e3   : > { %3945 = vst.msk [vmem:[#allocation4 + $0x38] sm:$0xff] %vm3937_vm3, %v3912_v50  ;;  %9642 = vmatprep.mubr.msk.f32.mxu0 %vm3423_vm2, %v8293_v32 }
 0x5e4   : > { %3944 = vst.msk [vmem:[#allocation4 + $0x30] sm:$0xff] %vm3937_vm3, %v3911_v11  ;;  %v9524_v7 = vpop.f32.mrb[96].mxu1  ;;  %v8310_v11 = vld [vmem:[%s14632_s6 + $0x1c8] sm:$0xff] }
 0x5e5   : > { %v3914_v6 = vadd.f32 %v9524_v7, %v3793_v43  ;;  %v3626_v10 = vpop.f32.mrb[97].mxu1  ;;  %v8299_v43 = vld [vmem:[%s14632_s6 + $0x170] sm:$0xff] }
 0x5e6   : > { %v3913_v16 = vadd.f32 %v3788_v35, %v3626_v10  ;;  %9643 = vmatmul.mubr.msk.f32.gmra.mrb[92].mxu0 %vm3423_vm2, %v8294_v58 }
 0x5e7   : > { %3947 = vst.msk [vmem:[#allocation4 + $0x48] sm:$0xff] %vm3937_vm3, %v3914_v6  ;;  %9645 = vmatprep.mubr.msk.f32.mxu0 %vm3423_vm2, %v8295_v41  ;;  %v8312_v41 = vld [vmem:[%s14632_s6 + $0x1d8] sm:$0xff] }
 0x5e8   : > { %3946 = vst.msk [vmem:[#allocation4 + $0x40] sm:$0xff] %vm3937_vm3, %v3913_v16  ;;  %v9527_v20 = vpop.f32.mrb[98].mxu1  ;;  %v8314_v16 = vld [vmem:[%s14632_s6 + $0x1e8] sm:$0xff] }
 0x5e9   : > { %v3916_v26 = vadd.f32 %v9527_v20, %v3803_v1  ;;  %v3636_v37 = vpop.f32.mrb[99].mxu1  ;;  %v8302_v1 = vld [vmem:[%s14632_s6 + $0x188] sm:$0xff] }
 0x5ea   : > { %v3915_v28 = vadd.f32 %v3798_v8, %v3636_v37  ;;  %9646 = vmatmul.mubr.msk.f32.gmra.mrb[94].mxu0 %vm3423_vm2, %v8296_v19 }
 0x5eb   : > { %3949 = vst.msk [vmem:[#allocation4 + $0x58] sm:$0xff] %vm3937_vm3, %v3916_v26  ;;  %9648 = vmatprep.mubr.msk.f32.mxu0 %vm3423_vm2, %v8297_v24  ;;  %v8316_v26 = vld [vmem:[%s14632_s6 + $0x1f8] sm:$0xff] }
 0x5ec   : > { %3948 = vst.msk [vmem:[#allocation4 + $0x50] sm:$0xff] %vm3937_vm3, %v3915_v28  ;;  %v9530_v33 = vpop.f32.mrb[100].mxu1 }
 0x5ed   : > { %v3918_v35 = vadd.f32 %v9530_v33, %v3813_v34  ;;  %v3646_v36 = vpop.f32.mrb[101].mxu1 }
 0x5ee   : > { %v3917_v45 = vadd.f32 %v3808_v44, %v3646_v36  ;;  %9649 = vmatmul.mubr.msk.f32.gmra.mrb[96].mxu0 %vm3423_vm2, %v8298_v30 }
 0x5ef   : > { %3951 = vst.msk [vmem:[#allocation4 + $0x68] sm:$0xff] %vm3937_vm3, %v3918_v35  ;;  %9651 = vmatprep.mubr.msk.f32.mxu0 %vm3423_vm2, %v8299_v43 }
 0x5f0   : > { %3950 = vst.msk [vmem:[#allocation4 + $0x60] sm:$0xff] %vm3937_vm3, %v3917_v45  ;;  %v9533_v61 = vpop.f32.mrb[102].mxu1 }
 0x5f1   : > { %v3920_v0 = vadd.f32 %v9533_v61, %v3823_v59  ;;  %v3656_v54 = vpop.f32.mrb[103].mxu1 }
 0x5f2   : > { %v3919_v57 = vadd.f32 %v3818_v63, %v3656_v54  ;;  %9652 = vmatmul.mubr.msk.f32.gmra.mrb[98].mxu0 %vm3423_vm2, %v8300_v52 }
 0x5f3   : > { %3953 = vst.msk [vmem:[#allocation4 + $0x78] sm:$0xff] %vm3937_vm3, %v3920_v0  ;;  %9654 = vmatprep.mubr.msk.f32.mxu0 %vm3423_vm2, %v8301_v62 }
 0x5f4   : > { %3952 = vst.msk [vmem:[#allocation4 + $0x70] sm:$0xff] %vm3937_vm3, %v3919_v57  ;;  %v9536_v3 = vpop.f32.mrb[104].mxu1 }
 0x5f5   : > { %v3922_v8 = vadd.f32 %v9536_v3, %v13152_v55  ;;  %v3666_v9 = vpop.f32.mrb[105].mxu1  ;;  %v8305_v55 = vld [vmem:[%s14632_s6 + $0x1a0] sm:$0xff] }
 0x5f6   : > { %v3921_v13 = vadd.f32 %v13154_v12, %v3666_v9  ;;  %9655 = vmatmul.mubr.msk.f32.gmra.mrb[100].mxu0 %vm3423_vm2, %v8302_v1  ;;  %v8364_v9 = vld [vmem:[%s14632_s6 + $0x218] sm:$0xff] }
 0x5f7   : > { %3955 = vst.msk [vmem:[#allocation4 + $0x88] sm:$0xff] %vm3937_vm3, %v3922_v8  ;;  %9657 = vmatprep.mubr.msk.f32.mxu0 %vm3423_vm2, %v8303_v5  ;;  %v8362_v5 = vld [vmem:[%s14632_s6 + $0x208] sm:$0xff]  ;;  %v8363_v8 = vld [vmem:[%s14632_s6 + $0x210] sm:$0xff] }
 0x5f8   : > { %3954 = vst.msk [vmem:[#allocation4 + $0x80] sm:$0xff] %vm3937_vm3, %v3921_v13  ;;  %v9539_v47 = vpop.f32.mrb[106].mxu1  ;;  %v8365_v13 = vld [vmem:[%s14632_s6 + $0x220] sm:$0xff] }
 0x5f9   : > { %v3924_v49 = vadd.f32 %v9539_v47, %v13156_v17  ;;  %v3676_v12 = vpop.f32.mrb[107].mxu1  ;;  %v8307_v17 = vld [vmem:[%s14632_s6 + $0x1b0] sm:$0xff] }
 0x5fa   : > { %v3923_v56 = vadd.f32 %v13158_v27, %v3676_v12  ;;  %9658 = vmatmul.mubr.msk.f32.gmra.mrb[102].mxu0 %vm3423_vm2, %v8304_v14  ;;  %v8366_v14 = vld [vmem:[%s14632_s6 + $0x228] sm:$0xff]  ;;  %v8367_v47 = vld [vmem:[%s14632_s6 + $0x230] sm:$0xff] }
 0x5fb   : > { %3957 = vst.msk [vmem:[#allocation4 + $0x98] sm:$0xff] %vm3937_vm3, %v3924_v49  ;;  %9660 = vmatprep.mubr.msk.f32.mxu0 %vm3423_vm2, %v8305_v55  ;;  %v8368_v55 = vld [vmem:[%s14632_s6 + $0x238] sm:$0xff]  ;;  %v8369_v49 = vld [vmem:[%s14632_s6 + $0x240] sm:$0xff]  ;;  %v8370_v12 = vld [vmem:[%s14632_s6 + $0x248] sm:$0xff] }
 0x5fc   : > { %3956 = vst.msk [vmem:[#allocation4 + $0x90] sm:$0xff] %vm3937_vm3, %v3923_v56  ;;  %v9542_v18 = vpop.f32.mrb[108].mxu1  ;;  %v8371_v56 = vld [vmem:[%s14632_s6 + $0x250] sm:$0xff] }
 0x5fd   : > { %v3926_v48 = vadd.f32 %v9542_v18, %v13163_v4  ;;  %v3686_v27 = vpop.f32.mrb[109].mxu1  ;;  %v8309_v4 = vld [vmem:[%s14632_s6 + $0x1c0] sm:$0xff] }
 0x5fe   : > { %v3925_v15 = vadd.f32 %v13166_v25, %v3686_v27  ;;  %9661 = vmatmul.mubr.msk.f32.gmra.mrb[104].mxu0 %vm3423_vm2, %v8306_v2  ;;  %v8372_v2 = vld [vmem:[%s14632_s6 + $0x258] sm:$0xff]  ;;  %v8373_v18 = vld [vmem:[%s14632_s6 + $0x260] sm:$0xff] }
 0x5ff   : > { %3959 = vst.msk [vmem:[#allocation4 + $0xa8] sm:$0xff] %vm3937_vm3, %v3926_v48  ;;  %9663 = vmatprep.mubr.msk.f32.mxu0 %vm3423_vm2, %v8307_v17  ;;  %v8374_v17 = vld [vmem:[%s14632_s6 + $0x268] sm:$0xff]  ;;  %v8375_v48 = vld [vmem:[%s14632_s6 + $0x270] sm:$0xff]  ;;  %v8376_v27 = vld [vmem:[%s14632_s6 + $0x278] sm:$0xff] }
 0x600   : > { %3958 = vst.msk [vmem:[#allocation4 + $0xa0] sm:$0xff] %vm3937_vm3, %v3925_v15  ;;  %v9545_v32 = vpop.f32.mrb[110].mxu1  ;;  %v8377_v15 = vld [vmem:[%s14632_s6 + $0x280] sm:$0xff] }
 0x601   : > { %v3928_v50 = vadd.f32 %v9545_v32, %v13168_v21  ;;  %v3696_v25 = vpop.f32.mrb[111].mxu1  ;;  %v8311_v21 = vld [vmem:[%s14632_s6 + $0x1d0] sm:$0xff] }
 0x602   : > { %v3927_v53 = vadd.f32 %v13170_v23, %v3696_v25  ;;  %9664 = vmatmul.mubr.msk.f32.gmra.mrb[106].mxu0 %vm3423_vm2, %v8308_v22  ;;  %v8378_v22 = vld [vmem:[%s14632_s6 + $0x288] sm:$0xff]  ;;  %v8379_v32 = vld [vmem:[%s14632_s6 + $0x290] sm:$0xff] }
 0x603   : > { %3961 = vst.msk [vmem:[#allocation4 + $0xb8] sm:$0xff] %vm3937_vm3, %v3928_v50  ;;  %9666 = vmatprep.mubr.msk.f32.mxu0 %vm3423_vm2, %v8309_v4  ;;  %v8380_v4 = vld [vmem:[%s14632_s6 + $0x298] sm:$0xff]  ;;  %v8381_v50 = vld [vmem:[%s14632_s6 + $0x2a0] sm:$0xff]  ;;  %v8382_v25 = vld [vmem:[%s14632_s6 + $0x2a8] sm:$0xff] }
 0x604   : > { %3960 = vst.msk [vmem:[#allocation4 + $0xb0] sm:$0xff] %vm3937_vm3, %v3927_v53  ;;  %v9548_v58 = vpop.f32.mrb[112].mxu1  ;;  %v8383_v53 = vld [vmem:[%s14632_s6 + $0x2b0] sm:$0xff] }
 0x605   : > { %v3930_v34 = vadd.f32 %v9548_v58, %v13172_v39  ;;  %v3706_v23 = vpop.f32.mrb[113].mxu1  ;;  %v8313_v39 = vld [vmem:[%s14632_s6 + $0x1e0] sm:$0xff] }
 0x606   : > { %v3929_v7 = vadd.f32 %v13174_v42, %v3706_v23  ;;  %9667 = vmatmul.mubr.msk.f32.gmra.mrb[108].mxu0 %vm3423_vm2, %v8310_v11  ;;  %v8384_v11 = vld [vmem:[%s14632_s6 + $0x2b8] sm:$0xff]  ;;  %v8385_v58 = vld [vmem:[%s14632_s6 + $0x2c0] sm:$0xff] }
 0x607   : > { %3963 = vst.msk [vmem:[#allocation4 + $0xc8] sm:$0xff] %vm3937_vm3, %v3930_v34  ;;  %9669 = vmatprep.mubr.msk.f32.mxu0 %vm3423_vm2, %v8311_v21  ;;  %v8386_v21 = vld [vmem:[%s14632_s6 + $0x2c8] sm:$0xff]  ;;  %v8387_v34 = vld [vmem:[%s14632_s6 + $0x2d0] sm:$0xff]  ;;  %v8388_v23 = vld [vmem:[%s14632_s6 + $0x2d8] sm:$0xff] }
 0x608   : > { %3962 = vst.msk [vmem:[#allocation4 + $0xc0] sm:$0xff] %vm3937_vm3, %v3929_v7  ;;  %v9551_v44 = vpop.f32.mrb[114].mxu1  ;;  %v8389_v7 = vld [vmem:[%s14632_s6 + $0x2e0] sm:$0xff] }
 0x609   : > { %v3932_v6 = vadd.f32 %v9551_v44, %v13176_v46  ;;  %v3716_v42 = vpop.f32.mrb[115].mxu1  ;;  %v8315_v46 = vld [vmem:[%s14632_s6 + $0x1f0] sm:$0xff] }
 0x60a   : > { %v3931_v10 = vadd.f32 %v13178_v51, %v3716_v42  ;;  %9670 = vmatmul.mubr.msk.f32.gmra.mrb[110].mxu0 %vm3423_vm2, %v8312_v41  ;;  %v8390_v41 = vld [vmem:[%s14632_s6 + $0x2e8] sm:$0xff]  ;;  %v8391_v44 = vld [vmem:[%s14632_s6 + $0x2f0] sm:$0xff] }
 0x60b   : > { %3965 = vst.msk [vmem:[#allocation4 + $0xd8] sm:$0xff] %vm3937_vm3, %v3932_v6  ;;  %9672 = vmatprep.mubr.msk.f32.mxu0 %vm3423_vm2, %v8313_v39  ;;  %v8392_v39 = vld [vmem:[%s14632_s6 + $0x2f8] sm:$0xff]  ;;  %v3971_v6 = vld [vmem:[#allocation4 + $0x8] sm:$0xff] }
 0x60c   : > { %3964 = vst.msk [vmem:[#allocation4 + $0xd0] sm:$0xff] %vm3937_vm3, %v3931_v10  ;;  %v9554_v19 = vpop.f32.mrb[116].mxu1 }
 0x60d   : > { %v3934_v20 = vadd.f32 %v9554_v19, %v13206_v31  ;;  %v3726_v51 = vpop.f32.mrb[117].mxu1 }
 0x60e   : > { %v3933_v24 = vadd.f32 %v13209_v60, %v3726_v51  ;;  %9673 = vmatmul.mubr.msk.f32.gmra.mrb[112].mxu0 %vm3423_vm2, %v8314_v16  ;;  %v3970_v16 = vld [vmem:[#allocation4] sm:$0xff] }
 0x60f   : > { %3967 = vst.msk [vmem:[#allocation4 + $0xe8] sm:$0xff] %vm3937_vm3, %v3934_v20  ;;  %9675 = vmatprep.mubr.msk.f32.mxu0 %vm3423_vm2, %v8315_v46  ;;  %v3973_v20 = vld [vmem:[#allocation4 + $0x18] sm:$0xff] }
 0x610   : > { %3966 = vst.msk [vmem:[#allocation4 + $0xe0] sm:$0xff] %vm3937_vm3, %v3933_v24  ;;  %v9557_v37 = vpop.f32.mrb[118].mxu1 }
 0x611   : > { %v3936_v28 = vadd.f32 %v9557_v37, %v13240_v38  ;;  %v3736_v30 = vpop.f32.mrb[119].mxu1 }
 0x612   : > { %v3935_v31 = vadd.f32 %v13243_v29, %v3736_v30  ;;  %9676 = vmatmul.mubr.msk.f32.gmra.mrb[114].mxu0 %vm3423_vm2, %v8316_v26  ;;  %v3972_v26 = vld [vmem:[#allocation4 + $0x10] sm:$0xff]  ;;  %v3975_v30 = vld [vmem:[#allocation4 + $0x28] sm:$0xff] }
 0x613   : > { %3969 = vst.msk [vmem:[#allocation4 + $0xf8] sm:$0xff] %vm3937_vm3, %v3936_v28 }
 0x614   : > { %3968 = vst.msk [vmem:[#allocation4 + $0xf0] sm:$0xff] %vm3937_vm3, %v3935_v31  ;;  %v9710_v60 = vpop.f32.mrb[120].mxu1 }
 0x615   : > { %v4743_v33 = vpop.f32.mrb[121].mxu1 }
 0x616   : > { %v10639_v43 = vpack.c.bf16 %v9710_v60, %v4743_v33  ;;  %v3974_v33 = vld [vmem:[#allocation4 + $0x20] sm:$0xff] }
 0x618   : > { %v9713_v35 = vpop.f32.mrb[122].mxu1  ;;  %10640 = vmatprep.subr.bf16.mxu1 %v10639_v43 }
 0x619   : > { %v4753_v36 = vpop.f32.mrb[123].mxu1  ;;  %10642 = vmatpush3.bf16.msra.mxu1 %v10639_v43 }
 0x61a   : > { %v10643_v45 = vpack.c.bf16 %v9713_v35, %v4753_v36  ;;  %v3977_v36 = vld [vmem:[#allocation4 + $0x38] sm:$0xff] }
 0x61c   : > { %v9716_v52 = vpop.f32.mrb[124].mxu1  ;;  %10644 = vmatprep.subr.bf16.mxu1 %v10643_v45 }
 0x61d   : > { %v4763_v38 = vpop.f32.mrb[125].mxu1  ;;  %10646 = vmatpush3.bf16.msra.mxu1 %v10643_v45 }
 0x61e   : > { %v10647_v59 = vpack.c.bf16 %v9716_v52, %v4763_v38  ;;  %v3976_v38 = vld [vmem:[#allocation4 + $0x30] sm:$0xff] }
 0x620   : > { %v9719_v29 = vpop.f32.mrb[126].mxu1  ;;  %10648 = vmatprep.subr.bf16.mxu1 %v10647_v59 }
 0x621   : > { %v4773_v61 = vpop.f32.mrb[127].mxu1  ;;  %10650 = vmatpush3.bf16.msra.mxu1 %v10647_v59 }
 0x622   : > { %v10651_v62 = vpack.c.bf16 %v9719_v29, %v4773_v61  ;;  %v3979_v61 = vld [vmem:[#allocation4 + $0x48] sm:$0xff] }
 0x624   : > { %v9722_v63 = vpop.f32.mrb[128].mxu1  ;;  %10652 = vmatprep.subr.bf16.mxu1 %v10651_v62 }
 0x625   : > { %v4783_v0 = vpop.f32.mrb[129].mxu1  ;;  %10654 = vmatpush3.bf16.msra.mxu1 %v10651_v62 }
 0x626   : > { %v10655_v54 = vpack.c.bf16 %v9722_v63, %v4783_v0  ;;  %v3978_v0 = vld [vmem:[#allocation4 + $0x40] sm:$0xff] }
 0x628   : > { %v9725_v57 = vpop.f32.mrb[130].mxu1  ;;  %10656 = vmatprep.subr.bf16.mxu1 %v10655_v54 }
 0x629   : > { %v4793_v1 = vpop.f32.mrb[131].mxu1  ;;  %10658 = vmatpush3.bf16.msra.mxu1 %v10655_v54 }
 0x62a   : > { %v10659_v3 = vpack.c.bf16 %v9725_v57, %v4793_v1  ;;  %v3981_v1 = vld [vmem:[#allocation4 + $0x58] sm:$0xff] }
 0x62c   : > { %10660 = vmatprep.subr.bf16.mxu1 %v10659_v3 }
 0x62d   : > { %10662 = vmatpush3.bf16.msra.mxu1 %v10659_v3 }
 0x630   : > { %9751 = vmatmul.mubr.msk.f32.vlgmr.msra.gmra.mrb[132].mxu1 %vm3423_vm2, %v8362_v5 }
 0x631   : > { %9753 = vmatprep.mubr.msk.f32.mxu1 %vm3423_vm2, %v8363_v8  ;;  %v3980_v8 = vld [vmem:[#allocation4 + $0x50] sm:$0xff] }
 0x634   : > { %9754 = vmatmul.mubr.msk.f32.gmra.mrb[134].mxu1 %vm3423_vm2, %v8364_v9 }
 0x635   : > { %9756 = vmatprep.mubr.msk.f32.mxu1 %vm3423_vm2, %v8365_v13 }
 0x638   : > { %9757 = vmatmul.mubr.msk.f32.gmra.mrb[136].mxu1 %vm3423_vm2, %v8366_v14  ;;  %v3983_v14 = vld [vmem:[#allocation4 + $0x68] sm:$0xff] }
 0x639   : > { %9759 = vmatprep.mubr.msk.f32.mxu1 %vm3423_vm2, %v8367_v47 }
 0x63c   : > { %9760 = vmatmul.mubr.msk.f32.gmra.mrb[138].mxu1 %vm3423_vm2, %v8368_v55 }
 0x63d   : > { %9762 = vmatprep.mubr.msk.f32.mxu1 %vm3423_vm2, %v8369_v49  ;;  %v3982_v49 = vld [vmem:[#allocation4 + $0x60] sm:$0xff] }
 0x640   : > { %9763 = vmatmul.mubr.msk.f32.gmra.mrb[140].mxu1 %vm3423_vm2, %v8370_v12 }
 0x641   : > { %9765 = vmatprep.mubr.msk.f32.mxu1 %vm3423_vm2, %v8371_v56 }
 0x644   : > { %9766 = vmatmul.mubr.msk.f32.gmra.mrb[142].mxu1 %vm3423_vm2, %v8372_v2  ;;  %v3985_v2 = vld [vmem:[#allocation4 + $0x78] sm:$0xff] }
 0x645   : > { %9768 = vmatprep.mubr.msk.f32.mxu1 %vm3423_vm2, %v8373_v18 }
 0x648   : > { %9769 = vmatmul.mubr.msk.f32.gmra.mrb[144].mxu1 %vm3423_vm2, %v8374_v17 }
 0x649   : > { %9771 = vmatprep.mubr.msk.f32.mxu1 %vm3423_vm2, %v8375_v48  ;;  %v3984_v48 = vld [vmem:[#allocation4 + $0x70] sm:$0xff] }
 0x64c   : > { %9772 = vmatmul.mubr.msk.f32.gmra.mrb[146].mxu1 %vm3423_vm2, %v8376_v27 }
 0x64d   : > { %9774 = vmatprep.mubr.msk.f32.mxu1 %vm3423_vm2, %v8377_v15 }
 0x650   : > { %9775 = vmatmul.mubr.msk.f32.gmra.mrb[148].mxu1 %vm3423_vm2, %v8378_v22  ;;  %v3987_v22 = vld [vmem:[#allocation4 + $0x88] sm:$0xff] }
 0x651   : > { %9777 = vmatprep.mubr.msk.f32.mxu1 %vm3423_vm2, %v8379_v32 }
 0x654   : > { %9778 = vmatmul.mubr.msk.f32.gmra.mrb[150].mxu1 %vm3423_vm2, %v8380_v4 }
 0x655   : > { %9780 = vmatprep.mubr.msk.f32.mxu1 %vm3423_vm2, %v8381_v50  ;;  %v3986_v50 = vld [vmem:[#allocation4 + $0x80] sm:$0xff] }
 0x658   : > { %9781 = vmatmul.mubr.msk.f32.gmra.mrb[152].mxu1 %vm3423_vm2, %v8382_v25 }
 0x659   : > { %9783 = vmatprep.mubr.msk.f32.mxu1 %vm3423_vm2, %v8383_v53 }
 0x65c   : > { %9784 = vmatmul.mubr.msk.f32.gmra.mrb[154].mxu1 %vm3423_vm2, %v8384_v11  ;;  %v3989_v11 = vld [vmem:[#allocation4 + $0x98] sm:$0xff] }
 0x65d   : > { %9786 = vmatprep.mubr.msk.f32.mxu1 %vm3423_vm2, %v8385_v58 }
 0x660   : > { %9787 = vmatmul.mubr.msk.f32.gmra.mrb[156].mxu1 %vm3423_vm2, %v8386_v21 }
 0x661   : > { %9789 = vmatprep.mubr.msk.f32.mxu1 %vm3423_vm2, %v8387_v34  ;;  %v3988_v34 = vld [vmem:[#allocation4 + $0x90] sm:$0xff] }
 0x664   : > { %9790 = vmatmul.mubr.msk.f32.gmra.mrb[158].mxu1 %vm3423_vm2, %v8388_v23 }
 0x665   : > { %9792 = vmatprep.mubr.msk.f32.mxu1 %vm3423_vm2, %v8389_v7 }
 0x668   : > { %9793 = vmatmul.mubr.msk.f32.gmra.mrb[160].mxu1 %vm3423_vm2, %v8390_v41  ;;  %v3991_v41 = vld [vmem:[#allocation4 + $0xa8] sm:$0xff] }
 0x669   : > { %9795 = vmatprep.mubr.msk.f32.mxu1 %vm3423_vm2, %v8391_v44 }
 0x66c   : > { %9796 = vmatmul.mubr.msk.f32.gmra.mrb[162].mxu1 %vm3423_vm2, %v8392_v39 }
 0x6a9   : > { %v9632_v42 = vpop.f32.mrb[84].mxu0 }
 0x6aa   : > { %v4533_v10 = vadd.f32 %v9632_v42, %v3971_v6  ;;  %v4373_v19 = vpop.f32.mrb[85].mxu0  ;;  %v3990_v6 = vld [vmem:[#allocation4 + $0xa0] sm:$0xff] }
 0x6ab   : > { %v4532_v46 = vadd.f32 %v4373_v19, %v3970_v16  ;;  %v3993_v16 = vld [vmem:[#allocation4 + $0xb8] sm:$0xff] }
 0x6ac   : > { %4565 = vst.msk [vmem:[#allocation4 + $0x8] sm:$0xff] %vm3937_vm3, %v4533_v10 }
 0x6ad   : > { %4564 = vst.msk [vmem:[#allocation4] sm:$0xff] %vm3937_vm3, %v4532_v46  ;;  %v9635_v51 = vpop.f32.mrb[86].mxu0 }
 0x6ae   : > { %v4535_v24 = vadd.f32 %v9635_v51, %v3973_v20  ;;  %v4383_v37 = vpop.f32.mrb[87].mxu0  ;;  %v3992_v20 = vld [vmem:[#allocation4 + $0xb0] sm:$0xff] }
 0x6af   : > { %v4534_v28 = vadd.f32 %v4383_v37, %v3972_v26  ;;  %v5284_v26 = vld [vmem:[%s14635_s9 + $0x8] sm:$0xff] }
 0x6b0   : > { %4567 = vst.msk [vmem:[#allocation4 + $0x18] sm:$0xff] %vm3937_vm3, %v4535_v24  ;;  %v8453_v37 = vld [vmem:[%s14635_s9 + $0xc8] sm:$0xff]  ;;  %5403 = vmatprep.mubr.f32.mxu0 %v5284_v26 }
 0x6b1   : > { %4566 = vst.msk [vmem:[#allocation4 + $0x10] sm:$0xff] %vm3937_vm3, %v4534_v28  ;;  %v9638_v31 = vpop.f32.mrb[88].mxu0  ;;  %v3995_v28 = vld [vmem:[#allocation4 + $0xc8] sm:$0xff]  ;;  %5553 = vmatprep.mubr.f32.mxu1 %v8453_v37 }
 0x6b2   : > { %v4537_v60 = vadd.f32 %v9638_v31, %v3975_v30  ;;  %v4393_v43 = vpop.f32.mrb[89].mxu0 }
 0x6b3   : > { %v4536_v35 = vadd.f32 %v4393_v43, %v3974_v33 }
 0x6b4   : > { %4569 = vst.msk [vmem:[#allocation4 + $0x28] sm:$0xff] %vm3937_vm3, %v4537_v60  ;;  %v3994_v60 = vld [vmem:[#allocation4 + $0xc0] sm:$0xff] }
 0x6b5   : > { %4568 = vst.msk [vmem:[#allocation4 + $0x20] sm:$0xff] %vm3937_vm3, %v4536_v35  ;;  %v9641_v45 = vpop.f32.mrb[90].mxu0  ;;  %v3997_v35 = vld [vmem:[#allocation4 + $0xd8] sm:$0xff] }
 0x6b6   : > { %v4539_v52 = vadd.f32 %v9641_v45, %v3977_v36  ;;  %v4403_v59 = vpop.f32.mrb[91].mxu0 }
 0x6b7   : > { %v4538_v29 = vadd.f32 %v4403_v59, %v3976_v38 }
 0x6b8   : > { %4571 = vst.msk [vmem:[#allocation4 + $0x38] sm:$0xff] %vm3937_vm3, %v4539_v52  ;;  %v3996_v52 = vld [vmem:[#allocation4 + $0xd0] sm:$0xff] }
 0x6b9   : > { %4570 = vst.msk [vmem:[#allocation4 + $0x30] sm:$0xff] %vm3937_vm3, %v4538_v29  ;;  %v9644_v62 = vpop.f32.mrb[92].mxu0  ;;  %v3999_v29 = vld [vmem:[#allocation4 + $0xe8] sm:$0xff] }
 0x6ba   : > { %v4541_v63 = vadd.f32 %v9644_v62, %v3979_v61  ;;  %v4413_v54 = vpop.f32.mrb[93].mxu0 }
 0x6bb   : > { %v4540_v57 = vadd.f32 %v4413_v54, %v3978_v0 }
 0x6bc   : > { %4573 = vst.msk [vmem:[#allocation4 + $0x48] sm:$0xff] %vm3937_vm3, %v4541_v63  ;;  %v3998_v63 = vld [vmem:[#allocation4 + $0xe0] sm:$0xff] }
 0x6bd   : > { %4572 = vst.msk [vmem:[#allocation4 + $0x40] sm:$0xff] %vm3937_vm3, %v4540_v57  ;;  %v9647_v3 = vpop.f32.mrb[94].mxu0  ;;  %v4001_v57 = vld [vmem:[#allocation4 + $0xf8] sm:$0xff] }
 0x6be   : > { %v4543_v5 = vadd.f32 %v9647_v3, %v3981_v1  ;;  %v4423_v9 = vpop.f32.mrb[95].mxu0 }
 0x6bf   : > { %v4542_v13 = vadd.f32 %v4423_v9, %v3980_v8 }
 0x6c0   : > { %4575 = vst.msk [vmem:[#allocation4 + $0x58] sm:$0xff] %vm3937_vm3, %v4543_v5  ;;  %v4000_v5 = vld [vmem:[#allocation4 + $0xf0] sm:$0xff] }
 0x6c1   : > { %4574 = vst.msk [vmem:[#allocation4 + $0x50] sm:$0xff] %vm3937_vm3, %v4542_v13  ;;  %v9650_v47 = vpop.f32.mrb[96].mxu0  ;;  %v4597_v13 = vld [vmem:[#allocation4 + $0x8] sm:$0xff] }
 0x6c2   : > { %v4545_v55 = vadd.f32 %v9650_v47, %v3983_v14  ;;  %v4433_v12 = vpop.f32.mrb[97].mxu0 }
 0x6c3   : > { %v4544_v56 = vadd.f32 %v4433_v12, %v3982_v49 }
 0x6c4   : > { %4577 = vst.msk [vmem:[#allocation4 + $0x68] sm:$0xff] %vm3937_vm3, %v4545_v55  ;;  %v4596_v55 = vld [vmem:[#allocation4] sm:$0xff] }
 0x6c5   : > { %4576 = vst.msk [vmem:[#allocation4 + $0x60] sm:$0xff] %vm3937_vm3, %v4544_v56  ;;  %v9653_v18 = vpop.f32.mrb[98].mxu0  ;;  %v4599_v56 = vld [vmem:[#allocation4 + $0x18] sm:$0xff] }
 0x6c6   : > { %v4547_v17 = vadd.f32 %v9653_v18, %v3985_v2  ;;  %v4443_v27 = vpop.f32.mrb[99].mxu0 }
 0x6c7   : > { %v4546_v15 = vadd.f32 %v4443_v27, %v3984_v48 }
 0x6c8   : > { %4579 = vst.msk [vmem:[#allocation4 + $0x78] sm:$0xff] %vm3937_vm3, %v4547_v17  ;;  %v4598_v17 = vld [vmem:[#allocation4 + $0x10] sm:$0xff] }
 0x6c9   : > { %4578 = vst.msk [vmem:[#allocation4 + $0x70] sm:$0xff] %vm3937_vm3, %v4546_v15  ;;  %v9656_v32 = vpop.f32.mrb[100].mxu0  ;;  %v4601_v15 = vld [vmem:[#allocation4 + $0x28] sm:$0xff] }
 0x6ca   : > { %v4549_v4 = vadd.f32 %v9656_v32, %v3987_v22  ;;  %v4453_v25 = vpop.f32.mrb[101].mxu0 }
 0x6cb   : > { %v4548_v53 = vadd.f32 %v4453_v25, %v3986_v50 }
 0x6cc   : > { %4581 = vst.msk [vmem:[#allocation4 + $0x88] sm:$0xff] %vm3937_vm3, %v4549_v4  ;;  %v4600_v4 = vld [vmem:[#allocation4 + $0x20] sm:$0xff] }
 0x6cd   : > { %4580 = vst.msk [vmem:[#allocation4 + $0x80] sm:$0xff] %vm3937_vm3, %v4548_v53  ;;  %v9659_v58 = vpop.f32.mrb[102].mxu0 }
 0x6ce   : > { %v4551_v21 = vadd.f32 %v9659_v58, %v3989_v11  ;;  %v4463_v23 = vpop.f32.mrb[103].mxu0 }
 0x6cf   : > { %v4550_v7 = vadd.f32 %v4463_v23, %v3988_v34  ;;  %v4603_v34 = vld [vmem:[#allocation4 + $0x38] sm:$0xff] }
 0x6d0   : > { %4583 = vst.msk [vmem:[#allocation4 + $0x98] sm:$0xff] %vm3937_vm3, %v4551_v21 }
 0x6d1   : > { %4582 = vst.msk [vmem:[#allocation4 + $0x90] sm:$0xff] %vm3937_vm3, %v4550_v7  ;;  %v9662_v44 = vpop.f32.mrb[104].mxu0 }
 0x6d2   : > { %v4553_v39 = vadd.f32 %v9662_v44, %v3991_v41  ;;  %v4473_v42 = vpop.f32.mrb[105].mxu0  ;;  %v4602_v41 = vld [vmem:[#allocation4 + $0x30] sm:$0xff] }
 0x6d3   : > { %v4552_v10 = vadd.f32 %v4473_v42, %v3990_v6 }
 0x6d4   : > { %4585 = vst.msk [vmem:[#allocation4 + $0xa8] sm:$0xff] %vm3937_vm3, %v4553_v39 }
 0x6d5   : > { %4584 = vst.msk [vmem:[#allocation4 + $0xa0] sm:$0xff] %vm3937_vm3, %v4552_v10  ;;  %v9665_v19 = vpop.f32.mrb[106].mxu0 }
 0x6d6   : > { %v4555_v46 = vadd.f32 %v9665_v19, %v3993_v16  ;;  %v4483_v51 = vpop.f32.mrb[107].mxu0  ;;  %v4605_v19 = vld [vmem:[#allocation4 + $0x48] sm:$0xff] }
 0x6d7   : > { %v4554_v24 = vadd.f32 %v4483_v51, %v3992_v20  ;;  %v4604_v51 = vld [vmem:[#allocation4 + $0x40] sm:$0xff] }
 0x6d8   : > { %4587 = vst.msk [vmem:[#allocation4 + $0xb8] sm:$0xff] %vm3937_vm3, %v4555_v46 }
 0x6d9   : > { %4586 = vst.msk [vmem:[#allocation4 + $0xb0] sm:$0xff] %vm3937_vm3, %v4554_v24  ;;  %v9668_v30 = vpop.f32.mrb[108].mxu0 }
 0x6da   : > { %v4557_v31 = vadd.f32 %v9668_v30, %v3995_v28  ;;  %v4493_v33 = vpop.f32.mrb[109].mxu0 }
 0x6db   : > { %v4556_v43 = vadd.f32 %v4493_v33, %v3994_v60  ;;  %v4607_v60 = vld [vmem:[#allocation4 + $0x58] sm:$0xff] }
 0x6dc   : > { %4589 = vst.msk [vmem:[#allocation4 + $0xc8] sm:$0xff] %vm3937_vm3, %v4557_v31 }
 0x6dd   : > { %4588 = vst.msk [vmem:[#allocation4 + $0xc0] sm:$0xff] %vm3937_vm3, %v4556_v43  ;;  %v9671_v36 = vpop.f32.mrb[110].mxu0 }
 0x6de   : > { %v4559_v45 = vadd.f32 %v9671_v36, %v3997_v35  ;;  %v4503_v38 = vpop.f32.mrb[111].mxu0  ;;  %v4606_v35 = vld [vmem:[#allocation4 + $0x50] sm:$0xff] }
 0x6df   : > { %v4558_v59 = vadd.f32 %v4503_v38, %v3996_v52 }
 0x6e0   : > { %4591 = vst.msk [vmem:[#allocation4 + $0xd8] sm:$0xff] %vm3937_vm3, %v4559_v45 }
 0x6e1   : > { %4590 = vst.msk [vmem:[#allocation4 + $0xd0] sm:$0xff] %vm3937_vm3, %v4558_v59  ;;  %v9674_v61 = vpop.f32.mrb[112].mxu0 }
 0x6e2   : > { %v4561_v62 = vadd.f32 %v9674_v61, %v3999_v29  ;;  %v4513_v0 = vpop.f32.mrb[113].mxu0  ;;  %v4609_v61 = vld [vmem:[#allocation4 + $0x68] sm:$0xff] }
 0x6e3   : > { %v4560_v54 = vadd.f32 %v4513_v0, %v3998_v63  ;;  %v4608_v0 = vld [vmem:[#allocation4 + $0x60] sm:$0xff] }
 0x6e4   : > { %4593 = vst.msk [vmem:[#allocation4 + $0xe8] sm:$0xff] %vm3937_vm3, %v4561_v62 }
 0x6e5   : > { %4592 = vst.msk [vmem:[#allocation4 + $0xe0] sm:$0xff] %vm3937_vm3, %v4560_v54  ;;  %v9677_v1 = vpop.f32.mrb[114].mxu0 }
 0x6e6   : > { %v4563_v3 = vadd.f32 %v9677_v1, %v4001_v57  ;;  %v4523_v8 = vpop.f32.mrb[115].mxu0 }
 0x6e7   : > { %v4562_v9 = vadd.f32 %v4523_v8, %v4000_v5 }
 0x6e8   : > { %4595 = vst.msk [vmem:[#allocation4 + $0xf8] sm:$0xff] %vm3937_vm3, %v4563_v3 }
 0x6e9   : > { %4594 = vst.msk [vmem:[#allocation4 + $0xf0] sm:$0xff] %vm3937_vm3, %v4562_v9  ;;  %v4611_v9 = vld [vmem:[#allocation4 + $0x78] sm:$0xff] }
 0x703   : > { %v9752_v14 = vpop.f32.mrb[132].mxu1 }
 0x704   : > { %v5124_v47 = vadd.f32 %v9752_v14, %v4597_v13  ;;  %v4964_v49 = vpop.f32.mrb[133].mxu1 }
 0x705   : > { %v5123_v12 = vadd.f32 %v4964_v49, %v4596_v55 }
 0x706   : > { %5156 = vst.msk [vmem:[#allocation4 + $0x8] sm:$0xff] %vm3937_vm3, %v5124_v47  ;;  %v4610_v47 = vld [vmem:[#allocation4 + $0x70] sm:$0xff] }
 0x707   : > { %5155 = vst.msk [vmem:[#allocation4] sm:$0xff] %vm3937_vm3, %v5123_v12  ;;  %v9755_v2 = vpop.f32.mrb[134].mxu1 }
 0x708   : > { %v5126_v18 = vadd.f32 %v9755_v2, %v4599_v56  ;;  %v4974_v48 = vpop.f32.mrb[135].mxu1 }
 0x709   : > { %v5125_v27 = vadd.f32 %v4974_v48, %v4598_v17  ;;  %v4613_v17 = vld [vmem:[#allocation4 + $0x88] sm:$0xff] }
 0x70a   : > { %5158 = vst.msk [vmem:[#allocation4 + $0x18] sm:$0xff] %vm3937_vm3, %v5126_v18 }
 0x70b   : > { %5157 = vst.msk [vmem:[#allocation4 + $0x10] sm:$0xff] %vm3937_vm3, %v5125_v27  ;;  %v9758_v22 = vpop.f32.mrb[136].mxu1 }
 0x70c   : > { %v5128_v32 = vadd.f32 %v9758_v22, %v4601_v15  ;;  %v4984_v50 = vpop.f32.mrb[137].mxu1  ;;  %v4612_v15 = vld [vmem:[#allocation4 + $0x80] sm:$0xff] }
 0x70d   : > { %v5188_v25 = vld [vmem:[#allocation4 + $0x8] sm:$0xff]  ;;  %v5127_v53 = vadd.f32 %v4984_v50, %v4600_v4 }
 0x70e   : > { %v5220_v11 = vmax.f32 %v5188_v25, 0.0  ;;  %v5187_v58 = vld [vmem:[#allocation4] sm:$0xff]  ;;  %5160 = vst.msk [vmem:[#allocation4 + $0x28] sm:$0xff] %vm3937_vm3, %v5128_v32 }
 0x70f   : > { %v5219_v21 = vmax.f32 %v5187_v58, 0.0  ;;  %5159 = vst.msk [vmem:[#allocation4 + $0x20] sm:$0xff] %vm3937_vm3, %v5127_v53  ;;  %v9761_v23 = vpop.f32.mrb[138].mxu1 }
 0x710   : > { %5252 = vst.msk [vmem:[#allocation4 + $0x8] sm:$0xff] %vm3937_vm3, %v5220_v11  ;;  %v5130_v7 = vadd.f32 %v9761_v23, %v4603_v34  ;;  %v4994_v44 = vpop.f32.mrb[139].mxu1  ;;  %v4615_v11 = vld [vmem:[#allocation4 + $0x98] sm:$0xff]  ;;  %v4614_v34 = vld [vmem:[#allocation4 + $0x90] sm:$0xff] }
 0x711   : > { %5251 = vst.msk [vmem:[#allocation4] sm:$0xff] %vm3937_vm3, %v5219_v21  ;;  %v5190_v39 = vld [vmem:[#allocation4 + $0x18] sm:$0xff]  ;;  %v5129_v6 = vadd.f32 %v4994_v44, %v4602_v41 }
 0x712   : > { %v5222_v42 = vmax.f32 %v5190_v39, 0.0  ;;  %v5189_v10 = vld [vmem:[#allocation4 + $0x10] sm:$0xff]  ;;  %5162 = vst.msk [vmem:[#allocation4 + $0x38] sm:$0xff] %vm3937_vm3, %v5130_v7 }
 0x713   : > { %v5221_v16 = vmax.f32 %v5189_v10, 0.0  ;;  %5161 = vst.msk [vmem:[#allocation4 + $0x30] sm:$0xff] %vm3937_vm3, %v5129_v6  ;;  %v9764_v46 = vpop.f32.mrb[140].mxu1 }
 0x714   : > { %5254 = vst.msk [vmem:[#allocation4 + $0x18] sm:$0xff] %vm3937_vm3, %v5222_v42  ;;  %v5132_v20 = vadd.f32 %v9764_v46, %v4605_v19  ;;  %v5004_v24 = vpop.f32.mrb[141].mxu1  ;;  %v4617_v42 = vld [vmem:[#allocation4 + $0xa8] sm:$0xff]  ;;  %v4616_v19 = vld [vmem:[#allocation4 + $0xa0] sm:$0xff] }
 0x715   : > { %5253 = vst.msk [vmem:[#allocation4 + $0x10] sm:$0xff] %vm3937_vm3, %v5221_v16  ;;  %v5192_v26 = vld [vmem:[#allocation4 + $0x28] sm:$0xff]  ;;  %v5131_v37 = vadd.f32 %v5004_v24, %v4604_v51 }
 0x716   : > { %v5224_v28 = vmax.f32 %v5192_v26, 0.0  ;;  %v5191_v30 = vld [vmem:[#allocation4 + $0x20] sm:$0xff]  ;;  %5164 = vst.msk [vmem:[#allocation4 + $0x48] sm:$0xff] %vm3937_vm3, %v5132_v20 }
 0x717   : > { %v5223_v31 = vmax.f32 %v5191_v30, 0.0  ;;  %5163 = vst.msk [vmem:[#allocation4 + $0x40] sm:$0xff] %vm3937_vm3, %v5131_v37  ;;  %v9767_v33 = vpop.f32.mrb[142].mxu1 }
 0x718   : > { %5256 = vst.msk [vmem:[#allocation4 + $0x28] sm:$0xff] %vm3937_vm3, %v5224_v28  ;;  %v5134_v43 = vadd.f32 %v9767_v33, %v4607_v60  ;;  %v5014_v36 = vpop.f32.mrb[143].mxu1  ;;  %v4619_v28 = vld [vmem:[#allocation4 + $0xb8] sm:$0xff]  ;;  %v4618_v60 = vld [vmem:[#allocation4 + $0xb0] sm:$0xff] }
 0x719   : > { %5255 = vst.msk [vmem:[#allocation4 + $0x20] sm:$0xff] %vm3937_vm3, %v5223_v31  ;;  %v5194_v45 = vld [vmem:[#allocation4 + $0x38] sm:$0xff]  ;;  %v5133_v52 = vadd.f32 %v5014_v36, %v4606_v35 }
 0x71a   : > { %v5226_v38 = vmax.f32 %v5194_v45, 0.0  ;;  %v5193_v59 = vld [vmem:[#allocation4 + $0x30] sm:$0xff]  ;;  %5166 = vst.msk [vmem:[#allocation4 + $0x58] sm:$0xff] %vm3937_vm3, %v5134_v43 }
 0x71b   : > { %v5225_v29 = vmax.f32 %v5193_v59, 0.0  ;;  %5165 = vst.msk [vmem:[#allocation4 + $0x50] sm:$0xff] %vm3937_vm3, %v5133_v52  ;;  %v9770_v62 = vpop.f32.mrb[144].mxu1 }
 0x71c   : > { %5258 = vst.msk [vmem:[#allocation4 + $0x38] sm:$0xff] %vm3937_vm3, %v5226_v38  ;;  %v5136_v63 = vadd.f32 %v9770_v62, %v4609_v61  ;;  %v5024_v54 = vpop.f32.mrb[145].mxu1  ;;  %v4621_v38 = vld [vmem:[#allocation4 + $0xc8] sm:$0xff]  ;;  %v4620_v61 = vld [vmem:[#allocation4 + $0xc0] sm:$0xff] }
 0x71d   : > { %5257 = vst.msk [vmem:[#allocation4 + $0x30] sm:$0xff] %vm3937_vm3, %v5225_v29  ;;  %v5196_v57 = vld [vmem:[#allocation4 + $0x48] sm:$0xff]  ;;  %v5135_v1 = vadd.f32 %v5024_v54, %v4608_v0 }
 0x71e   : > { %v5228_v3 = vmax.f32 %v5196_v57, 0.0  ;;  %v5195_v5 = vld [vmem:[#allocation4 + $0x40] sm:$0xff]  ;;  %5168 = vst.msk [vmem:[#allocation4 + $0x68] sm:$0xff] %vm3937_vm3, %v5136_v63 }
 0x71f   : > { %v5227_v8 = vmax.f32 %v5195_v5, 0.0  ;;  %5167 = vst.msk [vmem:[#allocation4 + $0x60] sm:$0xff] %vm3937_vm3, %v5135_v1  ;;  %v9773_v13 = vpop.f32.mrb[146].mxu1  ;;  %v4623_v1 = vld [vmem:[#allocation4 + $0xd8] sm:$0xff] }
 0x720   : > { %5260 = vst.msk [vmem:[#allocation4 + $0x48] sm:$0xff] %vm3937_vm3, %v5228_v3  ;;  %v5138_v14 = vadd.f32 %v9773_v13, %v4611_v9  ;;  %v5034_v55 = vpop.f32.mrb[147].mxu1  ;;  %v5307_v9 = vld [vmem:[#allocation4] sm:$0xff]  ;;  %v5308_v13 = vld [vmem:[#allocation4 + $0x8] sm:$0xff] }
 0x721   : > { %5259 = vst.msk [vmem:[#allocation4 + $0x40] sm:$0xff] %vm3937_vm3, %v5227_v8  ;;  %v5198_v49 = vld [vmem:[#allocation4 + $0x58] sm:$0xff]  ;;  %v5137_v12 = vadd.f32 %v5034_v55, %v4610_v47  ;;  %v4622_v47 = vld [vmem:[#allocation4 + $0xd0] sm:$0xff] }
 0x722   : > { %v5230_v56 = vmax.f32 %v5198_v49, 0.0  ;;  %v5197_v2 = vld [vmem:[#allocation4 + $0x50] sm:$0xff]  ;;  %5170 = vst.msk [vmem:[#allocation4 + $0x78] sm:$0xff] %vm3937_vm3, %v5138_v14 }
 0x723   : > { %v5229_v18 = vmax.f32 %v5197_v2, 0.0  ;;  %5169 = vst.msk [vmem:[#allocation4 + $0x70] sm:$0xff] %vm3937_vm3, %v5137_v12  ;;  %v9776_v48 = vpop.f32.mrb[148].mxu1 }
 0x724   : > { %5262 = vst.msk [vmem:[#allocation4 + $0x58] sm:$0xff] %vm3937_vm3, %v5230_v56  ;;  %v5140_v27 = vadd.f32 %v9776_v48, %v4613_v17  ;;  %v5044_v22 = vpop.f32.mrb[149].mxu1  ;;  %v4625_v48 = vld [vmem:[#allocation4 + $0xe8] sm:$0xff] }
 0x725   : > { %5261 = vst.msk [vmem:[#allocation4 + $0x50] sm:$0xff] %vm3937_vm3, %v5229_v18  ;;  %v5200_v32 = vld [vmem:[#allocation4 + $0x68] sm:$0xff]  ;;  %v5139_v4 = vadd.f32 %v5044_v22, %v4612_v15 }
 0x726   : > { %v5232_v50 = vmax.f32 %v5200_v32, 0.0  ;;  %v5199_v25 = vld [vmem:[#allocation4 + $0x60] sm:$0xff]  ;;  %5172 = vst.msk [vmem:[#allocation4 + $0x88] sm:$0xff] %vm3937_vm3, %v5140_v27  ;;  %v10665_v27 = vpack.c.bf16 %v5308_v13, %v5307_v9 }
 0x727   : > { %v5231_v53 = vmax.f32 %v5199_v25, 0.0  ;;  %5171 = vst.msk [vmem:[#allocation4 + $0x80] sm:$0xff] %vm3937_vm3, %v5139_v4  ;;  %v9779_v58 = vpop.f32.mrb[150].mxu1  ;;  %v5309_v4 = vld [vmem:[#allocation4 + $0x10] sm:$0xff] }
 0x728   : > { %5264 = vst.msk [vmem:[#allocation4 + $0x68] sm:$0xff] %vm3937_vm3, %v5232_v50  ;;  %v5142_v21 = vadd.f32 %v9779_v58, %v4615_v11  ;;  %v5054_v23 = vpop.f32.mrb[151].mxu1  ;;  %v5310_v50 = vld [vmem:[#allocation4 + $0x18] sm:$0xff] }
 0x729   : > { %5263 = vst.msk [vmem:[#allocation4 + $0x60] sm:$0xff] %vm3937_vm3, %v5231_v53  ;;  %v5202_v7 = vld [vmem:[#allocation4 + $0x78] sm:$0xff]  ;;  %v5141_v41 = vadd.f32 %v5054_v23, %v4614_v34  ;;  %v4624_v53 = vld [vmem:[#allocation4 + $0xe0] sm:$0xff] }
 0x72a   : > { %v5234_v44 = vmax.f32 %v5202_v7, 0.0  ;;  %v5201_v39 = vld [vmem:[#allocation4 + $0x70] sm:$0xff]  ;;  %5174 = vst.msk [vmem:[#allocation4 + $0x98] sm:$0xff] %vm3937_vm3, %v5142_v21 }
 0x72b   : > { %v5233_v6 = vmax.f32 %v5201_v39, 0.0  ;;  %5173 = vst.msk [vmem:[#allocation4 + $0x90] sm:$0xff] %vm3937_vm3, %v5141_v41  ;;  %v9782_v10 = vpop.f32.mrb[152].mxu1  ;;  %v10669_v39 = vpack.c.bf16 %v5310_v50, %v5309_v4 }
 0x72c   : > { %5266 = vst.msk [vmem:[#allocation4 + $0x78] sm:$0xff] %vm3937_vm3, %v5234_v44  ;;  %v5144_v16 = vadd.f32 %v9782_v10, %v4617_v42  ;;  %v5064_v46 = vpop.f32.mrb[153].mxu1  ;;  %v4627_v44 = vld [vmem:[#allocation4 + $0xf8] sm:$0xff] }
 0x72d   : > { %5265 = vst.msk [vmem:[#allocation4 + $0x70] sm:$0xff] %vm3937_vm3, %v5233_v6  ;;  %v5204_v20 = vld [vmem:[#allocation4 + $0x88] sm:$0xff]  ;;  %v5143_v51 = vadd.f32 %v5064_v46, %v4616_v19 }
 0x72e   : > { %v5236_v24 = vmax.f32 %v5204_v20, 0.0  ;;  %v5203_v26 = vld [vmem:[#allocation4 + $0x80] sm:$0xff]  ;;  %5176 = vst.msk [vmem:[#allocation4 + $0xa8] sm:$0xff] %vm3937_vm3, %v5144_v16  ;;  %v5312_v19 = vld [vmem:[#allocation4 + $0x28] sm:$0xff]  ;;  %v4626_v20 = vld [vmem:[#allocation4 + $0xf0] sm:$0xff] }
 0x72f   : > { %v5235_v37 = vmax.f32 %v5203_v26, 0.0  ;;  %5175 = vst.msk [vmem:[#allocation4 + $0xa0] sm:$0xff] %vm3937_vm3, %v5143_v51  ;;  %v9785_v30 = vpop.f32.mrb[154].mxu1  ;;  %v5311_v16 = vld [vmem:[#allocation4 + $0x20] sm:$0xff] }
 0x730   : > { %5268 = vst.msk [vmem:[#allocation4 + $0x88] sm:$0xff] %vm3937_vm3, %v5236_v24  ;;  %v5146_v31 = vadd.f32 %v9785_v30, %v4619_v28  ;;  %v5074_v33 = vpop.f32.mrb[155].mxu1 }
 0x731   : > { %5267 = vst.msk [vmem:[#allocation4 + $0x80] sm:$0xff] %vm3937_vm3, %v5235_v37  ;;  %v5206_v43 = vld [vmem:[#allocation4 + $0x98] sm:$0xff]  ;;  %v5145_v35 = vadd.f32 %v5074_v33, %v4618_v60  ;;  %v10673_v60 = vpack.c.bf16 %v5312_v19, %v5311_v16  ;;  %v5285_v16 = vld [vmem:[%s14635_s9 + $0x10] sm:$0xff] }
 0x732   : > { %v5238_v36 = vmax.f32 %v5206_v43, 0.0  ;;  %v5205_v45 = vld [vmem:[#allocation4 + $0x90] sm:$0xff]  ;;  %5178 = vst.msk [vmem:[#allocation4 + $0xb8] sm:$0xff] %vm3937_vm3, %v5146_v31 }
 0x733   : > { %v5237_v52 = vmax.f32 %v5205_v45, 0.0  ;;  %5177 = vst.msk [vmem:[#allocation4 + $0xb0] sm:$0xff] %vm3937_vm3, %v5145_v35  ;;  %v9788_v59 = vpop.f32.mrb[156].mxu1  ;;  %v5313_v35 = vld [vmem:[#allocation4 + $0x30] sm:$0xff] }
 0x734   : > { %5270 = vst.msk [vmem:[#allocation4 + $0x98] sm:$0xff] %vm3937_vm3, %v5238_v36  ;;  %v5148_v29 = vadd.f32 %v9788_v59, %v4621_v38  ;;  %v5084_v62 = vpop.f32.mrb[157].mxu1  ;;  %v5314_v36 = vld [vmem:[#allocation4 + $0x38] sm:$0xff]  ;;  %v5321_v50 = vld [vmem:[#allocation4 + $0x70] sm:$0xff] }
 0x735   : > { %5269 = vst.msk [vmem:[#allocation4 + $0x90] sm:$0xff] %vm3937_vm3, %v5237_v52  ;;  %v5208_v63 = vld [vmem:[#allocation4 + $0xa8] sm:$0xff]  ;;  %v5147_v0 = vadd.f32 %v5084_v62, %v4620_v61  ;;  %v10677_v61 = vpack.c.bf16 %v5314_v36, %v5313_v35  ;;  %v8454_v19 = vld [vmem:[%s14635_s9 + $0xd0] sm:$0xff] }
 0x736   : > { %v5240_v54 = vmax.f32 %v5208_v63, 0.0  ;;  %v5207_v57 = vld [vmem:[#allocation4 + $0xa0] sm:$0xff]  ;;  %5180 = vst.msk [vmem:[#allocation4 + $0xc8] sm:$0xff] %vm3937_vm3, %v5148_v29  ;;  %v5289_v35 = vld [vmem:[%s14635_s9 + $0x30] sm:$0xff] }
 0x737   : > { %v5239_v3 = vmax.f32 %v5207_v57, 0.0  ;;  %5179 = vst.msk [vmem:[#allocation4 + $0xc0] sm:$0xff] %vm3937_vm3, %v5147_v0  ;;  %v9791_v5 = vpop.f32.mrb[158].mxu1  ;;  %v5324_v8 = vld [vmem:[#allocation4 + $0x88] sm:$0xff]  ;;  %v5315_v0 = vld [vmem:[#allocation4 + $0x40] sm:$0xff]  ;;  %v8458_v36 = vld [vmem:[%s14635_s9 + $0xf0] sm:$0xff] }
 0x738   : > { %5272 = vst.msk [vmem:[#allocation4 + $0xa8] sm:$0xff] %vm3937_vm3, %v5240_v54  ;;  %v5150_v14 = vadd.f32 %v9791_v5, %v4623_v1  ;;  %v5094_v55 = vpop.f32.mrb[159].mxu1  ;;  %v5323_v49 = vld [vmem:[#allocation4 + $0x80] sm:$0xff]  ;;  %v5316_v54 = vld [vmem:[#allocation4 + $0x48] sm:$0xff] }
 0x739   : > { %5271 = vst.msk [vmem:[#allocation4 + $0xa0] sm:$0xff] %vm3937_vm3, %v5239_v3  ;;  %v5210_v12 = vld [vmem:[#allocation4 + $0xb8] sm:$0xff]  ;;  %v5149_v56 = vadd.f32 %v5094_v55, %v4622_v47  ;;  %v10663_v2 = vpack.c.bf16 %v5324_v8, %v5323_v49  ;;  %v10681_v9 = vpack.c.bf16 %v5316_v54, %v5315_v0  ;;  %v5317_v47 = vld [vmem:[#allocation4 + $0x50] sm:$0xff] }
 0x73a   : > { %v5242_v18 = vmax.f32 %v5210_v12, 0.0  ;;  %v5209_v17 = vld [vmem:[#allocation4 + $0xb0] sm:$0xff]  ;;  %5182 = vst.msk [vmem:[#allocation4 + $0xd8] sm:$0xff] %vm3937_vm3, %v5150_v14  ;;  %v5318_v55 = vld [vmem:[#allocation4 + $0x58] sm:$0xff] }
 0x73b   : > { %v5241_v15 = vmax.f32 %v5209_v17, 0.0  ;;  %5181 = vst.msk [vmem:[#allocation4 + $0xd0] sm:$0xff] %vm3937_vm3, %v5149_v56  ;;  %v9794_v22 = vpop.f32.mrb[160].mxu1  ;;  %10664 = vmatprep.subr.bf16.mxu0 %v10663_v2  ;;  %10696 = vmatprep.subr.bf16.mxu1 %v10663_v2  ;;  %v5326_v32 = vld [vmem:[#allocation4 + $0x98] sm:$0xff]  ;;  %v10685_v56 = vpack.c.bf16 %v5318_v55, %v5317_v47  ;;  %v5320_v17 = vld [vmem:[#allocation4 + $0x68] sm:$0xff]  ;;  %v5297_v47 = vld [vmem:[%s14635_s9 + $0x70] sm:$0xff] }
 0x73c   : > { %5274 = vst.msk [vmem:[#allocation4 + $0xb8] sm:$0xff] %vm3937_vm3, %v5242_v18  ;;  %v5152_v25 = vadd.f32 %v9794_v22, %v4625_v48  ;;  %v5104_v11 = vpop.f32.mrb[161].mxu1  ;;  %10666 = vmatpush3.bf16.msra.mxu0 %v10665_v27  ;;  %10698 = vmatpush3.bf16.msra.mxu1 %v10665_v27  ;;  %v5325_v58 = vld [vmem:[#allocation4 + $0x90] sm:$0xff]  ;;  %v5319_v18 = vld [vmem:[#allocation4 + $0x60] sm:$0xff]  ;;  %v8463_v0 = vld [vmem:[%s14635_s9 + $0x118] sm:$0xff] }
 0x73d   : > { %5273 = vst.msk [vmem:[#allocation4 + $0xb0] sm:$0xff] %vm3937_vm3, %v5241_v15  ;;  %v5212_v21 = vld [vmem:[#allocation4 + $0xc8] sm:$0xff]  ;;  %v5151_v34 = vadd.f32 %v5104_v11, %v4624_v53  ;;  %v10667_v23 = vpack.c.bf16 %v5326_v32, %v5325_v58  ;;  %v10689_v15 = vpack.c.bf16 %v5320_v17, %v5319_v18  ;;  %v5626_v22 = vld [vmem:[%s14636_s10] sm:$0xff]  ;;  %v8466_v55 = vld [vmem:[%s14635_s9 + $0x130] sm:$0xff] }
 0x73e   : > { %v5244_v7 = vmax.f32 %v5212_v21, 0.0  ;;  %v5211_v41 = vld [vmem:[#allocation4 + $0xc0] sm:$0xff]  ;;  %5184 = vst.msk [vmem:[#allocation4 + $0xe8] sm:$0xff] %vm3937_vm3, %v5152_v25  ;;  %v5627_v32 = vld [vmem:[%s14636_s10 + $0x8] sm:$0xff]  ;;  %v5322_v25 = vld [vmem:[#allocation4 + $0x78] sm:$0xff] }
 0x73f   : > { %v5243_v6 = vmax.f32 %v5211_v41, 0.0  ;;  %5183 = vst.msk [vmem:[#allocation4 + $0xe0] sm:$0xff] %vm3937_vm3, %v5151_v34  ;;  %v9797_v42 = vpop.f32.mrb[162].mxu1  ;;  %10668 = vmatprep.subr.bf16.mxu0 %v10667_v23  ;;  %10700 = vmatprep.subr.bf16.mxu1 %v10667_v23  ;;  %v5328_v10 = vld [vmem:[#allocation4 + $0xa8] sm:$0xff]  ;;  %v10727_v58 = vpack.c.bf16 %v5627_v32, %v5626_v22  ;;  %v10693_v21 = vpack.c.bf16 %v5322_v25, %v5321_v50  ;;  %v5628_v34 = vld [vmem:[%s14636_s10 + $0x10] sm:$0xff]  ;;  %v5629_v23 = vld [vmem:[%s14636_s10 + $0x18] sm:$0xff] }
 0x740   : > { %5276 = vst.msk [vmem:[#allocation4 + $0xc8] sm:$0xff] %vm3937_vm3, %v5244_v7  ;;  %v5154_v46 = vadd.f32 %v9797_v42, %v4627_v44  ;;  %v5114_v51 = vpop.f32.mrb[163].mxu1  ;;  %10670 = vmatpush3.bf16.msra.mxu0 %v10669_v39  ;;  %10702 = vmatpush3.bf16.msra.mxu1 %v10669_v39  ;;  %v5327_v24 = vld [vmem:[#allocation4 + $0xa0] sm:$0xff]  ;;  %v5286_v44 = vld [vmem:[%s14635_s9 + $0x18] sm:$0xff]  ;;  %v8473_v22 = vld [vmem:[%s14635_s9 + $0x168] sm:$0xff] }
 0x741   : > { %5275 = vst.msk [vmem:[#allocation4 + $0xc0] sm:$0xff] %vm3937_vm3, %v5243_v6  ;;  %v5214_v26 = vld [vmem:[#allocation4 + $0xd8] sm:$0xff]  ;;  %v5153_v37 = vadd.f32 %v5114_v51, %v4626_v20  ;;  %v10671_v28 = vpack.c.bf16 %v5328_v10, %v5327_v24  ;;  %v5283_v7 = vld [vmem:[%s14635_s9] sm:$0xff]  ;;  %v10731_v6 = vpack.c.bf16 %v5629_v23, %v5628_v34  ;;  %v5631_v10 = vld [vmem:[%s14636_s10 + $0x28] sm:$0xff] }
 0x742   : > { %v5246_v30 = vmax.f32 %v5214_v26, 0.0  ;;  %v5213_v31 = vld [vmem:[#allocation4 + $0xd0] sm:$0xff]  ;;  %5186 = vst.msk [vmem:[#allocation4 + $0xf8] sm:$0xff] %vm3937_vm3, %v5154_v46  ;;  %v8452_v41 = vld [vmem:[%s14635_s9 + $0xc0] sm:$0xff]  ;;  %v8455_v39 = vld [vmem:[%s14635_s9 + $0xd8] sm:$0xff] }
 0x743   : > { %v5245_v33 = vmax.f32 %v5213_v31, 0.0  ;;  %5185 = vst.msk [vmem:[#allocation4 + $0xf0] sm:$0xff] %vm3937_vm3, %v5153_v37  ;;  %10672 = vmatprep.subr.bf16.mxu0 %v10671_v28  ;;  %10704 = vmatprep.subr.bf16.mxu1 %v10671_v28  ;;  %v5330_v43 = vld [vmem:[#allocation4 + $0xb8] sm:$0xff]  ;;  %v5630_v42 = vld [vmem:[%s14636_s10 + $0x20] sm:$0xff]  ;;  %v5288_v46 = vld [vmem:[%s14635_s9 + $0x28] sm:$0xff] }
 0x744   : > { %5278 = vst.msk [vmem:[#allocation4 + $0xd8] sm:$0xff] %vm3937_vm3, %v5246_v30  ;;  %10674 = vmatpush3.bf16.msra.mxu0 %v10673_v60  ;;  %10706 = vmatpush3.bf16.msra.mxu1 %v10673_v60  ;;  %v5329_v45 = vld [vmem:[#allocation4 + $0xb0] sm:$0xff]  ;;  %v8457_v20 = vld [vmem:[%s14635_s9 + $0xe8] sm:$0xff]  ;;  %v10735_v51 = vpack.c.bf16 %v5631_v10, %v5630_v42  ;;  %v5633_v26 = vld [vmem:[%s14636_s10 + $0x38] sm:$0xff] }
 0x745   : > { %5277 = vst.msk [vmem:[#allocation4 + $0xd0] sm:$0xff] %vm3937_vm3, %v5245_v33  ;;  %v5216_v52 = vld [vmem:[#allocation4 + $0xe8] sm:$0xff]  ;;  %v10675_v38 = vpack.c.bf16 %v5330_v43, %v5329_v45  ;;  %v5632_v24 = vld [vmem:[%s14636_s10 + $0x30] sm:$0xff]  ;;  %v5287_v37 = vld [vmem:[%s14635_s9 + $0x20] sm:$0xff] }
 0x746   : > { %v5248_v59 = vmax.f32 %v5216_v52, 0.0  ;;  %v5215_v29 = vld [vmem:[#allocation4 + $0xe0] sm:$0xff]  ;;  %v5290_v30 = vld [vmem:[%s14635_s9 + $0x38] sm:$0xff]  ;;  %v10739_v60 = vpack.c.bf16 %v5633_v26, %v5632_v24  ;;  %v5635_v43 = vld [vmem:[%s14636_s10 + $0x48] sm:$0xff] }
 0x747   : > { %v5247_v62 = vmax.f32 %v5215_v29, 0.0  ;;  %10676 = vmatprep.subr.bf16.mxu0 %v10675_v38  ;;  %10708 = vmatprep.subr.bf16.mxu1 %v10675_v38  ;;  %v5332_v63 = vld [vmem:[#allocation4 + $0xc8] sm:$0xff]  ;;  %v8456_v28 = vld [vmem:[%s14635_s9 + $0xe0] sm:$0xff]  ;;  %v8459_v31 = vld [vmem:[%s14635_s9 + $0xf8] sm:$0xff] }
 0x748   : > { %5280 = vst.msk [vmem:[#allocation4 + $0xe8] sm:$0xff] %vm3937_vm3, %v5248_v59  ;;  %10678 = vmatpush3.bf16.msra.mxu0 %v10677_v61  ;;  %10710 = vmatpush3.bf16.msra.mxu1 %v10677_v61  ;;  %v5331_v57 = vld [vmem:[#allocation4 + $0xc0] sm:$0xff]  ;;  %v5292_v45 = vld [vmem:[%s14635_s9 + $0x48] sm:$0xff]  ;;  %v5636_v59 = vld [vmem:[%s14636_s10 + $0x50] sm:$0xff] }
 0x749   : > { %5279 = vst.msk [vmem:[#allocation4 + $0xe0] sm:$0xff] %vm3937_vm3, %v5247_v62  ;;  %v5218_v1 = vld [vmem:[#allocation4 + $0xf8] sm:$0xff]  ;;  %v10679_v3 = vpack.c.bf16 %v5332_v63, %v5331_v57  ;;  %v5634_v33 = vld [vmem:[%s14636_s10 + $0x40] sm:$0xff]  ;;  %v8461_v52 = vld [vmem:[%s14635_s9 + $0x108] sm:$0xff] }
 0x74a   : > { %v5250_v5 = vmax.f32 %v5218_v1, 0.0  ;;  %v5217_v8 = vld [vmem:[#allocation4 + $0xf0] sm:$0xff]  ;;  %v10743_v38 = vpack.c.bf16 %v5635_v43, %v5634_v33  ;;  %v5637_v29 = vld [vmem:[%s14636_s10 + $0x58] sm:$0xff]  ;;  %v5291_v61 = vld [vmem:[%s14635_s9 + $0x40] sm:$0xff] }
 0x74b   : > { %v5249_v13 = vmax.f32 %v5217_v8, 0.0  ;;  %10680 = vmatprep.subr.bf16.mxu0 %v10679_v3  ;;  %10712 = vmatprep.subr.bf16.mxu1 %v10679_v3  ;;  %v5334_v14 = vld [vmem:[#allocation4 + $0xd8] sm:$0xff]  ;;  %v8460_v62 = vld [vmem:[%s14635_s9 + $0x100] sm:$0xff]  ;;  %v10747_v54 = vpack.c.bf16 %v5637_v29, %v5636_v59  ;;  %v5293_v57 = vld [vmem:[%s14635_s9 + $0x50] sm:$0xff] }
 0x74c   : > { %5282 = vst.msk [vmem:[#allocation4 + $0xf8] sm:$0xff] %vm3937_vm3, %v5250_v5  ;;  %10682 = vmatpush3.bf16.msra.mxu0 %v10681_v9  ;;  %10714 = vmatpush3.bf16.msra.mxu1 %v10681_v9  ;;  %v5333_v49 = vld [vmem:[#allocation4 + $0xd0] sm:$0xff]  ;;  %v5294_v63 = vld [vmem:[%s14635_s9 + $0x58] sm:$0xff]  ;;  %v5296_v3 = vld [vmem:[%s14635_s9 + $0x68] sm:$0xff] }
 0x74d   : > { %5281 = vst.msk [vmem:[#allocation4 + $0xf0] sm:$0xff] %vm3937_vm3, %v5249_v13  ;;  %v10683_v12 = vpack.c.bf16 %v5334_v14, %v5333_v49  ;;  %v8462_v1 = vld [vmem:[%s14635_s9 + $0x110] sm:$0xff]  ;;  %v8465_v5 = vld [vmem:[%s14635_s9 + $0x128] sm:$0xff]  ;;  %v5295_v8 = vld [vmem:[%s14635_s9 + $0x60] sm:$0xff] }
 0x74e   : > { %v8464_v9 = vld [vmem:[%s14635_s9 + $0x120] sm:$0xff]  ;;  %v5298_v13 = vld [vmem:[%s14635_s9 + $0x78] sm:$0xff]  ;;  %v5300_v49 = vld [vmem:[%s14635_s9 + $0x88] sm:$0xff] }
 0x74f   : > { %10684 = vmatprep.subr.bf16.mxu0 %v10683_v12  ;;  %10716 = vmatprep.subr.bf16.mxu1 %v10683_v12  ;;  %v5336_v2 = vld [vmem:[#allocation4 + $0xe8] sm:$0xff]  ;;  %v8467_v14 = vld [vmem:[%s14635_s9 + $0x138] sm:$0xff]  ;;  %v5303_v32 = vld [vmem:[%s14635_s9 + $0xa0] sm:$0xff] }
 0x750   : > { %10686 = vmatpush3.bf16.msra.mxu0 %v10685_v56  ;;  %10718 = vmatpush3.bf16.msra.mxu1 %v10685_v56  ;;  %v5335_v48 = vld [vmem:[#allocation4 + $0xe0] sm:$0xff]  ;;  %v8469_v12 = vld [vmem:[%s14635_s9 + $0x148] sm:$0xff]  ;;  %v5302_v18 = vld [vmem:[%s14635_s9 + $0x98] sm:$0xff] }
 0x751   : > { %v10687_v27 = vpack.c.bf16 %v5336_v2, %v5335_v48  ;;  %v5299_v56 = vld [vmem:[%s14635_s9 + $0x80] sm:$0xff]  ;;  %v8471_v17 = vld [vmem:[%s14635_s9 + $0x158] sm:$0xff]  ;;  %v5301_v48 = vld [vmem:[%s14635_s9 + $0x90] sm:$0xff] }
 0x752   : > { %v8468_v2 = vld [vmem:[%s14635_s9 + $0x140] sm:$0xff]  ;;  %v5306_v50 = vld [vmem:[%s14635_s9 + $0xb8] sm:$0xff]  ;;  %v5640_v23 = vld [vmem:[%s14636_s10 + $0x70] sm:$0xff] }
 0x753   : > { %10688 = vmatprep.subr.bf16.mxu0 %v10687_v27  ;;  %10720 = vmatprep.subr.bf16.mxu1 %v10687_v27  ;;  %v5338_v4 = vld [vmem:[#allocation4 + $0xf8] sm:$0xff]  ;;  %v8470_v27 = vld [vmem:[%s14635_s9 + $0x150] sm:$0xff] }
 0x754   : > { %10690 = vmatpush3.bf16.msra.mxu0 %v10689_v15  ;;  %10722 = vmatpush3.bf16.msra.mxu1 %v10689_v15  ;;  %v5337_v53 = vld [vmem:[#allocation4 + $0xf0] sm:$0xff]  ;;  %v5304_v15 = vld [vmem:[%s14635_s9 + $0xa8] sm:$0xff]  ;;  %v8475_v25 = vld [vmem:[%s14635_s9 + $0x178] sm:$0xff] }
 0x755   : > { %v10691_v11 = vpack.c.bf16 %v5338_v4, %v5337_v53  ;;  %v8472_v4 = vld [vmem:[%s14635_s9 + $0x160] sm:$0xff]  ;;  %v5305_v53 = vld [vmem:[%s14635_s9 + $0xb0] sm:$0xff] }
 0x757   : > { %10692 = vmatprep.subr.bf16.mxu0 %v10691_v11  ;;  %10724 = vmatprep.subr.bf16.mxu1 %v10691_v11  ;;  %v8474_v11 = vld [vmem:[%s14635_s9 + $0x170] sm:$0xff] }
 0x758   : > { %10694 = vmatpush3.bf16.msra.mxu0 %v10693_v21  ;;  %10726 = vmatpush3.bf16.msra.mxu1 %v10693_v21  ;;  %v5639_v21 = vld [vmem:[%s14636_s10 + $0x68] sm:$0xff] }
 0x759   : > { %10728 = vmatprep.subr.bf16.mxu0 %v10727_v58 }
 0x75b   : > { %5404 = vmatmul.mubr.f32.vlgmr.msra.gmra.mrb[116].mxu0 %v5283_v7  ;;  %5554 = vmatmul.mubr.f32.vlgmr.msra.gmra.mrb[164].mxu1 %v8452_v41  ;;  %v8488_v7 = vld [vmem:[%s14636_s10 + $0x78] sm:$0xff]  ;;  %v8489_v41 = vld [vmem:[%s14636_s10 + $0x80] sm:$0xff] }
 0x75c   : > { %5408 = vmatprep.mubr.f32.mxu0 %v5286_v44  ;;  %5558 = vmatprep.mubr.f32.mxu1 %v8455_v39  ;;  %v10755_v44 = vpack.c.bf16 %v8489_v41, %v8488_v7  ;;  %v8500_v41 = vld [vmem:[%s14636_s10 + $0xd8] sm:$0xff] }
 0x75d   : > { %10730 = vmatpush3.bf16.msra.mxu0 %v10727_v58  ;;  %v5638_v58 = vld [vmem:[%s14636_s10 + $0x60] sm:$0xff] }
 0x75e   : > { %10732 = vmatprep.subr.bf16.mxu0 %v10731_v6  ;;  %v10751_v34 = vpack.c.bf16 %v5639_v21, %v5638_v58 }
 0x75f   : > { %5409 = vmatmul.mubr.f32.gmra.mrb[118].mxu0 %v5285_v16  ;;  %5559 = vmatmul.mubr.f32.gmra.mrb[166].mxu1 %v8454_v19 }
 0x760   : > { %5413 = vmatprep.mubr.f32.mxu0 %v5288_v46  ;;  %5563 = vmatprep.mubr.f32.mxu1 %v8457_v20 }
 0x761   : > { %10734 = vmatpush3.bf16.msra.mxu0 %v10731_v6 }
 0x762   : > { %10736 = vmatprep.subr.bf16.mxu0 %v10735_v51 }
 0x763   : > { %5414 = vmatmul.mubr.f32.gmra.mrb[120].mxu0 %v5287_v37  ;;  %5564 = vmatmul.mubr.f32.gmra.mrb[168].mxu1 %v8456_v28  ;;  %v8490_v37 = vld [vmem:[%s14636_s10 + $0x88] sm:$0xff]  ;;  %v8491_v28 = vld [vmem:[%s14636_s10 + $0x90] sm:$0xff] }
 0x764   : > { %5418 = vmatprep.mubr.f32.mxu0 %v5290_v30  ;;  %5568 = vmatprep.mubr.f32.mxu1 %v8459_v31 }
 0x765   : > { %10738 = vmatpush3.bf16.msra.mxu0 %v10735_v51 }
 0x766   : > { %10740 = vmatprep.subr.bf16.mxu0 %v10739_v60 }
 0x767   : > { %5419 = vmatmul.mubr.f32.gmra.mrb[122].mxu0 %v5289_v35  ;;  %5569 = vmatmul.mubr.f32.gmra.mrb[170].mxu1 %v8458_v36  ;;  %v10759_v35 = vpack.c.bf16 %v8491_v28, %v8490_v37 }
 0x768   : > { %5423 = vmatprep.mubr.f32.mxu0 %v5292_v45  ;;  %5573 = vmatprep.mubr.f32.mxu1 %v8461_v52  ;;  %v8492_v52 = vld [vmem:[%s14636_s10 + $0x98] sm:$0xff] }
 0x769   : > { %10742 = vmatpush3.bf16.msra.mxu0 %v10739_v60 }
 0x76a   : > { %10744 = vmatprep.subr.bf16.mxu0 %v10743_v38 }
 0x76b   : > { %5424 = vmatmul.mubr.f32.gmra.mrb[124].mxu0 %v5291_v61  ;;  %5574 = vmatmul.mubr.f32.gmra.mrb[172].mxu1 %v8460_v62 }
 0x76c   : > { %5428 = vmatprep.mubr.f32.mxu0 %v5294_v63  ;;  %5578 = vmatprep.mubr.f32.mxu1 %v8463_v0 }
 0x76d   : > { %10746 = vmatpush3.bf16.msra.mxu0 %v10743_v38  ;;  %v8493_v38 = vld [vmem:[%s14636_s10 + $0xa0] sm:$0xff] }
 0x76e   : > { %10748 = vmatprep.subr.bf16.mxu0 %v10747_v54  ;;  %v10763_v0 = vpack.c.bf16 %v8493_v38, %v8492_v52 }
 0x76f   : > { %5429 = vmatmul.mubr.f32.gmra.mrb[126].mxu0 %v5293_v57  ;;  %5579 = vmatmul.mubr.f32.gmra.mrb[174].mxu1 %v8462_v1  ;;  %v8494_v1 = vld [vmem:[%s14636_s10 + $0xa8] sm:$0xff] }
 0x770   : > { %5433 = vmatprep.mubr.f32.mxu0 %v5296_v3  ;;  %5583 = vmatprep.mubr.f32.mxu1 %v8465_v5  ;;  %v8495_v3 = vld [vmem:[%s14636_s10 + $0xb0] sm:$0xff] }
 0x771   : > { %10750 = vmatpush3.bf16.msra.mxu0 %v10747_v54 }
 0x772   : > { %10752 = vmatprep.subr.bf16.mxu0 %v10751_v34 }
 0x773   : > { %5434 = vmatmul.mubr.f32.gmra.mrb[128].mxu0 %v5295_v8  ;;  %5584 = vmatmul.mubr.f32.gmra.mrb[176].mxu1 %v8464_v9 }
 0x774   : > { %5438 = vmatprep.mubr.f32.mxu0 %v5298_v13  ;;  %5588 = vmatprep.mubr.f32.mxu1 %v8467_v14 }
 0x775   : > { %10754 = vmatpush3.bf16.msra.mxu0 %v10751_v34 }
 0x776   : > { %9826 = vmatprep.subr.mxu0 %v5640_v23 }
 0x777   : > { %5439 = vmatmul.mubr.f32.gmra.mrb[130].mxu0 %v5297_v47  ;;  %5589 = vmatmul.mubr.f32.gmra.mrb[178].mxu1 %v8466_v55  ;;  %v10767_v47 = vpack.c.bf16 %v8495_v3, %v8494_v1 }
 0x778   : > { %5443 = vmatprep.mubr.f32.mxu0 %v5300_v49  ;;  %5593 = vmatprep.mubr.f32.mxu1 %v8469_v12  ;;  %v8496_v12 = vld [vmem:[%s14636_s10 + $0xb8] sm:$0xff] }
 0x779   : > { %9827 = vmatpush3.msra.mxu0 %v5640_v23 }
 0x77a   : > { %10756 = vmatprep.subr.bf16.mxu0 %v10755_v44 }
 0x77b   : > { %5444 = vmatmul.mubr.f32.gmra.mrb[132].mxu0 %v5299_v56  ;;  %5594 = vmatmul.mubr.f32.gmra.mrb[180].mxu1 %v8468_v2  ;;  %v8497_v56 = vld [vmem:[%s14636_s10 + $0xc0] sm:$0xff] }
 0x77c   : > { %5448 = vmatprep.mubr.f32.mxu0 %v5302_v18  ;;  %5598 = vmatprep.mubr.f32.mxu1 %v8471_v17 }
 0x77f   : > { %5449 = vmatmul.mubr.f32.gmra.mrb[134].mxu0 %v5301_v48  ;;  %5599 = vmatmul.mubr.f32.gmra.mrb[182].mxu1 %v8470_v27 }
 0x780   : > { %5453 = vmatprep.mubr.f32.mxu0 %v5304_v15  ;;  %5603 = vmatprep.mubr.f32.mxu1 %v8473_v22  ;;  %v10771_v15 = vpack.c.bf16 %v8497_v56, %v8496_v12 }
 0x783   : > { %5454 = vmatmul.mubr.f32.gmra.mrb[136].mxu0 %v5303_v32  ;;  %5604 = vmatmul.mubr.f32.gmra.mrb[184].mxu1 %v8472_v4  ;;  %v8498_v4 = vld [vmem:[%s14636_s10 + $0xc8] sm:$0xff] }
 0x784   : > { %5458 = vmatprep.mubr.f32.mxu0 %v5306_v50  ;;  %5608 = vmatprep.mubr.f32.mxu1 %v8475_v25  ;;  %v8499_v50 = vld [vmem:[%s14636_s10 + $0xd0] sm:$0xff] }
 0x785   : > { %v10775_v34 = vpack.c.bf16 %v8499_v50, %v8498_v4  ;;  %v5959_v50 = vld [vmem:[%s14637_s11 + $0x20] sm:$0xff] }
 0x787   : > { %5459 = vmatmul.mubr.f32.gmra.mrb[138].mxu0 %v5305_v53  ;;  %5609 = vmatmul.mubr.f32.gmra.mrb[186].mxu1 %v8474_v11 }
 0x82e   : > { %v9004_v39 = vpop.f32.mrb[116].mxu0  ;;  %v9072_v6 = vpop.f32.mrb[164].mxu1 }
 0x82f   : > { %v9005_v42 = vpop.f32.mrb[117].mxu0  ;;  %v9073_v10 = vpop.f32.mrb[165].mxu1 }
 0x830   : > { %v9006_v16 = vadd.f32 %v9005_v42, %v9004_v39  ;;  %v9074_v19 = vadd.f32 %v9073_v10, %v9072_v6 }
 0x832   : > { %v13775_v46 = vmax.f32 %v9006_v16, %v9074_v19  ;;  %v9007_v20 = vpop.f32.mrb[118].mxu0  ;;  %v9075_v51 = vpop.f32.mrb[166].mxu1 }
 0x833   : > { %v9008_v24 = vpop.f32.mrb[119].mxu0  ;;  %v9076_v26 = vpop.f32.mrb[167].mxu1 }
 0x834   : > { %v9009_v30 = vadd.f32 %v9008_v24, %v9007_v20  ;;  %v9077_v31 = vadd.f32 %v9076_v26, %v9075_v51  ;;  %9828 = vmatprep.mubr.msk.f32.mxu0 %vm3937_vm3, %v13775_v46 }
 0x836   : > { %v13785_v60 = vmax.f32 %v9009_v30, %v9077_v31  ;;  %v9010_v33 = vpop.f32.mrb[120].mxu0  ;;  %v9078_v43 = vpop.f32.mrb[168].mxu1 }
 0x837   : > { %v9011_v36 = vpop.f32.mrb[121].mxu0  ;;  %v9079_v45 = vpop.f32.mrb[169].mxu1 }
 0x838   : > { %9829 = vmatmul.mubr.msk.f32.vlgmr.msra.gmra.mrb[140].mxu0 %vm3937_vm3, %v13785_v60  ;;  %v9012_v59 = vadd.f32 %v9011_v36, %v9010_v33  ;;  %v9080_v29 = vadd.f32 %v9079_v45, %v9078_v43  ;;  %v8502_v43 = vld [vmem:[%s14636_s10 + $0xe8] sm:$0xff] }
 0x839   : > { %10758 = vmatpush3.bf16.msra.mxu0 %v10755_v44  ;;  %v8501_v44 = vld [vmem:[%s14636_s10 + $0xe0] sm:$0xff] }
 0x83a   : > { %v13795_v61 = vmax.f32 %v9012_v59, %v9080_v29  ;;  %v9013_v62 = vpop.f32.mrb[122].mxu0  ;;  %v9081_v63 = vpop.f32.mrb[170].mxu1  ;;  %10760 = vmatprep.subr.bf16.mxu0 %v10759_v35  ;;  %v10779_v19 = vpack.c.bf16 %v8501_v44, %v8500_v41  ;;  %v8564_v44 = vld [vmem:[%s14637_s11 + $0x98] sm:$0xff] }
 0x83b   : > { %v9014_v54 = vpop.f32.mrb[123].mxu0  ;;  %v9082_v57 = vpop.f32.mrb[171].mxu1 }
 0x83c   : > { %v9015_v5 = vadd.f32 %v9014_v54, %v9013_v62  ;;  %v9083_v8 = vadd.f32 %v9082_v57, %v9081_v63  ;;  %9831 = vmatprep.mubr.msk.f32.mxu0 %vm3937_vm3, %v13795_v61 }
 0x83d   : > { %10762 = vmatpush3.bf16.msra.mxu0 %v10759_v35 }
 0x83e   : > { %v13805_v9 = vmax.f32 %v9015_v5, %v9083_v8  ;;  %v9016_v13 = vpop.f32.mrb[124].mxu0  ;;  %v9084_v14 = vpop.f32.mrb[172].mxu1  ;;  %10764 = vmatprep.subr.bf16.mxu0 %v10763_v0 }
 0x83f   : > { %v9017_v55 = vpop.f32.mrb[125].mxu0  ;;  %v9085_v49 = vpop.f32.mrb[173].mxu1 }
 0x840   : > { %v9018_v2 = vadd.f32 %v9017_v55, %v9016_v13  ;;  %v9086_v18 = vadd.f32 %v9085_v49, %v9084_v14  ;;  %9832 = vmatmul.mubr.msk.f32.gmra.mrb[142].mxu0 %vm3937_vm3, %v13805_v9 }
 0x841   : > { %10766 = vmatpush3.bf16.msra.mxu0 %v10763_v0 }
 0x842   : > { %v13815_v17 = vmax.f32 %v9018_v2, %v9086_v18  ;;  %v9019_v48 = vpop.f32.mrb[126].mxu0  ;;  %v9087_v27 = vpop.f32.mrb[174].mxu1  ;;  %10768 = vmatprep.subr.bf16.mxu0 %v10767_v47  ;;  %v8528_v18 = vld [vmem:[%s14637_s11 + $0x38] sm:$0xff] }
 0x843   : > { %v9020_v22 = vpop.f32.mrb[127].mxu0  ;;  %v9088_v32 = vpop.f32.mrb[175].mxu1 }
 0x844   : > { %v9021_v25 = vadd.f32 %v9020_v22, %v9019_v48  ;;  %v9089_v53 = vadd.f32 %v9088_v32, %v9087_v27  ;;  %9834 = vmatprep.mubr.msk.f32.mxu0 %vm3937_vm3, %v13815_v17  ;;  %v5957_v48 = vld [vmem:[%s14637_s11 + $0x10] sm:$0xff]  ;;  %v5958_v27 = vld [vmem:[%s14637_s11 + $0x18] sm:$0xff]  ;;  %v8530_v32 = vld [vmem:[%s14637_s11 + $0x48] sm:$0xff] }
 0x845   : > { %10770 = vmatpush3.bf16.msra.mxu0 %v10767_v47  ;;  %v10787_v22 = vpack.c.bf16 %v5958_v27, %v5957_v48 }
 0x846   : > { %v13825_v11 = vmax.f32 %v9021_v25, %v9089_v53  ;;  %v9022_v58 = vpop.f32.mrb[128].mxu0  ;;  %v9090_v21 = vpop.f32.mrb[176].mxu1  ;;  %10772 = vmatprep.subr.bf16.mxu0 %v10771_v15  ;;  %v5960_v25 = vld [vmem:[%s14637_s11 + $0x28] sm:$0xff]  ;;  %v8531_v53 = vld [vmem:[%s14637_s11 + $0x50] sm:$0xff] }
 0x847   : > { %v9023_v23 = vpop.f32.mrb[129].mxu0  ;;  %v9091_v7 = vpop.f32.mrb[177].mxu1 }
 0x848   : > { %v9024_v39 = vadd.f32 %v9023_v23, %v9022_v58  ;;  %v9092_v6 = vadd.f32 %v9091_v7, %v9090_v21  ;;  %9835 = vmatmul.mubr.msk.f32.gmra.mrb[144].mxu0 %vm3937_vm3, %v13825_v11  ;;  %v8532_v58 = vld [vmem:[%s14637_s11 + $0x58] sm:$0xff]  ;;  %v8546_v23 = vld [vmem:[%s14637_s11 + $0x68] sm:$0xff]  ;;  %v8563_v7 = vld [vmem:[%s14637_s11 + $0x90] sm:$0xff] }
 0x849   : > { %10774 = vmatpush3.bf16.msra.mxu0 %v10771_v15  ;;  %v8529_v15 = vld [vmem:[%s14637_s11 + $0x40] sm:$0xff]  ;;  %v10803_v21 = vpack.c.bf16 %v8532_v58, %v8531_v53  ;;  %v8584_v58 = vld [vmem:[%s14637_s11 + $0xd8] sm:$0xff] }
 0x84a   : > { %v5620_v42 = vmax.f32 %v9024_v39, %v9092_v6  ;;  %v9025_v10 = vpop.f32.mrb[130].mxu0  ;;  %v9093_v16 = vpop.f32.mrb[178].mxu1  ;;  %10776 = vmatprep.subr.bf16.mxu0 %v10775_v34  ;;  %v10799_v4 = vpack.c.bf16 %v8530_v32, %v8529_v15  ;;  %v10819_v39 = vpack.c.bf16 %v8564_v44, %v8563_v7  ;;  %v8586_v44 = vld [vmem:[%s14637_s11 + $0xe8] sm:$0xff] }
 0x84b   : > { %v9026_v20 = vpop.f32.mrb[131].mxu0  ;;  %v9094_v51 = vpop.f32.mrb[179].mxu1 }
 0x84c   : > { %v9027_v24 = vadd.f32 %v9026_v20, %v9025_v10  ;;  %v9095_v26 = vadd.f32 %v9094_v51, %v9093_v16  ;;  %9837 = vmatprep.mubr.msk.f32.mxu0 %vm3937_vm3, %v5620_v42 }
 0x84d   : > { %10778 = vmatpush3.bf16.msra.mxu0 %v10775_v34  ;;  %v8545_v34 = vld [vmem:[%s14637_s11 + $0x60] sm:$0xff] }
 0x84e   : > { %v5621_v37 = vmax.f32 %v9027_v24, %v9095_v26  ;;  %v9028_v28 = vpop.f32.mrb[132].mxu0  ;;  %v9096_v30 = vpop.f32.mrb[180].mxu1  ;;  %10780 = vmatprep.subr.bf16.mxu0 %v10779_v19  ;;  %v10807_v41 = vpack.c.bf16 %v8546_v23, %v8545_v34  ;;  %v8602_v34 = vld [vmem:[%s14637_s11 + $0x108] sm:$0xff] }
 0x84f   : > { %v9029_v31 = vpop.f32.mrb[133].mxu0  ;;  %v9097_v33 = vpop.f32.mrb[181].mxu1 }
 0x850   : > { %v9030_v35 = vadd.f32 %v9029_v31, %v9028_v28  ;;  %v9098_v36 = vadd.f32 %v9097_v33, %v9096_v30  ;;  %9838 = vmatmul.mubr.msk.f32.gmra.mrb[146].mxu0 %vm3937_vm3, %v5621_v37  ;;  %v8547_v31 = vld [vmem:[%s14637_s11 + $0x70] sm:$0xff] }
 0x851   : > { %10782 = vmatpush3.bf16.msra.mxu0 %v10779_v19 }
 0x852   : > { %v5622_v45 = vmax.f32 %v9030_v35, %v9098_v36  ;;  %v9031_v52 = vpop.f32.mrb[134].mxu0  ;;  %v9099_v38 = vpop.f32.mrb[182].mxu1  ;;  %9874 = vmatprep.subr.mxu0 %v8502_v43  ;;  %v8565_v35 = vld [vmem:[%s14637_s11 + $0xa0] sm:$0xff]  ;;  %v8566_v36 = vld [vmem:[%s14637_s11 + $0xa8] sm:$0xff] }
 0x853   : > { %v9032_v59 = vpop.f32.mrb[135].mxu0  ;;  %v9100_v29 = vpop.f32.mrb[183].mxu1 }
 0x854   : > { %v9033_v62 = vadd.f32 %v9032_v59, %v9031_v52  ;;  %v9101_v63 = vadd.f32 %v9100_v29, %v9099_v38  ;;  %9840 = vmatprep.mubr.msk.f32.mxu0 %vm3937_vm3, %v5622_v45  ;;  %v10823_v29 = vpack.c.bf16 %v8566_v36, %v8565_v35 }
 0x855   : > { %9875 = vmatpush3.msra.mxu0 %v8502_v43  ;;  %v8548_v43 = vld [vmem:[%s14637_s11 + $0x78] sm:$0xff] }
 0x856   : > { %v5623_v0 = vmax.f32 %v9033_v62, %v9101_v63  ;;  %v9034_v54 = vpop.f32.mrb[136].mxu0  ;;  %v9102_v57 = vpop.f32.mrb[184].mxu1  ;;  %v10811_v59 = vpack.c.bf16 %v8548_v43, %v8547_v31  ;;  %v8549_v62 = vld [vmem:[%s14637_s11 + $0x80] sm:$0xff] }
 0x857   : > { %v9035_v1 = vpop.f32.mrb[137].mxu0  ;;  %v9103_v3 = vpop.f32.mrb[185].mxu1 }
 0x858   : > { %v9036_v5 = vadd.f32 %v9035_v1, %v9034_v54  ;;  %v9104_v8 = vadd.f32 %v9103_v3, %v9102_v57  ;;  %9841 = vmatmul.mubr.msk.f32.gmra.mrb[148].mxu0 %vm3937_vm3, %v5623_v0  ;;  %v8567_v54 = vld [vmem:[%s14637_s11 + $0xb0] sm:$0xff]  ;;  %v8568_v57 = vld [vmem:[%s14637_s11 + $0xb8] sm:$0xff] }
 0x85a   : > { %v5624_v13 = vmax.f32 %v9036_v5, %v9104_v8  ;;  %v9037_v14 = vpop.f32.mrb[138].mxu0  ;;  %v9105_v47 = vpop.f32.mrb[186].mxu1 }
 0x85b   : > { %v9038_v55 = vpop.f32.mrb[139].mxu0  ;;  %v9106_v49 = vpop.f32.mrb[187].mxu1 }
 0x85c   : > { %v9039_v12 = vadd.f32 %v9038_v55, %v9037_v14  ;;  %v9107_v56 = vadd.f32 %v9106_v49, %v9105_v47  ;;  %9843 = vmatprep.mubr.msk.f32.mxu0 %vm3937_vm3, %v5624_v13  ;;  %v8581_v14 = vld [vmem:[%s14637_s11 + $0xc0] sm:$0xff]  ;;  %v8582_v55 = vld [vmem:[%s14637_s11 + $0xc8] sm:$0xff]  ;;  %v8599_v49 = vld [vmem:[%s14637_s11 + $0xf0] sm:$0xff] }
 0x85e   : > { %v5625_v2 = vmax.f32 %v9039_v12, %v9107_v56  ;;  %v8600_v12 = vld [vmem:[%s14637_s11 + $0xf8] sm:$0xff] }
 0x860   : > { %9844 = vmatmul.mubr.msk.f32.gmra.mrb[150].mxu0 %vm3937_vm3, %v5625_v2 }
 0x861   : > { %9876 = vmatprep.mubr.msk.f32.mxu0 %vm3937_vm3, %v13775_v46  ;;  %v5955_v46 = vld [vmem:[%s14637_s11] sm:$0xff] }
 0x864   : > { %9877 = vmatmul.mubr.msk.f32.vlgmr.msra.gmra.mrb[152].mxu0 %vm3937_vm3, %v13785_v60  ;;  %v5956_v60 = vld [vmem:[%s14637_s11 + $0x8] sm:$0xff] }
 0x865   : > { %9879 = vmatprep.mubr.msk.f32.mxu0 %vm3937_vm3, %v13795_v61  ;;  %v8527_v61 = vld [vmem:[%s14637_s11 + $0x30] sm:$0xff] }
 0x868   : > { %9880 = vmatmul.mubr.msk.f32.gmra.mrb[154].mxu0 %vm3937_vm3, %v13805_v9  ;;  %v10783_v9 = vpack.c.bf16 %v5956_v60, %v5955_v46  ;;  %v10831_v60 = vpack.c.bf16 %v8582_v55, %v8581_v14 }
 0x869   : > { %9882 = vmatprep.mubr.msk.f32.mxu0 %vm3937_vm3, %v13815_v17  ;;  %v10795_v17 = vpack.c.bf16 %v8528_v18, %v8527_v61  ;;  %v10843_v61 = vpack.c.bf16 %v8600_v12, %v8599_v49 }
 0x86a   : > { %10784 = vmatprep.subr.bf16.mxu1 %v10783_v9 }
 0x86b   : > { %10796 = vmatprep.subr.bf16.mxu0 %v10795_v17  ;;  %10786 = vmatpush3.bf16.msra.mxu1 %v10783_v9 }
 0x86c   : > { %9883 = vmatmul.mubr.msk.f32.gmra.mrb[156].mxu0 %vm3937_vm3, %v13825_v11  ;;  %10788 = vmatprep.subr.bf16.mxu1 %v10787_v22  ;;  %v10791_v11 = vpack.c.bf16 %v5960_v25, %v5959_v50 }
 0x86d   : > { %9885 = vmatprep.mubr.msk.f32.mxu0 %vm3937_vm3, %v5620_v42  ;;  %10798 = vmatpush3.bf16.msra.mxu0 %v10795_v17 }
 0x86e   : > { %10800 = vmatprep.subr.bf16.mxu0 %v10799_v4 }
 0x86f   : > { %10790 = vmatpush3.bf16.msra.mxu1 %v10787_v22 }
 0x870   : > { %9886 = vmatmul.mubr.msk.f32.gmra.mrb[158].mxu0 %vm3937_vm3, %v5621_v37  ;;  %10792 = vmatprep.subr.bf16.mxu1 %v10791_v11 }
 0x871   : > { %9888 = vmatprep.mubr.msk.f32.mxu0 %vm3937_vm3, %v5622_v45  ;;  %10802 = vmatpush3.bf16.msra.mxu0 %v10799_v4 }
 0x872   : > { %10804 = vmatprep.subr.bf16.mxu0 %v10803_v21 }
 0x873   : > { %10794 = vmatpush3.bf16.msra.mxu1 %v10791_v11  ;;  %v8583_v11 = vld [vmem:[%s14637_s11 + $0xd0] sm:$0xff] }
 0x874   : > { %9889 = vmatmul.mubr.msk.f32.gmra.mrb[160].mxu0 %vm3937_vm3, %v5623_v0  ;;  %10808 = vmatprep.subr.bf16.mxu1 %v10807_v41  ;;  %v8550_v0 = vld [vmem:[%s14637_s11 + $0x88] sm:$0xff]  ;;  %v10835_v23 = vpack.c.bf16 %v8584_v58, %v8583_v11 }
 0x875   : > { %9891 = vmatprep.mubr.msk.f32.mxu0 %vm3937_vm3, %v5624_v13  ;;  %10806 = vmatpush3.bf16.msra.mxu0 %v10803_v21  ;;  %v10815_v8 = vpack.c.bf16 %v8550_v0, %v8549_v62  ;;  %v10827_v13 = vpack.c.bf16 %v8568_v57, %v8567_v54  ;;  %v8601_v21 = vld [vmem:[%s14637_s11 + $0x100] sm:$0xff] }
 0x876   : > { %10820 = vmatprep.subr.bf16.mxu0 %v10819_v39  ;;  %v10847_v7 = vpack.c.bf16 %v8602_v34, %v8601_v21 }
 0x878   : > { %9892 = vmatmul.mubr.msk.f32.gmra.mrb[162].mxu0 %vm3937_vm3, %v5625_v2 }
 0x90b   : > { %v9830_v6 = vpop.f32.mrb[140].mxu0 }
 0x90c   : > { %v5743_v42 = vpop.f32.mrb[141].mxu0 }
 0x913   : > { %v9833_v10 = vpop.f32.mrb[142].mxu0 }
 0x914   : > { %v5753_v16 = vpop.f32.mrb[143].mxu0 }
 0x91b   : > { %v9836_v19 = vpop.f32.mrb[144].mxu0 }
 0x91c   : > { %v5763_v20 = vpop.f32.mrb[145].mxu0 }
 0x923   : > { %v9839_v51 = vpop.f32.mrb[146].mxu0 }
 0x924   : > { %v5773_v24 = vpop.f32.mrb[147].mxu0 }
 0x92b   : > { %v13910_v26 = vpop.f32.mrb[148].mxu0 }
 0x92c   : > { %v13912_v37 = vpop.f32.mrb[149].mxu0 }
 0x933   : > { %v13914_v28 = vpop.f32.mrb[150].mxu0 }
 0x934   : > { %v13916_v30 = vpop.f32.mrb[151].mxu0 }
 0x937   : > { %v9878_v33 = vpop.f32.mrb[152].mxu0 }
 0x938   : > { %v13930_v45 = vmax.f32 %v9830_v6, %v9878_v33  ;;  %v5884_v52 = vpop.f32.mrb[153].mxu0  ;;  %v8604_v6 = vld [vmem:[%s14637_s11 + $0x118] sm:$0xff] }
 0x939   : > { %v13932_v38 = vmax.f32 %v5743_v42, %v5884_v52 }
 0x93b   : > { %v9881_v63 = vpop.f32.mrb[154].mxu0  ;;  %9906 = vmatprep.mubr.msk.f32.mxu1 %vm5961_vm4, %v13932_v38  ;;  %9936 = vmatprep.mubr.msk.f32.mxu0 %vm5961_vm4, %v13932_v38 }
 0x93c   : > { %v13950_v1 = vmax.f32 %v9833_v10, %v9881_v63  ;;  %v5894_v3 = vpop.f32.mrb[155].mxu0  ;;  %9907 = vmatmul.mubr.msk.f32.vlgmr.msra.gmra.mrb[188].mxu1 %vm5961_vm4, %v13930_v45  ;;  %9937 = vmatmul.mubr.msk.f32.vlgmr.msra.gmra.mrb[164].mxu0 %vm5961_vm4, %v13930_v45 }
 0x93d   : > { %v13956_v5 = vmax.f32 %v5753_v16, %v5894_v3  ;;  %10810 = vmatpush3.bf16.msra.mxu1 %v10807_v41  ;;  %10822 = vmatpush3.bf16.msra.mxu0 %v10819_v39  ;;  %v8585_v41 = vld [vmem:[%s14637_s11 + $0xe0] sm:$0xff]  ;;  %v8603_v39 = vld [vmem:[%s14637_s11 + $0x110] sm:$0xff]  ;;  %v6857_v16 = vld [vmem:[%s14638_s12 + $0x8] sm:$0xff] }
 0x93e   : > { %10812 = vmatprep.subr.bf16.mxu1 %v10811_v59  ;;  %10824 = vmatprep.subr.bf16.mxu0 %v10823_v29  ;;  %v10839_v42 = vpack.c.bf16 %v8586_v44, %v8585_v41  ;;  %v10851_v10 = vpack.c.bf16 %v8604_v6, %v8603_v39 }
 0x93f   : > { %v9884_v47 = vpop.f32.mrb[156].mxu0  ;;  %9909 = vmatprep.mubr.msk.f32.mxu1 %vm5961_vm4, %v13956_v5  ;;  %9939 = vmatprep.mubr.msk.f32.mxu0 %vm5961_vm4, %v13956_v5 }
 0x940   : > { %v13974_v56 = vmax.f32 %v9836_v19, %v9884_v47  ;;  %v5904_v2 = vpop.f32.mrb[157].mxu0  ;;  %9910 = vmatmul.mubr.msk.f32.gmra.mrb[190].mxu1 %vm5961_vm4, %v13950_v1  ;;  %9940 = vmatmul.mubr.msk.f32.gmra.mrb[166].mxu0 %vm5961_vm4, %v13950_v1  ;;  %v6859_v19 = vld [vmem:[%s14638_s12 + $0x18] sm:$0xff] }
 0x941   : > { %v13980_v46 = vmax.f32 %v5763_v20, %v5904_v2  ;;  %10814 = vmatpush3.bf16.msra.mxu1 %v10811_v59  ;;  %10826 = vmatpush3.bf16.msra.mxu0 %v10823_v29 }
 0x942   : > { %10816 = vmatprep.subr.bf16.mxu1 %v10815_v8  ;;  %10828 = vmatprep.subr.bf16.mxu0 %v10827_v13 }
 0x943   : > { %v9887_v9 = vpop.f32.mrb[158].mxu0  ;;  %9912 = vmatprep.mubr.msk.f32.mxu1 %vm5961_vm4, %v13980_v46  ;;  %9942 = vmatprep.mubr.msk.f32.mxu0 %vm5961_vm4, %v13980_v46 }
 0x944   : > { %v13986_v18 = vmax.f32 %v9839_v51, %v9887_v9  ;;  %v5914_v17 = vpop.f32.mrb[159].mxu0  ;;  %9913 = vmatmul.mubr.msk.f32.gmra.mrb[192].mxu1 %vm5961_vm4, %v13974_v56  ;;  %9943 = vmatmul.mubr.msk.f32.gmra.mrb[168].mxu0 %vm5961_vm4, %v13974_v56 }
 0x945   : > { %v13992_v48 = vmax.f32 %v5773_v24, %v5914_v17  ;;  %10818 = vmatpush3.bf16.msra.mxu1 %v10815_v8  ;;  %10830 = vmatpush3.bf16.msra.mxu0 %v10827_v13 }
 0x946   : > { %10832 = vmatprep.subr.bf16.mxu1 %v10831_v60  ;;  %10844 = vmatprep.subr.bf16.mxu0 %v10843_v61 }
 0x947   : > { %v9890_v27 = vpop.f32.mrb[160].mxu0  ;;  %9915 = vmatprep.mubr.msk.f32.mxu1 %vm5961_vm4, %v13992_v48  ;;  %9945 = vmatprep.mubr.msk.f32.mxu0 %vm5961_vm4, %v13992_v48 }
 0x948   : > { %v13999_v15 = vmax.f32 %v13910_v26, %v9890_v27  ;;  %v5924_v22 = vpop.f32.mrb[161].mxu0  ;;  %9916 = vmatmul.mubr.msk.f32.gmra.mrb[194].mxu1 %vm5961_vm4, %v13986_v18  ;;  %9946 = vmatmul.mubr.msk.f32.gmra.mrb[170].mxu0 %vm5961_vm4, %v13986_v18 }
 0x949   : > { %v14006_v32 = vmax.f32 %v13912_v37, %v5924_v22 }
 0x94b   : > { %v9893_v4 = vpop.f32.mrb[162].mxu0  ;;  %9918 = vmatprep.mubr.msk.f32.mxu1 %vm5961_vm4, %v14006_v32  ;;  %9948 = vmatprep.mubr.msk.f32.mxu0 %vm5961_vm4, %v14006_v32 }
 0x94c   : > { %v14013_v50 = vmax.f32 %v13914_v28, %v9893_v4  ;;  %v5934_v25 = vpop.f32.mrb[163].mxu0  ;;  %9919 = vmatmul.mubr.msk.f32.gmra.mrb[196].mxu1 %vm5961_vm4, %v13999_v15  ;;  %9949 = vmatmul.mubr.msk.f32.gmra.mrb[172].mxu0 %vm5961_vm4, %v13999_v15 }
 0x94d   : > { %v14020_v53 = vmax.f32 %v13916_v30, %v5934_v25 }
 0x94f   : > { %9921 = vmatprep.mubr.msk.f32.mxu1 %vm5961_vm4, %v14020_v53  ;;  %9951 = vmatprep.mubr.msk.f32.mxu0 %vm5961_vm4, %v14020_v53 }
 0x950   : > { %9922 = vmatmul.mubr.msk.f32.gmra.mrb[198].mxu1 %vm5961_vm4, %v14013_v50  ;;  %9952 = vmatmul.mubr.msk.f32.gmra.mrb[174].mxu0 %vm5961_vm4, %v14013_v50 }
 0x951   : > { %9966 = vmatprep.mubr.msk.f32.mxu1 %vm5961_vm4, %v13932_v38  ;;  %9996 = vmatprep.mubr.msk.f32.mxu0 %vm5961_vm4, %v13932_v38 }
 0x954   : > { %9967 = vmatmul.mubr.msk.f32.vlgmr.msra.gmra.mrb[200].mxu1 %vm5961_vm4, %v13930_v45  ;;  %9997 = vmatmul.mubr.msk.f32.vlgmr.msra.gmra.mrb[176].mxu0 %vm5961_vm4, %v13930_v45 }
 0x955   : > { %9969 = vmatprep.mubr.msk.f32.mxu1 %vm5961_vm4, %v13956_v5  ;;  %9999 = vmatprep.mubr.msk.f32.mxu0 %vm5961_vm4, %v13956_v5 }
 0x956   : > { %10834 = vmatpush3.bf16.msra.mxu1 %v10831_v60  ;;  %10846 = vmatpush3.bf16.msra.mxu0 %v10843_v61 }
 0x957   : > { %10836 = vmatprep.subr.bf16.mxu1 %v10835_v23  ;;  %10848 = vmatprep.subr.bf16.mxu0 %v10847_v7 }
 0x958   : > { %9970 = vmatmul.mubr.msk.f32.gmra.mrb[202].mxu1 %vm5961_vm4, %v13950_v1  ;;  %10000 = vmatmul.mubr.msk.f32.gmra.mrb[178].mxu0 %vm5961_vm4, %v13950_v1 }
 0x959   : > { %9972 = vmatprep.mubr.msk.f32.mxu1 %vm5961_vm4, %v13980_v46  ;;  %10002 = vmatprep.mubr.msk.f32.mxu0 %vm5961_vm4, %v13980_v46 }
 0x95a   : > { %10838 = vmatpush3.bf16.msra.mxu1 %v10835_v23  ;;  %10850 = vmatpush3.bf16.msra.mxu0 %v10847_v7 }
 0x95b   : > { %10840 = vmatprep.subr.bf16.mxu1 %v10839_v42  ;;  %10852 = vmatprep.subr.bf16.mxu0 %v10851_v10 }
 0x95c   : > { %9973 = vmatmul.mubr.msk.f32.gmra.mrb[204].mxu1 %vm5961_vm4, %v13974_v56  ;;  %10003 = vmatmul.mubr.msk.f32.gmra.mrb[180].mxu0 %vm5961_vm4, %v13974_v56 }
 0x95d   : > { %9975 = vmatprep.mubr.msk.f32.mxu1 %vm5961_vm4, %v13992_v48  ;;  %10005 = vmatprep.mubr.msk.f32.mxu0 %vm5961_vm4, %v13992_v48 }
 0x95e   : > { %10842 = vmatpush3.bf16.msra.mxu1 %v10839_v42  ;;  %10854 = vmatpush3.bf16.msra.mxu0 %v10851_v10 }
 0x960   : > { %9976 = vmatmul.mubr.msk.f32.gmra.mrb[206].mxu1 %vm5961_vm4, %v13986_v18  ;;  %10006 = vmatmul.mubr.msk.f32.gmra.mrb[182].mxu0 %vm5961_vm4, %v13986_v18 }
 0x961   : > { %9978 = vmatprep.mubr.msk.f32.mxu1 %vm5961_vm4, %v14006_v32  ;;  %10008 = vmatprep.mubr.msk.f32.mxu0 %vm5961_vm4, %v14006_v32 }
 0x964   : > { %9979 = vmatmul.mubr.msk.f32.gmra.mrb[208].mxu1 %vm5961_vm4, %v13999_v15  ;;  %10009 = vmatmul.mubr.msk.f32.gmra.mrb[184].mxu0 %vm5961_vm4, %v13999_v15 }
 0x965   : > { %9981 = vmatprep.mubr.msk.f32.mxu1 %vm5961_vm4, %v14020_v53  ;;  %10011 = vmatprep.mubr.msk.f32.mxu0 %vm5961_vm4, %v14020_v53 }
 0x968   : > { %9982 = vmatmul.mubr.msk.f32.gmra.mrb[210].mxu1 %vm5961_vm4, %v14013_v50  ;;  %10012 = vmatmul.mubr.msk.f32.gmra.mrb[186].mxu0 %vm5961_vm4, %v14013_v50 }
 0x969   : > { %10026 = vmatprep.mubr.msk.f32.mxu1 %vm5961_vm4, %v13932_v38  ;;  %10056 = vmatprep.mubr.msk.f32.mxu0 %vm5961_vm4, %v13932_v38 }
 0x96c   : > { %10027 = vmatmul.mubr.msk.f32.vlgmr.msra.gmra.mrb[212].mxu1 %vm5961_vm4, %v13930_v45  ;;  %10057 = vmatmul.mubr.msk.f32.vlgmr.msra.gmra.mrb[188].mxu0 %vm5961_vm4, %v13930_v45 }
 0x96d   : > { %10029 = vmatprep.mubr.msk.f32.mxu1 %vm5961_vm4, %v13956_v5  ;;  %10059 = vmatprep.mubr.msk.f32.mxu0 %vm5961_vm4, %v13956_v5 }
 0x970   : > { %10030 = vmatmul.mubr.msk.f32.gmra.mrb[214].mxu1 %vm5961_vm4, %v13950_v1  ;;  %10060 = vmatmul.mubr.msk.f32.gmra.mrb[190].mxu0 %vm5961_vm4, %v13950_v1 }
 0x971   : > { %10032 = vmatprep.mubr.msk.f32.mxu1 %vm5961_vm4, %v13980_v46  ;;  %10062 = vmatprep.mubr.msk.f32.mxu0 %vm5961_vm4, %v13980_v46 }
 0x974   : > { %10033 = vmatmul.mubr.msk.f32.gmra.mrb[216].mxu1 %vm5961_vm4, %v13974_v56  ;;  %10063 = vmatmul.mubr.msk.f32.gmra.mrb[192].mxu0 %vm5961_vm4, %v13974_v56 }
 0x975   : > { %10035 = vmatprep.mubr.msk.f32.mxu1 %vm5961_vm4, %v13992_v48  ;;  %10065 = vmatprep.mubr.msk.f32.mxu0 %vm5961_vm4, %v13992_v48 }
 0x978   : > { %10036 = vmatmul.mubr.msk.f32.gmra.mrb[218].mxu1 %vm5961_vm4, %v13986_v18  ;;  %10066 = vmatmul.mubr.msk.f32.gmra.mrb[194].mxu0 %vm5961_vm4, %v13986_v18 }
 0x979   : > { %10038 = vmatprep.mubr.msk.f32.mxu1 %vm5961_vm4, %v14006_v32  ;;  %10068 = vmatprep.mubr.msk.f32.mxu0 %vm5961_vm4, %v14006_v32 }
 0x97c   : > { %10039 = vmatmul.mubr.msk.f32.gmra.mrb[220].mxu1 %vm5961_vm4, %v13999_v15  ;;  %10069 = vmatmul.mubr.msk.f32.gmra.mrb[196].mxu0 %vm5961_vm4, %v13999_v15 }
 0x97d   : > { %10041 = vmatprep.mubr.msk.f32.mxu1 %vm5961_vm4, %v14020_v53  ;;  %10071 = vmatprep.mubr.msk.f32.mxu0 %vm5961_vm4, %v14020_v53 }
 0x980   : > { %10042 = vmatmul.mubr.msk.f32.gmra.mrb[222].mxu1 %vm5961_vm4, %v14013_v50  ;;  %10072 = vmatmul.mubr.msk.f32.gmra.mrb[198].mxu0 %vm5961_vm4, %v14013_v50 }
 0x981   : > { %7202 = vmatprep.mubr.f32.mxu1 %v6857_v16  ;;  %7342 = vmatprep.mubr.f32.mxu0 %v6859_v19 }
 0xa0f   : > { %v9938_v20 = vpop.f32.mrb[164].mxu0  ;;  %v9908_v51 = vpop.f32.mrb[188].mxu1 }
 0xa10   : > { %6269 = vst.msk [vmem:[#allocation5 + $0x68] sm:$0xff] %vm6123_vm5, %v9938_v20  ;;  %v6209_v24 = vpop.f32.mrb[165].mxu0  ;;  %6125 = vst.msk [vmem:[#allocation5 + $0x8] sm:$0xff] %vm6123_vm5, %v9908_v51  ;;  %v6064_v26 = vpop.f32.mrb[189].mxu1 }
 0xa11   : > { %6268 = vst.msk [vmem:[#allocation5 + $0x60] sm:$0xff] %vm6123_vm5, %v6209_v24  ;;  %6124 = vst.msk [vmem:[#allocation5] sm:$0xff] %vm6123_vm5, %v6064_v26 }
 0xa13   : > { %v9941_v37 = vpop.f32.mrb[166].mxu0  ;;  %v9911_v28 = vpop.f32.mrb[190].mxu1 }
 0xa14   : > { %6271 = vst.msk [vmem:[#allocation5 + $0x78] sm:$0xff] %vm6123_vm5, %v9941_v37  ;;  %v6219_v30 = vpop.f32.mrb[167].mxu0  ;;  %6127 = vst.msk [vmem:[#allocation5 + $0x18] sm:$0xff] %vm6123_vm5, %v9911_v28  ;;  %v6074_v31 = vpop.f32.mrb[191].mxu1 }
 0xa15   : > { %6270 = vst.msk [vmem:[#allocation5 + $0x70] sm:$0xff] %vm6123_vm5, %v6219_v30  ;;  %6126 = vst.msk [vmem:[#allocation5 + $0x10] sm:$0xff] %vm6123_vm5, %v6074_v31 }
 0xa17   : > { %v9944_v33 = vpop.f32.mrb[168].mxu0  ;;  %v9914_v43 = vpop.f32.mrb[192].mxu1  ;;  %v6932_v54 = vld [vmem:[#allocation5 + $0x8] sm:$0xff] }
 0xa18   : > { %6273 = vst.msk [vmem:[#allocation5 + $0x88] sm:$0xff] %vm6123_vm5, %v9944_v33  ;;  %v6229_v35 = vpop.f32.mrb[169].mxu0  ;;  %6129 = vst.msk [vmem:[#allocation5 + $0x28] sm:$0xff] %vm6123_vm5, %v9914_v43  ;;  %v6084_v36 = vpop.f32.mrb[193].mxu1  ;;  %v6931_v0 = vld [vmem:[#allocation5] sm:$0xff] }
 0xa19   : > { %6272 = vst.msk [vmem:[#allocation5 + $0x80] sm:$0xff] %vm6123_vm5, %v6229_v35  ;;  %6128 = vst.msk [vmem:[#allocation5 + $0x20] sm:$0xff] %vm6123_vm5, %v6084_v36  ;;  %v10857_v8 = vpack.c.bf16 %v6932_v54, %v6931_v0 }
 0xa1b   : > { %v9947_v45 = vpop.f32.mrb[170].mxu0  ;;  %v9917_v52 = vpop.f32.mrb[194].mxu1  ;;  %v6934_v49 = vld [vmem:[#allocation5 + $0x18] sm:$0xff] }
 0xa1c   : > { %6275 = vst.msk [vmem:[#allocation5 + $0x98] sm:$0xff] %vm6123_vm5, %v9947_v45  ;;  %v6239_v38 = vpop.f32.mrb[171].mxu0  ;;  %6131 = vst.msk [vmem:[#allocation5 + $0x38] sm:$0xff] %vm6123_vm5, %v9917_v52  ;;  %v6094_v59 = vpop.f32.mrb[195].mxu1  ;;  %v6933_v55 = vld [vmem:[#allocation5 + $0x10] sm:$0xff] }
 0xa1d   : > { %6274 = vst.msk [vmem:[#allocation5 + $0x90] sm:$0xff] %vm6123_vm5, %v6239_v38  ;;  %6130 = vst.msk [vmem:[#allocation5 + $0x30] sm:$0xff] %vm6123_vm5, %v6094_v59  ;;  %v10861_v60 = vpack.c.bf16 %v6934_v49, %v6933_v55 }
 0xa1f   : > { %v9950_v29 = vpop.f32.mrb[172].mxu0  ;;  %v9920_v62 = vpop.f32.mrb[196].mxu1  ;;  %v6948_v63 = vld [vmem:[#allocation5 + $0x88] sm:$0xff] }
 0xa20   : > { %6277 = vst.msk [vmem:[#allocation5 + $0xa8] sm:$0xff] %vm6123_vm5, %v9950_v29  ;;  %v6249_v57 = vpop.f32.mrb[173].mxu0  ;;  %6133 = vst.msk [vmem:[#allocation5 + $0x48] sm:$0xff] %vm6123_vm5, %v9920_v62  ;;  %v6947_v1 = vld [vmem:[#allocation5 + $0x80] sm:$0xff]  ;;  %v6104_v3 = vpop.f32.mrb[197].mxu1  ;;  %v6936_v48 = vld [vmem:[#allocation5 + $0x28] sm:$0xff] }
 0xa21   : > { %6276 = vst.msk [vmem:[#allocation5 + $0xa0] sm:$0xff] %vm6123_vm5, %v6249_v57  ;;  %v10855_v5 = vpack.c.bf16 %v6948_v63, %v6947_v1  ;;  %6132 = vst.msk [vmem:[#allocation5 + $0x40] sm:$0xff] %vm6123_vm5, %v6104_v3  ;;  %v6935_v17 = vld [vmem:[#allocation5 + $0x20] sm:$0xff]  ;;  %v6944_v62 = vld [vmem:[#allocation5 + $0x68] sm:$0xff] }
 0xa22   : > { %v10865_v4 = vpack.c.bf16 %v6936_v48, %v6935_v17  ;;  %v6943_v29 = vld [vmem:[#allocation5 + $0x60] sm:$0xff]  ;;  %v11172_v17 = vmov 0.0|0.0  }
 0xa23   : > { %v9953_v13 = vpop.f32.mrb[174].mxu0  ;;  %10856 = vmatprep.subr.bf16.mxu1 %v10855_v5  ;;  %v9923_v14 = vpop.f32.mrb[198].mxu1  ;;  %v6950_v47 = vld [vmem:[#allocation5 + $0x98] sm:$0xff]  ;;  %v10881_v1 = vpack.c.bf16 %v6944_v62, %v6943_v29 }
 0xa24   : > { %6279 = vst.msk [vmem:[#allocation5 + $0xb8] sm:$0xff] %vm6123_vm5, %v9953_v13  ;;  %v6259_v12 = vpop.f32.mrb[175].mxu0  ;;  %10858 = vmatpush3.bf16.msra.mxu1 %v10857_v8  ;;  %6135 = vst.msk [vmem:[#allocation5 + $0x58] sm:$0xff] %vm6123_vm5, %v9923_v14  ;;  %v6114_v56 = vpop.f32.mrb[199].mxu1  ;;  %v6949_v2 = vld [vmem:[#allocation5 + $0x90] sm:$0xff]  ;;  %v6938_v58 = vld [vmem:[#allocation5 + $0x38] sm:$0xff] }
 0xa25   : > { %6278 = vst.msk [vmem:[#allocation5 + $0xb0] sm:$0xff] %vm6123_vm5, %v6259_v12  ;;  %6134 = vst.msk [vmem:[#allocation5 + $0x50] sm:$0xff] %vm6123_vm5, %v6114_v56  ;;  %v10859_v46 = vpack.c.bf16 %v6950_v47, %v6949_v2  ;;  %v6937_v11 = vld [vmem:[#allocation5 + $0x30] sm:$0xff]  ;;  %v6946_v14 = vld [vmem:[#allocation5 + $0x78] sm:$0xff] }
 0xa26   : > { %v10869_v41 = vpack.c.bf16 %v6938_v58, %v6937_v11  ;;  %v6945_v13 = vld [vmem:[#allocation5 + $0x70] sm:$0xff] }
 0xa27   : > { %v9968_v61 = vpop.f32.mrb[200].mxu1  ;;  %v9998_v9 = vpop.f32.mrb[176].mxu0  ;;  %10860 = vmatprep.subr.bf16.mxu1 %v10859_v46  ;;  %v6952_v18 = vld [vmem:[#allocation5 + $0xa8] sm:$0xff]  ;;  %v10885_v56 = vpack.c.bf16 %v6946_v14, %v6945_v13 }
 0xa28   : > { %6413 = vst.msk [vmem:[#allocation5 + $0xc8] sm:$0xff] %vm6123_vm5, %v9968_v61  ;;  %6557 = vst.msk [vmem:[#allocation5 + $0x128] sm:$0xff] %vm6123_vm5, %v9998_v9  ;;  %v6353_v27 = vpop.f32.mrb[201].mxu1  ;;  %v6497_v15 = vpop.f32.mrb[177].mxu0  ;;  %10862 = vmatpush3.bf16.msra.mxu1 %v10861_v60  ;;  %v6951_v22 = vld [vmem:[#allocation5 + $0xa0] sm:$0xff]  ;;  %v6940_v10 = vld [vmem:[#allocation5 + $0x48] sm:$0xff] }
 0xa29   : > { %6412 = vst.msk [vmem:[#allocation5 + $0xc0] sm:$0xff] %vm6123_vm5, %v6353_v27  ;;  %6556 = vst.msk [vmem:[#allocation5 + $0x120] sm:$0xff] %vm6123_vm5, %v6497_v15  ;;  %v10863_v32 = vpack.c.bf16 %v6952_v18, %v6951_v22  ;;  %v6939_v42 = vld [vmem:[#allocation5 + $0x40] sm:$0xff]  ;;  %v6862_v18 = vld [vmem:[%s14638_s12 + $0x30] sm:$0xff] }
 0xa2a   : > { %v10873_v24 = vpack.c.bf16 %v6940_v10, %v6939_v42  ;;  %v6856_v9 = vld [vmem:[%s14638_s12] sm:$0xff] }
 0xa2b   : > { %v9971_v50 = vpop.f32.mrb[202].mxu1  ;;  %10864 = vmatprep.subr.bf16.mxu1 %v10863_v32  ;;  %v10001_v25 = vpop.f32.mrb[178].mxu0  ;;  %v6954_v53 = vld [vmem:[#allocation5 + $0xb8] sm:$0xff]  ;;  %v6861_v32 = vld [vmem:[%s14638_s12 + $0x28] sm:$0xff] }
 0xa2c   : > { %6415 = vst.msk [vmem:[#allocation5 + $0xd8] sm:$0xff] %vm6123_vm5, %v9971_v50  ;;  %v6363_v21 = vpop.f32.mrb[203].mxu1  ;;  %6559 = vst.msk [vmem:[#allocation5 + $0x138] sm:$0xff] %vm6123_vm5, %v10001_v25  ;;  %10866 = vmatpush3.bf16.msra.mxu1 %v10865_v4  ;;  %v6507_v34 = vpop.f32.mrb[179].mxu0  ;;  %v6953_v23 = vld [vmem:[#allocation5 + $0xb0] sm:$0xff]  ;;  %v6942_v30 = vld [vmem:[#allocation5 + $0x58] sm:$0xff] }
 0xa2d   : > { %6414 = vst.msk [vmem:[#allocation5 + $0xd0] sm:$0xff] %vm6123_vm5, %v6363_v21  ;;  %6558 = vst.msk [vmem:[#allocation5 + $0x130] sm:$0xff] %vm6123_vm5, %v6507_v34  ;;  %v10867_v7 = vpack.c.bf16 %v6954_v53, %v6953_v23  ;;  %v6941_v28 = vld [vmem:[#allocation5 + $0x50] sm:$0xff]  ;;  %v6867_v4 = vld [vmem:[%s14638_s12 + $0x58] sm:$0xff] }
 0xa2e   : > { %v10877_v45 = vpack.c.bf16 %v6942_v30, %v6941_v28  ;;  %v6866_v23 = vld [vmem:[%s14638_s12 + $0x50] sm:$0xff]  ;;  %v6877_v28 = vld [vmem:[%s14638_s12 + $0xa8] sm:$0xff] }
 0xa2f   : > { %v9974_v44 = vpop.f32.mrb[204].mxu1  ;;  %10868 = vmatprep.subr.bf16.mxu1 %v10867_v7  ;;  %v6956_v39 = vld [vmem:[#allocation5 + $0xc8] sm:$0xff]  ;;  %v10004_v6 = vpop.f32.mrb[180].mxu0 }
 0xa30   : > { %6417 = vst.msk [vmem:[#allocation5 + $0xe8] sm:$0xff] %vm6123_vm5, %v9974_v44  ;;  %v6373_v16 = vpop.f32.mrb[205].mxu1  ;;  %10870 = vmatpush3.bf16.msra.mxu1 %v10869_v41  ;;  %v6955_v19 = vld [vmem:[#allocation5 + $0xc0] sm:$0xff]  ;;  %6561 = vst.msk [vmem:[#allocation5 + $0x148] sm:$0xff] %vm6123_vm5, %v10004_v6  ;;  %v6517_v20 = vpop.f32.mrb[181].mxu0 }
 0xa31   : > { %6416 = vst.msk [vmem:[#allocation5 + $0xe0] sm:$0xff] %vm6123_vm5, %v6373_v16  ;;  %v10871_v51 = vpack.c.bf16 %v6956_v39, %v6955_v19  ;;  %6560 = vst.msk [vmem:[#allocation5 + $0x140] sm:$0xff] %vm6123_vm5, %v6517_v20  ;;  %v6872_v44 = vld [vmem:[%s14638_s12 + $0x80] sm:$0xff] }
 0xa33   : > { %v9977_v26 = vpop.f32.mrb[206].mxu1  ;;  %10872 = vmatprep.subr.bf16.mxu1 %v10871_v51  ;;  %v6958_v37 = vld [vmem:[#allocation5 + $0xd8] sm:$0xff]  ;;  %v10007_v31 = vpop.f32.mrb[182].mxu0 }
 0xa34   : > { %6419 = vst.msk [vmem:[#allocation5 + $0xf8] sm:$0xff] %vm6123_vm5, %v9977_v26  ;;  %v6383_v33 = vpop.f32.mrb[207].mxu1  ;;  %10874 = vmatpush3.bf16.msra.mxu1 %v10873_v24  ;;  %v6957_v43 = vld [vmem:[#allocation5 + $0xd0] sm:$0xff]  ;;  %6563 = vst.msk [vmem:[#allocation5 + $0x158] sm:$0xff] %vm6123_vm5, %v10007_v31  ;;  %v6527_v35 = vpop.f32.mrb[183].mxu0  ;;  %v6871_v24 = vld [vmem:[%s14638_s12 + $0x78] sm:$0xff] }
 0xa35   : > { %6418 = vst.msk [vmem:[#allocation5 + $0xf0] sm:$0xff] %vm6123_vm5, %v6383_v33  ;;  %v10875_v36 = vpack.c.bf16 %v6958_v37, %v6957_v43  ;;  %6562 = vst.msk [vmem:[#allocation5 + $0x150] sm:$0xff] %vm6123_vm5, %v6527_v35  ;;  %v6968_v31 = vld [vmem:[#allocation5 + $0x128] sm:$0xff]  ;;  %v6969_v14 = vld [vmem:[#allocation5 + $0x130] sm:$0xff] }
 0xa37   : > { %10876 = vmatprep.subr.bf16.mxu1 %v10875_v36  ;;  %v9980_v52 = vpop.f32.mrb[208].mxu1  ;;  %v10010_v38 = vpop.f32.mrb[184].mxu0  ;;  %v6960_v59 = vld [vmem:[#allocation5 + $0xe8] sm:$0xff] }
 0xa38   : > { %10878 = vmatpush3.bf16.msra.mxu1 %v10877_v45  ;;  %6421 = vst.msk [vmem:[#allocation5 + $0x108] sm:$0xff] %vm6123_vm5, %v9980_v52  ;;  %6565 = vst.msk [vmem:[#allocation5 + $0x168] sm:$0xff] %vm6123_vm5, %v10010_v38  ;;  %v6959_v63 = vld [vmem:[#allocation5 + $0xe0] sm:$0xff]  ;;  %v6393_v0 = vpop.f32.mrb[209].mxu1  ;;  %v6537_v54 = vpop.f32.mrb[185].mxu0 }
 0xa39   : > { %v10879_v57 = vpack.c.bf16 %v6960_v59, %v6959_v63  ;;  %6420 = vst.msk [vmem:[#allocation5 + $0x100] sm:$0xff] %vm6123_vm5, %v6393_v0  ;;  %6564 = vst.msk [vmem:[#allocation5 + $0x160] sm:$0xff] %vm6123_vm5, %v6537_v54  ;;  %v6967_v45 = vld [vmem:[#allocation5 + $0x120] sm:$0xff] }
 0xa3a   : > { %v6876_v59 = vld [vmem:[%s14638_s12 + $0xa0] sm:$0xff]  ;;  %v10897_v54 = vpack.c.bf16 %v6968_v31, %v6967_v45 }
 0xa3b   : > { %10880 = vmatprep.subr.bf16.mxu1 %v10879_v57  ;;  %v9983_v3 = vpop.f32.mrb[210].mxu1  ;;  %v10013_v5 = vpop.f32.mrb[186].mxu0  ;;  %v6962_v8 = vld [vmem:[#allocation5 + $0xf8] sm:$0xff]  ;;  %v6882_v57 = vld [vmem:[%s14638_s12 + $0xd0] sm:$0xff] }
 0xa3c   : > { %10882 = vmatpush3.bf16.msra.mxu1 %v10881_v1  ;;  %6423 = vst.msk [vmem:[#allocation5 + $0x118] sm:$0xff] %vm6123_vm5, %v9983_v3  ;;  %6567 = vst.msk [vmem:[#allocation5 + $0x178] sm:$0xff] %vm6123_vm5, %v10013_v5  ;;  %v6403_v47 = vpop.f32.mrb[211].mxu1  ;;  %v6547_v55 = vpop.f32.mrb[187].mxu0  ;;  %v6961_v49 = vld [vmem:[#allocation5 + $0xf0] sm:$0xff]  ;;  %v6970_v1 = vld [vmem:[#allocation5 + $0x138] sm:$0xff] }
 0xa3d   : > { %6422 = vst.msk [vmem:[#allocation5 + $0x110] sm:$0xff] %vm6123_vm5, %v6403_v47  ;;  %6566 = vst.msk [vmem:[#allocation5 + $0x170] sm:$0xff] %vm6123_vm5, %v6547_v55  ;;  %v10883_v12 = vpack.c.bf16 %v6962_v8, %v6961_v49  ;;  %v6881_v49 = vld [vmem:[%s14638_s12 + $0xc8] sm:$0xff] }
 0xa3f   : > { %v10028_v2 = vpop.f32.mrb[212].mxu1  ;;  %v10058_v46 = vpop.f32.mrb[188].mxu0  ;;  %10884 = vmatprep.subr.bf16.mxu1 %v10883_v12  ;;  %v6964_v58 = vld [vmem:[#allocation5 + $0x108] sm:$0xff] }
 0xa40   : > { %6701 = vst.msk [vmem:[#allocation5 + $0x188] sm:$0xff] %vm6123_vm5, %v10028_v2  ;;  %6845 = vst.msk [vmem:[#allocation5 + $0x1e8] sm:$0xff] %vm6123_vm5, %v10058_v46  ;;  %v6641_v60 = vpop.f32.mrb[213].mxu1  ;;  %v6785_v61 = vpop.f32.mrb[189].mxu0  ;;  %10886 = vmatpush3.bf16.msra.mxu1 %v10885_v56  ;;  %v6963_v11 = vld [vmem:[#allocation5 + $0x100] sm:$0xff] }
 0xa41   : > { %6700 = vst.msk [vmem:[#allocation5 + $0x180] sm:$0xff] %vm6123_vm5, %v6641_v60  ;;  %6844 = vst.msk [vmem:[#allocation5 + $0x1e0] sm:$0xff] %vm6123_vm5, %v6785_v61  ;;  %10919 = vmatprep.subr.bf16.mxu1 %v11172_v17  ;;  %v10889_v39 = vpack.c.bf16 %v6964_v58, %v6963_v11  ;;  %v10901_v60 = vpack.c.bf16 %v6970_v1, %v6969_v14  ;;  %v6887_v61 = vld [vmem:[%s14638_s12 + $0xf8] sm:$0xff]  ;;  %v6973_v58 = vld [vmem:[#allocation5 + $0x150] sm:$0xff] }
 0xa42   : > { %v6891_v11 = vld [vmem:[%s14638_s12 + $0x118] sm:$0xff]  ;;  %v6868_v1 = vld [vmem:[%s14638_s12 + $0x60] sm:$0xff] }
 0xa43   : > { %v10031_v48 = vpop.f32.mrb[214].mxu1  ;;  %v10061_v27 = vpop.f32.mrb[190].mxu0  ;;  %7203 = vmatmul.mubr.f32.vlgmr.msra.gmra.mrb[224].mxu1 %v6856_v9  ;;  %v6966_v19 = vld [vmem:[#allocation5 + $0x118] sm:$0xff]  ;;  %v6972_v9 = vld [vmem:[#allocation5 + $0x148] sm:$0xff] }
 0xa44   : > { %6703 = vst.msk [vmem:[#allocation5 + $0x198] sm:$0xff] %vm6123_vm5, %v10031_v48  ;;  %6847 = vst.msk [vmem:[#allocation5 + $0x1f8] sm:$0xff] %vm6123_vm5, %v10061_v27  ;;  %v6651_v15 = vpop.f32.mrb[215].mxu1  ;;  %v6795_v22 = vpop.f32.mrb[191].mxu0  ;;  %7207 = vmatprep.mubr.f32.mxu1 %v6862_v18  ;;  %v6965_v16 = vld [vmem:[#allocation5 + $0x110] sm:$0xff]  ;;  %v6971_v27 = vld [vmem:[#allocation5 + $0x140] sm:$0xff] }
 0xa45   : > { %6702 = vst.msk [vmem:[#allocation5 + $0x190] sm:$0xff] %vm6123_vm5, %v6651_v15  ;;  %6846 = vst.msk [vmem:[#allocation5 + $0x1f0] sm:$0xff] %vm6123_vm5, %v6795_v22  ;;  %v10893_v30 = vpack.c.bf16 %v6966_v19, %v6965_v16  ;;  %v6886_v15 = vld [vmem:[%s14638_s12 + $0xf0] sm:$0xff]  ;;  %v6897_v16 = vld [vmem:[%s14638_s12 + $0x148] sm:$0xff] }
 0xa46   : > { %v6927_v14 = vld [vmem:[%s14638_s12 + $0x238] sm:$0xff] }
 0xa47   : > { %v10034_v50 = vpop.f32.mrb[216].mxu1  ;;  %v10064_v25 = vpop.f32.mrb[192].mxu0  ;;  %7208 = vmatmul.mubr.f32.gmra.mrb[226].mxu1 %v6861_v32  ;;  %v6980_v53 = vld [vmem:[#allocation5 + $0x188] sm:$0xff] }
 0xa48   : > { %6705 = vst.msk [vmem:[#allocation5 + $0x1a8] sm:$0xff] %vm6123_vm5, %v10034_v50  ;;  %6849 = vst.msk [vmem:[#allocation5 + $0x208] sm:$0xff] %vm6123_vm5, %v10064_v25  ;;  %v6661_v21 = vpop.f32.mrb[217].mxu1  ;;  %v6805_v34 = vpop.f32.mrb[193].mxu0  ;;  %7212 = vmatprep.mubr.f32.mxu1 %v6867_v4  ;;  %v6979_v7 = vld [vmem:[#allocation5 + $0x180] sm:$0xff] }
 0xa49   : > { %6704 = vst.msk [vmem:[#allocation5 + $0x1a0] sm:$0xff] %vm6123_vm5, %v6661_v21  ;;  %6848 = vst.msk [vmem:[#allocation5 + $0x200] sm:$0xff] %vm6123_vm5, %v6805_v34  ;;  %v10887_v41 = vpack.c.bf16 %v6980_v53, %v6979_v7  ;;  %v6892_v25 = vld [vmem:[%s14638_s12 + $0x120] sm:$0xff]  ;;  %v10905_v53 = vpack.c.bf16 %v6972_v9, %v6971_v27  ;;  %v6974_v21 = vld [vmem:[#allocation5 + $0x158] sm:$0xff] }
 0xa4a   : > { %v6992_v7 = vld [vmem:[#allocation5 + $0x1e8] sm:$0xff]  ;;  %v6894_v9 = vld [vmem:[%s14638_s12 + $0x130] sm:$0xff]  ;;  %v6899_v27 = vld [vmem:[%s14638_s12 + $0x158] sm:$0xff] }
 0xa4b   : > { %v10037_v6 = vpop.f32.mrb[218].mxu1  ;;  %v10067_v42 = vpop.f32.mrb[194].mxu0  ;;  %7213 = vmatmul.mubr.f32.gmra.mrb[228].mxu1 %v6866_v23  ;;  %10888 = vmatprep.subr.bf16.mxu0 %v10887_v41  ;;  %v6982_v10 = vld [vmem:[#allocation5 + $0x198] sm:$0xff] }
 0xa4c   : > { %6707 = vst.msk [vmem:[#allocation5 + $0x1b8] sm:$0xff] %vm6123_vm5, %v10037_v6  ;;  %6851 = vst.msk [vmem:[#allocation5 + $0x218] sm:$0xff] %vm6123_vm5, %v10067_v42  ;;  %v6671_v20 = vpop.f32.mrb[219].mxu1  ;;  %v6815_v51 = vpop.f32.mrb[195].mxu0  ;;  %10890 = vmatpush3.bf16.msra.mxu0 %v10889_v39  ;;  %7217 = vmatprep.mubr.f32.mxu1 %v6872_v44  ;;  %v6981_v26 = vld [vmem:[#allocation5 + $0x190] sm:$0xff]  ;;  %v6991_v39 = vld [vmem:[#allocation5 + $0x1e0] sm:$0xff] }
 0xa4d   : > { %6706 = vst.msk [vmem:[#allocation5 + $0x1b0] sm:$0xff] %vm6123_vm5, %v6671_v20  ;;  %6850 = vst.msk [vmem:[#allocation5 + $0x210] sm:$0xff] %vm6123_vm5, %v6815_v51  ;;  %v10891_v37 = vpack.c.bf16 %v6982_v10, %v6981_v26  ;;  %v10909_v10 = vpack.c.bf16 %v6974_v21, %v6973_v58  ;;  %v10911_v19 = vpack.c.bf16 %v6992_v7, %v6991_v39  ;;  %v6975_v20 = vld [vmem:[#allocation5 + $0x160] sm:$0xff]  ;;  %v6976_v51 = vld [vmem:[#allocation5 + $0x168] sm:$0xff] }
 0xa4e   : > { %v6993_v26 = vld [vmem:[#allocation5 + $0x1f0] sm:$0xff]  ;;  %v6913_v21 = vld [vmem:[%s14638_s12 + $0x1c8] sm:$0xff]  ;;  %v6923_v39 = vld [vmem:[%s14638_s12 + $0x218] sm:$0xff] }
 0xa4f   : > { %v10040_v33 = vpop.f32.mrb[220].mxu1  ;;  %v10070_v43 = vpop.f32.mrb[196].mxu0  ;;  %7218 = vmatmul.mubr.f32.gmra.mrb[230].mxu1 %v6871_v24  ;;  %10892 = vmatprep.subr.bf16.mxu0 %v10891_v37  ;;  %v6984_v35 = vld [vmem:[#allocation5 + $0x1a8] sm:$0xff]  ;;  %v6896_v24 = vld [vmem:[%s14638_s12 + $0x140] sm:$0xff]  ;;  %v6994_v37 = vld [vmem:[#allocation5 + $0x1f8] sm:$0xff] }
 0xa50   : > { %v6996_v36 = vld [vmem:[#allocation5 + $0x208] sm:$0xff]  ;;  %6709 = vst.msk [vmem:[#allocation5 + $0x1c8] sm:$0xff] %vm6123_vm5, %v10040_v33  ;;  %6853 = vst.msk [vmem:[#allocation5 + $0x228] sm:$0xff] %vm6123_vm5, %v10070_v43  ;;  %v6681_v52 = vpop.f32.mrb[221].mxu1  ;;  %v6825_v38 = vpop.f32.mrb[197].mxu0  ;;  %10894 = vmatpush3.bf16.msra.mxu0 %v10893_v30  ;;  %7222 = vmatprep.mubr.f32.mxu1 %v6877_v28  ;;  %v6983_v29 = vld [vmem:[#allocation5 + $0x1a0] sm:$0xff]  ;;  %v10913_v30 = vpack.c.bf16 %v6976_v51, %v6975_v20  ;;  %v10915_v31 = vpack.c.bf16 %v6994_v37, %v6993_v26 }
 0xa51   : > { %v6995_v62 = vld [vmem:[#allocation5 + $0x200] sm:$0xff]  ;;  %6708 = vst.msk [vmem:[#allocation5 + $0x1c0] sm:$0xff] %vm6123_vm5, %v6681_v52  ;;  %6852 = vst.msk [vmem:[#allocation5 + $0x220] sm:$0xff] %vm6123_vm5, %v6825_v38  ;;  %v10895_v63 = vpack.c.bf16 %v6984_v35, %v6983_v29  ;;  %v6902_v28 = vld [vmem:[%s14638_s12 + $0x170] sm:$0xff] }
 0xa52   : > { %v10920_v0 = vpack.c.bf16 %v6996_v36, %v6995_v62  ;;  %v6977_v33 = vld [vmem:[#allocation5 + $0x170] sm:$0xff]  ;;  %v6978_v43 = vld [vmem:[#allocation5 + $0x178] sm:$0xff]  ;;  %v6901_v35 = vld [vmem:[%s14638_s12 + $0x168] sm:$0xff] }
 0xa53   : > { %v10043_v3 = vpop.f32.mrb[222].mxu1  ;;  %v10073_v5 = vpop.f32.mrb[198].mxu0  ;;  %7223 = vmatmul.mubr.f32.gmra.mrb[232].mxu1 %v6876_v59  ;;  %10896 = vmatprep.subr.bf16.mxu0 %v10895_v63  ;;  %v6986_v8 = vld [vmem:[#allocation5 + $0x1b8] sm:$0xff]  ;;  %v10917_v45 = vpack.c.bf16 %v6978_v43, %v6977_v33  ;;  %v6906_v52 = vld [vmem:[%s14638_s12 + $0x190] sm:$0xff]  ;;  %v6912_v59 = vld [vmem:[%s14638_s12 + $0x1c0] sm:$0xff] }
 0xa54   : > { %v6998_v13 = vld [vmem:[#allocation5 + $0x218] sm:$0xff]  ;;  %6711 = vst.msk [vmem:[#allocation5 + $0x1d8] sm:$0xff] %vm6123_vm5, %v10043_v3  ;;  %6855 = vst.msk [vmem:[#allocation5 + $0x238] sm:$0xff] %vm6123_vm5, %v10073_v5  ;;  %10921 = vmatpush3.bf16.msra.mxu1 %v10920_v0  ;;  %v6691_v47 = vpop.f32.mrb[223].mxu1  ;;  %v6835_v55 = vpop.f32.mrb[199].mxu0  ;;  %10898 = vmatpush3.bf16.msra.mxu0 %v10897_v54  ;;  %v6985_v12 = vld [vmem:[#allocation5 + $0x1b0] sm:$0xff] }
 0xa55   : > { %v6997_v56 = vld [vmem:[#allocation5 + $0x210] sm:$0xff]  ;;  %6710 = vst.msk [vmem:[#allocation5 + $0x1d0] sm:$0xff] %vm6123_vm5, %v6691_v47  ;;  %6854 = vst.msk [vmem:[#allocation5 + $0x230] sm:$0xff] %vm6123_vm5, %v6835_v55  ;;  %7227 = vmatprep.mubr.f32.mxu1 %v6882_v57  ;;  %10922 = vmatprep.subr.bf16.mxu1 %v11172_v17  ;;  %v10899_v2 = vpack.c.bf16 %v6986_v8, %v6985_v12  ;;  %v6907_v36 = vld [vmem:[%s14638_s12 + $0x198] sm:$0xff] }
 0xa56   : > { %v10923_v46 = vpack.c.bf16 %v6998_v13, %v6997_v56  ;;  %v6858_v38 = vld [vmem:[%s14638_s12 + $0x10] sm:$0xff]  ;;  %v6864_v29 = vld [vmem:[%s14638_s12 + $0x40] sm:$0xff]  ;;  %v6911_v62 = vld [vmem:[%s14638_s12 + $0x1b8] sm:$0xff] }
 0xa57   : > { %7228 = vmatmul.mubr.f32.gmra.mrb[234].mxu1 %v6881_v49  ;;  %10900 = vmatprep.subr.bf16.mxu0 %v10899_v2  ;;  %v6988_v18 = vld [vmem:[#allocation5 + $0x1c8] sm:$0xff]  ;;  %v6863_v63 = vld [vmem:[%s14638_s12 + $0x38] sm:$0xff]  ;;  %v6916_v57 = vld [vmem:[%s14638_s12 + $0x1e0] sm:$0xff] }
 0xa58   : > { %v7000_v48 = vld [vmem:[#allocation5 + $0x228] sm:$0xff]  ;;  %10924 = vmatpush3.bf16.msra.mxu1 %v10923_v46  ;;  %10902 = vmatpush3.bf16.msra.mxu0 %v10901_v60  ;;  %v6987_v22 = vld [vmem:[#allocation5 + $0x1c0] sm:$0xff]  ;;  %v6922_v3 = vld [vmem:[%s14638_s12 + $0x210] sm:$0xff] }
 0xa59   : > { %v6999_v32 = vld [vmem:[#allocation5 + $0x220] sm:$0xff]  ;;  %7232 = vmatprep.mubr.f32.mxu1 %v6887_v61  ;;  %10925 = vmatprep.subr.bf16.mxu1 %v11172_v17  ;;  %v10903_v4 = vpack.c.bf16 %v6988_v18, %v6987_v22  ;;  %v6917_v0 = vld [vmem:[%s14638_s12 + $0x1e8] sm:$0xff]  ;;  %v6874_v5 = vld [vmem:[%s14638_s12 + $0x90] sm:$0xff] }
 0xa5a   : > { %v10926_v50 = vpack.c.bf16 %v7000_v48, %v6999_v32  ;;  %v6869_v54 = vld [vmem:[%s14638_s12 + $0x68] sm:$0xff]  ;;  %v6879_v47 = vld [vmem:[%s14638_s12 + $0xb8] sm:$0xff]  ;;  %v6926_v55 = vld [vmem:[%s14638_s12 + $0x230] sm:$0xff] }
 0xa5b   : > { %7233 = vmatmul.mubr.f32.gmra.mrb[236].mxu1 %v6886_v15  ;;  %10904 = vmatprep.subr.bf16.mxu0 %v10903_v4  ;;  %v6990_v34 = vld [vmem:[#allocation5 + $0x1d8] sm:$0xff]  ;;  %v6921_v8 = vld [vmem:[%s14638_s12 + $0x208] sm:$0xff]  ;;  %v6878_v49 = vld [vmem:[%s14638_s12 + $0xb0] sm:$0xff] }
 0xa5c   : > { %v7002_v23 = vld [vmem:[#allocation5 + $0x238] sm:$0xff]  ;;  %10927 = vmatpush3.bf16.msra.mxu1 %v10926_v50  ;;  %10906 = vmatpush3.bf16.msra.mxu0 %v10905_v53  ;;  %v6989_v41 = vld [vmem:[#allocation5 + $0x1d0] sm:$0xff]  ;;  %v6873_v13 = vld [vmem:[%s14638_s12 + $0x88] sm:$0xff] }
 0xa5d   : > { %v7001_v44 = vld [vmem:[#allocation5 + $0x230] sm:$0xff]  ;;  %7237 = vmatprep.mubr.f32.mxu1 %v6892_v25  ;;  %10928 = vmatprep.subr.bf16.mxu1 %v11172_v17  ;;  %v10907_v6 = vpack.c.bf16 %v6990_v34, %v6989_v41  ;;  %v6884_v12 = vld [vmem:[%s14638_s12 + $0xe0] sm:$0xff]  ;;  %v6883_v56 = vld [vmem:[%s14638_s12 + $0xd8] sm:$0xff] }
 0xa5e   : > { %v10929_v42 = vpack.c.bf16 %v7002_v23, %v7001_v44  ;;  %v6860_v2 = vld [vmem:[%s14638_s12 + $0x20] sm:$0xff]  ;;  %v6889_v46 = vld [vmem:[%s14638_s12 + $0x108] sm:$0xff]  ;;  %v6870_v48 = vld [vmem:[%s14638_s12 + $0x70] sm:$0xff] }
 0xa5f   : > { %7238 = vmatmul.mubr.f32.gmra.mrb[238].mxu1 %v6891_v11  ;;  %10908 = vmatprep.subr.bf16.mxu0 %v10907_v6  ;;  %v6888_v60 = vld [vmem:[%s14638_s12 + $0x100] sm:$0xff]  ;;  %v6865_v61 = vld [vmem:[%s14638_s12 + $0x48] sm:$0xff]  ;;  %v6898_v15 = vld [vmem:[%s14638_s12 + $0x150] sm:$0xff] }
 0xa60   : > { %10930 = vmatpush3.bf16.msra.mxu1 %v10929_v42  ;;  %10910 = vmatpush3.bf16.msra.mxu0 %v10909_v10  ;;  %v6893_v18 = vld [vmem:[%s14638_s12 + $0x128] sm:$0xff]  ;;  %v6875_v22 = vld [vmem:[%s14638_s12 + $0x98] sm:$0xff]  ;;  %v6904_v32 = vld [vmem:[%s14638_s12 + $0x180] sm:$0xff] }
 0xa61   : > { %10912 = vmatprep.subr.bf16.mxu0 %v10911_v19  ;;  %7242 = vmatprep.mubr.f32.mxu1 %v6897_v16  ;;  %v6903_v4 = vld [vmem:[%s14638_s12 + $0x178] sm:$0xff]  ;;  %v6880_v50 = vld [vmem:[%s14638_s12 + $0xc0] sm:$0xff]  ;;  %v6909_v25 = vld [vmem:[%s14638_s12 + $0x1a8] sm:$0xff] }
 0xa62   : > { %v6908_v53 = vld [vmem:[%s14638_s12 + $0x1a0] sm:$0xff]  ;;  %v6885_v11 = vld [vmem:[%s14638_s12 + $0xe8] sm:$0xff]  ;;  %v6914_v58 = vld [vmem:[%s14638_s12 + $0x1d0] sm:$0xff] }
 0xa63   : > { %7243 = vmatmul.mubr.f32.gmra.mrb[240].mxu1 %v6896_v24  ;;  %v6890_v34 = vld [vmem:[%s14638_s12 + $0x110] sm:$0xff]  ;;  %v6919_v23 = vld [vmem:[%s14638_s12 + $0x1f8] sm:$0xff]  ;;  %v6924_v44 = vld [vmem:[%s14638_s12 + $0x220] sm:$0xff] }
 0xa64   : > { %10914 = vmatpush3.bf16.msra.mxu0 %v10913_v30  ;;  %7247 = vmatprep.mubr.f32.mxu1 %v6902_v28  ;;  %v6918_v7 = vld [vmem:[%s14638_s12 + $0x1f0] sm:$0xff]  ;;  %v6895_v41 = vld [vmem:[%s14638_s12 + $0x138] sm:$0xff]  ;;  %v6900_v6 = vld [vmem:[%s14638_s12 + $0x160] sm:$0xff] }
 0xa65   : > { %10916 = vmatprep.subr.bf16.mxu0 %v10915_v31  ;;  %v6929_v42 = vld [vmem:[%s14638_s12 + $0x248] sm:$0xff]  ;;  %v6928_v10 = vld [vmem:[%s14638_s12 + $0x240] sm:$0xff]  ;;  %v6910_v19 = vld [vmem:[%s14638_s12 + $0x1b0] sm:$0xff] }
 0xa66   : > { %v6905_v16 = vld [vmem:[%s14638_s12 + $0x188] sm:$0xff]  ;;  %v6915_v20 = vld [vmem:[%s14638_s12 + $0x1d8] sm:$0xff]  ;;  %v6920_v51 = vld [vmem:[%s14638_s12 + $0x200] sm:$0xff] }
 0xa67   : > { %7248 = vmatmul.mubr.f32.gmra.mrb[242].mxu1 %v6901_v35  ;;  %v6925_v24 = vld [vmem:[%s14638_s12 + $0x228] sm:$0xff]  ;;  %v6930_v26 = vld [vmem:[%s14638_s12 + $0x250] sm:$0xff] }
 0xa68   : > { %10918 = vmatpush3.bf16.msra.mxu0 %v10917_v45  ;;  %7252 = vmatprep.mubr.f32.mxu1 %v6907_v36 }
 0xa69   : > { %10931 = vmatprep.subr.bf16.mxu0 %v11172_v17 }
 0xa6b   : > { %7253 = vmatmul.mubr.f32.gmra.mrb[244].mxu1 %v6906_v52  ;;  %7343 = vmatmul.mubr.f32.vlgmr.msra.gmra.mrb[200].mxu0 %v6858_v38 }
 0xa6c   : > { %7257 = vmatprep.mubr.f32.mxu1 %v6912_v59  ;;  %7347 = vmatprep.mubr.f32.mxu0 %v6864_v29 }
 0xa6f   : > { %7258 = vmatmul.mubr.f32.gmra.mrb[246].mxu1 %v6911_v62  ;;  %7348 = vmatmul.mubr.f32.gmra.mrb[202].mxu0 %v6863_v63 }
 0xa70   : > { %7262 = vmatprep.mubr.f32.mxu1 %v6917_v0  ;;  %7352 = vmatprep.mubr.f32.mxu0 %v6869_v54 }
 0xa73   : > { %7263 = vmatmul.mubr.f32.gmra.mrb[248].mxu1 %v6916_v57  ;;  %7353 = vmatmul.mubr.f32.gmra.mrb[204].mxu0 %v6868_v1 }
 0xa74   : > { %7267 = vmatprep.mubr.f32.mxu1 %v6922_v3  ;;  %7357 = vmatprep.mubr.f32.mxu0 %v6874_v5 }
 0xa77   : > { %7268 = vmatmul.mubr.f32.gmra.mrb[250].mxu1 %v6921_v8  ;;  %7358 = vmatmul.mubr.f32.gmra.mrb[206].mxu0 %v6873_v13 }
 0xa78   : > { %7272 = vmatprep.mubr.f32.mxu1 %v6927_v14  ;;  %7362 = vmatprep.mubr.f32.mxu0 %v6879_v47 }
 0xa7b   : > { %7273 = vmatmul.mubr.f32.gmra.mrb[252].mxu1 %v6926_v55  ;;  %7363 = vmatmul.mubr.f32.gmra.mrb[208].mxu0 %v6878_v49 }
 0xa7c   : > { %7367 = vmatprep.mubr.f32.mxu0 %v6884_v12  ;;  %10090 = vmatprep.mubr.msk.f32.mxu1 %vm11173_vm6, %v11170_v40 }
 0xa7f   : > { %7368 = vmatmul.mubr.f32.gmra.mrb[210].mxu0 %v6883_v56  ;;  %10091 = vmatmul.mubr.msk.f32.vlgmr.msra.gmra.mrb[254].mxu1 %vm2588_vm1, %v6860_v2 }
 0xa80   : > { %7372 = vmatprep.mubr.f32.mxu0 %v6889_v46  ;;  %10093 = vmatprep.mubr.msk.f32.mxu1 %vm11173_vm6, %v11170_v40  ;;  %v7021_v46 = vpop.permute.xlu0 %7020 }
 0xa83   : > { %7373 = vmatmul.mubr.f32.gmra.mrb[212].mxu0 %v6888_v60  ;;  %10094 = vmatmul.mubr.msk.f32.gmra.mrb[0].mxu1 %vm2588_vm1, %v6865_v61 }
 0xa84   : > { %7377 = vmatprep.mubr.f32.mxu0 %v6894_v9  ;;  %10096 = vmatprep.mubr.msk.f32.mxu1 %vm11173_vm6, %v11170_v40 }
 0xa87   : > { %7378 = vmatmul.mubr.f32.gmra.mrb[214].mxu0 %v6893_v18  ;;  %10097 = vmatmul.mubr.msk.f32.gmra.mrb[2].mxu1 %vm2588_vm1, %v6870_v48 }
 0xa88   : > { %7382 = vmatprep.mubr.f32.mxu0 %v6899_v27  ;;  %10099 = vmatprep.mubr.msk.f32.mxu1 %vm11173_vm6, %v11170_v40 }
 0xa8b   : > { %7383 = vmatmul.mubr.f32.gmra.mrb[216].mxu0 %v6898_v15  ;;  %10100 = vmatmul.mubr.msk.f32.gmra.mrb[4].mxu1 %vm2588_vm1, %v6875_v22  ;;  %v7026_v22 = vpop.permute.xlu1 %7025 }
 0xa8c   : > { %7387 = vmatprep.mubr.f32.mxu0 %v6904_v32  ;;  %10102 = vmatprep.mubr.msk.f32.mxu1 %vm11173_vm6, %v11170_v40 }
 0xa8f   : > { %7388 = vmatmul.mubr.f32.gmra.mrb[218].mxu0 %v6903_v4  ;;  %10103 = vmatmul.mubr.msk.f32.gmra.mrb[6].mxu1 %vm2588_vm1, %v6880_v50 }
 0xa90   : > { %7392 = vmatprep.mubr.f32.mxu0 %v6909_v25  ;;  %10105 = vmatprep.mubr.msk.f32.mxu1 %vm11173_vm6, %v11170_v40 }
 0xa93   : > { %7393 = vmatmul.mubr.f32.gmra.mrb[220].mxu0 %v6908_v53  ;;  %10106 = vmatmul.mubr.msk.f32.gmra.mrb[8].mxu1 %vm2588_vm1, %v6885_v11 }
 0xa94   : > { %7397 = vmatprep.mubr.f32.mxu0 %v6914_v58  ;;  %10108 = vmatprep.mubr.msk.f32.mxu1 %vm11173_vm6, %v11170_v40 }
 0xa97   : > { %7398 = vmatmul.mubr.f32.gmra.mrb[222].mxu0 %v6913_v21  ;;  %10109 = vmatmul.mubr.msk.f32.gmra.mrb[10].mxu1 %vm2588_vm1, %v6890_v34  ;;  %v7031_v34 = vpop.permute.xlu0 %7030 }
 0xa98   : > { %7402 = vmatprep.mubr.f32.mxu0 %v6919_v23  ;;  %10111 = vmatprep.mubr.msk.f32.mxu1 %vm11173_vm6, %v11170_v40 }
 0xa9b   : > { %7403 = vmatmul.mubr.f32.gmra.mrb[224].mxu0 %v6918_v7  ;;  %10112 = vmatmul.mubr.msk.f32.gmra.mrb[12].mxu1 %vm2588_vm1, %v6895_v41 }
 0xa9c   : > { %7407 = vmatprep.mubr.f32.mxu0 %v6924_v44  ;;  %10114 = vmatprep.mubr.msk.f32.mxu1 %vm11173_vm6, %v11170_v40 }
 0xa9f   : > { %7408 = vmatmul.mubr.f32.gmra.mrb[226].mxu0 %v6923_v39  ;;  %10115 = vmatmul.mubr.msk.f32.gmra.mrb[14].mxu1 %vm2588_vm1, %v6900_v6 }
 0xaa0   : > { %7412 = vmatprep.mubr.f32.mxu0 %v6929_v42  ;;  %10117 = vmatprep.mubr.msk.f32.mxu1 %vm11173_vm6, %v11170_v40 }
 0xaa3   : > { %7413 = vmatmul.mubr.f32.gmra.mrb[228].mxu0 %v6928_v10  ;;  %10118 = vmatmul.mubr.msk.f32.gmra.mrb[16].mxu1 %vm2588_vm1, %v6905_v16  ;;  %v7036_v16 = vpop.permute.xlu1 %7035 }
 0xaa4   : > { %10120 = vmatprep.mubr.msk.f32.mxu1 %vm11173_vm6, %v11170_v40  ;;  %10165 = vmatprep.mubr.msk.f32.mxu0 %vm11173_vm6, %v11170_v40 }
 0xaa7   : > { %10121 = vmatmul.mubr.msk.f32.gmra.mrb[18].mxu1 %vm2588_vm1, %v6910_v19 }
 0xaa8   : > { %10123 = vmatprep.mubr.msk.f32.mxu1 %vm11173_vm6, %v11170_v40 }
 0xaab   : > { %10124 = vmatmul.mubr.msk.f32.gmra.mrb[20].mxu1 %vm2588_vm1, %v6915_v20 }
 0xaac   : > { %10126 = vmatprep.mubr.msk.f32.mxu1 %vm11173_vm6, %v11170_v40 }
 0xaaf   : > { %10127 = vmatmul.mubr.msk.f32.gmra.mrb[22].mxu1 %vm2588_vm1, %v6920_v51 }
 0xab0   : > { %10129 = vmatprep.mubr.msk.f32.mxu1 %vm11173_vm6, %v11170_v40 }
 0xab3   : > { %10130 = vmatmul.mubr.msk.f32.gmra.mrb[24].mxu1 %vm2588_vm1, %v6925_v24 }
 0xab4   : > { %10132 = vmatprep.mubr.msk.f32.mxu1 %vm11173_vm6, %v11170_v40 }
 0xab7   : > { %10133 = vmatmul.mubr.msk.f32.gmra.mrb[26].mxu1 %vm2588_vm1, %v6930_v26 }
 0xb16   : > { %v9302_v37 = vpop.f32.mrb[224].mxu1 }
 0xb17   : > { %v9303_v28 = vpop.f32.mrb[225].mxu1 }
 0xb18   : > { %v9304_v30 = vadd.f32 %v9303_v28, %v9302_v37 }
 0xb1a   : > { %v9305_v31 = vpop.f32.mrb[226].mxu1  ;;  %v7205_v48 = vadd.f32 %v9304_v30, %v7021_v46 }
 0xb1b   : > { %v9306_v33 = vpop.f32.mrb[227].mxu1 }
 0xb1c   : > { %v9307_v43 = vadd.f32 %v9306_v33, %v9305_v31  ;;  %v7041_v31 = vpop.permute.xlu0 %7040 }
 0xb1e   : > { %v9308_v35 = vpop.f32.mrb[228].mxu1  ;;  %v7210_v11 = vadd.f32 %v9307_v43, %v7026_v22 }
 0xb1f   : > { %v9309_v36 = vpop.f32.mrb[229].mxu1 }
 0xb20   : > { %v9310_v45 = vadd.f32 %v9309_v36, %v9308_v35 }
 0xb22   : > { %v9311_v52 = vpop.f32.mrb[230].mxu1  ;;  %v7215_v6 = vadd.f32 %v9310_v45, %v7031_v34 }
 0xb23   : > { %v9312_v38 = vpop.f32.mrb[231].mxu1 }
 0xb24   : > { %v9313_v59 = vadd.f32 %v9312_v38, %v9311_v52 }
 0xb26   : > { %v9314_v29 = vpop.f32.mrb[232].mxu1  ;;  %v7220_v37 = vadd.f32 %v9313_v59, %v7036_v16 }
 0xb27   : > { %v9315_v62 = vpop.f32.mrb[233].mxu1 }
 0xb28   : > { %v9316_v63 = vadd.f32 %v9315_v62, %v9314_v29  ;;  %v7046_v62 = vpop.permute.xlu1 %7045 }
 0xb2a   : > { %v9317_v0 = vpop.f32.mrb[234].mxu1  ;;  %v7225_v45 = vadd.f32 %v9316_v63, %v7041_v31 }
 0xb2b   : > { %v9318_v54 = vpop.f32.mrb[235].mxu1 }
 0xb2c   : > { %v14499_v57 = vadd.f32 %v9318_v54, %v9317_v0 }
 0xb2e   : > { %v9320_v1 = vpop.f32.mrb[236].mxu1 }
 0xb2f   : > { %v9321_v3 = vpop.f32.mrb[237].mxu1 }
 0xb30   : > { %v14501_v5 = vadd.f32 %v9321_v3, %v9320_v1 }
 0xb32   : > { %v9323_v8 = vpop.f32.mrb[238].mxu1 }
 0xb33   : > { %v9324_v13 = vpop.f32.mrb[239].mxu1 }
 0xb34   : > { %v14503_v14 = vadd.f32 %v9324_v13, %v9323_v8  ;;  %v7230_v13 = vadd.f32 %v14499_v57, %v7046_v62 }
 0xb36   : > { %v9326_v47 = vpop.f32.mrb[240].mxu1 }
 0xb37   : > { %v9327_v55 = vpop.f32.mrb[241].mxu1 }
 0xb38   : > { %v14505_v49 = vadd.f32 %v9327_v55, %v9326_v47  ;;  %v7051_v55 = vpop.permute.xlu0 %7050 }
 0xb3a   : > { %v9329_v12 = vpop.f32.mrb[242].mxu1 }
 0xb3b   : > { %v9330_v56 = vpop.f32.mrb[243].mxu1 }
 0xb3c   : > { %v14507_v2 = vadd.f32 %v9330_v56, %v9329_v12 }
 0xb3e   : > { %v9332_v60 = vpop.f32.mrb[244].mxu1  ;;  %v9379_v61 = vpop.f32.mrb[200].mxu0 }
 0xb3f   : > { %v9333_v9 = vpop.f32.mrb[245].mxu1  ;;  %v9380_v18 = vpop.f32.mrb[201].mxu0 }
 0xb40   : > { %v14509_v27 = vadd.f32 %v9333_v9, %v9332_v60  ;;  %v9381_v15 = vadd.f32 %v9380_v18, %v9379_v61  ;;  %v7235_v9 = vadd.f32 %v14501_v5, %v7051_v55 }
 0xb42   : > { %v9335_v32 = vpop.f32.mrb[246].mxu1  ;;  %v9382_v4 = vpop.f32.mrb[202].mxu0  ;;  %v7345_v50 = vadd.f32 %v9381_v15, %v7205_v48 }
 0xb43   : > { %v9336_v25 = vpop.f32.mrb[247].mxu1  ;;  %v9383_v53 = vpop.f32.mrb[203].mxu0 }
 0xb44   : > { %v14511_v58 = vadd.f32 %v9336_v25, %v9335_v32  ;;  %v9384_v21 = vadd.f32 %v9383_v53, %v9382_v4  ;;  %v7056_v48 = vpop.permute.xlu1 %7055 }
 0xb46   : > { %v9338_v23 = vpop.f32.mrb[248].mxu1  ;;  %v9385_v7 = vpop.f32.mrb[204].mxu0  ;;  %v7350_v41 = vadd.f32 %v9384_v21, %v7210_v11  ;;  %v7240_v21 = vadd.f32 %v14503_v14, %v7056_v48 }
 0xb47   : > { %v9339_v44 = vpop.f32.mrb[249].mxu1  ;;  %v9386_v39 = vpop.f32.mrb[205].mxu0 }
 0xb48   : > { %v14513_v42 = vadd.f32 %v9339_v44, %v9338_v23  ;;  %v9387_v10 = vadd.f32 %v9386_v39, %v9385_v7  ;;  %v7061_v23 = vpop.permute.xlu0 %7060 }
 0xb4a   : > { %v9341_v19 = vpop.f32.mrb[250].mxu1  ;;  %v9388_v20 = vpop.f32.mrb[206].mxu0  ;;  %v7355_v51 = vadd.f32 %v9387_v10, %v7215_v6  ;;  %v7245_v10 = vadd.f32 %v14505_v49, %v7061_v23 }
 0xb4b   : > { %v9342_v24 = vpop.f32.mrb[251].mxu1  ;;  %v9389_v26 = vpop.f32.mrb[207].mxu0 }
 0xb4c   : > { %v14515_v28 = vadd.f32 %v9342_v24, %v9341_v19  ;;  %v9390_v30 = vadd.f32 %v9389_v26, %v9388_v20  ;;  %v7066_v19 = vpop.permute.xlu1 %7065 }
 0xb4e   : > { %v9344_v33 = vpop.f32.mrb[252].mxu1  ;;  %v9391_v43 = vpop.f32.mrb[208].mxu0  ;;  %v7360_v35 = vadd.f32 %v9390_v30, %v7220_v37 }
 0xb4f   : > { %v9345_v36 = vpop.f32.mrb[253].mxu1  ;;  %v9392_v52 = vpop.f32.mrb[209].mxu0 }
 0xb50   : > { %v14517_v38 = vadd.f32 %v9345_v36, %v9344_v33  ;;  %v9393_v29 = vadd.f32 %v9392_v52, %v9391_v43  ;;  %v7250_v43 = vadd.f32 %v14507_v2, %v7066_v19  ;;  %v7071_v52 = vpop.permute.xlu0 %7070 }
 0xb52   : > { %v9394_v0 = vpop.f32.mrb[210].mxu0  ;;  %v7484_v54 = vpop.f32.mrb[254].mxu1  ;;  %v7365_v1 = vadd.f32 %v9393_v29, %v7225_v45 }
 0xb53   : > { %v7485_v3 = vadd.f32 %v7484_v54, %v7345_v50  ;;  %v9395_v8 = vpop.f32.mrb[211].mxu0  ;;  %v10092_v59 = vpop.f32.mrb[255].mxu1  ;;  %v7255_v54 = vadd.f32 %v14509_v27, %v7071_v52 }
 0xb54   : > { %v9396_v47 = vadd.f32 %v9395_v8, %v9394_v0  ;;  %v7076_v8 = vpop.permute.xlu1 %7075 }
 0xb55   : > { %v7558_v15 = vmax.f32 %v7485_v3, 0.0 }
 0xb56   : > { %v9397_v12 = vpop.f32.mrb[212].mxu0  ;;  %v7489_v56 = vpop.f32.mrb[0].mxu1  ;;  %v7370_v46 = vadd.f32 %v9396_v47, %v7230_v13 }
 0xb57   : > { %v7490_v60 = vadd.f32 %v7489_v56, %v7350_v41  ;;  %v9398_v61 = vpop.f32.mrb[213].mxu0  ;;  %v10095_v63 = vpop.f32.mrb[1].mxu1 }
 0xb58   : > { %v9399_v18 = vadd.f32 %v9398_v61, %v9397_v12  ;;  %v7260_v61 = vadd.f32 %v14511_v58, %v7076_v8 }
 0xb59   : > { %v7559_v22 = vmax.f32 %v7490_v60, 0.0 }
 0xb5a   : > { %v9400_v32 = vpop.f32.mrb[214].mxu0  ;;  %v7494_v4 = vpop.f32.mrb[2].mxu1  ;;  %v7375_v50 = vadd.f32 %v9399_v18, %v7235_v9 }
 0xb5b   : > { %v10932_v25 = vpack.c.bf16 %v7559_v22, %v7558_v15  ;;  %v7495_v53 = vadd.f32 %v7494_v4, %v7355_v51  ;;  %v9401_v57 = vpop.f32.mrb[215].mxu0  ;;  %v10098_v11 = vpop.f32.mrb[3].mxu1 }
 0xb5c   : > { %v9402_v34 = vadd.f32 %v9401_v57, %v9400_v32  ;;  %v7081_v9 = vpop.permute.xlu0 %7080 }
 0xb5d   : > { %10933 = vmatpush3.bf16.msra.mxu0 %v10932_v25  ;;  %v7560_v20 = vmax.f32 %v7495_v53, 0.0  ;;  %v7265_v32 = vadd.f32 %v14513_v42, %v7081_v9  ;;  %v7086_v25 = vpop.permute.xlu1 %7085  ;;  %v7580_v9 = vld [vmem:[%s14640_s14 + $0x38] sm:$0xff] }
 0xb5e   : > { %v9403_v7 = vpop.f32.mrb[216].mxu0  ;;  %v7499_v41 = vpop.f32.mrb[4].mxu1  ;;  %10934 = vmatprep.subr.bf16.mxu0 %v11172_v17  ;;  %v7380_v5 = vadd.f32 %v9402_v34, %v7240_v21 }
 0xb5f   : > { %v7500_v44 = vadd.f32 %v7499_v41, %v7360_v35  ;;  %v9404_v39 = vpop.f32.mrb[217].mxu0  ;;  %v10101_v6 = vpop.f32.mrb[5].mxu1  ;;  %v7270_v41 = vadd.f32 %v14515_v28, %v7086_v25 }
 0xb60   : > { %v9405_v16 = vadd.f32 %v9404_v39, %v9403_v7  ;;  %v7091_v39 = vpop.permute.xlu0 %7090 }
 0xb61   : > { %v7561_v51 = vmax.f32 %v7500_v44, 0.0 }
 0xb62   : > { %v9406_v24 = vpop.f32.mrb[218].mxu0  ;;  %v7504_v26 = vpop.f32.mrb[6].mxu1  ;;  %v7385_v14 = vadd.f32 %v9405_v16, %v7245_v10 }
 0xb63   : > { %v10935_v37 = vpack.c.bf16 %v7561_v51, %v7560_v20  ;;  %v7505_v30 = vadd.f32 %v7504_v26, %v7365_v1  ;;  %v9407_v31 = vpop.f32.mrb[219].mxu0  ;;  %v10104_v33 = vpop.f32.mrb[7].mxu1  ;;  %v7275_v20 = vadd.f32 %v14517_v38, %v7091_v39 }
 0xb64   : > { %v9408_v36 = vadd.f32 %v9407_v31, %v9406_v24  ;;  %v7603_v25 = vpop.permute.xlu0 %7602 }
 0xb65   : > { %10936 = vmatpush3.bf16.msra.mxu0 %v10935_v37  ;;  %v7562_v1 = vmax.f32 %v7505_v30, 0.0 }
 0xb66   : > { %v9409_v35 = vpop.f32.mrb[220].mxu0  ;;  %v7509_v45 = vpop.f32.mrb[8].mxu1  ;;  %10937 = vmatprep.subr.bf16.mxu0 %v11172_v17  ;;  %v7390_v49 = vadd.f32 %v9408_v36, %v7250_v43 }
 0xb67   : > { %v7510_v29 = vadd.f32 %v7509_v45, %v7370_v46  ;;  %v9410_v62 = vpop.f32.mrb[221].mxu0  ;;  %v10107_v0 = vpop.f32.mrb[9].mxu1 }
 0xb68   : > { %v9411_v3 = vadd.f32 %v9410_v62, %v9409_v35 }
 0xb69   : > { %v7563_v59 = vmax.f32 %v7510_v29, 0.0 }
 0xb6a   : > { %v9412_v13 = vpop.f32.mrb[222].mxu0  ;;  %v7514_v47 = vpop.f32.mrb[10].mxu1  ;;  %v7395_v2 = vadd.f32 %v9411_v3, %v7255_v54 }
 0xb6b   : > { %v10938_v55 = vpack.c.bf16 %v7563_v59, %v7562_v1  ;;  %v7515_v12 = vadd.f32 %v7514_v47, %v7375_v50  ;;  %v9413_v56 = vpop.f32.mrb[223].mxu0  ;;  %v10110_v60 = vpop.f32.mrb[11].mxu1 }
 0xb6c   : > { %v9414_v63 = vadd.f32 %v9413_v56, %v9412_v13  ;;  %v7576_v56 = vld [vmem:[%s14640_s14 + $0x18] sm:$0xff]  ;;  %v7577_v60 = vld [vmem:[%s14640_s14 + $0x20] sm:$0xff] }
 0xb6d   : > { %10939 = vmatpush3.bf16.msra.mxu0 %v10938_v55  ;;  %v7564_v50 = vmax.f32 %v7515_v12, 0.0  ;;  %v7573_v55 = vld [vmem:[%s14640_s14] sm:$0xff]  ;;  %v7575_v12 = vld [vmem:[%s14640_s14 + $0x10] sm:$0xff] }
 0xb6e   : > { %v9415_v46 = vpop.f32.mrb[224].mxu0  ;;  %v7519_v18 = vpop.f32.mrb[12].mxu1  ;;  %10940 = vmatprep.subr.bf16.mxu0 %v11172_v17  ;;  %v7400_v27 = vadd.f32 %v9414_v63, %v7260_v61  ;;  %v7578_v61 = vld [vmem:[%s14640_s14 + $0x28] sm:$0xff]  ;;  %v7579_v63 = vld [vmem:[%s14640_s14 + $0x30] sm:$0xff] }
 0xb6f   : > { %v7520_v48 = vadd.f32 %v7519_v18, %v7380_v5  ;;  %v9416_v15 = vpop.f32.mrb[225].mxu0  ;;  %v10113_v22 = vpop.f32.mrb[13].mxu1  ;;  %v7582_v18 = vld [vmem:[%s14640_s14 + $0x48] sm:$0xff] }
 0xb70   : > { %v9417_v4 = vadd.f32 %v9416_v15, %v9415_v46  ;;  %v7581_v46 = vld [vmem:[%s14640_s14 + $0x40] sm:$0xff] }
 0xb71   : > { %v7565_v53 = vmax.f32 %v7520_v48, 0.0  ;;  %v7814_v48 = vld [vmem:[%s14642_s16] sm:$0xff] }
 0xb72   : > { %v9418_v57 = vpop.f32.mrb[226].mxu0  ;;  %v7524_v11 = vpop.f32.mrb[14].mxu1  ;;  %v7405_v58 = vadd.f32 %v9417_v4, %v7265_v32 }
 0xb73   : > { %v10941_v21 = vpack.c.bf16 %v7565_v53, %v7564_v50  ;;  %v7525_v34 = vadd.f32 %v7524_v11, %v7385_v14  ;;  %v9419_v23 = vpop.f32.mrb[227].mxu0  ;;  %v10116_v7 = vpop.f32.mrb[15].mxu1 }
 0xb74   : > { %v9420_v44 = vadd.f32 %v9419_v23, %v9418_v57  ;;  %v7598_v32 = vpop.permute.xlu1 %7597 }
 0xb75   : > { %10942 = vmatpush3.bf16.msra.mxu0 %v10941_v21  ;;  %v7566_v24 = vmax.f32 %v7525_v34, 0.0 }
 0xb76   : > { %v9421_v5 = vpop.f32.mrb[228].mxu0  ;;  %v7529_v6 = vpop.f32.mrb[16].mxu1  ;;  %10943 = vmatprep.subr.bf16.mxu0 %v11172_v17  ;;  %v7410_v42 = vadd.f32 %v9420_v44, %v7270_v41 }
 0xb77   : > { %v7530_v10 = vadd.f32 %v7529_v6, %v7390_v49  ;;  %v9422_v16 = vpop.f32.mrb[229].mxu0  ;;  %v10119_v19 = vpop.f32.mrb[17].mxu1 }
 0xb78   : > { %v9423_v51 = vadd.f32 %v9422_v16, %v9421_v5  ;;  %v7608_v23 = vpop.permute.xlu1 %7607  ;;  %v7613_v41 = vpop.permute.xlu0 %7612 }
 0xb79   : > { %v7567_v26 = vmax.f32 %v7530_v10, 0.0 }
 0xb7a   : > { %v7534_v14 = vpop.f32.mrb[18].mxu1  ;;  %v7415_v37 = vadd.f32 %v9423_v51, %v7275_v20 }
 0xb7b   : > { %v10944_v30 = vpack.c.bf16 %v7567_v26, %v7566_v24  ;;  %v7535_v28 = vadd.f32 %v7534_v14, %v7395_v2  ;;  %v10122_v31 = vpop.f32.mrb[19].mxu1 }
 0xb7c   : > { %v7618_v20 = vpop.permute.xlu1 %7617  ;;  %v7623_v24 = vpop.permute.xlu0 %7622 }
 0xb7d   : > { %10945 = vmatpush3.bf16.msra.mxu0 %v10944_v30  ;;  %v7568_v52 = vmax.f32 %v7535_v28, 0.0 }
 0xb7e   : > { %v7539_v33 = vpop.f32.mrb[20].mxu1  ;;  %10946 = vmatprep.subr.bf16.mxu0 %v11172_v17 }
 0xb7f   : > { %v7540_v43 = vadd.f32 %v7539_v33, %v7400_v27  ;;  %v10125_v36 = vpop.f32.mrb[21].mxu1  ;;  %v7583_v27 = vld [vmem:[%s14640_s14 + $0x50] sm:$0xf] }
 0xb80   : > { %v7628_v36 = vpop.permute.xlu1 %7627 }
 0xb81   : > { %v7569_v35 = vmax.f32 %v7540_v43, 0.0 }
 0xb82   : > { %v7544_v45 = vpop.f32.mrb[22].mxu1 }
 0xb83   : > { %v10947_v49 = vpack.c.bf16 %v7569_v35, %v7568_v52  ;;  %v7545_v29 = vadd.f32 %v7544_v45, %v7405_v58  ;;  %v10128_v38 = vpop.f32.mrb[23].mxu1  ;;  %v7633_v35 = vpop.permute.xlu0 %7632 }
 0xb85   : > { %10948 = vmatpush3.bf16.msra.mxu0 %v10947_v49  ;;  %v7570_v3 = vmax.f32 %v7545_v29, 0.0 }
 0xb86   : > { %v7549_v62 = vpop.f32.mrb[24].mxu1  ;;  %10949 = vmatprep.subr.bf16.mxu0 %v11172_v17  ;;  %v7574_v17 = vld [vmem:[%s14640_s14 + $0x8] sm:$0xff] }
 0xb87   : > { %v7550_v0 = vadd.f32 %v7549_v62, %v7410_v42  ;;  %v10131_v54 = vpop.f32.mrb[25].mxu1 }
 0xb89   : > { %v7571_v8 = vmax.f32 %v7550_v0, 0.0 }
 0xb8a   : > { %v7554_v1 = vpop.f32.mrb[26].mxu1 }
 0xb8b   : > { %v10950_v59 = vpack.c.bf16 %v7571_v8, %v7570_v3  ;;  %v7555_v13 = vadd.f32 %v7554_v1, %v7415_v37  ;;  %v10134_v47 = vpop.f32.mrb[27].mxu1  ;;  %v7638_v8 = vpop.permute.xlu1 %7637 }
 0xb8d   : > { %10951 = vmatpush3.bf16.msra.mxu0 %v10950_v59  ;;  %v7572_v2 = vmax.f32 %v7555_v13, 0.0  ;;  %v7643_v59 = vpop.permute.xlu0 %7642 }
 0xb8e   : > { %10163 = vmatprep.subr.mxu0 %v11170_v40 }
 0xb91   : > { %10164 = vmatpush3.msra.mxu0 %v7572_v2 }
 0xb92   : > { %10166 = vmatmul.mubr.msk.f32.vlgmr.msra.gmra.mrb[230].mxu0 %vm3937_vm3, %v7573_v55 }
 0xb93   : > { %10168 = vmatprep.mubr.msk.f32.mxu0 %vm11173_vm6, %v11170_v40 }
 0xb96   : > { %10169 = vmatmul.mubr.msk.f32.gmra.mrb[232].mxu0 %vm3937_vm3, %v7574_v17 }
 0xb97   : > { %10171 = vmatprep.mubr.msk.f32.mxu0 %vm11173_vm6, %v11170_v40 }
 0xb9a   : > { %10172 = vmatmul.mubr.msk.f32.gmra.mrb[234].mxu0 %vm3937_vm3, %v7575_v12  ;;  %v7648_v12 = vpop.permute.xlu1 %7647 }
 0xb9b   : > { %10174 = vmatprep.mubr.msk.f32.mxu0 %vm11173_vm6, %v11170_v40 }
 0xb9e   : > { %10175 = vmatmul.mubr.msk.f32.gmra.mrb[236].mxu0 %vm3937_vm3, %v7576_v56 }
 0xb9f   : > { %10177 = vmatprep.mubr.msk.f32.mxu0 %vm11173_vm6, %v11170_v40 }
 0xba2   : > { %10178 = vmatmul.mubr.msk.f32.gmra.mrb[238].mxu0 %vm3937_vm3, %v7577_v60 }
 0xba3   : > { %10180 = vmatprep.mubr.msk.f32.mxu0 %vm11173_vm6, %v11170_v40 }
 0xba6   : > { %10181 = vmatmul.mubr.msk.f32.gmra.mrb[240].mxu0 %vm3937_vm3, %v7578_v61 }
 0xba7   : > { %10183 = vmatprep.mubr.msk.f32.mxu0 %vm11173_vm6, %v11170_v40 }
 0xbaa   : > { %10184 = vmatmul.mubr.msk.f32.gmra.mrb[242].mxu0 %vm3937_vm3, %v7579_v63 }
 0xbab   : > { %10186 = vmatprep.mubr.msk.f32.mxu0 %vm11173_vm6, %v11170_v40 }
 0xbae   : > { %10187 = vmatmul.mubr.msk.f32.gmra.mrb[244].mxu0 %vm3937_vm3, %v7580_v9 }
 0xbaf   : > { %10189 = vmatprep.mubr.msk.f32.mxu0 %vm11173_vm6, %v11170_v40 }
 0xbb2   : > { %10190 = vmatmul.mubr.msk.f32.gmra.mrb[246].mxu0 %vm3937_vm3, %v7581_v46  ;;  %v7815_v46 = vld [vmem:[%s14642_s16 + $0x8] sm:$0x3] }
 0xbb3   : > { %10192 = vmatprep.mubr.msk.f32.mxu0 %vm11173_vm6, %v11170_v40 }
 0xbb6   : > { %10193 = vmatmul.mubr.msk.f32.gmra.mrb[248].mxu0 %vm3937_vm3, %v7582_v18  ;;  %v7826_v18 = vpop.permute.xlu1 %7825 }
 0xbb7   : > { %10195 = vmatprep.mubr.msk.f32.mxu0 %vm11173_vm6, %v11170_v40 }
 0xbba   : > { %10196 = vmatmul.mubr.msk.f32.gmra.mrb[250].mxu0 %vm3937_vm3, %v7583_v27 }
 0xbbb   : > { %10220 = vmatprep.mubr.msk.f32.mxu0 %vm7828_vm7, %v7814_v48  ;;  %v7821_v48 = vpop.permute.xlu0 %7820 }
 0xc65   : > { %v7749_v15 = vpop.f32.mrb[230].mxu0 }
 0xc66   : > { %v10167_v22 = vpop.f32.mrb[231].mxu0  ;;  %v7750_v4 = vadd.f32 %v7749_v15, %v7598_v32 }
 0xc68   : > { %v7803_v57 = vmax.f32 %v7750_v4, 0.0 }
 0xc69   : > { %v7754_v50 = vpop.f32.mrb[232].mxu0 }
 0xc6a   : > { %v7755_v40 = vadd.f32 %v7754_v50, %v7603_v25  ;;  %v10170_v53 = vpop.f32.mrb[233].mxu0 }
 0xc6c   : > { %v7804_v11 = vmax.f32 %v7755_v40, 0.0 }
 0xc6d   : > { %v7759_v58 = vpop.f32.mrb[234].mxu0 }
 0xc6e   : > { %v10952_v21 = vpack.c.bf16 %v7804_v11, %v7803_v57  ;;  %v10173_v34 = vpop.f32.mrb[235].mxu0  ;;  %v7760_v7 = vadd.f32 %v7759_v58, %v7608_v23 }
 0xc70   : > { %10953 = vmatprep.subr.bf16.mxu0 %v10952_v21  ;;  %v7805_v6 = vmax.f32 %v7760_v7, 0.0 }
 0xc71   : > { %v7764_v44 = vpop.f32.mrb[236].mxu0  ;;  %10955 = vmatpush3.bf16.msra.mxu0 %v10952_v21 }
 0xc72   : > { %v7765_v39 = vadd.f32 %v7764_v44, %v7613_v41  ;;  %v10176_v5 = vpop.f32.mrb[237].mxu0 }
 0xc74   : > { %v7806_v42 = vmax.f32 %v7765_v39, 0.0 }
 0xc75   : > { %v7769_v10 = vpop.f32.mrb[238].mxu0 }
 0xc76   : > { %v10956_v16 = vpack.c.bf16 %v7806_v42, %v7805_v6  ;;  %v10179_v19 = vpop.f32.mrb[239].mxu0  ;;  %v7770_v51 = vadd.f32 %v7769_v10, %v7618_v20 }
 0xc78   : > { %10957 = vmatprep.subr.bf16.mxu0 %v10956_v16  ;;  %v7807_v30 = vmax.f32 %v7770_v51, 0.0 }
 0xc79   : > { %v7774_v26 = vpop.f32.mrb[240].mxu0  ;;  %10959 = vmatpush3.bf16.msra.mxu0 %v10956_v16 }
 0xc7a   : > { %v7775_v14 = vadd.f32 %v7774_v26, %v7623_v24  ;;  %v10182_v37 = vpop.f32.mrb[241].mxu0 }
 0xc7c   : > { %v7808_v28 = vmax.f32 %v7775_v14, 0.0 }
 0xc7d   : > { %v7779_v31 = vpop.f32.mrb[242].mxu0 }
 0xc7e   : > { %v10960_v33 = vpack.c.bf16 %v7808_v28, %v7807_v30  ;;  %v10185_v43 = vpop.f32.mrb[243].mxu0  ;;  %v7780_v52 = vadd.f32 %v7779_v31, %v7628_v36 }
 0xc80   : > { %10961 = vmatprep.subr.bf16.mxu0 %v10960_v33  ;;  %v7809_v38 = vmax.f32 %v7780_v52, 0.0 }
 0xc81   : > { %v7784_v45 = vpop.f32.mrb[244].mxu0  ;;  %10963 = vmatpush3.bf16.msra.mxu0 %v10960_v33 }
 0xc82   : > { %v7785_v49 = vadd.f32 %v7784_v45, %v7633_v35  ;;  %v10188_v29 = vpop.f32.mrb[245].mxu0 }
 0xc84   : > { %v7810_v62 = vmax.f32 %v7785_v49, 0.0 }
 0xc85   : > { %v7789_v0 = vpop.f32.mrb[246].mxu0 }
 0xc86   : > { %v10964_v54 = vpack.c.bf16 %v7810_v62, %v7809_v38  ;;  %v10191_v3 = vpop.f32.mrb[247].mxu0  ;;  %v7790_v1 = vadd.f32 %v7789_v0, %v7638_v8 }
 0xc88   : > { %10965 = vmatprep.subr.bf16.mxu0 %v10964_v54  ;;  %v7811_v55 = vmax.f32 %v7790_v1, 0.0 }
 0xc89   : > { %v7794_v13 = vpop.f32.mrb[248].mxu0  ;;  %10967 = vmatpush3.bf16.msra.mxu0 %v10964_v54 }
 0xc8a   : > { %v7795_v47 = vadd.f32 %v7794_v13, %v7643_v59  ;;  %v10194_v2 = vpop.f32.mrb[249].mxu0 }
 0xc8c   : > { %v7812_v17 = vmax.f32 %v7795_v47, 0.0 }
 0xc8d   : > { %v7799_v56 = vpop.f32.mrb[250].mxu0 }
 0xc8e   : > { %v10968_v60 = vpack.c.bf16 %v7812_v17, %v7811_v55  ;;  %v7800_v61 = vadd.f32 %v7799_v56, %v7648_v12  ;;  %v10197_v63 = vpop.f32.mrb[251].mxu0 }
 0xc90   : > { %v7813_v9 = vmax.f32 %v7800_v61, 0.0  ;;  %10969 = vmatprep.subr.bf16.mxu0 %v10968_v60 }
 0xc91   : > { %10971 = vmatpush3.bf16.msra.mxu0 %v10968_v60 }
 0xc92   : > { %10218 = vmatprep.subr.msk.mxu0 %vm7835_vm8, %v7813_v9 }
 0xc95   : > { %10219 = vmatpush3.msk.msra.mxu0 %vm7835_vm8, %v7813_v9 }
 0xc96   : > { %10221 = vmatmul.mubr.msk.f32.vlgmr.msra.gmra.mrb[252].mxu0 %vm7828_vm7, %v7815_v46 }
 0xd69   : > { %v10222_v27 = vpop.f32.mrb[252].mxu0 }
 0xd6a   : > { %v7911_v15 = vadd.f32 %v10222_v27, %v7826_v18  ;;  %v7905_v22 = vpop.f32.mrb[253].mxu0 }
 0xd6b   : > { %v7906_v32 = vadd.f32 %v7905_v22, %v7821_v48 }
 0xd6c   : > { %7916 = vst.msk [vmem:[%s610_s19 + $0x8] sm:$0x3] %vm7915_vm9, %v7911_v15 }
 0xd6d   : > { %7914 = vst.msk [vmem:[%s610_s19] sm:$0xff] %vm6123_vm5, %v7906_v32 }
 0xd6e PF: > { %s14658_s27 = sld [smem:[#allocation7_spill]]  ;;  %s14659_s28 = sld [smem:[#allocation8_spill]] }
 0xd6f   : > { %p25_p9 = scmp.ge.s32.totalorder %s11286_s0, 4   ;;  %s14660_s29 = smov %s11286_s0 }
 0xd71   :  { %27 = sbr.rel (!%p25_p9) target bundleno = 6 (0x6), region = 165 }

</bundles_post_ra>
